<compile_context>
chip_gen: v6e
topology: v6e:2x2x1
jax: 0.10.0
libtpu: 0.0.40
codegen_flags: <defaults>
</compile_context>

<pallas_src>
import numpy as np
import jax
import jax.numpy as jnp
from jax import lax
from jax.experimental import pallas as pl
from jax.experimental.pallas import tpu as pltpu

_HI = lax.Precision.HIGHEST


def _tree_sum(terms):
    terms = list(terms)
    while len(terms) > 1:
        nxt = [a + b for a, b in zip(terms[0::2], terms[1::2])]
        if len(terms) % 2:
            nxt.append(terms[-1])
        terms = nxt
    return terms[0]


def _nn_kernel(taps1_ref, w1r_ref, b1r_ref, dh1_ref, dw1_ref,
               w2r_ref, b2r_ref, dh2_ref, dw2_ref, wlr_ref, blr_ref,
               out_ref):
    # ---- conv1: 4 output channels lane-packed -> (28, 112), 9 tree-summed MACs ----
    a1 = _tree_sum([taps1_ref[t] * w1r_ref[t] for t in range(9)]) + b1r_ref[...]

    # ---- maxpool1 (+ zero-pad + 4-way rotated replication for conv2) ----
    # 2 row-select matmuls + 4 column-select matmuls, all channels at once.
    lh = [jnp.dot(dh1_ref[d], a1, preferred_element_type=jnp.float32, precision=_HI)
          for d in range(2)]
    cands = [jnp.dot(lh[di], dw1_ref[dj], preferred_element_type=jnp.float32, precision=_HI)
             for di in range(2) for dj in range(2)]
    x2w = jnp.maximum(jnp.maximum(cands[0], cands[1]),
                      jnp.maximum(cands[2], cands[3]))            # (16, 256)
    # x2w[1+i, 64*r + 16*oc + 1 + j] = pooled1[(oc + r) % 4][i, j], zero padding elsewhere.

    # ---- conv2: 4 output channels lane-packed -> (14, 62), 36 tree-summed MACs ----
    t2 = []
    for r in range(4):            # rotation r: output channel oc reads input (oc + r) % 4
        for ki in range(3):
            for kj in range(3):
                idx = (r * 3 + ki) * 3 + kj
                c0 = 64 * r + kj
                t2.append(x2w[ki:ki + 14, c0:c0 + 62] * w2r_ref[idx])
    acc2 = _tree_sum(t2) + b2r_ref[...]                           # (14, 62)
    # acc2[i, 16*oc + j] = conv2 output channel oc at (i, j); junk lanes are exactly 0.

    # ---- maxpool2 -> compact (7, 28): channel oc in lanes [7oc, 7oc+7) ----
    lh2 = [jnp.dot(dh2_ref[d], acc2, preferred_element_type=jnp.float32, precision=_HI)
           for d in range(2)]
    c2 = [jnp.dot(lh2[di], dw2_ref[dj], preferred_element_type=jnp.float32, precision=_HI)
          for di in range(2) for dj in range(2)]
    p2 = jnp.maximum(jnp.maximum(c2[0], c2[1]), jnp.maximum(c2[2], c2[3]))   # (7, 28)

    # ---- linear 196 -> 42: 7 matmuls (1,28)@(28,42), tree-summed ----
    lt = [jnp.dot(p2[i:i + 1, :], wlr_ref[i], preferred_element_type=jnp.float32, precision=_HI)
          for i in range(7)]
    out_ref[...] = _tree_sum(lt) + blr_ref[...]


def _selectors():
    # pool1 row selector: pooled row i -> padded row 1+i (rows 0, 15 stay zero)
    dh1 = np.zeros((2, 16, 28), np.float32)
    for di in range(2):
        for i in range(14):
            dh1[di, 1 + i, 2 * i + di] = 1.0
    # pool1 column selector: pooled column j of conv1-channel ic goes to lane
    # 64*r + 16*((ic - r) % 4) + 1 + j for every rotation r (fuses the pooling column
    # pick, the zero padding, and the 4 rotated copies conv2 needs).
    dw1 = np.zeros((2, 112, 256), np.float32)
    for dj in range(2):
        for ic in range(4):
            for j in range(14):
                for r in range(4):
                    oc = (ic - r) % 4
                    dw1[dj, 28 * ic + 2 * j + dj, 64 * r + 16 * oc + 1 + j] = 1.0
    # pool2 selectors: (14, 62) packed conv2 output -> compact (7, 28)
    dh2 = np.zeros((2, 7, 14), np.float32)
    for di in range(2):
        for i in range(7):
            dh2[di, i, 2 * i + di] = 1.0
    dw2 = np.zeros((2, 62, 28), np.float32)
    for dj in range(2):
        for oc in range(4):
            for j in range(7):
                dw2[dj, 16 * oc + 2 * j + dj, 7 * oc + j] = 1.0
    return dh1, dw1, dh2, dw2


@jax.jit
def nn_forward(x, params):
    """x: (1, 1, 28, 28) float32 NCHW. Returns (1, 42) float32."""
    w1, b1, w2, b2, wl, bl = params

    # conv1 input patches, lane-tiled x4 (one copy per output channel): (9, 28, 112)
    xpad = jnp.pad(x[0, 0], ((1, 1), (1, 1)))                    # (30, 30)
    taps1 = jnp.stack([xpad[ki:ki + 28, kj:kj + 28]
                       for ki in range(3) for kj in range(3)])    # (9, 28, 28)
    taps1 = jnp.tile(taps1, (1, 1, 4))                            # (9, 28, 112)

    # conv1 weight rows (9, 1, 112): [3ki+kj, 0, 28oc + c] = w1[oc, 0, ki, kj]
    w1rows = jnp.repeat(jnp.transpose(w1[:, 0], (1, 2, 0)).reshape(9, 4),
                        28, axis=1).reshape(9, 1, 112)
    b1row = jnp.repeat(b1, 28).reshape(1, 112)

    # conv2 weight rows (36, 1, 62): [(r*3+ki)*3+kj, 0, 16oc + j] = w2[oc, (oc+r)%4, ki, kj]
    oc_idx = jnp.arange(4)
    w2g = jnp.stack([w2[oc_idx, (oc_idx + r) % 4] for r in range(4)], axis=0)  # (r, oc, 3, 3)
    w2g = jnp.transpose(w2g, (0, 2, 3, 1))                                     # (r, ki, kj, oc)
    w2rows = jnp.pad(jnp.repeat(w2g[..., None], 14, axis=-1),
                     ((0, 0), (0, 0), (0, 0), (0, 0), (0, 2)))                 # (r,ki,kj,oc,16)
    w2rows = w2rows.reshape(36, 64)[:, :62].reshape(36, 1, 62)
    b2row = jnp.pad(jnp.repeat(b2[:, None], 14, axis=1),
                    ((0, 0), (0, 2))).reshape(1, 64)[:, :62]                   # (1, 62)

    # linear weight rows (7, 28, 42): [i, 7oc + j, n] = wl[n, 49oc + 7i + j]
    wlrows = jnp.transpose(wl.reshape(42, 4, 7, 7), (2, 1, 3, 0)).reshape(7, 28, 42)
    blrow = bl.reshape(1, 42)

    dh1, dw1, dh2, dw2 = _selectors()
    vmem = pl.BlockSpec(memory_space=pltpu.MemorySpace.VMEM)
    return pl.pallas_call(
        _nn_kernel,
        out_shape=jax.ShapeDtypeStruct((1, 42), jnp.float32),
        in_specs=[vmem] * 11,
        out_specs=vmem,
    )(taps1, w1rows, b1row, jnp.asarray(dh1), jnp.asarray(dw1),
      w2rows, b2row, jnp.asarray(dh2), jnp.asarray(dw2), wlrows, blrow)


def _reference_numpy(x, params):
    w1, b1, w2, b2, wl, bl = params

    def conv3x3(xin, w, b):
        cin, h, wd = xin.shape
        cout = w.shape[0]
        xp = np.pad(xin, ((0, 0), (1, 1), (1, 1)))
        out = np.zeros((cout, h, wd), np.float32)
        for oc in range(cout):
            acc = np.full((h, wd), b[oc], np.float32)
            for ic in range(cin):
                for ki in range(3):
                    for kj in range(3):
                        acc += w[oc, ic, ki, kj] * xp[ic, ki:ki + h, kj:kj + wd]
            out[oc] = acc
        return out

    def maxpool2(xin):
        c, h, wd = xin.shape
        return xin.reshape(c, h // 2, 2, wd // 2, 2).max(axis=(2, 4))

    a = conv3x3(x[0], w1, b1)
    a = maxpool2(a)
    a = conv3x3(a, w2, b2)
    a = maxpool2(a)
    flat = a.reshape(1, -1)
    return flat @ wl.T + bl[None, :]


if __name__ == "__main__":
    key = jax.random.PRNGKey(0)
    ks = jax.random.split(key, 7)

    def uni(k, shape, fan_in):
        bound = 1.0 / np.sqrt(fan_in)
        return jax.random.uniform(k, shape, jnp.float32, -bound, bound)

    # Deterministic parameter init (same shapes as the PyTorch module).
    w1 = uni(ks[0], (4, 1, 3, 3), 9)
    b1 = uni(ks[1], (4,), 9)
    w2 = uni(ks[2], (4, 4, 3, 3), 36)
    b2 = uni(ks[3], (4,), 36)
    wl = uni(ks[4], (42, 4 * 7 * 7), 4 * 7 * 7)
    bl = uni(ks[5], (42,), 4 * 7 * 7)
    x = jax.random.normal(ks[6], (1, 1, 28, 28), jnp.float32)

    params = (w1, b1, w2, b2, wl, bl)
    out = nn_forward(x, params)
    out = jax.block_until_ready(out)

    ref = _reference_numpy(np.asarray(x), [np.asarray(p) for p in params])
    assert out.shape == (1, 42)
    assert np.allclose(np.asarray(out), ref, atol=1e-3, rtol=1e-3), (
        f"max abs diff {np.max(np.abs(np.asarray(out) - ref))}")
    print("KERNEL_OK")
</pallas_src>

<mosaic_0001>
module attributes {stable_mosaic.version = 11 : i64} {
  func.func @_nn_kernel(%arg0: memref<9x28x112xf32, #tpu.memory_space<vmem>>, %arg1: memref<9x1x112xf32, #tpu.memory_space<vmem>>, %arg2: memref<1x112xf32, #tpu.memory_space<vmem>>, %arg3: memref<2x16x28xf32, #tpu.memory_space<vmem>>, %arg4: memref<2x112x256xf32, #tpu.memory_space<vmem>>, %arg5: memref<36x1x62xf32, #tpu.memory_space<vmem>>, %arg6: memref<1x62xf32, #tpu.memory_space<vmem>>, %arg7: memref<2x7x14xf32, #tpu.memory_space<vmem>>, %arg8: memref<2x62x28xf32, #tpu.memory_space<vmem>>, %arg9: memref<7x28x42xf32, #tpu.memory_space<vmem>>, %arg10: memref<1x42xf32, #tpu.memory_space<vmem>>, %arg11: memref<1x42xf32, #tpu.memory_space<vmem>>) attributes {dimension_semantics = [], scalar_prefetch = 0 : i64, scratch_operands = 0 : i64, tpu.core_type = #tpu.core_type<tc>} {
    %c0 = arith.constant 0 : index
    %c0_0 = arith.constant 0 : index
    %c0_1 = arith.constant 0 : index
    %0 = vector.load %arg0[%c0, %c0_0, %c0_1] : memref<9x28x112xf32, #tpu.memory_space<vmem>>, vector<1x28x112xf32>
    %1 = vector.shape_cast %0 : vector<1x28x112xf32> to vector<28x112xf32>
    %c0_2 = arith.constant 0 : index
    %c0_3 = arith.constant 0 : index
    %c0_4 = arith.constant 0 : index
    %2 = vector.load %arg1[%c0_2, %c0_3, %c0_4] : memref<9x1x112xf32, #tpu.memory_space<vmem>>, vector<1x1x112xf32>
    %3 = vector.shape_cast %2 : vector<1x1x112xf32> to vector<1x112xf32>
    %4 = vector.broadcast %3 : vector<1x112xf32> to vector<28x112xf32>
    %5 = arith.mulf %1, %4 : vector<28x112xf32>
    %c1 = arith.constant 1 : index
    %c0_5 = arith.constant 0 : index
    %c0_6 = arith.constant 0 : index
    %6 = vector.load %arg0[%c1, %c0_5, %c0_6] : memref<9x28x112xf32, #tpu.memory_space<vmem>>, vector<1x28x112xf32>
    %7 = vector.shape_cast %6 : vector<1x28x112xf32> to vector<28x112xf32>
    %c1_7 = arith.constant 1 : index
    %c0_8 = arith.constant 0 : index
    %c0_9 = arith.constant 0 : index
    %8 = vector.load %arg1[%c1_7, %c0_8, %c0_9] : memref<9x1x112xf32, #tpu.memory_space<vmem>>, vector<1x1x112xf32>
    %9 = vector.shape_cast %8 : vector<1x1x112xf32> to vector<1x112xf32>
    %10 = vector.broadcast %9 : vector<1x112xf32> to vector<28x112xf32>
    %11 = arith.mulf %7, %10 : vector<28x112xf32>
    %c2 = arith.constant 2 : index
    %c0_10 = arith.constant 0 : index
    %c0_11 = arith.constant 0 : index
    %12 = vector.load %arg0[%c2, %c0_10, %c0_11] : memref<9x28x112xf32, #tpu.memory_space<vmem>>, vector<1x28x112xf32>
    %13 = vector.shape_cast %12 : vector<1x28x112xf32> to vector<28x112xf32>
    %c2_12 = arith.constant 2 : index
    %c0_13 = arith.constant 0 : index
    %c0_14 = arith.constant 0 : index
    %14 = vector.load %arg1[%c2_12, %c0_13, %c0_14] : memref<9x1x112xf32, #tpu.memory_space<vmem>>, vector<1x1x112xf32>
    %15 = vector.shape_cast %14 : vector<1x1x112xf32> to vector<1x112xf32>
    %16 = vector.broadcast %15 : vector<1x112xf32> to vector<28x112xf32>
    %17 = arith.mulf %13, %16 : vector<28x112xf32>
    %c3 = arith.constant 3 : index
    %c0_15 = arith.constant 0 : index
    %c0_16 = arith.constant 0 : index
    %18 = vector.load %arg0[%c3, %c0_15, %c0_16] : memref<9x28x112xf32, #tpu.memory_space<vmem>>, vector<1x28x112xf32>
    %19 = vector.shape_cast %18 : vector<1x28x112xf32> to vector<28x112xf32>
    %c3_17 = arith.constant 3 : index
    %c0_18 = arith.constant 0 : index
    %c0_19 = arith.constant 0 : index
    %20 = vector.load %arg1[%c3_17, %c0_18, %c0_19] : memref<9x1x112xf32, #tpu.memory_space<vmem>>, vector<1x1x112xf32>
    %21 = vector.shape_cast %20 : vector<1x1x112xf32> to vector<1x112xf32>
    %22 = vector.broadcast %21 : vector<1x112xf32> to vector<28x112xf32>
    %23 = arith.mulf %19, %22 : vector<28x112xf32>
    %c4 = arith.constant 4 : index
    %c0_20 = arith.constant 0 : index
    %c0_21 = arith.constant 0 : index
    %24 = vector.load %arg0[%c4, %c0_20, %c0_21] : memref<9x28x112xf32, #tpu.memory_space<vmem>>, vector<1x28x112xf32>
    %25 = vector.shape_cast %24 : vector<1x28x112xf32> to vector<28x112xf32>
    %c4_22 = arith.constant 4 : index
    %c0_23 = arith.constant 0 : index
    %c0_24 = arith.constant 0 : index
    %26 = vector.load %arg1[%c4_22, %c0_23, %c0_24] : memref<9x1x112xf32, #tpu.memory_space<vmem>>, vector<1x1x112xf32>
    %27 = vector.shape_cast %26 : vector<1x1x112xf32> to vector<1x112xf32>
    %28 = vector.broadcast %27 : vector<1x112xf32> to vector<28x112xf32>
    %29 = arith.mulf %25, %28 : vector<28x112xf32>
    %c5 = arith.constant 5 : index
    %c0_25 = arith.constant 0 : index
    %c0_26 = arith.constant 0 : index
    %30 = vector.load %arg0[%c5, %c0_25, %c0_26] : memref<9x28x112xf32, #tpu.memory_space<vmem>>, vector<1x28x112xf32>
    %31 = vector.shape_cast %30 : vector<1x28x112xf32> to vector<28x112xf32>
    %c5_27 = arith.constant 5 : index
    %c0_28 = arith.constant 0 : index
    %c0_29 = arith.constant 0 : index
    %32 = vector.load %arg1[%c5_27, %c0_28, %c0_29] : memref<9x1x112xf32, #tpu.memory_space<vmem>>, vector<1x1x112xf32>
    %33 = vector.shape_cast %32 : vector<1x1x112xf32> to vector<1x112xf32>
    %34 = vector.broadcast %33 : vector<1x112xf32> to vector<28x112xf32>
    %35 = arith.mulf %31, %34 : vector<28x112xf32>
    %c6 = arith.constant 6 : index
    %c0_30 = arith.constant 0 : index
    %c0_31 = arith.constant 0 : index
    %36 = vector.load %arg0[%c6, %c0_30, %c0_31] : memref<9x28x112xf32, #tpu.memory_space<vmem>>, vector<1x28x112xf32>
    %37 = vector.shape_cast %36 : vector<1x28x112xf32> to vector<28x112xf32>
    %c6_32 = arith.constant 6 : index
    %c0_33 = arith.constant 0 : index
    %c0_34 = arith.constant 0 : index
    %38 = vector.load %arg1[%c6_32, %c0_33, %c0_34] : memref<9x1x112xf32, #tpu.memory_space<vmem>>, vector<1x1x112xf32>
    %39 = vector.shape_cast %38 : vector<1x1x112xf32> to vector<1x112xf32>
    %40 = vector.broadcast %39 : vector<1x112xf32> to vector<28x112xf32>
    %41 = arith.mulf %37, %40 : vector<28x112xf32>
    %c7 = arith.constant 7 : index
    %c0_35 = arith.constant 0 : index
    %c0_36 = arith.constant 0 : index
    %42 = vector.load %arg0[%c7, %c0_35, %c0_36] : memref<9x28x112xf32, #tpu.memory_space<vmem>>, vector<1x28x112xf32>
    %43 = vector.shape_cast %42 : vector<1x28x112xf32> to vector<28x112xf32>
    %c7_37 = arith.constant 7 : index
    %c0_38 = arith.constant 0 : index
    %c0_39 = arith.constant 0 : index
    %44 = vector.load %arg1[%c7_37, %c0_38, %c0_39] : memref<9x1x112xf32, #tpu.memory_space<vmem>>, vector<1x1x112xf32>
    %45 = vector.shape_cast %44 : vector<1x1x112xf32> to vector<1x112xf32>
    %46 = vector.broadcast %45 : vector<1x112xf32> to vector<28x112xf32>
    %47 = arith.mulf %43, %46 : vector<28x112xf32>
    %c8 = arith.constant 8 : index
    %c0_40 = arith.constant 0 : index
    %c0_41 = arith.constant 0 : index
    %48 = vector.load %arg0[%c8, %c0_40, %c0_41] : memref<9x28x112xf32, #tpu.memory_space<vmem>>, vector<1x28x112xf32>
    %49 = vector.shape_cast %48 : vector<1x28x112xf32> to vector<28x112xf32>
    %c8_42 = arith.constant 8 : index
    %c0_43 = arith.constant 0 : index
    %c0_44 = arith.constant 0 : index
    %50 = vector.load %arg1[%c8_42, %c0_43, %c0_44] : memref<9x1x112xf32, #tpu.memory_space<vmem>>, vector<1x1x112xf32>
    %51 = vector.shape_cast %50 : vector<1x1x112xf32> to vector<1x112xf32>
    %52 = vector.broadcast %51 : vector<1x112xf32> to vector<28x112xf32>
    %53 = arith.mulf %49, %52 : vector<28x112xf32>
    %54 = arith.addf %5, %11 : vector<28x112xf32>
    %55 = arith.addf %17, %23 : vector<28x112xf32>
    %56 = arith.addf %29, %35 : vector<28x112xf32>
    %57 = arith.addf %41, %47 : vector<28x112xf32>
    %58 = arith.addf %54, %55 : vector<28x112xf32>
    %59 = arith.addf %56, %57 : vector<28x112xf32>
    %60 = arith.addf %58, %59 : vector<28x112xf32>
    %61 = arith.addf %60, %53 : vector<28x112xf32>
    %c0_45 = arith.constant 0 : index
    %c0_46 = arith.constant 0 : index
    %62 = vector.load %arg2[%c0_45, %c0_46] : memref<1x112xf32, #tpu.memory_space<vmem>>, vector<1x112xf32>
    %63 = vector.broadcast %62 : vector<1x112xf32> to vector<28x112xf32>
    %64 = arith.addf %61, %63 : vector<28x112xf32>
    %c0_47 = arith.constant 0 : index
    %c0_48 = arith.constant 0 : index
    %c0_49 = arith.constant 0 : index
    %65 = vector.load %arg3[%c0_47, %c0_48, %c0_49] : memref<2x16x28xf32, #tpu.memory_space<vmem>>, vector<1x16x28xf32>
    %66 = vector.shape_cast %65 : vector<1x16x28xf32> to vector<16x28xf32>
    %cst = arith.constant dense<0.000000e+00> : vector<16x112xf32>
    %67 = tpu.matmul %66, %64, %cst {dimension_numbers = #tpu.dot_dimension_numbers<[1], [0], [0], [1], [0, 0, 1, 1], [], []>, precision = #tpu.contract_precision<fp32>} : vector<16x28xf32>, vector<28x112xf32>, vector<16x112xf32> -> vector<16x112xf32>
    %c1_50 = arith.constant 1 : index
    %c0_51 = arith.constant 0 : index
    %c0_52 = arith.constant 0 : index
    %68 = vector.load %arg3[%c1_50, %c0_51, %c0_52] : memref<2x16x28xf32, #tpu.memory_space<vmem>>, vector<1x16x28xf32>
    %69 = vector.shape_cast %68 : vector<1x16x28xf32> to vector<16x28xf32>
    %cst_53 = arith.constant dense<0.000000e+00> : vector<16x112xf32>
    %70 = tpu.matmul %69, %64, %cst_53 {dimension_numbers = #tpu.dot_dimension_numbers<[1], [0], [0], [1], [0, 0, 1, 1], [], []>, precision = #tpu.contract_precision<fp32>} : vector<16x28xf32>, vector<28x112xf32>, vector<16x112xf32> -> vector<16x112xf32>
    %c0_54 = arith.constant 0 : index
    %c0_55 = arith.constant 0 : index
    %c0_56 = arith.constant 0 : index
    %71 = vector.load %arg4[%c0_54, %c0_55, %c0_56] : memref<2x112x256xf32, #tpu.memory_space<vmem>>, vector<1x112x256xf32>
    %72 = vector.shape_cast %71 : vector<1x112x256xf32> to vector<112x256xf32>
    %cst_57 = arith.constant dense<0.000000e+00> : vector<16x256xf32>
    %73 = tpu.matmul %67, %72, %cst_57 {dimension_numbers = #tpu.dot_dimension_numbers<[1], [0], [0], [1], [0, 0, 1, 1], [], []>, precision = #tpu.contract_precision<fp32>} : vector<16x112xf32>, vector<112x256xf32>, vector<16x256xf32> -> vector<16x256xf32>
    %c1_58 = arith.constant 1 : index
    %c0_59 = arith.constant 0 : index
    %c0_60 = arith.constant 0 : index
    %74 = vector.load %arg4[%c1_58, %c0_59, %c0_60] : memref<2x112x256xf32, #tpu.memory_space<vmem>>, vector<1x112x256xf32>
    %75 = vector.shape_cast %74 : vector<1x112x256xf32> to vector<112x256xf32>
    %cst_61 = arith.constant dense<0.000000e+00> : vector<16x256xf32>
    %76 = tpu.matmul %67, %75, %cst_61 {dimension_numbers = #tpu.dot_dimension_numbers<[1], [0], [0], [1], [0, 0, 1, 1], [], []>, precision = #tpu.contract_precision<fp32>} : vector<16x112xf32>, vector<112x256xf32>, vector<16x256xf32> -> vector<16x256xf32>
    %c0_62 = arith.constant 0 : index
    %c0_63 = arith.constant 0 : index
    %c0_64 = arith.constant 0 : index
    %77 = vector.load %arg4[%c0_62, %c0_63, %c0_64] : memref<2x112x256xf32, #tpu.memory_space<vmem>>, vector<1x112x256xf32>
    %78 = vector.shape_cast %77 : vector<1x112x256xf32> to vector<112x256xf32>
    %cst_65 = arith.constant dense<0.000000e+00> : vector<16x256xf32>
    %79 = tpu.matmul %70, %78, %cst_65 {dimension_numbers = #tpu.dot_dimension_numbers<[1], [0], [0], [1], [0, 0, 1, 1], [], []>, precision = #tpu.contract_precision<fp32>} : vector<16x112xf32>, vector<112x256xf32>, vector<16x256xf32> -> vector<16x256xf32>
    %c1_66 = arith.constant 1 : index
    %c0_67 = arith.constant 0 : index
    %c0_68 = arith.constant 0 : index
    %80 = vector.load %arg4[%c1_66, %c0_67, %c0_68] : memref<2x112x256xf32, #tpu.memory_space<vmem>>, vector<1x112x256xf32>
    %81 = vector.shape_cast %80 : vector<1x112x256xf32> to vector<112x256xf32>
    %cst_69 = arith.constant dense<0.000000e+00> : vector<16x256xf32>
    %82 = tpu.matmul %70, %81, %cst_69 {dimension_numbers = #tpu.dot_dimension_numbers<[1], [0], [0], [1], [0, 0, 1, 1], [], []>, precision = #tpu.contract_precision<fp32>} : vector<16x112xf32>, vector<112x256xf32>, vector<16x256xf32> -> vector<16x256xf32>
    %83 = arith.maximumf %73, %76 : vector<16x256xf32>
    %84 = arith.maximumf %79, %82 : vector<16x256xf32>
    %85 = arith.maximumf %83, %84 : vector<16x256xf32>
    %86 = vector.extract_strided_slice %85 {offsets = [0, 0], sizes = [14, 62], strides = [1, 1]} : vector<16x256xf32> to vector<14x62xf32>
    %c0_70 = arith.constant 0 : index
    %c0_71 = arith.constant 0 : index
    %c0_72 = arith.constant 0 : index
    %87 = vector.load %arg5[%c0_70, %c0_71, %c0_72] : memref<36x1x62xf32, #tpu.memory_space<vmem>>, vector<1x1x62xf32>
    %88 = vector.shape_cast %87 : vector<1x1x62xf32> to vector<1x62xf32>
    %89 = vector.broadcast %88 : vector<1x62xf32> to vector<14x62xf32>
    %90 = arith.mulf %86, %89 : vector<14x62xf32>
    %91 = vector.extract_strided_slice %85 {offsets = [0, 1], sizes = [14, 62], strides = [1, 1]} : vector<16x256xf32> to vector<14x62xf32>
    %c1_73 = arith.constant 1 : index
    %c0_74 = arith.constant 0 : index
    %c0_75 = arith.constant 0 : index
    %92 = vector.load %arg5[%c1_73, %c0_74, %c0_75] : memref<36x1x62xf32, #tpu.memory_space<vmem>>, vector<1x1x62xf32>
    %93 = vector.shape_cast %92 : vector<1x1x62xf32> to vector<1x62xf32>
    %94 = vector.broadcast %93 : vector<1x62xf32> to vector<14x62xf32>
    %95 = arith.mulf %91, %94 : vector<14x62xf32>
    %96 = vector.extract_strided_slice %85 {offsets = [0, 2], sizes = [14, 62], strides = [1, 1]} : vector<16x256xf32> to vector<14x62xf32>
    %c2_76 = arith.constant 2 : index
    %c0_77 = arith.constant 0 : index
    %c0_78 = arith.constant 0 : index
    %97 = vector.load %arg5[%c2_76, %c0_77, %c0_78] : memref<36x1x62xf32, #tpu.memory_space<vmem>>, vector<1x1x62xf32>
    %98 = vector.shape_cast %97 : vector<1x1x62xf32> to vector<1x62xf32>
    %99 = vector.broadcast %98 : vector<1x62xf32> to vector<14x62xf32>
    %100 = arith.mulf %96, %99 : vector<14x62xf32>
    %101 = vector.extract_strided_slice %85 {offsets = [1, 0], sizes = [14, 62], strides = [1, 1]} : vector<16x256xf32> to vector<14x62xf32>
    %c3_79 = arith.constant 3 : index
    %c0_80 = arith.constant 0 : index
    %c0_81 = arith.constant 0 : index
    %102 = vector.load %arg5[%c3_79, %c0_80, %c0_81] : memref<36x1x62xf32, #tpu.memory_space<vmem>>, vector<1x1x62xf32>
    %103 = vector.shape_cast %102 : vector<1x1x62xf32> to vector<1x62xf32>
    %104 = vector.broadcast %103 : vector<1x62xf32> to vector<14x62xf32>
    %105 = arith.mulf %101, %104 : vector<14x62xf32>
    %106 = vector.extract_strided_slice %85 {offsets = [1, 1], sizes = [14, 62], strides = [1, 1]} : vector<16x256xf32> to vector<14x62xf32>
    %c4_82 = arith.constant 4 : index
    %c0_83 = arith.constant 0 : index
    %c0_84 = arith.constant 0 : index
    %107 = vector.load %arg5[%c4_82, %c0_83, %c0_84] : memref<36x1x62xf32, #tpu.memory_space<vmem>>, vector<1x1x62xf32>
    %108 = vector.shape_cast %107 : vector<1x1x62xf32> to vector<1x62xf32>
    %109 = vector.broadcast %108 : vector<1x62xf32> to vector<14x62xf32>
    %110 = arith.mulf %106, %109 : vector<14x62xf32>
    %111 = vector.extract_strided_slice %85 {offsets = [1, 2], sizes = [14, 62], strides = [1, 1]} : vector<16x256xf32> to vector<14x62xf32>
    %c5_85 = arith.constant 5 : index
    %c0_86 = arith.constant 0 : index
    %c0_87 = arith.constant 0 : index
    %112 = vector.load %arg5[%c5_85, %c0_86, %c0_87] : memref<36x1x62xf32, #tpu.memory_space<vmem>>, vector<1x1x62xf32>
    %113 = vector.shape_cast %112 : vector<1x1x62xf32> to vector<1x62xf32>
    %114 = vector.broadcast %113 : vector<1x62xf32> to vector<14x62xf32>
    %115 = arith.mulf %111, %114 : vector<14x62xf32>
    %116 = vector.extract_strided_slice %85 {offsets = [2, 0], sizes = [14, 62], strides = [1, 1]} : vector<16x256xf32> to vector<14x62xf32>
    %c6_88 = arith.constant 6 : index
    %c0_89 = arith.constant 0 : index
    %c0_90 = arith.constant 0 : index
    %117 = vector.load %arg5[%c6_88, %c0_89, %c0_90] : memref<36x1x62xf32, #tpu.memory_space<vmem>>, vector<1x1x62xf32>
    %118 = vector.shape_cast %117 : vector<1x1x62xf32> to vector<1x62xf32>
    %119 = vector.broadcast %118 : vector<1x62xf32> to vector<14x62xf32>
    %120 = arith.mulf %116, %119 : vector<14x62xf32>
    %121 = vector.extract_strided_slice %85 {offsets = [2, 1], sizes = [14, 62], strides = [1, 1]} : vector<16x256xf32> to vector<14x62xf32>
    %c7_91 = arith.constant 7 : index
    %c0_92 = arith.constant 0 : index
    %c0_93 = arith.constant 0 : index
    %122 = vector.load %arg5[%c7_91, %c0_92, %c0_93] : memref<36x1x62xf32, #tpu.memory_space<vmem>>, vector<1x1x62xf32>
    %123 = vector.shape_cast %122 : vector<1x1x62xf32> to vector<1x62xf32>
    %124 = vector.broadcast %123 : vector<1x62xf32> to vector<14x62xf32>
    %125 = arith.mulf %121, %124 : vector<14x62xf32>
    %126 = vector.extract_strided_slice %85 {offsets = [2, 2], sizes = [14, 62], strides = [1, 1]} : vector<16x256xf32> to vector<14x62xf32>
    %c8_94 = arith.constant 8 : index
    %c0_95 = arith.constant 0 : index
    %c0_96 = arith.constant 0 : index
    %127 = vector.load %arg5[%c8_94, %c0_95, %c0_96] : memref<36x1x62xf32, #tpu.memory_space<vmem>>, vector<1x1x62xf32>
    %128 = vector.shape_cast %127 : vector<1x1x62xf32> to vector<1x62xf32>
    %129 = vector.broadcast %128 : vector<1x62xf32> to vector<14x62xf32>
    %130 = arith.mulf %126, %129 : vector<14x62xf32>
    %131 = vector.extract_strided_slice %85 {offsets = [0, 64], sizes = [14, 62], strides = [1, 1]} : vector<16x256xf32> to vector<14x62xf32>
    %c9 = arith.constant 9 : index
    %c0_97 = arith.constant 0 : index
    %c0_98 = arith.constant 0 : index
    %132 = vector.load %arg5[%c9, %c0_97, %c0_98] : memref<36x1x62xf32, #tpu.memory_space<vmem>>, vector<1x1x62xf32>
    %133 = vector.shape_cast %132 : vector<1x1x62xf32> to vector<1x62xf32>
    %134 = vector.broadcast %133 : vector<1x62xf32> to vector<14x62xf32>
    %135 = arith.mulf %131, %134 : vector<14x62xf32>
    %136 = vector.extract_strided_slice %85 {offsets = [0, 65], sizes = [14, 62], strides = [1, 1]} : vector<16x256xf32> to vector<14x62xf32>
    %c10 = arith.constant 10 : index
    %c0_99 = arith.constant 0 : index
    %c0_100 = arith.constant 0 : index
    %137 = vector.load %arg5[%c10, %c0_99, %c0_100] : memref<36x1x62xf32, #tpu.memory_space<vmem>>, vector<1x1x62xf32>
    %138 = vector.shape_cast %137 : vector<1x1x62xf32> to vector<1x62xf32>
    %139 = vector.broadcast %138 : vector<1x62xf32> to vector<14x62xf32>
    %140 = arith.mulf %136, %139 : vector<14x62xf32>
    %141 = vector.extract_strided_slice %85 {offsets = [0, 66], sizes = [14, 62], strides = [1, 1]} : vector<16x256xf32> to vector<14x62xf32>
    %c11 = arith.constant 11 : index
    %c0_101 = arith.constant 0 : index
    %c0_102 = arith.constant 0 : index
    %142 = vector.load %arg5[%c11, %c0_101, %c0_102] : memref<36x1x62xf32, #tpu.memory_space<vmem>>, vector<1x1x62xf32>
    %143 = vector.shape_cast %142 : vector<1x1x62xf32> to vector<1x62xf32>
    %144 = vector.broadcast %143 : vector<1x62xf32> to vector<14x62xf32>
    %145 = arith.mulf %141, %144 : vector<14x62xf32>
    %146 = vector.extract_strided_slice %85 {offsets = [1, 64], sizes = [14, 62], strides = [1, 1]} : vector<16x256xf32> to vector<14x62xf32>
    %c12 = arith.constant 12 : index
    %c0_103 = arith.constant 0 : index
    %c0_104 = arith.constant 0 : index
    %147 = vector.load %arg5[%c12, %c0_103, %c0_104] : memref<36x1x62xf32, #tpu.memory_space<vmem>>, vector<1x1x62xf32>
    %148 = vector.shape_cast %147 : vector<1x1x62xf32> to vector<1x62xf32>
    %149 = vector.broadcast %148 : vector<1x62xf32> to vector<14x62xf32>
    %150 = arith.mulf %146, %149 : vector<14x62xf32>
    %151 = vector.extract_strided_slice %85 {offsets = [1, 65], sizes = [14, 62], strides = [1, 1]} : vector<16x256xf32> to vector<14x62xf32>
    %c13 = arith.constant 13 : index
    %c0_105 = arith.constant 0 : index
    %c0_106 = arith.constant 0 : index
    %152 = vector.load %arg5[%c13, %c0_105, %c0_106] : memref<36x1x62xf32, #tpu.memory_space<vmem>>, vector<1x1x62xf32>
    %153 = vector.shape_cast %152 : vector<1x1x62xf32> to vector<1x62xf32>
    %154 = vector.broadcast %153 : vector<1x62xf32> to vector<14x62xf32>
    %155 = arith.mulf %151, %154 : vector<14x62xf32>
    %156 = vector.extract_strided_slice %85 {offsets = [1, 66], sizes = [14, 62], strides = [1, 1]} : vector<16x256xf32> to vector<14x62xf32>
    %c14 = arith.constant 14 : index
    %c0_107 = arith.constant 0 : index
    %c0_108 = arith.constant 0 : index
    %157 = vector.load %arg5[%c14, %c0_107, %c0_108] : memref<36x1x62xf32, #tpu.memory_space<vmem>>, vector<1x1x62xf32>
    %158 = vector.shape_cast %157 : vector<1x1x62xf32> to vector<1x62xf32>
    %159 = vector.broadcast %158 : vector<1x62xf32> to vector<14x62xf32>
    %160 = arith.mulf %156, %159 : vector<14x62xf32>
    %161 = vector.extract_strided_slice %85 {offsets = [2, 64], sizes = [14, 62], strides = [1, 1]} : vector<16x256xf32> to vector<14x62xf32>
    %c15 = arith.constant 15 : index
    %c0_109 = arith.constant 0 : index
    %c0_110 = arith.constant 0 : index
    %162 = vector.load %arg5[%c15, %c0_109, %c0_110] : memref<36x1x62xf32, #tpu.memory_space<vmem>>, vector<1x1x62xf32>
    %163 = vector.shape_cast %162 : vector<1x1x62xf32> to vector<1x62xf32>
    %164 = vector.broadcast %163 : vector<1x62xf32> to vector<14x62xf32>
    %165 = arith.mulf %161, %164 : vector<14x62xf32>
    %166 = vector.extract_strided_slice %85 {offsets = [2, 65], sizes = [14, 62], strides = [1, 1]} : vector<16x256xf32> to vector<14x62xf32>
    %c16 = arith.constant 16 : index
    %c0_111 = arith.constant 0 : index
    %c0_112 = arith.constant 0 : index
    %167 = vector.load %arg5[%c16, %c0_111, %c0_112] : memref<36x1x62xf32, #tpu.memory_space<vmem>>, vector<1x1x62xf32>
    %168 = vector.shape_cast %167 : vector<1x1x62xf32> to vector<1x62xf32>
    %169 = vector.broadcast %168 : vector<1x62xf32> to vector<14x62xf32>
    %170 = arith.mulf %166, %169 : vector<14x62xf32>
    %171 = vector.extract_strided_slice %85 {offsets = [2, 66], sizes = [14, 62], strides = [1, 1]} : vector<16x256xf32> to vector<14x62xf32>
    %c17 = arith.constant 17 : index
    %c0_113 = arith.constant 0 : index
    %c0_114 = arith.constant 0 : index
    %172 = vector.load %arg5[%c17, %c0_113, %c0_114] : memref<36x1x62xf32, #tpu.memory_space<vmem>>, vector<1x1x62xf32>
    %173 = vector.shape_cast %172 : vector<1x1x62xf32> to vector<1x62xf32>
    %174 = vector.broadcast %173 : vector<1x62xf32> to vector<14x62xf32>
    %175 = arith.mulf %171, %174 : vector<14x62xf32>
    %176 = vector.extract_strided_slice %85 {offsets = [0, 128], sizes = [14, 62], strides = [1, 1]} : vector<16x256xf32> to vector<14x62xf32>
    %c18 = arith.constant 18 : index
    %c0_115 = arith.constant 0 : index
    %c0_116 = arith.constant 0 : index
    %177 = vector.load %arg5[%c18, %c0_115, %c0_116] : memref<36x1x62xf32, #tpu.memory_space<vmem>>, vector<1x1x62xf32>
    %178 = vector.shape_cast %177 : vector<1x1x62xf32> to vector<1x62xf32>
    %179 = vector.broadcast %178 : vector<1x62xf32> to vector<14x62xf32>
    %180 = arith.mulf %176, %179 : vector<14x62xf32>
    %181 = vector.extract_strided_slice %85 {offsets = [0, 129], sizes = [14, 62], strides = [1, 1]} : vector<16x256xf32> to vector<14x62xf32>
    %c19 = arith.constant 19 : index
    %c0_117 = arith.constant 0 : index
    %c0_118 = arith.constant 0 : index
    %182 = vector.load %arg5[%c19, %c0_117, %c0_118] : memref<36x1x62xf32, #tpu.memory_space<vmem>>, vector<1x1x62xf32>
    %183 = vector.shape_cast %182 : vector<1x1x62xf32> to vector<1x62xf32>
    %184 = vector.broadcast %183 : vector<1x62xf32> to vector<14x62xf32>
    %185 = arith.mulf %181, %184 : vector<14x62xf32>
    %186 = vector.extract_strided_slice %85 {offsets = [0, 130], sizes = [14, 62], strides = [1, 1]} : vector<16x256xf32> to vector<14x62xf32>
    %c20 = arith.constant 20 : index
    %c0_119 = arith.constant 0 : index
    %c0_120 = arith.constant 0 : index
    %187 = vector.load %arg5[%c20, %c0_119, %c0_120] : memref<36x1x62xf32, #tpu.memory_space<vmem>>, vector<1x1x62xf32>
    %188 = vector.shape_cast %187 : vector<1x1x62xf32> to vector<1x62xf32>
    %189 = vector.broadcast %188 : vector<1x62xf32> to vector<14x62xf32>
    %190 = arith.mulf %186, %189 : vector<14x62xf32>
    %191 = vector.extract_strided_slice %85 {offsets = [1, 128], sizes = [14, 62], strides = [1, 1]} : vector<16x256xf32> to vector<14x62xf32>
    %c21 = arith.constant 21 : index
    %c0_121 = arith.constant 0 : index
    %c0_122 = arith.constant 0 : index
    %192 = vector.load %arg5[%c21, %c0_121, %c0_122] : memref<36x1x62xf32, #tpu.memory_space<vmem>>, vector<1x1x62xf32>
    %193 = vector.shape_cast %192 : vector<1x1x62xf32> to vector<1x62xf32>
    %194 = vector.broadcast %193 : vector<1x62xf32> to vector<14x62xf32>
    %195 = arith.mulf %191, %194 : vector<14x62xf32>
    %196 = vector.extract_strided_slice %85 {offsets = [1, 129], sizes = [14, 62], strides = [1, 1]} : vector<16x256xf32> to vector<14x62xf32>
    %c22 = arith.constant 22 : index
    %c0_123 = arith.constant 0 : index
    %c0_124 = arith.constant 0 : index
    %197 = vector.load %arg5[%c22, %c0_123, %c0_124] : memref<36x1x62xf32, #tpu.memory_space<vmem>>, vector<1x1x62xf32>
    %198 = vector.shape_cast %197 : vector<1x1x62xf32> to vector<1x62xf32>
    %199 = vector.broadcast %198 : vector<1x62xf32> to vector<14x62xf32>
    %200 = arith.mulf %196, %199 : vector<14x62xf32>
    %201 = vector.extract_strided_slice %85 {offsets = [1, 130], sizes = [14, 62], strides = [1, 1]} : vector<16x256xf32> to vector<14x62xf32>
    %c23 = arith.constant 23 : index
    %c0_125 = arith.constant 0 : index
    %c0_126 = arith.constant 0 : index
    %202 = vector.load %arg5[%c23, %c0_125, %c0_126] : memref<36x1x62xf32, #tpu.memory_space<vmem>>, vector<1x1x62xf32>
    %203 = vector.shape_cast %202 : vector<1x1x62xf32> to vector<1x62xf32>
    %204 = vector.broadcast %203 : vector<1x62xf32> to vector<14x62xf32>
    %205 = arith.mulf %201, %204 : vector<14x62xf32>
    %206 = vector.extract_strided_slice %85 {offsets = [2, 128], sizes = [14, 62], strides = [1, 1]} : vector<16x256xf32> to vector<14x62xf32>
    %c24 = arith.constant 24 : index
    %c0_127 = arith.constant 0 : index
    %c0_128 = arith.constant 0 : index
    %207 = vector.load %arg5[%c24, %c0_127, %c0_128] : memref<36x1x62xf32, #tpu.memory_space<vmem>>, vector<1x1x62xf32>
    %208 = vector.shape_cast %207 : vector<1x1x62xf32> to vector<1x62xf32>
    %209 = vector.broadcast %208 : vector<1x62xf32> to vector<14x62xf32>
    %210 = arith.mulf %206, %209 : vector<14x62xf32>
    %211 = vector.extract_strided_slice %85 {offsets = [2, 129], sizes = [14, 62], strides = [1, 1]} : vector<16x256xf32> to vector<14x62xf32>
    %c25 = arith.constant 25 : index
    %c0_129 = arith.constant 0 : index
    %c0_130 = arith.constant 0 : index
    %212 = vector.load %arg5[%c25, %c0_129, %c0_130] : memref<36x1x62xf32, #tpu.memory_space<vmem>>, vector<1x1x62xf32>
    %213 = vector.shape_cast %212 : vector<1x1x62xf32> to vector<1x62xf32>
    %214 = vector.broadcast %213 : vector<1x62xf32> to vector<14x62xf32>
    %215 = arith.mulf %211, %214 : vector<14x62xf32>
    %216 = vector.extract_strided_slice %85 {offsets = [2, 130], sizes = [14, 62], strides = [1, 1]} : vector<16x256xf32> to vector<14x62xf32>
    %c26 = arith.constant 26 : index
    %c0_131 = arith.constant 0 : index
    %c0_132 = arith.constant 0 : index
    %217 = vector.load %arg5[%c26, %c0_131, %c0_132] : memref<36x1x62xf32, #tpu.memory_space<vmem>>, vector<1x1x62xf32>
    %218 = vector.shape_cast %217 : vector<1x1x62xf32> to vector<1x62xf32>
    %219 = vector.broadcast %218 : vector<1x62xf32> to vector<14x62xf32>
    %220 = arith.mulf %216, %219 : vector<14x62xf32>
    %221 = vector.extract_strided_slice %85 {offsets = [0, 192], sizes = [14, 62], strides = [1, 1]} : vector<16x256xf32> to vector<14x62xf32>
    %c27 = arith.constant 27 : index
    %c0_133 = arith.constant 0 : index
    %c0_134 = arith.constant 0 : index
    %222 = vector.load %arg5[%c27, %c0_133, %c0_134] : memref<36x1x62xf32, #tpu.memory_space<vmem>>, vector<1x1x62xf32>
    %223 = vector.shape_cast %222 : vector<1x1x62xf32> to vector<1x62xf32>
    %224 = vector.broadcast %223 : vector<1x62xf32> to vector<14x62xf32>
    %225 = arith.mulf %221, %224 : vector<14x62xf32>
    %226 = vector.extract_strided_slice %85 {offsets = [0, 193], sizes = [14, 62], strides = [1, 1]} : vector<16x256xf32> to vector<14x62xf32>
    %c28 = arith.constant 28 : index
    %c0_135 = arith.constant 0 : index
    %c0_136 = arith.constant 0 : index
    %227 = vector.load %arg5[%c28, %c0_135, %c0_136] : memref<36x1x62xf32, #tpu.memory_space<vmem>>, vector<1x1x62xf32>
    %228 = vector.shape_cast %227 : vector<1x1x62xf32> to vector<1x62xf32>
    %229 = vector.broadcast %228 : vector<1x62xf32> to vector<14x62xf32>
    %230 = arith.mulf %226, %229 : vector<14x62xf32>
    %231 = vector.extract_strided_slice %85 {offsets = [0, 194], sizes = [14, 62], strides = [1, 1]} : vector<16x256xf32> to vector<14x62xf32>
    %c29 = arith.constant 29 : index
    %c0_137 = arith.constant 0 : index
    %c0_138 = arith.constant 0 : index
    %232 = vector.load %arg5[%c29, %c0_137, %c0_138] : memref<36x1x62xf32, #tpu.memory_space<vmem>>, vector<1x1x62xf32>
    %233 = vector.shape_cast %232 : vector<1x1x62xf32> to vector<1x62xf32>
    %234 = vector.broadcast %233 : vector<1x62xf32> to vector<14x62xf32>
    %235 = arith.mulf %231, %234 : vector<14x62xf32>
    %236 = vector.extract_strided_slice %85 {offsets = [1, 192], sizes = [14, 62], strides = [1, 1]} : vector<16x256xf32> to vector<14x62xf32>
    %c30 = arith.constant 30 : index
    %c0_139 = arith.constant 0 : index
    %c0_140 = arith.constant 0 : index
    %237 = vector.load %arg5[%c30, %c0_139, %c0_140] : memref<36x1x62xf32, #tpu.memory_space<vmem>>, vector<1x1x62xf32>
    %238 = vector.shape_cast %237 : vector<1x1x62xf32> to vector<1x62xf32>
    %239 = vector.broadcast %238 : vector<1x62xf32> to vector<14x62xf32>
    %240 = arith.mulf %236, %239 : vector<14x62xf32>
    %241 = vector.extract_strided_slice %85 {offsets = [1, 193], sizes = [14, 62], strides = [1, 1]} : vector<16x256xf32> to vector<14x62xf32>
    %c31 = arith.constant 31 : index
    %c0_141 = arith.constant 0 : index
    %c0_142 = arith.constant 0 : index
    %242 = vector.load %arg5[%c31, %c0_141, %c0_142] : memref<36x1x62xf32, #tpu.memory_space<vmem>>, vector<1x1x62xf32>
    %243 = vector.shape_cast %242 : vector<1x1x62xf32> to vector<1x62xf32>
    %244 = vector.broadcast %243 : vector<1x62xf32> to vector<14x62xf32>
    %245 = arith.mulf %241, %244 : vector<14x62xf32>
    %246 = vector.extract_strided_slice %85 {offsets = [1, 194], sizes = [14, 62], strides = [1, 1]} : vector<16x256xf32> to vector<14x62xf32>
    %c32 = arith.constant 32 : index
    %c0_143 = arith.constant 0 : index
    %c0_144 = arith.constant 0 : index
    %247 = vector.load %arg5[%c32, %c0_143, %c0_144] : memref<36x1x62xf32, #tpu.memory_space<vmem>>, vector<1x1x62xf32>
    %248 = vector.shape_cast %247 : vector<1x1x62xf32> to vector<1x62xf32>
    %249 = vector.broadcast %248 : vector<1x62xf32> to vector<14x62xf32>
    %250 = arith.mulf %246, %249 : vector<14x62xf32>
    %251 = vector.extract_strided_slice %85 {offsets = [2, 192], sizes = [14, 62], strides = [1, 1]} : vector<16x256xf32> to vector<14x62xf32>
    %c33 = arith.constant 33 : index
    %c0_145 = arith.constant 0 : index
    %c0_146 = arith.constant 0 : index
    %252 = vector.load %arg5[%c33, %c0_145, %c0_146] : memref<36x1x62xf32, #tpu.memory_space<vmem>>, vector<1x1x62xf32>
    %253 = vector.shape_cast %252 : vector<1x1x62xf32> to vector<1x62xf32>
    %254 = vector.broadcast %253 : vector<1x62xf32> to vector<14x62xf32>
    %255 = arith.mulf %251, %254 : vector<14x62xf32>
    %256 = vector.extract_strided_slice %85 {offsets = [2, 193], sizes = [14, 62], strides = [1, 1]} : vector<16x256xf32> to vector<14x62xf32>
    %c34 = arith.constant 34 : index
    %c0_147 = arith.constant 0 : index
    %c0_148 = arith.constant 0 : index
    %257 = vector.load %arg5[%c34, %c0_147, %c0_148] : memref<36x1x62xf32, #tpu.memory_space<vmem>>, vector<1x1x62xf32>
    %258 = vector.shape_cast %257 : vector<1x1x62xf32> to vector<1x62xf32>
    %259 = vector.broadcast %258 : vector<1x62xf32> to vector<14x62xf32>
    %260 = arith.mulf %256, %259 : vector<14x62xf32>
    %261 = vector.extract_strided_slice %85 {offsets = [2, 194], sizes = [14, 62], strides = [1, 1]} : vector<16x256xf32> to vector<14x62xf32>
    %c35 = arith.constant 35 : index
    %c0_149 = arith.constant 0 : index
    %c0_150 = arith.constant 0 : index
    %262 = vector.load %arg5[%c35, %c0_149, %c0_150] : memref<36x1x62xf32, #tpu.memory_space<vmem>>, vector<1x1x62xf32>
    %263 = vector.shape_cast %262 : vector<1x1x62xf32> to vector<1x62xf32>
    %264 = vector.broadcast %263 : vector<1x62xf32> to vector<14x62xf32>
    %265 = arith.mulf %261, %264 : vector<14x62xf32>
    %266 = arith.addf %90, %95 : vector<14x62xf32>
    %267 = arith.addf %100, %105 : vector<14x62xf32>
    %268 = arith.addf %110, %115 : vector<14x62xf32>
    %269 = arith.addf %120, %125 : vector<14x62xf32>
    %270 = arith.addf %130, %135 : vector<14x62xf32>
    %271 = arith.addf %140, %145 : vector<14x62xf32>
    %272 = arith.addf %150, %155 : vector<14x62xf32>
    %273 = arith.addf %160, %165 : vector<14x62xf32>
    %274 = arith.addf %170, %175 : vector<14x62xf32>
    %275 = arith.addf %180, %185 : vector<14x62xf32>
    %276 = arith.addf %190, %195 : vector<14x62xf32>
    %277 = arith.addf %200, %205 : vector<14x62xf32>
    %278 = arith.addf %210, %215 : vector<14x62xf32>
    %279 = arith.addf %220, %225 : vector<14x62xf32>
    %280 = arith.addf %230, %235 : vector<14x62xf32>
    %281 = arith.addf %240, %245 : vector<14x62xf32>
    %282 = arith.addf %250, %255 : vector<14x62xf32>
    %283 = arith.addf %260, %265 : vector<14x62xf32>
    %284 = arith.addf %266, %267 : vector<14x62xf32>
    %285 = arith.addf %268, %269 : vector<14x62xf32>
    %286 = arith.addf %270, %271 : vector<14x62xf32>
    %287 = arith.addf %272, %273 : vector<14x62xf32>
    %288 = arith.addf %274, %275 : vector<14x62xf32>
    %289 = arith.addf %276, %277 : vector<14x62xf32>
    %290 = arith.addf %278, %279 : vector<14x62xf32>
    %291 = arith.addf %280, %281 : vector<14x62xf32>
    %292 = arith.addf %282, %283 : vector<14x62xf32>
    %293 = arith.addf %284, %285 : vector<14x62xf32>
    %294 = arith.addf %286, %287 : vector<14x62xf32>
    %295 = arith.addf %288, %289 : vector<14x62xf32>
    %296 = arith.addf %290, %291 : vector<14x62xf32>
    %297 = arith.addf %293, %294 : vector<14x62xf32>
    %298 = arith.addf %295, %296 : vector<14x62xf32>
    %299 = arith.addf %297, %298 : vector<14x62xf32>
    %300 = arith.addf %299, %292 : vector<14x62xf32>
    %c0_151 = arith.constant 0 : index
    %c0_152 = arith.constant 0 : index
    %301 = vector.load %arg6[%c0_151, %c0_152] : memref<1x62xf32, #tpu.memory_space<vmem>>, vector<1x62xf32>
    %302 = vector.broadcast %301 : vector<1x62xf32> to vector<14x62xf32>
    %303 = arith.addf %300, %302 : vector<14x62xf32>
    %c0_153 = arith.constant 0 : index
    %c0_154 = arith.constant 0 : index
    %c0_155 = arith.constant 0 : index
    %304 = vector.load %arg7[%c0_153, %c0_154, %c0_155] : memref<2x7x14xf32, #tpu.memory_space<vmem>>, vector<1x7x14xf32>
    %305 = vector.shape_cast %304 : vector<1x7x14xf32> to vector<7x14xf32>
    %cst_156 = arith.constant dense<0.000000e+00> : vector<7x62xf32>
    %306 = tpu.matmul %305, %303, %cst_156 {dimension_numbers = #tpu.dot_dimension_numbers<[1], [0], [0], [1], [0, 0, 1, 1], [], []>, precision = #tpu.contract_precision<fp32>} : vector<7x14xf32>, vector<14x62xf32>, vector<7x62xf32> -> vector<7x62xf32>
    %c1_157 = arith.constant 1 : index
    %c0_158 = arith.constant 0 : index
    %c0_159 = arith.constant 0 : index
    %307 = vector.load %arg7[%c1_157, %c0_158, %c0_159] : memref<2x7x14xf32, #tpu.memory_space<vmem>>, vector<1x7x14xf32>
    %308 = vector.shape_cast %307 : vector<1x7x14xf32> to vector<7x14xf32>
    %cst_160 = arith.constant dense<0.000000e+00> : vector<7x62xf32>
    %309 = tpu.matmul %308, %303, %cst_160 {dimension_numbers = #tpu.dot_dimension_numbers<[1], [0], [0], [1], [0, 0, 1, 1], [], []>, precision = #tpu.contract_precision<fp32>} : vector<7x14xf32>, vector<14x62xf32>, vector<7x62xf32> -> vector<7x62xf32>
    %c0_161 = arith.constant 0 : index
    %c0_162 = arith.constant 0 : index
    %c0_163 = arith.constant 0 : index
    %310 = vector.load %arg8[%c0_161, %c0_162, %c0_163] : memref<2x62x28xf32, #tpu.memory_space<vmem>>, vector<1x62x28xf32>
    %311 = vector.shape_cast %310 : vector<1x62x28xf32> to vector<62x28xf32>
    %cst_164 = arith.constant dense<0.000000e+00> : vector<7x28xf32>
    %312 = tpu.matmul %306, %311, %cst_164 {dimension_numbers = #tpu.dot_dimension_numbers<[1], [0], [0], [1], [0, 0, 1, 1], [], []>, precision = #tpu.contract_precision<fp32>} : vector<7x62xf32>, vector<62x28xf32>, vector<7x28xf32> -> vector<7x28xf32>
    %c1_165 = arith.constant 1 : index
    %c0_166 = arith.constant 0 : index
    %c0_167 = arith.constant 0 : index
    %313 = vector.load %arg8[%c1_165, %c0_166, %c0_167] : memref<2x62x28xf32, #tpu.memory_space<vmem>>, vector<1x62x28xf32>
    %314 = vector.shape_cast %313 : vector<1x62x28xf32> to vector<62x28xf32>
    %cst_168 = arith.constant dense<0.000000e+00> : vector<7x28xf32>
    %315 = tpu.matmul %306, %314, %cst_168 {dimension_numbers = #tpu.dot_dimension_numbers<[1], [0], [0], [1], [0, 0, 1, 1], [], []>, precision = #tpu.contract_precision<fp32>} : vector<7x62xf32>, vector<62x28xf32>, vector<7x28xf32> -> vector<7x28xf32>
    %c0_169 = arith.constant 0 : index
    %c0_170 = arith.constant 0 : index
    %c0_171 = arith.constant 0 : index
    %316 = vector.load %arg8[%c0_169, %c0_170, %c0_171] : memref<2x62x28xf32, #tpu.memory_space<vmem>>, vector<1x62x28xf32>
    %317 = vector.shape_cast %316 : vector<1x62x28xf32> to vector<62x28xf32>
    %cst_172 = arith.constant dense<0.000000e+00> : vector<7x28xf32>
    %318 = tpu.matmul %309, %317, %cst_172 {dimension_numbers = #tpu.dot_dimension_numbers<[1], [0], [0], [1], [0, 0, 1, 1], [], []>, precision = #tpu.contract_precision<fp32>} : vector<7x62xf32>, vector<62x28xf32>, vector<7x28xf32> -> vector<7x28xf32>
    %c1_173 = arith.constant 1 : index
    %c0_174 = arith.constant 0 : index
    %c0_175 = arith.constant 0 : index
    %319 = vector.load %arg8[%c1_173, %c0_174, %c0_175] : memref<2x62x28xf32, #tpu.memory_space<vmem>>, vector<1x62x28xf32>
    %320 = vector.shape_cast %319 : vector<1x62x28xf32> to vector<62x28xf32>
    %cst_176 = arith.constant dense<0.000000e+00> : vector<7x28xf32>
    %321 = tpu.matmul %309, %320, %cst_176 {dimension_numbers = #tpu.dot_dimension_numbers<[1], [0], [0], [1], [0, 0, 1, 1], [], []>, precision = #tpu.contract_precision<fp32>} : vector<7x62xf32>, vector<62x28xf32>, vector<7x28xf32> -> vector<7x28xf32>
    %322 = arith.maximumf %312, %315 : vector<7x28xf32>
    %323 = arith.maximumf %318, %321 : vector<7x28xf32>
    %324 = arith.maximumf %322, %323 : vector<7x28xf32>
    %325 = vector.extract_strided_slice %324 {offsets = [0, 0], sizes = [1, 28], strides = [1, 1]} : vector<7x28xf32> to vector<1x28xf32>
    %c0_177 = arith.constant 0 : index
    %c0_178 = arith.constant 0 : index
    %c0_179 = arith.constant 0 : index
    %326 = vector.load %arg9[%c0_177, %c0_178, %c0_179] : memref<7x28x42xf32, #tpu.memory_space<vmem>>, vector<1x28x42xf32>
    %327 = vector.shape_cast %326 : vector<1x28x42xf32> to vector<28x42xf32>
    %cst_180 = arith.constant dense<0.000000e+00> : vector<1x42xf32>
    %328 = tpu.matmul %325, %327, %cst_180 {dimension_numbers = #tpu.dot_dimension_numbers<[1], [0], [0], [1], [0, 0, 1, 1], [], []>, precision = #tpu.contract_precision<fp32>} : vector<1x28xf32>, vector<28x42xf32>, vector<1x42xf32> -> vector<1x42xf32>
    %329 = vector.extract_strided_slice %324 {offsets = [1, 0], sizes = [1, 28], strides = [1, 1]} : vector<7x28xf32> to vector<1x28xf32>
    %c1_181 = arith.constant 1 : index
    %c0_182 = arith.constant 0 : index
    %c0_183 = arith.constant 0 : index
    %330 = vector.load %arg9[%c1_181, %c0_182, %c0_183] : memref<7x28x42xf32, #tpu.memory_space<vmem>>, vector<1x28x42xf32>
    %331 = vector.shape_cast %330 : vector<1x28x42xf32> to vector<28x42xf32>
    %cst_184 = arith.constant dense<0.000000e+00> : vector<1x42xf32>
    %332 = tpu.matmul %329, %331, %cst_184 {dimension_numbers = #tpu.dot_dimension_numbers<[1], [0], [0], [1], [0, 0, 1, 1], [], []>, precision = #tpu.contract_precision<fp32>} : vector<1x28xf32>, vector<28x42xf32>, vector<1x42xf32> -> vector<1x42xf32>
    %333 = vector.extract_strided_slice %324 {offsets = [2, 0], sizes = [1, 28], strides = [1, 1]} : vector<7x28xf32> to vector<1x28xf32>
    %c2_185 = arith.constant 2 : index
    %c0_186 = arith.constant 0 : index
    %c0_187 = arith.constant 0 : index
    %334 = vector.load %arg9[%c2_185, %c0_186, %c0_187] : memref<7x28x42xf32, #tpu.memory_space<vmem>>, vector<1x28x42xf32>
    %335 = vector.shape_cast %334 : vector<1x28x42xf32> to vector<28x42xf32>
    %cst_188 = arith.constant dense<0.000000e+00> : vector<1x42xf32>
    %336 = tpu.matmul %333, %335, %cst_188 {dimension_numbers = #tpu.dot_dimension_numbers<[1], [0], [0], [1], [0, 0, 1, 1], [], []>, precision = #tpu.contract_precision<fp32>} : vector<1x28xf32>, vector<28x42xf32>, vector<1x42xf32> -> vector<1x42xf32>
    %337 = vector.extract_strided_slice %324 {offsets = [3, 0], sizes = [1, 28], strides = [1, 1]} : vector<7x28xf32> to vector<1x28xf32>
    %c3_189 = arith.constant 3 : index
    %c0_190 = arith.constant 0 : index
    %c0_191 = arith.constant 0 : index
    %338 = vector.load %arg9[%c3_189, %c0_190, %c0_191] : memref<7x28x42xf32, #tpu.memory_space<vmem>>, vector<1x28x42xf32>
    %339 = vector.shape_cast %338 : vector<1x28x42xf32> to vector<28x42xf32>
    %cst_192 = arith.constant dense<0.000000e+00> : vector<1x42xf32>
    %340 = tpu.matmul %337, %339, %cst_192 {dimension_numbers = #tpu.dot_dimension_numbers<[1], [0], [0], [1], [0, 0, 1, 1], [], []>, precision = #tpu.contract_precision<fp32>} : vector<1x28xf32>, vector<28x42xf32>, vector<1x42xf32> -> vector<1x42xf32>
    %341 = vector.extract_strided_slice %324 {offsets = [4, 0], sizes = [1, 28], strides = [1, 1]} : vector<7x28xf32> to vector<1x28xf32>
    %c4_193 = arith.constant 4 : index
    %c0_194 = arith.constant 0 : index
    %c0_195 = arith.constant 0 : index
    %342 = vector.load %arg9[%c4_193, %c0_194, %c0_195] : memref<7x28x42xf32, #tpu.memory_space<vmem>>, vector<1x28x42xf32>
    %343 = vector.shape_cast %342 : vector<1x28x42xf32> to vector<28x42xf32>
    %cst_196 = arith.constant dense<0.000000e+00> : vector<1x42xf32>
    %344 = tpu.matmul %341, %343, %cst_196 {dimension_numbers = #tpu.dot_dimension_numbers<[1], [0], [0], [1], [0, 0, 1, 1], [], []>, precision = #tpu.contract_precision<fp32>} : vector<1x28xf32>, vector<28x42xf32>, vector<1x42xf32> -> vector<1x42xf32>
    %345 = vector.extract_strided_slice %324 {offsets = [5, 0], sizes = [1, 28], strides = [1, 1]} : vector<7x28xf32> to vector<1x28xf32>
    %c5_197 = arith.constant 5 : index
    %c0_198 = arith.constant 0 : index
    %c0_199 = arith.constant 0 : index
    %346 = vector.load %arg9[%c5_197, %c0_198, %c0_199] : memref<7x28x42xf32, #tpu.memory_space<vmem>>, vector<1x28x42xf32>
    %347 = vector.shape_cast %346 : vector<1x28x42xf32> to vector<28x42xf32>
    %cst_200 = arith.constant dense<0.000000e+00> : vector<1x42xf32>
    %348 = tpu.matmul %345, %347, %cst_200 {dimension_numbers = #tpu.dot_dimension_numbers<[1], [0], [0], [1], [0, 0, 1, 1], [], []>, precision = #tpu.contract_precision<fp32>} : vector<1x28xf32>, vector<28x42xf32>, vector<1x42xf32> -> vector<1x42xf32>
    %349 = vector.extract_strided_slice %324 {offsets = [6, 0], sizes = [1, 28], strides = [1, 1]} : vector<7x28xf32> to vector<1x28xf32>
    %c6_201 = arith.constant 6 : index
    %c0_202 = arith.constant 0 : index
    %c0_203 = arith.constant 0 : index
    %350 = vector.load %arg9[%c6_201, %c0_202, %c0_203] : memref<7x28x42xf32, #tpu.memory_space<vmem>>, vector<1x28x42xf32>
    %351 = vector.shape_cast %350 : vector<1x28x42xf32> to vector<28x42xf32>
    %cst_204 = arith.constant dense<0.000000e+00> : vector<1x42xf32>
    %352 = tpu.matmul %349, %351, %cst_204 {dimension_numbers = #tpu.dot_dimension_numbers<[1], [0], [0], [1], [0, 0, 1, 1], [], []>, precision = #tpu.contract_precision<fp32>} : vector<1x28xf32>, vector<28x42xf32>, vector<1x42xf32> -> vector<1x42xf32>
    %353 = arith.addf %328, %332 : vector<1x42xf32>
    %354 = arith.addf %336, %340 : vector<1x42xf32>
    %355 = arith.addf %344, %348 : vector<1x42xf32>
    %356 = arith.addf %353, %354 : vector<1x42xf32>
    %357 = arith.addf %355, %352 : vector<1x42xf32>
    %358 = arith.addf %356, %357 : vector<1x42xf32>
    %c0_205 = arith.constant 0 : index
    %c0_206 = arith.constant 0 : index
    %359 = vector.load %arg10[%c0_205, %c0_206] : memref<1x42xf32, #tpu.memory_space<vmem>>, vector<1x42xf32>
    %360 = arith.addf %358, %359 : vector<1x42xf32>
    %c0_207 = arith.constant 0 : index
    %c0_208 = arith.constant 0 : index
    %361 = vector.load %arg11[%c0_207, %c0_208] : memref<1x42xf32, #tpu.memory_space<vmem>>, vector<1x42xf32>
    tpu.vector_store %arg11[%c0_207, %c0_208], %360 {strides = array<i32>} : memref<1x42xf32, #tpu.memory_space<vmem>>, vector<1x42xf32>,
    return
  }
}

</mosaic_0001>

<bundles_post_ra>
// kernel: tile.9
= control target key start
LH: loop header
LB: loop body
LE: loop exit
PB: predicated region body
PF: predicated region fallthrough
CT: control target
= control target key end

     0   :  { %vm1263_vm0 = vcmask 1047556   ;;  %s3259_s10 = smov 84   ;;  %vm1265_vm1 = vcmask 228352   ;;  %vm1558_vm2 = vcmask 917152   ;;  %s3261_s14 = smov 28   ;;  %vm1913_vm3 = vcmask 687552   ;;  %s4857_s0 = inlined_call_operand.vmem [shape: f32[9,28,4,28], index: 0, kind: input, shape index: {}]   ;;  %s4858_s1 = inlined_call_operand.vmem [shape: f32[9,28,112], index: 1, kind: output, shape index: {}]  }
   0x1   :  { %v3109_v0 = vld [vmem:[%s4857_s0 + $0x1c] sm:$0xf]  ;;  %v3110_v1 = vld [vmem:[%s4857_s0 + $0x18] sm:$0xf]  ;;  %v3111_v2 = vld [vmem:[%s4857_s0 + $0x14] sm:$0xf] }
   0x2   :  { %1229 = vst [vmem:[#allocation0 + $0x38] sm:$0xf] %v3109_v0  ;;  %1234 = vst [vmem:[#allocation0 + $0x30] sm:$0xf] %v3110_v1  ;;  %v3112_v3 = vld [vmem:[%s4857_s0 + $0x10] sm:$0xf] }
   0x3   :  { %1239 = vst [vmem:[#allocation0 + $0x28] sm:$0xf] %v3111_v2  ;;  %v3113_v4 = vld [vmem:[%s4857_s0 + $0xc] sm:$0xf]  ;;  %v3114_v5 = vld [vmem:[%s4857_s0 + $0x8] sm:$0xf] }
   0x4   :  { %1244 = vst [vmem:[#allocation0 + $0x20] sm:$0xf] %v3112_v3  ;;  %1249 = vst [vmem:[#allocation0 + $0x18] sm:$0xf] %v3113_v4  ;;  %v3115_v6 = vld [vmem:[%s4857_s0 + $0x4] sm:$0xf] }
   0x5   :  { %1254 = vst [vmem:[#allocation0 + $0x10] sm:$0xf] %v3114_v5  ;;  %v1259_v7 = vld [vmem:[%s4857_s0] sm:$0xf]  ;;  %1258 = vst [vmem:[#allocation0 + $0x8] sm:$0xf] %v3115_v6 }
   0x6   :  { %1260 = vst [vmem:[#allocation0] sm:$0xf] %v1259_v7  ;;  %v3053_v8 = vld [vmem:[%s4857_s0 + $0xfc] sm:$0xf]  ;;  %v3054_v9 = vld [vmem:[%s4857_s0 + $0xf8] sm:$0xf] }
   0x7   :  { %v3055_v10 = vld [vmem:[%s4857_s0 + $0xf4] sm:$0xf]  ;;  %949 = vst [vmem:[#allocation0 + $0x1f8] sm:$0xf] %v3053_v8  ;;  %954 = vst [vmem:[#allocation0 + $0x1f0] sm:$0xf] %v3054_v9 }
   0x8   :  { %959 = vst [vmem:[#allocation0 + $0x1e8] sm:$0xf] %v3055_v10  ;;  %v3056_v11 = vld [vmem:[%s4857_s0 + $0xf0] sm:$0xf]  ;;  %v3057_v12 = vld [vmem:[%s4857_s0 + $0xec] sm:$0xf] }
   0x9   :  { %v3058_v13 = vld [vmem:[%s4857_s0 + $0xe8] sm:$0xf]  ;;  %964 = vst [vmem:[#allocation0 + $0x1e0] sm:$0xf] %v3056_v11  ;;  %969 = vst [vmem:[#allocation0 + $0x1d8] sm:$0xf] %v3057_v12 }
   0xa   :  { %974 = vst [vmem:[#allocation0 + $0x1d0] sm:$0xf] %v3058_v13  ;;  %v3059_v14 = vld [vmem:[%s4857_s0 + $0xe4] sm:$0xf]  ;;  %v3060_v15 = vld [vmem:[%s4857_s0 + $0xe0] sm:$0xf] }
   0xb   :  { %v3081_v16 = vld [vmem:[%s4857_s0 + $0x8c] sm:$0xf]  ;;  %979 = vst [vmem:[#allocation0 + $0x1c8] sm:$0xf] %v3059_v14  ;;  %984 = vst [vmem:[#allocation0 + $0x1c0] sm:$0xf] %v3060_v15 }
   0xc   :  { %1089 = vst [vmem:[#allocation0 + $0x118] sm:$0xf] %v3081_v16  ;;  %v3082_v17 = vld [vmem:[%s4857_s0 + $0x88] sm:$0xf]  ;;  %v3083_v18 = vld [vmem:[%s4857_s0 + $0x84] sm:$0xf] }
   0xd   :  { %v3084_v19 = vld [vmem:[%s4857_s0 + $0x80] sm:$0xf]  ;;  %1094 = vst [vmem:[#allocation0 + $0x110] sm:$0xf] %v3082_v17  ;;  %1099 = vst [vmem:[#allocation0 + $0x108] sm:$0xf] %v3083_v18 }
   0xe   :  { %1104 = vst [vmem:[#allocation0 + $0x100] sm:$0xf] %v3084_v19  ;;  %v3085_v20 = vld [vmem:[%s4857_s0 + $0x7c] sm:$0xf]  ;;  %v3086_v21 = vld [vmem:[%s4857_s0 + $0x78] sm:$0xf] }
   0xf   :  { %v3087_v22 = vld [vmem:[%s4857_s0 + $0x74] sm:$0xf]  ;;  %1109 = vst [vmem:[#allocation0 + $0xf8] sm:$0xf] %v3085_v20  ;;  %1114 = vst [vmem:[#allocation0 + $0xf0] sm:$0xf] %v3086_v21 }
  0x10   :  { %1119 = vst [vmem:[#allocation0 + $0xe8] sm:$0xf] %v3087_v22  ;;  %v3088_v23 = vld [vmem:[%s4857_s0 + $0x70] sm:$0xf]  ;;  %v3025_v24 = vld [vmem:[%s4857_s0 + $0x16c] sm:$0xf] }
  0x11   :  { %v3026_v25 = vld [vmem:[%s4857_s0 + $0x168] sm:$0xf]  ;;  %1124 = vst [vmem:[#allocation0 + $0xe0] sm:$0xf] %v3088_v23  ;;  %809 = vst [vmem:[#allocation0 + $0x2d8] sm:$0xf] %v3025_v24 }
  0x12   :  { %v1553_v26 = vld [vmem:[#allocation0 + $0x3] ss:$8 sm:$0xf0]   ;;  %814 = vst [vmem:[#allocation0 + $0x2d0] sm:$0xf] %v3026_v25  ;;  %vm2268_vm4 = vcmask 457952  }
  0x13   :  { %v3027_v27 = vld [vmem:[%s4857_s0 + $0x164] sm:$0xf]  ;;  %v1551_v28 = vld [vmem:[#allocation0 + $0x3] ss:$8 sm:$0xf]  }
  0x14   :  { %819 = vst [vmem:[#allocation0 + $0x2c8] sm:$0xf] %v3027_v27  ;;  %v3028_v29 = vld [vmem:[%s4857_s0 + $0x160] sm:$0xf]  ;;  %v1555_v30 = vsel %vm1263_vm0, %v1553_v26, %v1551_v28  ;;  %v3029_v31 = vld [vmem:[%s4857_s0 + $0x15c] sm:$0xf] }
  0x15   :  { %824 = vst [vmem:[#allocation0 + $0x2c0] sm:$0xf] %v3028_v29  ;;  %v3030_v32 = vld [vmem:[%s4857_s0 + $0x158] sm:$0xf]  ;;  %v3031_v33 = vld [vmem:[%s4857_s0 + $0x154] sm:$0xf]  ;;  %1556 = vrot.lane.b32.xlu0 %v1555_v30, %s3259_s10 }
  0x16   :  { %v1574_v34 = vld [vmem:[#allocation0 + $0x1c3] ss:$8 sm:$0xf0]   ;;  %829 = vst [vmem:[#allocation0 + $0x2b8] sm:$0xf] %v3029_v31 }
  0x17   :  { %834 = vst [vmem:[#allocation0 + $0x2b0] sm:$0xf] %v3030_v32  ;;  %839 = vst [vmem:[#allocation0 + $0x2a8] sm:$0xf] %v3031_v33  ;;  %v3032_v35 = vld [vmem:[%s4857_s0 + $0x150] sm:$0xf] }
  0x18   :  { %v1572_v36 = vld [vmem:[#allocation0 + $0x1c3] ss:$8 sm:$0xf]   ;;  %844 = vst [vmem:[#allocation0 + $0x2a0] sm:$0xf] %v3032_v35 }
  0x19   :  { %v2997_v37 = vld [vmem:[%s4857_s0 + $0x1dc] sm:$0xf]  ;;  %v1576_v38 = vsel %vm1263_vm0, %v1574_v34, %v1572_v36  ;;  %v1563_v39 = vld [vmem:[#allocation0 + $0xe3] ss:$8 sm:$0xf0]  }
  0x1a   :  { %669 = vst [vmem:[#allocation0 + $0x3b8] sm:$0xf] %v2997_v37  ;;  %v2998_v40 = vld [vmem:[%s4857_s0 + $0x1d8] sm:$0xf]  ;;  %1577 = vrot.lane.b32.xlu1 %v1576_v38, %s3259_s10  ;;  %v2999_v41 = vld [vmem:[%s4857_s0 + $0x1d4] sm:$0xf] }
  0x1b   :  { %674 = vst [vmem:[#allocation0 + $0x3b0] sm:$0xf] %v2998_v40  ;;  %v3000_v42 = vld [vmem:[%s4857_s0 + $0x1d0] sm:$0xf]  ;;  %v3001_v43 = vld [vmem:[%s4857_s0 + $0x1cc] sm:$0xf] }
  0x1c   :  { %v1561_v44 = vld [vmem:[#allocation0 + $0xe3] ss:$8 sm:$0xf]   ;;  %679 = vst [vmem:[#allocation0 + $0x3a8] sm:$0xf] %v2999_v41 }
  0x1d   :  { %684 = vst [vmem:[#allocation0 + $0x3a0] sm:$0xf] %v3000_v42  ;;  %689 = vst [vmem:[#allocation0 + $0x398] sm:$0xf] %v3001_v43  ;;  %v3002_v45 = vld [vmem:[%s4857_s0 + $0x1c8] sm:$0xf]  ;;  %v1565_v46 = vsel %vm1263_vm0, %v1563_v39, %v1561_v44 }
  0x1e   :  { %694 = vst [vmem:[#allocation0 + $0x390] sm:$0xf] %v3002_v45  ;;  %v3003_v47 = vld [vmem:[%s4857_s0 + $0x1c4] sm:$0xf]  ;;  %v3004_v48 = vld [vmem:[%s4857_s0 + $0x1c0] sm:$0xf]  ;;  %1566 = vrot.lane.b32.xlu0 %v1565_v46, %s3259_s10 }
  0x1f   :  { %v2969_v49 = vld [vmem:[%s4857_s0 + $0x24c] sm:$0xf]  ;;  %v1585_v50 = vld [vmem:[#allocation0 + $0x2a3] ss:$8 sm:$0xf0]  }
  0x20   :  { %699 = vst [vmem:[#allocation0 + $0x388] sm:$0xf] %v3003_v47  ;;  %704 = vst [vmem:[#allocation0 + $0x380] sm:$0xf] %v3004_v48  ;;  %v2970_v51 = vld [vmem:[%s4857_s0 + $0x248] sm:$0xf] }
  0x21   :  { %529 = vst [vmem:[#allocation0 + $0x498] sm:$0xf] %v2969_v49  ;;  %534 = vst [vmem:[#allocation0 + $0x490] sm:$0xf] %v2970_v51  ;;  %v2971_v52 = vld [vmem:[%s4857_s0 + $0x244] sm:$0xf] }
  0x22   :  { %v2972_v53 = vld [vmem:[%s4857_s0 + $0x240] sm:$0xf]  ;;  %v2973_v54 = vld [vmem:[%s4857_s0 + $0x23c] sm:$0xf]  ;;  %539 = vst [vmem:[#allocation0 + $0x488] sm:$0xf] %v2971_v52 }
  0x23   :  { %v1583_v55 = vld [vmem:[#allocation0 + $0x2a3] ss:$8 sm:$0xf]   ;;  %544 = vst [vmem:[#allocation0 + $0x480] sm:$0xf] %v2972_v53 }
  0x24   :  { %549 = vst [vmem:[#allocation0 + $0x478] sm:$0xf] %v2973_v54  ;;  %v2974_v56 = vld [vmem:[%s4857_s0 + $0x238] sm:$0xf]  ;;  %v1587_v57 = vsel %vm1263_vm0, %v1585_v50, %v1583_v55  ;;  %v2975_v58 = vld [vmem:[%s4857_s0 + $0x234] sm:$0xf] }
  0x25   :  { %554 = vst [vmem:[#allocation0 + $0x470] sm:$0xf] %v2974_v56  ;;  %v2976_v59 = vld [vmem:[%s4857_s0 + $0x230] sm:$0xf]  ;;  %v2941_v60 = vld [vmem:[%s4857_s0 + $0x2bc] sm:$0xf]  ;;  %1588 = vrot.lane.b32.xlu1 %v1587_v57, %s3259_s10 }
  0x26   :  { %559 = vst [vmem:[#allocation0 + $0x468] sm:$0xf] %v2975_v58  ;;  %564 = vst [vmem:[#allocation0 + $0x460] sm:$0xf] %v2976_v59  ;;  %v2942_v61 = vld [vmem:[%s4857_s0 + $0x2b8] sm:$0xf] }
  0x27   :  { %389 = vst [vmem:[#allocation0 + $0x578] sm:$0xf] %v2941_v60  ;;  %v2943_v62 = vld [vmem:[%s4857_s0 + $0x2b4] sm:$0xf]  ;;  %v2944_v63 = vld [vmem:[%s4857_s0 + $0x2b0] sm:$0xf] }
  0x28   :  { %v1596_v0 = vld [vmem:[#allocation0 + $0x383] ss:$8 sm:$0xf0]   ;;  %394 = vst [vmem:[#allocation0 + $0x570] sm:$0xf] %v2942_v61 }
  0x29   :  { %399 = vst [vmem:[#allocation0 + $0x568] sm:$0xf] %v2943_v62  ;;  %404 = vst [vmem:[#allocation0 + $0x560] sm:$0xf] %v2944_v63  ;;  %v2945_v1 = vld [vmem:[%s4857_s0 + $0x2ac] sm:$0xf] }
  0x2a   :  { %409 = vst [vmem:[#allocation0 + $0x558] sm:$0xf] %v2945_v1  ;;  %v2946_v2 = vld [vmem:[%s4857_s0 + $0x2a8] sm:$0xf]  ;;  %v2947_v3 = vld [vmem:[%s4857_s0 + $0x2a4] sm:$0xf] }
  0x2b   :  { %v2948_v4 = vld [vmem:[%s4857_s0 + $0x2a0] sm:$0xf]  ;;  %414 = vst [vmem:[#allocation0 + $0x550] sm:$0xf] %v2946_v2  ;;  %419 = vst [vmem:[#allocation0 + $0x548] sm:$0xf] %v2947_v3 }
  0x2c   :  { %v1594_v5 = vld [vmem:[#allocation0 + $0x383] ss:$8 sm:$0xf]   ;;  %424 = vst [vmem:[#allocation0 + $0x540] sm:$0xf] %v2948_v4 }
  0x2d   :  { %v2913_v6 = vld [vmem:[%s4857_s0 + $0x32c] sm:$0xf]  ;;  %v1598_v7 = vsel %vm1263_vm0, %v1596_v0, %v1594_v5  ;;  %v2914_v8 = vld [vmem:[%s4857_s0 + $0x328] sm:$0xf]  ;;  %v2915_v9 = vld [vmem:[%s4857_s0 + $0x324] sm:$0xf] }
  0x2e   :  { %249 = vst [vmem:[#allocation0 + $0x658] sm:$0xf] %v2913_v6  ;;  %v2916_v10 = vld [vmem:[%s4857_s0 + $0x320] sm:$0xf]  ;;  %1599 = vrot.lane.b32.xlu0 %v1598_v7, %s3259_s10  ;;  %254 = vst [vmem:[#allocation0 + $0x650] sm:$0xf] %v2914_v8 }
  0x2f   :  { %v1607_v11 = vld [vmem:[#allocation0 + $0x463] ss:$8 sm:$0xf0]   ;;  %259 = vst [vmem:[#allocation0 + $0x648] sm:$0xf] %v2915_v9 }
  0x30   :  { %264 = vst [vmem:[#allocation0 + $0x640] sm:$0xf] %v2916_v10  ;;  %v2917_v12 = vld [vmem:[%s4857_s0 + $0x31c] sm:$0xf]  ;;  %v2918_v13 = vld [vmem:[%s4857_s0 + $0x318] sm:$0xf] }
  0x31   :  { %269 = vst [vmem:[#allocation0 + $0x638] sm:$0xf] %v2917_v12  ;;  %v2919_v14 = vld [vmem:[%s4857_s0 + $0x314] sm:$0xf]  ;;  %v2920_v15 = vld [vmem:[%s4857_s0 + $0x310] sm:$0xf] }
  0x32   :  { %v1605_v16 = vld [vmem:[#allocation0 + $0x463] ss:$8 sm:$0xf]   ;;  %274 = vst [vmem:[#allocation0 + $0x630] sm:$0xf] %v2918_v13 }
  0x33   :  { %279 = vst [vmem:[#allocation0 + $0x628] sm:$0xf] %v2919_v14  ;;  %284 = vst [vmem:[#allocation0 + $0x620] sm:$0xf] %v2920_v15  ;;  %v3101_v17 = vld [vmem:[%s4857_s0 + $0x3c] sm:$0xf]  ;;  %v1609_v18 = vsel %vm1263_vm0, %v1607_v11, %v1605_v16 }
  0x34   :  { %v1618_v19 = vld [vmem:[#allocation0 + $0x543] ss:$8 sm:$0xf0]   ;;  %1189 = vst [vmem:[#allocation0 + $0x78] sm:$0xf] %v3101_v17  ;;  %1610 = vrot.lane.b32.xlu1 %v1609_v18, %s3259_s10 }
  0x35   :  { %v3102_v20 = vld [vmem:[%s4857_s0 + $0x38] sm:$0xf]  ;;  %v3103_v21 = vld [vmem:[%s4857_s0 + $0x34] sm:$0xf]  ;;  %v3104_v22 = vld [vmem:[%s4857_s0 + $0x30] sm:$0xf] }
  0x36   :  { %1194 = vst [vmem:[#allocation0 + $0x70] sm:$0xf] %v3102_v20  ;;  %v3105_v23 = vld [vmem:[%s4857_s0 + $0x2c] sm:$0xf]  ;;  %1199 = vst [vmem:[#allocation0 + $0x68] sm:$0xf] %v3103_v21 }
  0x37   :  { %v1616_v24 = vld [vmem:[#allocation0 + $0x543] ss:$8 sm:$0xf]   ;;  %1204 = vst [vmem:[#allocation0 + $0x60] sm:$0xf] %v3104_v22 }
  0x38   :  { %1209 = vst [vmem:[#allocation0 + $0x58] sm:$0xf] %v3105_v23  ;;  %v3106_v25 = vld [vmem:[%s4857_s0 + $0x28] sm:$0xf]  ;;  %v1620_v26 = vsel %vm1263_vm0, %v1618_v19, %v1616_v24  ;;  %v3107_v27 = vld [vmem:[%s4857_s0 + $0x24] sm:$0xf] }
  0x39   :  { %1214 = vst [vmem:[#allocation0 + $0x50] sm:$0xf] %v3106_v25  ;;  %v3108_v28 = vld [vmem:[%s4857_s0 + $0x20] sm:$0xf]  ;;  %v2885_v29 = vld [vmem:[%s4857_s0 + $0x39c] sm:$0xf]  ;;  %1621 = vrot.lane.b32.xlu0 %v1620_v26, %s3259_s10 }
  0x3a   :  { %v1629_v30 = vld [vmem:[#allocation0 + $0x623] ss:$8 sm:$0xf0]   ;;  %1219 = vst [vmem:[#allocation0 + $0x48] sm:$0xf] %v3107_v27 }
  0x3b   :  { %1224 = vst [vmem:[#allocation0 + $0x40] sm:$0xf] %v3108_v28  ;;  %109 = vst [vmem:[#allocation0 + $0x738] sm:$0xf] %v2885_v29  ;;  %v2886_v31 = vld [vmem:[%s4857_s0 + $0x398] sm:$0xf] }
  0x3c   :  { %114 = vst [vmem:[#allocation0 + $0x730] sm:$0xf] %v2886_v31  ;;  %v2887_v32 = vld [vmem:[%s4857_s0 + $0x394] sm:$0xf]  ;;  %v2888_v33 = vld [vmem:[%s4857_s0 + $0x390] sm:$0xf] }
  0x3d   :  { %v2889_v34 = vld [vmem:[%s4857_s0 + $0x38c] sm:$0xf]  ;;  %v1627_v35 = vld [vmem:[#allocation0 + $0x623] ss:$8 sm:$0xf]  }
  0x3e   :  { %119 = vst [vmem:[#allocation0 + $0x728] sm:$0xf] %v2887_v32  ;;  %124 = vst [vmem:[#allocation0 + $0x720] sm:$0xf] %v2888_v33  ;;  %v2890_v36 = vld [vmem:[%s4857_s0 + $0x388] sm:$0xf]  ;;  %v1631_v37 = vsel %vm1263_vm0, %v1629_v30, %v1627_v35 }
  0x3f   :  { %129 = vst [vmem:[#allocation0 + $0x718] sm:$0xf] %v2889_v34  ;;  %134 = vst [vmem:[#allocation0 + $0x710] sm:$0xf] %v2890_v36  ;;  %v2891_v38 = vld [vmem:[%s4857_s0 + $0x384] sm:$0xf]  ;;  %1632 = vrot.lane.b32.xlu1 %v1631_v37, %s3259_s10 }
  0x40   :  { %v2892_v39 = vld [vmem:[%s4857_s0 + $0x380] sm:$0xf]  ;;  %v3045_v40 = vld [vmem:[%s4857_s0 + $0x11c] sm:$0xf]  ;;  %139 = vst [vmem:[#allocation0 + $0x708] sm:$0xf] %v2891_v38 }
  0x41   :  { %144 = vst [vmem:[#allocation0 + $0x700] sm:$0xf] %v2892_v39  ;;  %909 = vst [vmem:[#allocation0 + $0x238] sm:$0xf] %v3045_v40  ;;  %v3046_v41 = vld [vmem:[%s4857_s0 + $0x118] sm:$0xf] }
  0x42   :  { %v3047_v42 = vld [vmem:[%s4857_s0 + $0x114] sm:$0xf]  ;;  %v3048_v43 = vld [vmem:[%s4857_s0 + $0x110] sm:$0xf]  ;;  %914 = vst [vmem:[#allocation0 + $0x230] sm:$0xf] %v3046_v41 }
  0x43   :  { %v1651_v44 = vld [vmem:[#allocation0 + $0x43] ss:$8 sm:$0xf0]   ;;  %919 = vst [vmem:[#allocation0 + $0x228] sm:$0xf] %v3047_v42 }
  0x44   :  { %924 = vst [vmem:[#allocation0 + $0x220] sm:$0xf] %v3048_v43  ;;  %v3049_v45 = vld [vmem:[%s4857_s0 + $0x10c] sm:$0xf]  ;;  %v3050_v46 = vld [vmem:[%s4857_s0 + $0x108] sm:$0xf] }
  0x45   :  { %929 = vst [vmem:[#allocation0 + $0x218] sm:$0xf] %v3049_v45  ;;  %v3051_v47 = vld [vmem:[%s4857_s0 + $0x104] sm:$0xf]  ;;  %v3052_v48 = vld [vmem:[%s4857_s0 + $0x100] sm:$0xf] }
  0x46   :  { %v1649_v49 = vld [vmem:[#allocation0 + $0x43] ss:$8 sm:$0xf]   ;;  %934 = vst [vmem:[#allocation0 + $0x210] sm:$0xf] %v3050_v46 }
  0x47   :  { %939 = vst [vmem:[#allocation0 + $0x208] sm:$0xf] %v3051_v47  ;;  %944 = vst [vmem:[#allocation0 + $0x200] sm:$0xf] %v3052_v48  ;;  %v3073_v50 = vld [vmem:[%s4857_s0 + $0xac] sm:$0xf]  ;;  %v1653_v51 = vsel %vm1263_vm0, %v1651_v44, %v1649_v49 }
  0x48   :  { %1049 = vst [vmem:[#allocation0 + $0x158] sm:$0xf] %v3073_v50  ;;  %v3074_v52 = vld [vmem:[%s4857_s0 + $0xa8] sm:$0xf]  ;;  %v3075_v53 = vld [vmem:[%s4857_s0 + $0xa4] sm:$0xf]  ;;  %1654 = vrot.lane.b32.xlu1 %v1653_v51, %s3259_s10 }
  0x49   :  { %v3076_v54 = vld [vmem:[%s4857_s0 + $0xa0] sm:$0xf]  ;;  %1054 = vst [vmem:[#allocation0 + $0x150] sm:$0xf] %v3074_v52  ;;  %1059 = vst [vmem:[#allocation0 + $0x148] sm:$0xf] %v3075_v53 }
  0x4a   :  { %v1640_v55 = vld [vmem:[#allocation0 + $0x703] ss:$8 sm:$0xf0]   ;;  %1064 = vst [vmem:[#allocation0 + $0x140] sm:$0xf] %v3076_v54 }
  0x4b   :  { %v3077_v56 = vld [vmem:[%s4857_s0 + $0x9c] sm:$0xf]  ;;  %v3078_v57 = vld [vmem:[%s4857_s0 + $0x98] sm:$0xf]  ;;  %v3079_v58 = vld [vmem:[%s4857_s0 + $0x94] sm:$0xf] }
  0x4c   :  { %1069 = vst [vmem:[#allocation0 + $0x138] sm:$0xf] %v3077_v56  ;;  %v3080_v59 = vld [vmem:[%s4857_s0 + $0x90] sm:$0xf]  ;;  %1074 = vst [vmem:[#allocation0 + $0x130] sm:$0xf] %v3078_v57 }
  0x4d   :  { %v1638_v60 = vld [vmem:[#allocation0 + $0x703] ss:$8 sm:$0xf]   ;;  %1079 = vst [vmem:[#allocation0 + $0x128] sm:$0xf] %v3079_v58 }
  0x4e   :  { %1084 = vst [vmem:[#allocation0 + $0x120] sm:$0xf] %v3080_v59  ;;  %v2989_v61 = vld [vmem:[%s4857_s0 + $0x1fc] sm:$0xf]  ;;  %v1642_v62 = vsel %vm1263_vm0, %v1640_v55, %v1638_v60  ;;  %v2990_v0 = vld [vmem:[%s4857_s0 + $0x1f8] sm:$0xf] }
  0x4f   :  { %v1673_v63 = vld [vmem:[#allocation0 + $0x203] ss:$8 sm:$0xf0]   ;;  %629 = vst [vmem:[#allocation0 + $0x3f8] sm:$0xf] %v2989_v61  ;;  %1643 = vrot.lane.b32.xlu0 %v1642_v62, %s3259_s10 }
  0x50   :  { %634 = vst [vmem:[#allocation0 + $0x3f0] sm:$0xf] %v2990_v0  ;;  %v2991_v1 = vld [vmem:[%s4857_s0 + $0x1f4] sm:$0xf]  ;;  %v2992_v2 = vld [vmem:[%s4857_s0 + $0x1f0] sm:$0xf] }
  0x51   :  { %v2993_v3 = vld [vmem:[%s4857_s0 + $0x1ec] sm:$0xf]  ;;  %v1671_v4 = vld [vmem:[#allocation0 + $0x203] ss:$8 sm:$0xf]  }
  0x52   :  { %639 = vst [vmem:[#allocation0 + $0x3e8] sm:$0xf] %v2991_v1  ;;  %644 = vst [vmem:[#allocation0 + $0x3e0] sm:$0xf] %v2992_v2  ;;  %v2994_v5 = vld [vmem:[%s4857_s0 + $0x1e8] sm:$0xf]  ;;  %v1675_v6 = vsel %vm1263_vm0, %v1673_v63, %v1671_v4 }
  0x53   :  { %649 = vst [vmem:[#allocation0 + $0x3d8] sm:$0xf] %v2993_v3  ;;  %654 = vst [vmem:[#allocation0 + $0x3d0] sm:$0xf] %v2994_v5  ;;  %v2995_v7 = vld [vmem:[%s4857_s0 + $0x1e4] sm:$0xf]  ;;  %1676 = vrot.lane.b32.xlu1 %v1675_v6, %s3259_s10 }
  0x54   :  { %v2996_v8 = vld [vmem:[%s4857_s0 + $0x1e0] sm:$0xf]  ;;  %v3017_v9 = vld [vmem:[%s4857_s0 + $0x18c] sm:$0xf]  ;;  %659 = vst [vmem:[#allocation0 + $0x3c8] sm:$0xf] %v2995_v7 }
  0x55   :  { %v1662_v10 = vld [vmem:[#allocation0 + $0x123] ss:$8 sm:$0xf0]   ;;  %664 = vst [vmem:[#allocation0 + $0x3c0] sm:$0xf] %v2996_v8 }
  0x56   :  { %769 = vst [vmem:[#allocation0 + $0x318] sm:$0xf] %v3017_v9  ;;  %v3018_v11 = vld [vmem:[%s4857_s0 + $0x188] sm:$0xf]  ;;  %v3019_v12 = vld [vmem:[%s4857_s0 + $0x184] sm:$0xf] }
  0x57   :  { %774 = vst [vmem:[#allocation0 + $0x310] sm:$0xf] %v3018_v11  ;;  %v3020_v13 = vld [vmem:[%s4857_s0 + $0x180] sm:$0xf]  ;;  %v3021_v14 = vld [vmem:[%s4857_s0 + $0x17c] sm:$0xf] }
  0x58   :  { %v1660_v15 = vld [vmem:[#allocation0 + $0x123] ss:$8 sm:$0xf]   ;;  %779 = vst [vmem:[#allocation0 + $0x308] sm:$0xf] %v3019_v12 }
  0x59   :  { %784 = vst [vmem:[#allocation0 + $0x300] sm:$0xf] %v3020_v13  ;;  %789 = vst [vmem:[#allocation0 + $0x2f8] sm:$0xf] %v3021_v14  ;;  %v3022_v16 = vld [vmem:[%s4857_s0 + $0x178] sm:$0xf]  ;;  %v1664_v17 = vsel %vm1263_vm0, %v1662_v10, %v1660_v15 }
  0x5a   :  { %794 = vst [vmem:[#allocation0 + $0x2f0] sm:$0xf] %v3022_v16  ;;  %v3023_v18 = vld [vmem:[%s4857_s0 + $0x174] sm:$0xf]  ;;  %v3024_v19 = vld [vmem:[%s4857_s0 + $0x170] sm:$0xf]  ;;  %1665 = vrot.lane.b32.xlu0 %v1664_v17, %s3259_s10 }
  0x5b   :  { %v2933_v20 = vld [vmem:[%s4857_s0 + $0x2dc] sm:$0xf]  ;;  %799 = vst [vmem:[#allocation0 + $0x2e8] sm:$0xf] %v3023_v18  ;;  %804 = vst [vmem:[#allocation0 + $0x2e0] sm:$0xf] %v3024_v19 }
  0x5c   :  { %349 = vst [vmem:[#allocation0 + $0x5b8] sm:$0xf] %v2933_v20  ;;  %v2934_v21 = vld [vmem:[%s4857_s0 + $0x2d8] sm:$0xf]  ;;  %v2935_v22 = vld [vmem:[%s4857_s0 + $0x2d4] sm:$0xf] }
  0x5d   :  { %v2936_v23 = vld [vmem:[%s4857_s0 + $0x2d0] sm:$0xf]  ;;  %354 = vst [vmem:[#allocation0 + $0x5b0] sm:$0xf] %v2934_v21  ;;  %359 = vst [vmem:[#allocation0 + $0x5a8] sm:$0xf] %v2935_v22 }
  0x5e   :  { %v1695_v24 = vld [vmem:[#allocation0 + $0x3c3] ss:$8 sm:$0xf0]   ;;  %364 = vst [vmem:[#allocation0 + $0x5a0] sm:$0xf] %v2936_v23 }
  0x5f   :  { %v2937_v25 = vld [vmem:[%s4857_s0 + $0x2cc] sm:$0xf]  ;;  %v2938_v26 = vld [vmem:[%s4857_s0 + $0x2c8] sm:$0xf]  ;;  %v2939_v27 = vld [vmem:[%s4857_s0 + $0x2c4] sm:$0xf] }
  0x60   :  { %369 = vst [vmem:[#allocation0 + $0x598] sm:$0xf] %v2937_v25  ;;  %v2940_v28 = vld [vmem:[%s4857_s0 + $0x2c0] sm:$0xf]  ;;  %374 = vst [vmem:[#allocation0 + $0x590] sm:$0xf] %v2938_v26 }
  0x61   :  { %v1693_v29 = vld [vmem:[#allocation0 + $0x3c3] ss:$8 sm:$0xf]   ;;  %379 = vst [vmem:[#allocation0 + $0x588] sm:$0xf] %v2939_v27 }
  0x62   :  { %384 = vst [vmem:[#allocation0 + $0x580] sm:$0xf] %v2940_v28  ;;  %v2961_v30 = vld [vmem:[%s4857_s0 + $0x26c] sm:$0xf]  ;;  %v1697_v31 = vsel %vm1263_vm0, %v1695_v24, %v1693_v29  ;;  %v2962_v32 = vld [vmem:[%s4857_s0 + $0x268] sm:$0xf] }
  0x63   :  { %489 = vst [vmem:[#allocation0 + $0x4d8] sm:$0xf] %v2961_v30  ;;  %v2963_v33 = vld [vmem:[%s4857_s0 + $0x264] sm:$0xf]  ;;  %v2964_v34 = vld [vmem:[%s4857_s0 + $0x260] sm:$0xf]  ;;  %1698 = vrot.lane.b32.xlu1 %v1697_v31, %s3259_s10 }
  0x64   :  { %v1684_v35 = vld [vmem:[#allocation0 + $0x2e3] ss:$8 sm:$0xf0]   ;;  %494 = vst [vmem:[#allocation0 + $0x4d0] sm:$0xf] %v2962_v32 }
  0x65   :  { %499 = vst [vmem:[#allocation0 + $0x4c8] sm:$0xf] %v2963_v33  ;;  %504 = vst [vmem:[#allocation0 + $0x4c0] sm:$0xf] %v2964_v34  ;;  %v2965_v36 = vld [vmem:[%s4857_s0 + $0x25c] sm:$0xf] }
  0x66   :  { %509 = vst [vmem:[#allocation0 + $0x4b8] sm:$0xf] %v2965_v36  ;;  %v2966_v37 = vld [vmem:[%s4857_s0 + $0x258] sm:$0xf]  ;;  %v2967_v38 = vld [vmem:[%s4857_s0 + $0x254] sm:$0xf] }
  0x67   :  { %v2968_v39 = vld [vmem:[%s4857_s0 + $0x250] sm:$0xf]  ;;  %514 = vst [vmem:[#allocation0 + $0x4b0] sm:$0xf] %v2966_v37  ;;  %519 = vst [vmem:[#allocation0 + $0x4a8] sm:$0xf] %v2967_v38 }
  0x68   :  { %v1682_v40 = vld [vmem:[#allocation0 + $0x2e3] ss:$8 sm:$0xf]   ;;  %524 = vst [vmem:[#allocation0 + $0x4a0] sm:$0xf] %v2968_v39 }
  0x69   :  { %v2905_v41 = vld [vmem:[%s4857_s0 + $0x34c] sm:$0xf]  ;;  %v1686_v42 = vsel %vm1263_vm0, %v1684_v35, %v1682_v40  ;;  %v1717_v43 = vld [vmem:[#allocation0 + $0x583] ss:$8 sm:$0xf0]  }
  0x6a   :  { %209 = vst [vmem:[#allocation0 + $0x698] sm:$0xf] %v2905_v41  ;;  %v2906_v44 = vld [vmem:[%s4857_s0 + $0x348] sm:$0xf]  ;;  %1687 = vrot.lane.b32.xlu0 %v1686_v42, %s3259_s10  ;;  %v2907_v45 = vld [vmem:[%s4857_s0 + $0x344] sm:$0xf] }
  0x6b   :  { %214 = vst [vmem:[#allocation0 + $0x690] sm:$0xf] %v2906_v44  ;;  %v2908_v46 = vld [vmem:[%s4857_s0 + $0x340] sm:$0xf]  ;;  %v2909_v47 = vld [vmem:[%s4857_s0 + $0x33c] sm:$0xf] }
  0x6c   :  { %v1715_v48 = vld [vmem:[#allocation0 + $0x583] ss:$8 sm:$0xf]   ;;  %219 = vst [vmem:[#allocation0 + $0x688] sm:$0xf] %v2907_v45 }
  0x6d   :  { %224 = vst [vmem:[#allocation0 + $0x680] sm:$0xf] %v2908_v46  ;;  %229 = vst [vmem:[#allocation0 + $0x678] sm:$0xf] %v2909_v47  ;;  %v2910_v49 = vld [vmem:[%s4857_s0 + $0x338] sm:$0xf]  ;;  %v1719_v50 = vsel %vm1263_vm0, %v1717_v43, %v1715_v48 }
  0x6e   :  { %234 = vst [vmem:[#allocation0 + $0x670] sm:$0xf] %v2910_v49  ;;  %v2911_v51 = vld [vmem:[%s4857_s0 + $0x334] sm:$0xf]  ;;  %v2912_v52 = vld [vmem:[%s4857_s0 + $0x330] sm:$0xf]  ;;  %1720 = vrot.lane.b32.xlu1 %v1719_v50, %s3259_s10 }
  0x6f   :  { %v2877_v53 = vld [vmem:[%s4857_s0 + $0x3bc] sm:$0xf]  ;;  %v1706_v54 = vld [vmem:[#allocation0 + $0x4a3] ss:$8 sm:$0xf0]  }
  0x70   :  { %239 = vst [vmem:[#allocation0 + $0x668] sm:$0xf] %v2911_v51  ;;  %244 = vst [vmem:[#allocation0 + $0x660] sm:$0xf] %v2912_v52  ;;  %v2878_v55 = vld [vmem:[%s4857_s0 + $0x3b8] sm:$0xf] }
  0x71   :  { %69 = vst [vmem:[#allocation0 + $0x778] sm:$0xf] %v2877_v53  ;;  %74 = vst [vmem:[#allocation0 + $0x770] sm:$0xf] %v2878_v55  ;;  %v2879_v56 = vld [vmem:[%s4857_s0 + $0x3b4] sm:$0xf] }
  0x72   :  { %v2880_v57 = vld [vmem:[%s4857_s0 + $0x3b0] sm:$0xf]  ;;  %v2881_v58 = vld [vmem:[%s4857_s0 + $0x3ac] sm:$0xf]  ;;  %79 = vst [vmem:[#allocation0 + $0x768] sm:$0xf] %v2879_v56 }
  0x73   :  { %v1704_v59 = vld [vmem:[#allocation0 + $0x4a3] ss:$8 sm:$0xf]   ;;  %84 = vst [vmem:[#allocation0 + $0x760] sm:$0xf] %v2880_v57 }
  0x74   :  { %89 = vst [vmem:[#allocation0 + $0x758] sm:$0xf] %v2881_v58  ;;  %v2882_v60 = vld [vmem:[%s4857_s0 + $0x3a8] sm:$0xf]  ;;  %v1708_v61 = vsel %vm1263_vm0, %v1706_v54, %v1704_v59  ;;  %v2883_v62 = vld [vmem:[%s4857_s0 + $0x3a4] sm:$0xf] }
  0x75   :  { %94 = vst [vmem:[#allocation0 + $0x750] sm:$0xf] %v2882_v60  ;;  %v2884_v63 = vld [vmem:[%s4857_s0 + $0x3a0] sm:$0xf]  ;;  %v3093_v0 = vld [vmem:[%s4857_s0 + $0x5c] sm:$0xf]  ;;  %1709 = vrot.lane.b32.xlu0 %v1708_v61, %s3259_s10 }
  0x76   :  { %99 = vst [vmem:[#allocation0 + $0x748] sm:$0xf] %v2883_v62  ;;  %104 = vst [vmem:[#allocation0 + $0x740] sm:$0xf] %v2884_v63  ;;  %v3094_v1 = vld [vmem:[%s4857_s0 + $0x58] sm:$0xf] }
  0x77   :  { %1149 = vst [vmem:[#allocation0 + $0xb8] sm:$0xf] %v3093_v0  ;;  %v3095_v2 = vld [vmem:[%s4857_s0 + $0x54] sm:$0xf]  ;;  %v3096_v3 = vld [vmem:[%s4857_s0 + $0x50] sm:$0xf] }
  0x78   :  { %v1728_v4 = vld [vmem:[#allocation0 + $0x663] ss:$8 sm:$0xf0]   ;;  %1154 = vst [vmem:[#allocation0 + $0xb0] sm:$0xf] %v3094_v1 }
  0x79   :  { %1159 = vst [vmem:[#allocation0 + $0xa8] sm:$0xf] %v3095_v2  ;;  %1164 = vst [vmem:[#allocation0 + $0xa0] sm:$0xf] %v3096_v3  ;;  %v3097_v5 = vld [vmem:[%s4857_s0 + $0x4c] sm:$0xf] }
  0x7a   :  { %1169 = vst [vmem:[#allocation0 + $0x98] sm:$0xf] %v3097_v5  ;;  %v3098_v6 = vld [vmem:[%s4857_s0 + $0x48] sm:$0xf]  ;;  %v3099_v7 = vld [vmem:[%s4857_s0 + $0x44] sm:$0xf] }
  0x7b   :  { %v3100_v8 = vld [vmem:[%s4857_s0 + $0x40] sm:$0xf]  ;;  %1174 = vst [vmem:[#allocation0 + $0x90] sm:$0xf] %v3098_v6  ;;  %1179 = vst [vmem:[#allocation0 + $0x88] sm:$0xf] %v3099_v7 }
  0x7c   :  { %v1726_v9 = vld [vmem:[#allocation0 + $0x663] ss:$8 sm:$0xf]   ;;  %1184 = vst [vmem:[#allocation0 + $0x80] sm:$0xf] %v3100_v8 }
  0x7d   :  { %v3065_v10 = vld [vmem:[%s4857_s0 + $0xcc] sm:$0xf]  ;;  %v1730_v11 = vsel %vm1263_vm0, %v1728_v4, %v1726_v9  ;;  %v3066_v12 = vld [vmem:[%s4857_s0 + $0xc8] sm:$0xf]  ;;  %v3067_v13 = vld [vmem:[%s4857_s0 + $0xc4] sm:$0xf] }
  0x7e   :  { %1009 = vst [vmem:[#allocation0 + $0x198] sm:$0xf] %v3065_v10  ;;  %v3068_v14 = vld [vmem:[%s4857_s0 + $0xc0] sm:$0xf]  ;;  %1731 = vrot.lane.b32.xlu0 %v1730_v11, %s3259_s10  ;;  %1014 = vst [vmem:[#allocation0 + $0x190] sm:$0xf] %v3066_v12 }
  0x7f   :  { %v1739_v15 = vld [vmem:[#allocation0 + $0x743] ss:$8 sm:$0xf0]   ;;  %1019 = vst [vmem:[#allocation0 + $0x188] sm:$0xf] %v3067_v13 }
  0x80   :  { %1024 = vst [vmem:[#allocation0 + $0x180] sm:$0xf] %v3068_v14  ;;  %v3069_v16 = vld [vmem:[%s4857_s0 + $0xbc] sm:$0xf]  ;;  %v3070_v17 = vld [vmem:[%s4857_s0 + $0xb8] sm:$0xf] }
  0x81   :  { %1029 = vst [vmem:[#allocation0 + $0x178] sm:$0xf] %v3069_v16  ;;  %v3071_v18 = vld [vmem:[%s4857_s0 + $0xb4] sm:$0xf]  ;;  %v3072_v19 = vld [vmem:[%s4857_s0 + $0xb0] sm:$0xf] }
  0x82   :  { %v1737_v20 = vld [vmem:[#allocation0 + $0x743] ss:$8 sm:$0xf]   ;;  %1034 = vst [vmem:[#allocation0 + $0x170] sm:$0xf] %v3070_v17 }
  0x83   :  { %1039 = vst [vmem:[#allocation0 + $0x168] sm:$0xf] %v3071_v18  ;;  %1044 = vst [vmem:[#allocation0 + $0x160] sm:$0xf] %v3072_v19  ;;  %v3037_v21 = vld [vmem:[%s4857_s0 + $0x13c] sm:$0xf]  ;;  %v1741_v22 = vsel %vm1263_vm0, %v1739_v15, %v1737_v20 }
  0x84   :  { %v1750_v23 = vld [vmem:[#allocation0 + $0x83] ss:$8 sm:$0xf0]   ;;  %869 = vst [vmem:[#allocation0 + $0x278] sm:$0xf] %v3037_v21  ;;  %1742 = vrot.lane.b32.xlu1 %v1741_v22, %s3259_s10 }
  0x85   :  { %v3038_v24 = vld [vmem:[%s4857_s0 + $0x138] sm:$0xf]  ;;  %v3039_v25 = vld [vmem:[%s4857_s0 + $0x134] sm:$0xf]  ;;  %v3040_v26 = vld [vmem:[%s4857_s0 + $0x130] sm:$0xf] }
  0x86   :  { %874 = vst [vmem:[#allocation0 + $0x270] sm:$0xf] %v3038_v24  ;;  %v3041_v27 = vld [vmem:[%s4857_s0 + $0x12c] sm:$0xf]  ;;  %879 = vst [vmem:[#allocation0 + $0x268] sm:$0xf] %v3039_v25 }
  0x87   :  { %v1748_v28 = vld [vmem:[#allocation0 + $0x83] ss:$8 sm:$0xf]   ;;  %884 = vst [vmem:[#allocation0 + $0x260] sm:$0xf] %v3040_v26 }
  0x88   :  { %889 = vst [vmem:[#allocation0 + $0x258] sm:$0xf] %v3041_v27  ;;  %v3042_v29 = vld [vmem:[%s4857_s0 + $0x128] sm:$0xf]  ;;  %v1752_v30 = vsel %vm1263_vm0, %v1750_v23, %v1748_v28  ;;  %v3043_v31 = vld [vmem:[%s4857_s0 + $0x124] sm:$0xf] }
  0x89   :  { %894 = vst [vmem:[#allocation0 + $0x250] sm:$0xf] %v3042_v29  ;;  %v3044_v32 = vld [vmem:[%s4857_s0 + $0x120] sm:$0xf]  ;;  %v3009_v33 = vld [vmem:[%s4857_s0 + $0x1ac] sm:$0xf]  ;;  %1753 = vrot.lane.b32.xlu0 %v1752_v30, %s3259_s10 }
  0x8a   :  { %v1761_v34 = vld [vmem:[#allocation0 + $0x163] ss:$8 sm:$0xf0]   ;;  %899 = vst [vmem:[#allocation0 + $0x248] sm:$0xf] %v3043_v31 }
  0x8b   :  { %904 = vst [vmem:[#allocation0 + $0x240] sm:$0xf] %v3044_v32  ;;  %729 = vst [vmem:[#allocation0 + $0x358] sm:$0xf] %v3009_v33  ;;  %v3010_v35 = vld [vmem:[%s4857_s0 + $0x1a8] sm:$0xf] }
  0x8c   :  { %734 = vst [vmem:[#allocation0 + $0x350] sm:$0xf] %v3010_v35  ;;  %v3011_v36 = vld [vmem:[%s4857_s0 + $0x1a4] sm:$0xf]  ;;  %v3012_v37 = vld [vmem:[%s4857_s0 + $0x1a0] sm:$0xf] }
  0x8d   :  { %v3013_v38 = vld [vmem:[%s4857_s0 + $0x19c] sm:$0xf]  ;;  %v1759_v39 = vld [vmem:[#allocation0 + $0x163] ss:$8 sm:$0xf]  }
  0x8e   :  { %739 = vst [vmem:[#allocation0 + $0x348] sm:$0xf] %v3011_v36  ;;  %744 = vst [vmem:[#allocation0 + $0x340] sm:$0xf] %v3012_v37  ;;  %v3014_v40 = vld [vmem:[%s4857_s0 + $0x198] sm:$0xf]  ;;  %v1763_v41 = vsel %vm1263_vm0, %v1761_v34, %v1759_v39 }
  0x8f   :  { %749 = vst [vmem:[#allocation0 + $0x338] sm:$0xf] %v3013_v38  ;;  %754 = vst [vmem:[#allocation0 + $0x330] sm:$0xf] %v3014_v40  ;;  %v3015_v42 = vld [vmem:[%s4857_s0 + $0x194] sm:$0xf]  ;;  %1764 = vrot.lane.b32.xlu1 %v1763_v41, %s3259_s10 }
  0x90   :  { %v3016_v43 = vld [vmem:[%s4857_s0 + $0x190] sm:$0xf]  ;;  %v2981_v44 = vld [vmem:[%s4857_s0 + $0x21c] sm:$0xf]  ;;  %759 = vst [vmem:[#allocation0 + $0x328] sm:$0xf] %v3015_v42 }
  0x91   :  { %764 = vst [vmem:[#allocation0 + $0x320] sm:$0xf] %v3016_v43  ;;  %589 = vst [vmem:[#allocation0 + $0x438] sm:$0xf] %v2981_v44  ;;  %v2982_v45 = vld [vmem:[%s4857_s0 + $0x218] sm:$0xf] }
  0x92   :  { %v2983_v46 = vld [vmem:[%s4857_s0 + $0x214] sm:$0xf]  ;;  %v2984_v47 = vld [vmem:[%s4857_s0 + $0x210] sm:$0xf]  ;;  %594 = vst [vmem:[#allocation0 + $0x430] sm:$0xf] %v2982_v45 }
  0x93   :  { %v1772_v48 = vld [vmem:[#allocation0 + $0x243] ss:$8 sm:$0xf0]   ;;  %599 = vst [vmem:[#allocation0 + $0x428] sm:$0xf] %v2983_v46 }
  0x94   :  { %604 = vst [vmem:[#allocation0 + $0x420] sm:$0xf] %v2984_v47  ;;  %v2985_v49 = vld [vmem:[%s4857_s0 + $0x20c] sm:$0xf]  ;;  %v2986_v50 = vld [vmem:[%s4857_s0 + $0x208] sm:$0xf] }
  0x95   :  { %609 = vst [vmem:[#allocation0 + $0x418] sm:$0xf] %v2985_v49  ;;  %v2987_v51 = vld [vmem:[%s4857_s0 + $0x204] sm:$0xf]  ;;  %v2988_v52 = vld [vmem:[%s4857_s0 + $0x200] sm:$0xf] }
  0x96   :  { %v1770_v53 = vld [vmem:[#allocation0 + $0x243] ss:$8 sm:$0xf]   ;;  %614 = vst [vmem:[#allocation0 + $0x410] sm:$0xf] %v2986_v50 }
  0x97   :  { %619 = vst [vmem:[#allocation0 + $0x408] sm:$0xf] %v2987_v51  ;;  %624 = vst [vmem:[#allocation0 + $0x400] sm:$0xf] %v2988_v52  ;;  %v2953_v54 = vld [vmem:[%s4857_s0 + $0x28c] sm:$0xf]  ;;  %v1774_v55 = vsel %vm1263_vm0, %v1772_v48, %v1770_v53 }
  0x98   :  { %449 = vst [vmem:[#allocation0 + $0x518] sm:$0xf] %v2953_v54  ;;  %v2954_v56 = vld [vmem:[%s4857_s0 + $0x288] sm:$0xf]  ;;  %v2955_v57 = vld [vmem:[%s4857_s0 + $0x284] sm:$0xf]  ;;  %1775 = vrot.lane.b32.xlu0 %v1774_v55, %s3259_s10 }
  0x99   :  { %v2956_v58 = vld [vmem:[%s4857_s0 + $0x280] sm:$0xf]  ;;  %454 = vst [vmem:[#allocation0 + $0x510] sm:$0xf] %v2954_v56  ;;  %459 = vst [vmem:[#allocation0 + $0x508] sm:$0xf] %v2955_v57 }
  0x9a   :  { %v1783_v59 = vld [vmem:[#allocation0 + $0x323] ss:$8 sm:$0xf0]   ;;  %464 = vst [vmem:[#allocation0 + $0x500] sm:$0xf] %v2956_v58 }
  0x9b   :  { %v2957_v60 = vld [vmem:[%s4857_s0 + $0x27c] sm:$0xf]  ;;  %v2958_v61 = vld [vmem:[%s4857_s0 + $0x278] sm:$0xf]  ;;  %v2959_v62 = vld [vmem:[%s4857_s0 + $0x274] sm:$0xf] }
  0x9c   :  { %469 = vst [vmem:[#allocation0 + $0x4f8] sm:$0xf] %v2957_v60  ;;  %v2960_v63 = vld [vmem:[%s4857_s0 + $0x270] sm:$0xf]  ;;  %474 = vst [vmem:[#allocation0 + $0x4f0] sm:$0xf] %v2958_v61 }
  0x9d   :  { %v1781_v0 = vld [vmem:[#allocation0 + $0x323] ss:$8 sm:$0xf]   ;;  %479 = vst [vmem:[#allocation0 + $0x4e8] sm:$0xf] %v2959_v62 }
  0x9e   :  { %484 = vst [vmem:[#allocation0 + $0x4e0] sm:$0xf] %v2960_v63  ;;  %v2925_v1 = vld [vmem:[%s4857_s0 + $0x2fc] sm:$0xf]  ;;  %v1785_v2 = vsel %vm1263_vm0, %v1783_v59, %v1781_v0  ;;  %v2926_v4 = vld [vmem:[%s4857_s0 + $0x2f8] sm:$0xf] }
  0x9f   :  { %v1794_v3 = vld [vmem:[#allocation0 + $0x403] ss:$8 sm:$0xf0]   ;;  %309 = vst [vmem:[#allocation0 + $0x5f8] sm:$0xf] %v2925_v1  ;;  %1786 = vrot.lane.b32.xlu1 %v1785_v2, %s3259_s10 }
  0xa0   :  { %314 = vst [vmem:[#allocation0 + $0x5f0] sm:$0xf] %v2926_v4  ;;  %v2927_v5 = vld [vmem:[%s4857_s0 + $0x2f4] sm:$0xf]  ;;  %v2928_v6 = vld [vmem:[%s4857_s0 + $0x2f0] sm:$0xf] }
  0xa1   :  { %v2929_v7 = vld [vmem:[%s4857_s0 + $0x2ec] sm:$0xf]  ;;  %v1792_v8 = vld [vmem:[#allocation0 + $0x403] ss:$8 sm:$0xf]  }
  0xa2   :  { %319 = vst [vmem:[#allocation0 + $0x5e8] sm:$0xf] %v2927_v5  ;;  %324 = vst [vmem:[#allocation0 + $0x5e0] sm:$0xf] %v2928_v6  ;;  %v2930_v9 = vld [vmem:[%s4857_s0 + $0x2e8] sm:$0xf]  ;;  %v1796_v10 = vsel %vm1263_vm0, %v1794_v3, %v1792_v8 }
  0xa3   :  { %329 = vst [vmem:[#allocation0 + $0x5d8] sm:$0xf] %v2929_v7  ;;  %334 = vst [vmem:[#allocation0 + $0x5d0] sm:$0xf] %v2930_v9  ;;  %v2931_v11 = vld [vmem:[%s4857_s0 + $0x2e4] sm:$0xf]  ;;  %1797 = vrot.lane.b32.xlu0 %v1796_v10, %s3259_s10 }
  0xa4   :  { %v2932_v12 = vld [vmem:[%s4857_s0 + $0x2e0] sm:$0xf]  ;;  %v2897_v13 = vld [vmem:[%s4857_s0 + $0x36c] sm:$0xf]  ;;  %339 = vst [vmem:[#allocation0 + $0x5c8] sm:$0xf] %v2931_v11 }
  0xa5   :  { %v1805_v14 = vld [vmem:[#allocation0 + $0x4e3] ss:$8 sm:$0xf0]   ;;  %344 = vst [vmem:[#allocation0 + $0x5c0] sm:$0xf] %v2932_v12 }
  0xa6   :  { %169 = vst [vmem:[#allocation0 + $0x6d8] sm:$0xf] %v2897_v13  ;;  %v2898_v15 = vld [vmem:[%s4857_s0 + $0x368] sm:$0xf]  ;;  %v2899_v16 = vld [vmem:[%s4857_s0 + $0x364] sm:$0xf] }
  0xa7   :  { %174 = vst [vmem:[#allocation0 + $0x6d0] sm:$0xf] %v2898_v15  ;;  %v2900_v17 = vld [vmem:[%s4857_s0 + $0x360] sm:$0xf]  ;;  %v2901_v18 = vld [vmem:[%s4857_s0 + $0x35c] sm:$0xf] }
  0xa8   :  { %v1803_v19 = vld [vmem:[#allocation0 + $0x4e3] ss:$8 sm:$0xf]   ;;  %179 = vst [vmem:[#allocation0 + $0x6c8] sm:$0xf] %v2899_v16 }
  0xa9   :  { %184 = vst [vmem:[#allocation0 + $0x6c0] sm:$0xf] %v2900_v17  ;;  %189 = vst [vmem:[#allocation0 + $0x6b8] sm:$0xf] %v2901_v18  ;;  %v2902_v20 = vld [vmem:[%s4857_s0 + $0x358] sm:$0xf]  ;;  %v1807_v21 = vsel %vm1263_vm0, %v1805_v14, %v1803_v19 }
  0xaa   :  { %194 = vst [vmem:[#allocation0 + $0x6b0] sm:$0xf] %v2902_v20  ;;  %v2903_v22 = vld [vmem:[%s4857_s0 + $0x354] sm:$0xf]  ;;  %v2904_v23 = vld [vmem:[%s4857_s0 + $0x350] sm:$0xf]  ;;  %1808 = vrot.lane.b32.xlu1 %v1807_v21, %s3259_s10 }
  0xab   :  { %v3061_v24 = vld [vmem:[%s4857_s0 + $0xdc] sm:$0xf]  ;;  %199 = vst [vmem:[#allocation0 + $0x6a8] sm:$0xf] %v2903_v22  ;;  %204 = vst [vmem:[#allocation0 + $0x6a0] sm:$0xf] %v2904_v23  ;;  %v4087_v23 = vpop.permute.xlu0 %1556  }
  0xac   :  { %989 = vst [vmem:[#allocation0 + $0x1b8] sm:$0xf] %v3061_v24  ;;  %v3062_v25 = vld [vmem:[%s4857_s0 + $0xd8] sm:$0xf]  ;;  %v3063_v26 = vld [vmem:[%s4857_s0 + $0xd4] sm:$0xf] }
  0xad   :  { %v3064_v27 = vld [vmem:[%s4857_s0 + $0xd0] sm:$0xf]  ;;  %994 = vst [vmem:[#allocation0 + $0x1b0] sm:$0xf] %v3062_v25  ;;  %999 = vst [vmem:[#allocation0 + $0x1a8] sm:$0xf] %v3063_v26 }
  0xae   :  { %v1816_v28 = vld [vmem:[#allocation0 + $0x5c3] ss:$8 sm:$0xf0]   ;;  %1004 = vst [vmem:[#allocation0 + $0x1a0] sm:$0xf] %v3064_v27 }
  0xaf   :  { %v3089_v29 = vld [vmem:[%s4857_s0 + $0x6c] sm:$0xf]  ;;  %v3090_v30 = vld [vmem:[%s4857_s0 + $0x68] sm:$0xf]  ;;  %v3091_v31 = vld [vmem:[%s4857_s0 + $0x64] sm:$0xf] }
  0xb0   :  { %1129 = vst [vmem:[#allocation0 + $0xd8] sm:$0xf] %v3089_v29  ;;  %v3092_v32 = vld [vmem:[%s4857_s0 + $0x60] sm:$0xf]  ;;  %1134 = vst [vmem:[#allocation0 + $0xd0] sm:$0xf] %v3090_v30  ;;  %v4091_v30 = vpop.permute.xlu1 %1577  }
  0xb1   :  { %v1814_v33 = vld [vmem:[#allocation0 + $0x5c3] ss:$8 sm:$0xf]   ;;  %1139 = vst [vmem:[#allocation0 + $0xc8] sm:$0xf] %v3091_v31 }
  0xb2   :  { %1144 = vst [vmem:[#allocation0 + $0xc0] sm:$0xf] %v3092_v32  ;;  %v2869_v34 = vld [vmem:[%s4857_s0 + $0x3dc] sm:$0xf]  ;;  %v1818_v35 = vsel %vm1263_vm0, %v1816_v28, %v1814_v33  ;;  %v2870_v36 = vld [vmem:[%s4857_s0 + $0x3d8] sm:$0xf] }
  0xb3   :  { %29 = vst [vmem:[#allocation0 + $0x7b8] sm:$0xf] %v2869_v34  ;;  %v2871_v37 = vld [vmem:[%s4857_s0 + $0x3d4] sm:$0xf]  ;;  %v2872_v38 = vld [vmem:[%s4857_s0 + $0x3d0] sm:$0xf]  ;;  %1819 = vrot.lane.b32.xlu0 %v1818_v35, %s3259_s10 }
  0xb4   :  { %v1827_v39 = vld [vmem:[#allocation0 + $0x6a3] ss:$8 sm:$0xf0]   ;;  %34 = vst [vmem:[#allocation0 + $0x7b0] sm:$0xf] %v2870_v36  ;;  %v4097_v36 = vpop.permute.xlu0 %1566  }
  0xb5   :  { %39 = vst [vmem:[#allocation0 + $0x7a8] sm:$0xf] %v2871_v37  ;;  %44 = vst [vmem:[#allocation0 + $0x7a0] sm:$0xf] %v2872_v38  ;;  %v2873_v40 = vld [vmem:[%s4857_s0 + $0x3cc] sm:$0xf] }
  0xb6   :  { %49 = vst [vmem:[#allocation0 + $0x798] sm:$0xf] %v2873_v40  ;;  %v2874_v41 = vld [vmem:[%s4857_s0 + $0x3c8] sm:$0xf]  ;;  %v2875_v42 = vld [vmem:[%s4857_s0 + $0x3c4] sm:$0xf] }
  0xb7   :  { %v2876_v43 = vld [vmem:[%s4857_s0 + $0x3c0] sm:$0xf]  ;;  %54 = vst [vmem:[#allocation0 + $0x790] sm:$0xf] %v2874_v41  ;;  %59 = vst [vmem:[#allocation0 + $0x788] sm:$0xf] %v2875_v42 }
  0xb8   :  { %v1825_v44 = vld [vmem:[#allocation0 + $0x6a3] ss:$8 sm:$0xf]   ;;  %64 = vst [vmem:[#allocation0 + $0x780] sm:$0xf] %v2876_v43  ;;  %v4103_v43 = vpop.permute.xlu1 %1588  }
  0xb9   :  { %v2949_v45 = vld [vmem:[%s4857_s0 + $0x29c] sm:$0xf]  ;;  %v1829_v46 = vsel %vm1263_vm0, %v1827_v39, %v1825_v44  ;;  %v1849_v47 = vld [vmem:[#allocation0 + $0x183] ss:$8 sm:$0xf0]  }
  0xba   :  { %429 = vst [vmem:[#allocation0 + $0x538] sm:$0xf] %v2949_v45  ;;  %v2950_v48 = vld [vmem:[%s4857_s0 + $0x298] sm:$0xf]  ;;  %1830 = vrot.lane.b32.xlu1 %v1829_v46, %s3259_s10  ;;  %v2951_v49 = vld [vmem:[%s4857_s0 + $0x294] sm:$0xf] }
  0xbb   :  { %434 = vst [vmem:[#allocation0 + $0x530] sm:$0xf] %v2950_v48  ;;  %v2952_v50 = vld [vmem:[%s4857_s0 + $0x290] sm:$0xf]  ;;  %v2977_v51 = vld [vmem:[%s4857_s0 + $0x22c] sm:$0xf] }
  0xbc   :  { %v1847_v52 = vld [vmem:[#allocation0 + $0xc3] ss:$8 sm:$0xf]   ;;  %439 = vst [vmem:[#allocation0 + $0x528] sm:$0xf] %v2951_v49 }
  0xbd   :  { %444 = vst [vmem:[#allocation0 + $0x520] sm:$0xf] %v2952_v50  ;;  %569 = vst [vmem:[#allocation0 + $0x458] sm:$0xf] %v2977_v51  ;;  %v2978_v53 = vld [vmem:[%s4857_s0 + $0x228] sm:$0xf]  ;;  %v1851_v54 = vsel %vm1263_vm0, %v1849_v47, %v1847_v52  ;;  %v4109_v52 = vpop.permute.xlu0 %1599  }
  0xbe   :  { %574 = vst [vmem:[#allocation0 + $0x450] sm:$0xf] %v2978_v53  ;;  %v2979_v55 = vld [vmem:[%s4857_s0 + $0x224] sm:$0xf]  ;;  %v2980_v56 = vld [vmem:[%s4857_s0 + $0x220] sm:$0xf]  ;;  %1852 = vrot.lane.b32.xlu1 %v1851_v54, %s3259_s10 }
  0xbf   :  { %v3005_v57 = vld [vmem:[%s4857_s0 + $0x1bc] sm:$0xf]  ;;  %v1838_v58 = vld [vmem:[#allocation0 + $0x783] ss:$8 sm:$0xf0]  }
  0xc0   :  { %579 = vst [vmem:[#allocation0 + $0x448] sm:$0xf] %v2979_v55  ;;  %584 = vst [vmem:[#allocation0 + $0x440] sm:$0xf] %v2980_v56  ;;  %v3006_v59 = vld [vmem:[%s4857_s0 + $0x1b8] sm:$0xf] }
  0xc1   :  { %709 = vst [vmem:[#allocation0 + $0x378] sm:$0xf] %v3005_v57  ;;  %714 = vst [vmem:[#allocation0 + $0x370] sm:$0xf] %v3006_v59  ;;  %v3007_v60 = vld [vmem:[%s4857_s0 + $0x1b4] sm:$0xf]  ;;  %v4115_v59 = vpop.permute.xlu1 %1610  }
  0xc2   :  { %v3008_v61 = vld [vmem:[%s4857_s0 + $0x1b0] sm:$0xf]  ;;  %v3033_v62 = vld [vmem:[%s4857_s0 + $0x14c] sm:$0xf]  ;;  %719 = vst [vmem:[#allocation0 + $0x368] sm:$0xf] %v3007_v60 }
  0xc3   :  { %v1836_v63 = vld [vmem:[#allocation0 + $0x783] ss:$8 sm:$0xf]   ;;  %724 = vst [vmem:[#allocation0 + $0x360] sm:$0xf] %v3008_v61 }
  0xc4   :  { %849 = vst [vmem:[#allocation0 + $0x298] sm:$0xf] %v3033_v62  ;;  %v3034_v0 = vld [vmem:[%s4857_s0 + $0x148] sm:$0xf]  ;;  %v1840_v1 = vsel %vm1263_vm0, %v1838_v58, %v1836_v63  ;;  %v3035_v2 = vld [vmem:[%s4857_s0 + $0x144] sm:$0xf] }
  0xc5   :  { %854 = vst [vmem:[#allocation0 + $0x290] sm:$0xf] %v3034_v0  ;;  %v3036_v3 = vld [vmem:[%s4857_s0 + $0x140] sm:$0xf]  ;;  %v2893_v4 = vld [vmem:[%s4857_s0 + $0x37c] sm:$0xf]  ;;  %1841 = vrot.lane.b32.xlu0 %v1840_v1, %s3259_s10  ;;  %v4121_v0 = vpop.permute.xlu0 %1621  }
  0xc6   :  { %859 = vst [vmem:[#allocation0 + $0x288] sm:$0xf] %v3035_v2  ;;  %864 = vst [vmem:[#allocation0 + $0x280] sm:$0xf] %v3036_v3  ;;  %v2894_v5 = vld [vmem:[%s4857_s0 + $0x378] sm:$0xf] }
  0xc7   :  { %149 = vst [vmem:[#allocation0 + $0x6f8] sm:$0xf] %v2893_v4  ;;  %v2895_v6 = vld [vmem:[%s4857_s0 + $0x374] sm:$0xf]  ;;  %v2896_v7 = vld [vmem:[%s4857_s0 + $0x370] sm:$0xf] }
  0xc8   :  { %v1875_v8 = vld [vmem:[#allocation0 + $0x503] ss:$8 sm:$0xf0]   ;;  %154 = vst [vmem:[#allocation0 + $0x6f0] sm:$0xf] %v2894_v5 }
  0xc9   :  { %159 = vst [vmem:[#allocation0 + $0x6e8] sm:$0xf] %v2895_v6  ;;  %164 = vst [vmem:[#allocation0 + $0x6e0] sm:$0xf] %v2896_v7  ;;  %v2921_v9 = vld [vmem:[%s4857_s0 + $0x30c] sm:$0xf] }
  0xca   :  { %289 = vst [vmem:[#allocation0 + $0x618] sm:$0xf] %v2921_v9  ;;  %v2922_v10 = vld [vmem:[%s4857_s0 + $0x308] sm:$0xf]  ;;  %v2923_v11 = vld [vmem:[%s4857_s0 + $0x304] sm:$0xf] }
  0xcb   :  { %v2924_v12 = vld [vmem:[%s4857_s0 + $0x300] sm:$0xf]  ;;  %294 = vst [vmem:[#allocation0 + $0x610] sm:$0xf] %v2922_v10  ;;  %299 = vst [vmem:[#allocation0 + $0x608] sm:$0xf] %v2923_v11  ;;  %v4127_v11 = vpop.permute.xlu1 %1632  }
  0xcc   :  { %v1873_v13 = vld [vmem:[#allocation0 + $0x443] ss:$8 sm:$0xf]   ;;  %304 = vst [vmem:[#allocation0 + $0x600] sm:$0xf] %v2924_v12 }
  0xcd   :  { %v2865_v14 = vld [vmem:[%s4857_s0 + $0x3ec] sm:$0xf]  ;;  %v1877_v15 = vsel %vm1263_vm0, %v1875_v8, %v1873_v13  ;;  %v2866_v16 = vld [vmem:[%s4857_s0 + $0x3e8] sm:$0xf]  ;;  %v2867_v17 = vld [vmem:[%s4857_s0 + $0x3e4] sm:$0xf] }
  0xce   :  { %9 = vst [vmem:[#allocation0 + $0x7d8] sm:$0xf] %v2865_v14  ;;  %v2868_v18 = vld [vmem:[%s4857_s0 + $0x3e0] sm:$0xf]  ;;  %1878 = vrot.lane.b32.xlu1 %v1877_v15, %s3259_s10  ;;  %14 = vst [vmem:[#allocation0 + $0x7d0] sm:$0xf] %v2866_v16 }
  0xcf   :  { %v1862_v19 = vld [vmem:[#allocation0 + $0x343] ss:$8 sm:$0xf0]   ;;  %19 = vst [vmem:[#allocation0 + $0x7c8] sm:$0xf] %v2867_v17  ;;  %s3260_s0 = smov 56  }
  0xd0   :  { %24 = vst [vmem:[#allocation0 + $0x7c0] sm:$0xf] %v2868_v18  ;;  %v1860_v20 = vld [vmem:[#allocation0 + $0x283] ss:$8 sm:$0xf]  }
  0xd1   :  { %v1864_v21 = vsel %vm1263_vm0, %v1862_v19, %v1860_v20  ;;  %v1888_v22 = vld [vmem:[#allocation0 + $0x6c3] ss:$8 sm:$0xf0]   ;;  %v1906_v24 = vld [vmem:[#allocation0 + $0x2] ss:$8 sm:$0xf]  }
  0xd2   :  { %1865 = vrot.lane.b32.xlu0 %v1864_v21, %s3259_s10  ;;  %v1908_v26 = vld [vmem:[#allocation0 + $0x2] ss:$8 sm:$0xf0]   ;;  %v1261_v6 = vld [vmem:[#allocation0] ss:$8 sm:$0xf]  }
  0xd3   :  { %v1886_v25 = vld [vmem:[#allocation0 + $0x603] ss:$8 sm:$0xf]   ;;  %v1916_v28 = vld [vmem:[#allocation0 + $0xe2] ss:$8 sm:$0xf]   ;;  %v1910_v32 = vsel %vm1263_vm0, %v1908_v26, %v1906_v24 }
  0xd4   :  { %v1890_v27 = vsel %vm1263_vm0, %v1888_v22, %v1886_v25  ;;  %v1918_v29 = vld [vmem:[#allocation0 + $0xe2] ss:$8 sm:$0xf0]   ;;  %v1262_v9 = vld [vmem:[#allocation0] ss:$8 sm:$0xf0]  }
  0xd5   :  { %v1920_v33 = vsel %vm1263_vm0, %v1918_v29, %v1916_v28  ;;  %v1927_v34 = vld [vmem:[#allocation0 + $0x1c2] ss:$8 sm:$0xf]   ;;  %v1324_v10 = vld [vmem:[#allocation0 + $0x1c0] ss:$8 sm:$0xf]   ;;  %v1264_v13 = vsel %vm1263_vm0, %v1262_v9, %v1261_v6  ;;  %v4154_v28 = vpop.permute.xlu1 %1654  }
  0xd6   :  { %1891 = vrot.lane.b32.xlu0 %v1890_v27, %s3259_s10  ;;  %v1929_v35 = vld [vmem:[#allocation0 + $0x1c2] ss:$8 sm:$0xf0]   ;;  %v1326_v14 = vld [vmem:[#allocation0 + $0x1c0] ss:$8 sm:$0xf0]  }
  0xd7   :  { %v1899_v31 = vld [vmem:[#allocation0 + $0x7c3] ss:$8 sm:$0xf]   ;;  %v1938_v37 = vld [vmem:[#allocation0 + $0x2a2] ss:$8 sm:$0xf]   ;;  %v1931_v39 = vsel %vm1263_vm0, %v1929_v35, %v1927_v34  ;;  %v1328_v15 = vsel %vm1263_vm0, %v1326_v14, %v1324_v10 }
  0xd8   :  { %1900 = vrot.lane.b32.xlu1 %v1899_v31, %s3259_s10  ;;  %v1940_v38 = vld [vmem:[#allocation0 + $0x2a2] ss:$8 sm:$0xf0]   ;;  %1266 = vst.msk [vmem:[%s4858_s1] sm:$0xff] %vm1265_vm1, %v1264_v13   ;;  %3123 = vst.msk [vmem:[%s4858_s1 + $0x40] sm:$0xff] %vm1265_vm1, %v1328_v15  }
  0xd9   :  { %v1942_v40 = vsel %vm1263_vm0, %v1940_v38, %v1938_v37  ;;  %v1949_v41 = vld [vmem:[#allocation0 + $0x382] ss:$8 sm:$0xf]   ;;  %1559 = vst.msk [vmem:[%s4858_s1] sm:$0xff] %vm1558_vm2, %v4087_v23   ;;  %3152 = vst.msk [vmem:[%s4858_s1 + $0x40] sm:$0xff] %vm1558_vm2, %v4091_v30  }
  0xda   :  { %1911 = vrot.lane.b32.xlu0 %v1910_v32, %s3260_s0  ;;  %v1951_v42 = vld [vmem:[#allocation0 + $0x382] ss:$8 sm:$0xf0]   ;;  %v1286_v20 = vld [vmem:[#allocation0 + $0xc0] ss:$8 sm:$0xf]  }
  0xdb   :  { %v1960_v44 = vld [vmem:[#allocation0 + $0x462] ss:$8 sm:$0xf]   ;;  %v1953_v46 = vsel %vm1263_vm0, %v1951_v42, %v1949_v41  ;;  %v1288_v23 = vld [vmem:[#allocation0 + $0xc0] ss:$8 sm:$0xf0]   ;;  %v4192_v42 = vpop.permute.xlu0 %1643  }
  0xdc   :  { %1921 = vrot.lane.b32.xlu1 %v1920_v33, %s3260_s0  ;;  %v1962_v45 = vld [vmem:[#allocation0 + $0x462] ss:$8 sm:$0xf0]   ;;  %v1297_v24 = vld [vmem:[#allocation0 + $0x100] ss:$8 sm:$0xf]   ;;  %v1290_v25 = vsel %vm1263_vm0, %v1288_v23, %v1286_v20 }
  0xdd   :  { %v1964_v47 = vsel %vm1263_vm0, %v1962_v45, %v1960_v44  ;;  %v1971_v48 = vld [vmem:[#allocation0 + $0x542] ss:$8 sm:$0xf]   ;;  %v1299_v26 = vld [vmem:[#allocation0 + $0x100] ss:$8 sm:$0xf0]  }
  0xde   :  { %1932 = vrot.lane.b32.xlu0 %v1931_v39, %s3260_s0  ;;  %v1973_v49 = vld [vmem:[#allocation0 + $0x542] ss:$8 sm:$0xf0]   ;;  %v1351_v27 = vld [vmem:[#allocation0 + $0x280] ss:$8 sm:$0xf]   ;;  %v1301_v29 = vsel %vm1263_vm0, %v1299_v26, %v1297_v24 }
  0xdf   :  { %v1982_v50 = vld [vmem:[#allocation0 + $0x622] ss:$8 sm:$0xf]   ;;  %v1975_v53 = vsel %vm1263_vm0, %v1973_v49, %v1971_v48  ;;  %3119 = vst.msk [vmem:[%s4858_s1 + $0x1c] sm:$0xf0] %vm1265_vm1, %v1290_v25   ;;  %3120 = vst.msk [vmem:[%s4858_s1 + $0x24] sm:$0xff] %vm1265_vm1, %v1301_v29  }
  0xe0   :  { %1943 = vrot.lane.b32.xlu1 %v1942_v40, %s3260_s0  ;;  %v1984_v51 = vld [vmem:[#allocation0 + $0x622] ss:$8 sm:$0xf0]   ;;  %3118 = vst.msk [vmem:[%s4858_s1 + $0x18] sm:$0xf] %vm1265_vm1, %v1290_v25  }
  0xe1   :  { %v1986_v54 = vsel %vm1263_vm0, %v1984_v51, %v1982_v50  ;;  %v1993_v55 = vld [vmem:[#allocation0 + $0x702] ss:$8 sm:$0xf]   ;;  %v1353_v30 = vld [vmem:[#allocation0 + $0x280] ss:$8 sm:$0xf0]  }
  0xe2   :  { %1954 = vrot.lane.b32.xlu0 %v1953_v46, %s3260_s0  ;;  %v1995_v56 = vld [vmem:[#allocation0 + $0x702] ss:$8 sm:$0xf0]   ;;  %v1362_v31 = vld [vmem:[#allocation0 + $0x2c0] ss:$8 sm:$0xf]   ;;  %v1355_v33 = vsel %vm1263_vm0, %v1353_v30, %v1351_v27 }
  0xe3   :  { %v2004_v57 = vld [vmem:[#allocation0 + $0x42] ss:$8 sm:$0xf]   ;;  %v1997_v60 = vsel %vm1263_vm0, %v1995_v56, %v1993_v55  ;;  %v1364_v34 = vld [vmem:[#allocation0 + $0x2c0] ss:$8 sm:$0xf0]   ;;  %v4209_v55 = vpop.permute.xlu1 %1676  }
  0xe4   :  { %1965 = vrot.lane.b32.xlu1 %v1964_v47, %s3260_s0  ;;  %v2006_v58 = vld [vmem:[#allocation0 + $0x42] ss:$8 sm:$0xf0]   ;;  %3151 = vst.msk [vmem:[%s4858_s1 + $0x20] sm:$0xff] %vm1558_vm2, %v4097_v36   ;;  %v1366_v36 = vsel %vm1263_vm0, %v1364_v34, %v1362_v31 }
  0xe5   :  { %v2008_v61 = vsel %vm1263_vm0, %v2006_v58, %v2004_v57  ;;  %v2015_v62 = vld [vmem:[#allocation0 + $0x122] ss:$8 sm:$0xf]   ;;  %3127 = vst.msk [vmem:[%s4858_s1 + $0x5c] sm:$0xf0] %vm1265_vm1, %v1355_v33   ;;  %3128 = vst.msk [vmem:[%s4858_s1 + $0x64] sm:$0xff] %vm1265_vm1, %v1366_v36  }
  0xe6   :  { %1976 = vrot.lane.b32.xlu0 %v1975_v53, %s3260_s0  ;;  %v2017_v63 = vld [vmem:[#allocation0 + $0x122] ss:$8 sm:$0xf0]   ;;  %3126 = vst.msk [vmem:[%s4858_s1 + $0x58] sm:$0xf] %vm1265_vm1, %v1355_v33  }
  0xe7   :  { %v2026_v1 = vld [vmem:[#allocation0 + $0x202] ss:$8 sm:$0xf]   ;;  %v2019_v7 = vsel %vm1263_vm0, %v2017_v63, %v2015_v62  ;;  %v1389_v41 = vld [vmem:[#allocation0 + $0x380] ss:$8 sm:$0xf]  }
  0xe8   :  { %1987 = vrot.lane.b32.xlu1 %v1986_v54, %s3260_s0  ;;  %v2028_v2 = vld [vmem:[#allocation0 + $0x202] ss:$8 sm:$0xf0]   ;;  %3153 = vst.msk [vmem:[%s4858_s1 + $0x60] sm:$0xff] %vm1558_vm2, %v4103_v43  }
  0xe9   :  { %v2037_v3 = vld [vmem:[#allocation0 + $0x2e2] ss:$8 sm:$0xf]   ;;  %v2030_v8 = vsel %vm1263_vm0, %v2028_v2, %v2026_v1  ;;  %v1391_v43 = vld [vmem:[#allocation0 + $0x380] ss:$8 sm:$0xf0]  }
  0xea   :  { %1998 = vrot.lane.b32.xlu0 %v1997_v60, %s3260_s0  ;;  %v2039_v4 = vld [vmem:[#allocation0 + $0x2e2] ss:$8 sm:$0xf0]   ;;  %v1416_v44 = vld [vmem:[#allocation0 + $0x440] ss:$8 sm:$0xf]   ;;  %v1393_v46 = vsel %vm1263_vm0, %v1391_v43, %v1389_v41 }
  0xeb   :  { %v2048_v5 = vld [vmem:[#allocation0 + $0x3c2] ss:$8 sm:$0xf]   ;;  %v2041_v21 = vsel %vm1263_vm0, %v2039_v4, %v2037_v3  ;;  %v1418_v47 = vld [vmem:[#allocation0 + $0x440] ss:$8 sm:$0xf0]  }
  0xec   :  { %2009 = vrot.lane.b32.xlu1 %v2008_v61, %s3260_s0  ;;  %v2050_v12 = vld [vmem:[#allocation0 + $0x3c2] ss:$8 sm:$0xf0]   ;;  %v1427_v48 = vld [vmem:[#allocation0 + $0x480] ss:$8 sm:$0xf]   ;;  %v1420_v53 = vsel %vm1263_vm0, %v1418_v47, %v1416_v44 }
  0xed   :  { %v2059_v16 = vld [vmem:[#allocation0 + $0x4a2] ss:$8 sm:$0xf]   ;;  %v2052_v22 = vsel %vm1263_vm0, %v2050_v12, %v2048_v5  ;;  %3131 = vst.msk [vmem:[%s4858_s1 + $0x80] sm:$0xff] %vm1265_vm1, %v1393_v46   ;;  %3135 = vst.msk [vmem:[%s4858_s1 + $0x9c] sm:$0xf0] %vm1265_vm1, %v1420_v53  }
  0xee   :  { %2020 = vrot.lane.b32.xlu0 %v2019_v7, %s3260_s0  ;;  %v2061_v17 = vld [vmem:[#allocation0 + $0x4a2] ss:$8 sm:$0xf0]   ;;  %v1429_v54 = vld [vmem:[#allocation0 + $0x480] ss:$8 sm:$0xf0]   ;;  %v1666_v7 = vpop.permute.xlu0 %1665  }
  0xef   :  { %v2070_v18 = vld [vmem:[#allocation0 + $0x582] ss:$8 sm:$0xf]   ;;  %v2063_v35 = vsel %vm1263_vm0, %v2061_v17, %v2059_v16  ;;  %3154 = vst.msk [vmem:[%s4858_s1 + $0x80] sm:$0xff] %vm1558_vm2, %v4109_v52   ;;  %v1431_v52 = vsel %vm1263_vm0, %v1429_v54, %v1427_v48 }
  0xf0   :  { %2031 = vrot.lane.b32.xlu1 %v2030_v8, %s3260_s0  ;;  %v2072_v19 = vld [vmem:[#allocation0 + $0x582] ss:$8 sm:$0xf0]   ;;  %3134 = vst.msk [vmem:[%s4858_s1 + $0x98] sm:$0xf] %vm1265_vm1, %v1420_v53   ;;  %3136 = vst.msk [vmem:[%s4858_s1 + $0xa4] sm:$0xff] %vm1265_vm1, %v1431_v52  }
  0xf1   :  { %v2081_v32 = vld [vmem:[#allocation0 + $0x662] ss:$8 sm:$0xf]   ;;  %v2074_v37 = vsel %vm1263_vm0, %v2072_v19, %v2070_v18  ;;  %v1454_v58 = vld [vmem:[#allocation0 + $0x540] ss:$8 sm:$0xf]  }
  0xf2   :  { %2042 = vrot.lane.b32.xlu0 %v2041_v21, %s3260_s0  ;;  %v2083_v38 = vld [vmem:[#allocation0 + $0x662] ss:$8 sm:$0xf0]   ;;  %v1456_v60 = vld [vmem:[#allocation0 + $0x540] ss:$8 sm:$0xf0]  }
  0xf3   :  { %v2092_v39 = vld [vmem:[#allocation0 + $0x742] ss:$8 sm:$0xf]   ;;  %v2085_v49 = vsel %vm1263_vm0, %v2083_v38, %v2081_v32  ;;  %3155 = vst.msk [vmem:[%s4858_s1 + $0xa0] sm:$0xff] %vm1558_vm2, %v4115_v59   ;;  %v1458_v59 = vsel %vm1263_vm0, %v1456_v60, %v1454_v58 }
  0xf4   :  { %2053 = vrot.lane.b32.xlu1 %v2052_v22, %s3260_s0  ;;  %v2094_v40 = vld [vmem:[#allocation0 + $0x742] ss:$8 sm:$0xf0]   ;;  %v1481_v63 = vld [vmem:[#allocation0 + $0x600] ss:$8 sm:$0xf]   ;;  %v1699_v22 = vpop.permute.xlu1 %1698  }
  0xf5   :  { %v2103_v45 = vld [vmem:[#allocation0 + $0x82] ss:$8 sm:$0xf]   ;;  %v2096_v50 = vsel %vm1263_vm0, %v2094_v40, %v2092_v39  ;;  %v1483_v1 = vld [vmem:[#allocation0 + $0x600] ss:$8 sm:$0xf0]  }
  0xf6   :  { %2064 = vrot.lane.b32.xlu0 %v2063_v35, %s3260_s0  ;;  %v2105_v51 = vld [vmem:[#allocation0 + $0x82] ss:$8 sm:$0xf0]   ;;  %3139 = vst.msk [vmem:[%s4858_s1 + $0xc0] sm:$0xff] %vm1265_vm1, %v1458_v59   ;;  %v1485_v4 = vsel %vm1263_vm0, %v1483_v1, %v1481_v63  ;;  %v1688_v35 = vpop.permute.xlu0 %1687  }
  0xf7   :  { %v2114_v56 = vld [vmem:[#allocation0 + $0x162] ss:$8 sm:$0xf]   ;;  %v2107_v2 = vsel %vm1263_vm0, %v2105_v51, %v2103_v45  ;;  %v1492_v5 = vld [vmem:[#allocation0 + $0x640] ss:$8 sm:$0xf]  }
  0xf8   :  { %2075 = vrot.lane.b32.xlu1 %v2074_v37, %s3260_s0  ;;  %v2116_v57 = vld [vmem:[#allocation0 + $0x162] ss:$8 sm:$0xf0]   ;;  %v1494_v6 = vld [vmem:[#allocation0 + $0x640] ss:$8 sm:$0xf0]   ;;  %v1721_v45 = vpop.permute.xlu1 %1720  }
  0xf9   :  { %v2125_v61 = vld [vmem:[#allocation0 + $0x242] ss:$8 sm:$0xf]   ;;  %v2118_v3 = vsel %vm1263_vm0, %v2116_v57, %v2114_v56  ;;  %3156 = vst.msk [vmem:[%s4858_s1 + $0xc0] sm:$0xff] %vm1558_vm2, %v4121_v0   ;;  %v1496_v0 = vsel %vm1263_vm0, %v1494_v6, %v1492_v5 }
  0xfa   :  { %2086 = vrot.lane.b32.xlu0 %v2085_v49, %s3260_s0  ;;  %v2127_v62 = vld [vmem:[#allocation0 + $0x242] ss:$8 sm:$0xf0]   ;;  %3143 = vst.msk [vmem:[%s4858_s1 + $0xdc] sm:$0xf0] %vm1265_vm1, %v1485_v4   ;;  %3144 = vst.msk [vmem:[%s4858_s1 + $0xe4] sm:$0xff] %vm1265_vm1, %v1496_v0   ;;  %v1710_v58 = vpop.permute.xlu0 %1709  }
  0xfb   :  { %v2136_v8 = vld [vmem:[#allocation0 + $0x322] ss:$8 sm:$0xf]   ;;  %3142 = vst.msk [vmem:[%s4858_s1 + $0xd8] sm:$0xf] %vm1265_vm1, %v1485_v4   ;;  %v2129_v14 = vsel %vm1263_vm0, %v2127_v62, %v2125_v61 }
  0xfc   :  { %2097 = vrot.lane.b32.xlu1 %v2096_v50, %s3260_s0  ;;  %v2138_v9 = vld [vmem:[#allocation0 + $0x322] ss:$8 sm:$0xf0]   ;;  %3157 = vst.msk [vmem:[%s4858_s1 + $0xe0] sm:$0xff] %vm1558_vm2, %v4127_v11  }
  0xfd   :  { %v2147_v10 = vld [vmem:[#allocation0 + $0x402] ss:$8 sm:$0xf]   ;;  %v1268_v11 = vld [vmem:[#allocation0 + $0x40] ss:$8 sm:$0xf]   ;;  %v2140_v15 = vsel %vm1263_vm0, %v2138_v9, %v2136_v8 }
  0xfe   :  { %2108 = vrot.lane.b32.xlu0 %v2107_v2, %s3260_s0  ;;  %v2149_v12 = vld [vmem:[#allocation0 + $0x402] ss:$8 sm:$0xf0]   ;;  %v1270_v13 = vld [vmem:[#allocation0 + $0x40] ss:$8 sm:$0xf0]   ;;  %v1732_v8 = vpop.permute.xlu0 %1731  }
  0xff   :  { %v1272_v16 = vsel %vm1263_vm0, %v1270_v13, %v1268_v11  ;;  %v1519_v17 = vld [vmem:[#allocation0 + $0x700] ss:$8 sm:$0xf]   ;;  %v2158_v19 = vld [vmem:[#allocation0 + $0x4e2] ss:$8 sm:$0xf]   ;;  %v2151_v27 = vsel %vm1263_vm0, %v2149_v12, %v2147_v10 }
 0x100   :  { %2119 = vrot.lane.b32.xlu1 %v2118_v3, %s3260_s0  ;;  %v1521_v18 = vld [vmem:[#allocation0 + $0x700] ss:$8 sm:$0xf0]   ;;  %v2160_v20 = vld [vmem:[#allocation0 + $0x4e2] ss:$8 sm:$0xf0]  }
 0x101   :  { %3116 = vst.msk [vmem:[%s4858_s1 + $0x8] sm:$0xff] %vm1265_vm1, %v1272_v16   ;;  %v1523_v21 = vsel %vm1263_vm0, %v1521_v18, %v1519_v17  ;;  %v2169_v23 = vld [vmem:[#allocation0 + $0x5c2] ss:$8 sm:$0xf]  }
 0x102   :  { %3159 = vst.msk [vmem:[%s4858_s1 + $0x8] sm:$0xff] %vm1558_vm2, %v4154_v28   ;;  %2130 = vrot.lane.b32.xlu0 %v2129_v14, %s3260_s0  ;;  %v2171_v24 = vld [vmem:[#allocation0 + $0x5c2] ss:$8 sm:$0xf0]   ;;  %v2162_v28 = vsel %vm1263_vm0, %v2160_v20, %v2158_v19  ;;  %v1743_v20 = vpop.permute.xlu1 %1742  }
 0x103   :  { %3147 = vst.msk [vmem:[%s4858_s1 + $0x100] sm:$0xff] %vm1265_vm1, %v1523_v21   ;;  %v1333_v25 = vld [vmem:[#allocation0 + $0x200] ss:$8 sm:$0xf]   ;;  %v2173_v40 = vsel %vm1263_vm0, %v2171_v24, %v2169_v23 }
 0x104   :  { %2141 = vrot.lane.b32.xlu1 %v2140_v15, %s3260_s0  ;;  %3158 = vst.msk [vmem:[%s4858_s1 + $0x100] sm:$0xff] %vm1558_vm2, %v4192_v42   ;;  %v1335_v26 = vld [vmem:[#allocation0 + $0x200] ss:$8 sm:$0xf0]  }
 0x105   :  { %v1337_v29 = vsel %vm1263_vm0, %v1335_v26, %v1333_v25  ;;  %v1306_v30 = vld [vmem:[#allocation0 + $0x140] ss:$8 sm:$0xf]   ;;  %v2180_v32 = vld [vmem:[#allocation0 + $0x6a2] ss:$8 sm:$0xf]  }
 0x106   :  { %v1308_v31 = vld [vmem:[#allocation0 + $0x140] ss:$8 sm:$0xf0]   ;;  %v2182_v33 = vld [vmem:[#allocation0 + $0x6a2] ss:$8 sm:$0xf0]   ;;  %2152 = vrot.lane.b32.xlu0 %v2151_v27, %s3260_s0 }
 0x107   :  { %3124 = vst.msk [vmem:[%s4858_s1 + $0x48] sm:$0xff] %vm1265_vm1, %v1337_v29   ;;  %v1310_v34 = vsel %vm1263_vm0, %v1308_v31, %v1306_v30  ;;  %v2191_v37 = vld [vmem:[#allocation0 + $0x782] ss:$8 sm:$0xf]   ;;  %v2184_v41 = vsel %vm1263_vm0, %v2182_v33, %v2180_v32 }
 0x108   :  { %3161 = vst.msk [vmem:[%s4858_s1 + $0x48] sm:$0xff] %vm1558_vm2, %v4209_v55   ;;  %2163 = vrot.lane.b32.xlu1 %v2162_v28, %s3260_s0  ;;  %v2193_v38 = vld [vmem:[#allocation0 + $0x782] ss:$8 sm:$0xf0]   ;;  %v1754_v28 = vpop.permute.xlu0 %1753  }
 0x109   :  { %3121 = vst.msk [vmem:[%s4858_s1 + $0x2c] sm:$0xff] %vm1265_vm1, %v1310_v34   ;;  %v1398_v39 = vld [vmem:[#allocation0 + $0x3c0] ss:$8 sm:$0xf]   ;;  %v2195_v54 = vsel %vm1263_vm0, %v2193_v38, %v2191_v37 }
 0x10a   :  { %3160 = vst.msk [vmem:[%s4858_s1 + $0x28] sm:$0xff] %vm1558_vm2, %v1666_v7   ;;  %v1400_v36 = vld [vmem:[#allocation0 + $0x3c0] ss:$8 sm:$0xf0]   ;;  %2174 = vrot.lane.b32.xlu0 %v2173_v40, %s3260_s0 }
 0x10b   :  { %v1402_v42 = vsel %vm1263_vm0, %v1400_v36, %v1398_v39  ;;  %v1371_v43 = vld [vmem:[#allocation0 + $0x300] ss:$8 sm:$0xf]   ;;  %v2202_v46 = vld [vmem:[#allocation0 + $0xc2] ss:$8 sm:$0xf]  }
 0x10c   :  { %v1373_v44 = vld [vmem:[#allocation0 + $0x300] ss:$8 sm:$0xf0]   ;;  %v2204_v47 = vld [vmem:[#allocation0 + $0x182] ss:$8 sm:$0xf0]   ;;  %2185 = vrot.lane.b32.xlu1 %v2184_v41, %s3260_s0  ;;  %v1765_v41 = vpop.permute.xlu1 %1764  }
 0x10d   :  { %3132 = vst.msk [vmem:[%s4858_s1 + $0x88] sm:$0xff] %vm1265_vm1, %v1402_v42   ;;  %v1375_v48 = vsel %vm1263_vm0, %v1373_v44, %v1371_v43  ;;  %v2215_v49 = vld [vmem:[#allocation0 + $0x282] ss:$8 sm:$0xf]   ;;  %v2206_v55 = vsel %vm1263_vm0, %v2204_v47, %v2202_v46 }
 0x10e   :  { %3163 = vst.msk [vmem:[%s4858_s1 + $0x88] sm:$0xff] %vm1558_vm2, %v1699_v22   ;;  %v2217_v50 = vld [vmem:[#allocation0 + $0x342] ss:$8 sm:$0xf0]   ;;  %2196 = vrot.lane.b32.xlu0 %v2195_v54, %s3260_s0 }
 0x10f   :  { %3129 = vst.msk [vmem:[%s4858_s1 + $0x6c] sm:$0xff] %vm1265_vm1, %v1375_v48   ;;  %v1463_v51 = vld [vmem:[#allocation0 + $0x580] ss:$8 sm:$0xf]   ;;  %v2219_v1 = vsel %vm1263_vm0, %v2217_v50, %v2215_v49 }
 0x110   :  { %3162 = vst.msk [vmem:[%s4858_s1 + $0x68] sm:$0xff] %vm1558_vm2, %v1688_v35   ;;  %v1465_v53 = vld [vmem:[#allocation0 + $0x580] ss:$8 sm:$0xf0]   ;;  %2207 = vrot.lane.b32.xlu1 %v2206_v55, %s3260_s0 }
 0x111   :  { %v1467_v56 = vsel %vm1263_vm0, %v1465_v53, %v1463_v51  ;;  %v1436_v57 = vld [vmem:[#allocation0 + $0x4c0] ss:$8 sm:$0xf]   ;;  %v2228_v60 = vld [vmem:[#allocation0 + $0x442] ss:$8 sm:$0xf]  }
 0x112   :  { %v1438_v52 = vld [vmem:[#allocation0 + $0x4c0] ss:$8 sm:$0xf0]   ;;  %v2230_v61 = vld [vmem:[#allocation0 + $0x502] ss:$8 sm:$0xf0]   ;;  %2220 = vrot.lane.b32.xlu0 %v2219_v1, %s3260_s0 }
 0x113   :  { %3140 = vst.msk [vmem:[%s4858_s1 + $0xc8] sm:$0xff] %vm1265_vm1, %v1467_v56   ;;  %v1440_v62 = vsel %vm1263_vm0, %v1438_v52, %v1436_v57  ;;  %v1501_v59 = vld [vmem:[#allocation0 + $0x680] ss:$8 sm:$0xf]   ;;  %v2232_v2 = vsel %vm1263_vm0, %v2230_v61, %v2228_v60  ;;  %v1776_v60 = vpop.permute.xlu0 %1775  }
 0x114   :  { %3165 = vst.msk [vmem:[%s4858_s1 + $0xc8] sm:$0xff] %vm1558_vm2, %v1721_v45   ;;  %v1503_v63 = vld [vmem:[#allocation0 + $0x680] ss:$8 sm:$0xf0]   ;;  %2233 = vrot.lane.b32.xlu1 %v2232_v2, %s3260_s0 }
 0x115   :  { %3137 = vst.msk [vmem:[%s4858_s1 + $0xac] sm:$0xff] %vm1265_vm1, %v1440_v62   ;;  %v1505_v3 = vsel %vm1263_vm0, %v1503_v63, %v1501_v59  ;;  %v1528_v4 = vld [vmem:[#allocation0 + $0x740] ss:$8 sm:$0xf]  }
 0x116   :  { %3164 = vst.msk [vmem:[%s4858_s1 + $0xa8] sm:$0xff] %vm1558_vm2, %v1710_v58   ;;  %v1530_v5 = vld [vmem:[#allocation0 + $0x740] ss:$8 sm:$0xf0]  }
 0x117   :  { %v2241_v6 = vld [vmem:[#allocation0 + $0x602] ss:$8 sm:$0xf]   ;;  %3145 = vst.msk [vmem:[%s4858_s1 + $0xec] sm:$0xff] %vm1265_vm1, %v1505_v3   ;;  %v1532_v9 = vsel %vm1263_vm0, %v1530_v5, %v1528_v4 }
 0x118   :  { %v2243_v7 = vld [vmem:[#allocation0 + $0x6c2] ss:$8 sm:$0xf0]   ;;  %3166 = vst.msk [vmem:[%s4858_s1 + $0xe8] sm:$0xff] %vm1558_vm2, %v1732_v8  }
 0x119   :  { %v2254_v0 = vld [vmem:[#allocation0 + $0x7c2] ss:$8 sm:$0xf]   ;;  %3148 = vst.msk [vmem:[%s4858_s1 + $0x108] sm:$0xff] %vm1265_vm1, %v1532_v9   ;;  %v2245_v14 = vsel %vm1263_vm0, %v2243_v7, %v2241_v6  ;;  %v1787_v7 = vpop.permute.xlu1 %1786  }
 0x11a   :  { %v2261_v10 = vld [vmem:[#allocation0 + $0x1] ss:$8 sm:$0xf]   ;;  %v1277_v11 = vld [vmem:[#allocation0 + $0x80] ss:$8 sm:$0xf]   ;;  %2246 = vrot.lane.b32.xlu0 %v2245_v14, %s3260_s0  ;;  %2255 = vrot.lane.b32.xlu1 %v2254_v0, %s3260_s0 }
 0x11b   :  { %v2263_v12 = vld [vmem:[#allocation0 + $0x1] ss:$8 sm:$0xf0]   ;;  %v1279_v13 = vld [vmem:[#allocation0 + $0x80] ss:$8 sm:$0xf0]  }
 0x11c   :  { %v1281_v15 = vsel %vm1263_vm0, %v1279_v13, %v1277_v11  ;;  %v1315_v16 = vld [vmem:[#allocation0 + $0x180] ss:$8 sm:$0xf]   ;;  %v2271_v18 = vld [vmem:[#allocation0 + $0xe1] ss:$8 sm:$0xf]   ;;  %v2265_v26 = vsel %vm1263_vm0, %v2263_v12, %v2261_v10  ;;  %v1798_v12 = vpop.permute.xlu0 %1797  }
 0x11d   :  { %v1317_v17 = vld [vmem:[#allocation0 + $0x180] ss:$8 sm:$0xf0]   ;;  %v2273_v19 = vld [vmem:[#allocation0 + $0xe1] ss:$8 sm:$0xf0]  }
 0x11e   :  { %3117 = vst.msk [vmem:[%s4858_s1 + $0x10] sm:$0xff] %vm1265_vm1, %v1281_v15   ;;  %v1319_v21 = vsel %vm1263_vm0, %v1317_v17, %v1315_v16  ;;  %v2282_v22 = vld [vmem:[#allocation0 + $0x1c1] ss:$8 sm:$0xf]   ;;  %v2275_v27 = vsel %vm1263_vm0, %v2273_v19, %v2271_v18  ;;  %2266 = vrot.lane.b32.xlu0 %v2265_v26, %s3261_s14  ;;  %v1809_v19 = vpop.permute.xlu1 %1808  }
 0x11f   :  { %3167 = vst.msk [vmem:[%s4858_s1 + $0x108] sm:$0xff] %vm1558_vm2, %v1743_v20   ;;  %v2284_v23 = vld [vmem:[#allocation0 + $0x1c1] ss:$8 sm:$0xf0]   ;;  %3168 = vst.msk [vmem:[%s4858_s1 + $0x10] sm:$0xff] %vm1558_vm2, %v1754_v28   ;;  %2276 = vrot.lane.b32.xlu1 %v2275_v27, %s3261_s14 }
 0x120   :  { %3122 = vst.msk [vmem:[%s4858_s1 + $0x34] sm:$0xff] %vm1265_vm1, %v1319_v21   ;;  %v1342_v24 = vld [vmem:[#allocation0 + $0x240] ss:$8 sm:$0xf]   ;;  %v2286_v36 = vsel %vm1263_vm0, %v2284_v23, %v2282_v22 }
 0x121   :  { %v1344_v25 = vld [vmem:[#allocation0 + $0x240] ss:$8 sm:$0xf0]   ;;  %v2293_v32 = vld [vmem:[#allocation0 + $0x2a1] ss:$8 sm:$0xf]  }
 0x122   :  { %v1346_v29 = vsel %vm1263_vm0, %v1344_v25, %v1342_v24  ;;  %v1380_v30 = vld [vmem:[#allocation0 + $0x340] ss:$8 sm:$0xf]   ;;  %v2295_v33 = vld [vmem:[#allocation0 + $0x2a1] ss:$8 sm:$0xf0]   ;;  %2287 = vrot.lane.b32.xlu0 %v2286_v36, %s3261_s14 }
 0x123   :  { %v1382_v31 = vld [vmem:[#allocation0 + $0x340] ss:$8 sm:$0xf0]   ;;  %3125 = vst.msk [vmem:[%s4858_s1 + $0x50] sm:$0xff] %vm1265_vm1, %v1346_v29   ;;  %v2297_v40 = vsel %vm1263_vm0, %v2295_v33, %v2293_v32 }
 0x124   :  { %v1384_v34 = vsel %vm1263_vm0, %v1382_v31, %v1380_v30  ;;  %v2304_v35 = vld [vmem:[#allocation0 + $0x381] ss:$8 sm:$0xf]   ;;  %v1407_v38 = vld [vmem:[#allocation0 + $0x400] ss:$8 sm:$0xf]   ;;  %2298 = vrot.lane.b32.xlu1 %v2297_v40, %s3261_s14 }
 0x125   :  { %3130 = vst.msk [vmem:[%s4858_s1 + $0x74] sm:$0xff] %vm1265_vm1, %v1384_v34   ;;  %v2306_v37 = vld [vmem:[#allocation0 + $0x381] ss:$8 sm:$0xf0]   ;;  %v1820_v28 = vpop.permute.xlu0 %1819  }
 0x126   :  { %v1409_v39 = vld [vmem:[#allocation0 + $0x400] ss:$8 sm:$0xf0]   ;;  %v2315_v45 = vld [vmem:[#allocation0 + $0x461] ss:$8 sm:$0xf]   ;;  %v2308_v53 = vsel %vm1263_vm0, %v2306_v37, %v2304_v35 }
 0x127   :  { %v1411_v42 = vsel %vm1263_vm0, %v1409_v39, %v1407_v38  ;;  %v1445_v43 = vld [vmem:[#allocation0 + $0x500] ss:$8 sm:$0xf]   ;;  %v2317_v46 = vld [vmem:[#allocation0 + $0x461] ss:$8 sm:$0xf0]   ;;  %2309 = vrot.lane.b32.xlu0 %v2308_v53, %s3261_s14 }
 0x128   :  { %v1447_v44 = vld [vmem:[#allocation0 + $0x500] ss:$8 sm:$0xf0]   ;;  %3169 = vst.msk [vmem:[%s4858_s1 + $0x30] sm:$0xff] %vm1558_vm2, %v1765_v41   ;;  %v2319_v54 = vsel %vm1263_vm0, %v2317_v46, %v2315_v45  ;;  %3170 = vst.msk [vmem:[%s4858_s1 + $0x50] sm:$0xff] %vm1558_vm2, %v1776_v60  }
 0x129   :  { %3133 = vst.msk [vmem:[%s4858_s1 + $0x90] sm:$0xff] %vm1265_vm1, %v1411_v42   ;;  %v1449_v47 = vsel %vm1263_vm0, %v1447_v44, %v1445_v43  ;;  %v2326_v48 = vld [vmem:[#allocation0 + $0x541] ss:$8 sm:$0xf]   ;;  %2320 = vrot.lane.b32.xlu1 %v2319_v54, %s3261_s14 }
 0x12a   :  { %3138 = vst.msk [vmem:[%s4858_s1 + $0xb4] sm:$0xff] %vm1265_vm1, %v1449_v47   ;;  %v2328_v49 = vld [vmem:[#allocation0 + $0x541] ss:$8 sm:$0xf0]  }
 0x12b   :  { %v1472_v50 = vld [vmem:[#allocation0 + $0x5c0] ss:$8 sm:$0xf]   ;;  %v2337_v52 = vld [vmem:[#allocation0 + $0x621] ss:$8 sm:$0xf]   ;;  %v2330_v63 = vsel %vm1263_vm0, %v2328_v49, %v2326_v48 }
 0x12c   :  { %v1474_v51 = vld [vmem:[#allocation0 + $0x5c0] ss:$8 sm:$0xf0]   ;;  %v2339_v58 = vld [vmem:[#allocation0 + $0x621] ss:$8 sm:$0xf0]   ;;  %2331 = vrot.lane.b32.xlu0 %v2330_v63, %s3261_s14  ;;  %v1831_v35 = vpop.permute.xlu1 %1830  }
 0x12d   :  { %v1476_v55 = vsel %vm1263_vm0, %v1474_v51, %v1472_v50  ;;  %v1510_v56 = vld [vmem:[#allocation0 + $0x6c0] ss:$8 sm:$0xf]   ;;  %v2341_v1 = vsel %vm1263_vm0, %v2339_v58, %v2337_v52  ;;  %v2348_v2 = vld [vmem:[#allocation0 + $0x701] ss:$8 sm:$0xf]  }
 0x12e   :  { %v1512_v57 = vld [vmem:[#allocation0 + $0x6c0] ss:$8 sm:$0xf0]   ;;  %3141 = vst.msk [vmem:[%s4858_s1 + $0xd0] sm:$0xff] %vm1265_vm1, %v1476_v55   ;;  %2342 = vrot.lane.b32.xlu1 %v2341_v1, %s3261_s14 }
 0x12f   :  { %v1514_v61 = vsel %vm1263_vm0, %v1512_v57, %v1510_v56  ;;  %v1537_v62 = vld [vmem:[#allocation0 + $0x780] ss:$8 sm:$0xf]   ;;  %v2350_v3 = vld [vmem:[#allocation0 + $0x701] ss:$8 sm:$0xf0]  }
 0x130   :  { %3146 = vst.msk [vmem:[%s4858_s1 + $0xf4] sm:$0xff] %vm1265_vm1, %v1514_v61   ;;  %v1539_v59 = vld [vmem:[#allocation0 + $0x780] ss:$8 sm:$0xf0]   ;;  %v2352_v9 = vsel %vm1263_vm0, %v2350_v3, %v2348_v2  ;;  %v1853_v42 = vpop.permute.xlu1 %1852  }
 0x131   :  { %v1541_v4 = vsel %vm1263_vm0, %v1539_v59, %v1537_v62  ;;  %v2359_v5 = vld [vmem:[#allocation0 + $0x41] ss:$8 sm:$0xf]   ;;  %3171 = vst.msk [vmem:[%s4858_s1 + $0x70] sm:$0xff] %vm1558_vm2, %v1787_v7   ;;  %3172 = vst.msk [vmem:[%s4858_s1 + $0x90] sm:$0xff] %vm1558_vm2, %v1798_v12   ;;  %2353 = vrot.lane.b32.xlu0 %v2352_v9, %s3261_s14 }
 0x132   :  { %v2361_v6 = vld [vmem:[#allocation0 + $0x41] ss:$8 sm:$0xf0]   ;;  %3149 = vst.msk [vmem:[%s4858_s1 + $0x110] sm:$0xff] %vm1265_vm1, %v1541_v4  }
 0x133   :  { %v2370_v8 = vld [vmem:[#allocation0 + $0x121] ss:$8 sm:$0xf]   ;;  %v2363_v0 = vsel %vm1263_vm0, %v2361_v6, %v2359_v5  ;;  %v1546_v11 = vld [vmem:[#allocation0 + $0x7c0] ss:$8 sm:$0xf]  }
 0x134   :  { %v2372_v10 = vld [vmem:[#allocation0 + $0x121] ss:$8 sm:$0xf0]   ;;  %3150 = vst.msk [vmem:[%s4858_s1 + $0x118] sm:$0xf] %vm1265_vm1, %v1546_v11   ;;  %2364 = vrot.lane.b32.xlu1 %v2363_v0, %s3261_s14 }
 0x135   :  { %v2381_v13 = vld [vmem:[#allocation0 + $0x201] ss:$8 sm:$0xf]   ;;  %v2374_v15 = vsel %vm1263_vm0, %v2372_v10, %v2370_v8  ;;  %3173 = vst.msk [vmem:[%s4858_s1 + $0xb0] sm:$0xff] %vm1558_vm2, %v1809_v19   ;;  %3174 = vst.msk [vmem:[%s4858_s1 + $0xd0] sm:$0xff] %vm1558_vm2, %v1820_v28  }
 0x136   :  { %v2383_v14 = vld [vmem:[#allocation0 + $0x201] ss:$8 sm:$0xf0]   ;;  %2375 = vrot.lane.b32.xlu0 %v2374_v15, %s3261_s14  ;;  %3175 = vst.msk [vmem:[%s4858_s1 + $0xf0] sm:$0xff] %vm1558_vm2, %v1831_v35   ;;  %3177 = vst.msk [vmem:[%s4858_s1 + $0x18] sm:$0xf] %vm1558_vm2, %v1853_v42  }
 0x137   :  { %v2385_v16 = vsel %vm1263_vm0, %v2383_v14, %v2381_v13  ;;  %v2392_v17 = vld [vmem:[#allocation0 + $0x2e1] ss:$8 sm:$0xf]   ;;  %3178 = vst.msk [vmem:[%s4858_s1 + $0x34] sm:$0xf0] %vm1558_vm2, %v1853_v42   ;;  %v1842_v45 = vpop.permute.xlu0 %1841  }
 0x138   :  { %v2394_v18 = vld [vmem:[#allocation0 + $0x2e1] ss:$8 sm:$0xf0]   ;;  %2386 = vrot.lane.b32.xlu1 %v2385_v16, %s3261_s14  ;;  %3176 = vst.msk [vmem:[%s4858_s1 + $0x110] sm:$0xff] %vm1558_vm2, %v1842_v45  }
 0x139   :  { %v2403_v20 = vld [vmem:[#allocation0 + $0x3c1] ss:$8 sm:$0xf]   ;;  %v2396_v22 = vsel %vm1263_vm0, %v2394_v18, %v2392_v17 }
 0x13a   :  { %v2405_v21 = vld [vmem:[#allocation0 + $0x3c1] ss:$8 sm:$0xf0]   ;;  %2397 = vrot.lane.b32.xlu0 %v2396_v22, %s3261_s14 }
 0x13b   :  { %v2407_v23 = vsel %vm1263_vm0, %v2405_v21, %v2403_v20  ;;  %v2414_v24 = vld [vmem:[#allocation0 + $0x4a1] ss:$8 sm:$0xf]  }
 0x13c   :  { %v2416_v25 = vld [vmem:[#allocation0 + $0x4a1] ss:$8 sm:$0xf0]   ;;  %2408 = vrot.lane.b32.xlu1 %v2407_v23, %s3261_s14 }
 0x13d   :  { %v2425_v26 = vld [vmem:[#allocation0 + $0x581] ss:$8 sm:$0xf]   ;;  %v2418_v29 = vsel %vm1263_vm0, %v2416_v25, %v2414_v24 }
 0x13e   :  { %v2427_v27 = vld [vmem:[#allocation0 + $0x581] ss:$8 sm:$0xf0]   ;;  %2419 = vrot.lane.b32.xlu0 %v2418_v29, %s3261_s14 }
 0x13f   :  { %v2429_v30 = vsel %vm1263_vm0, %v2427_v27, %v2425_v26  ;;  %v2436_v31 = vld [vmem:[#allocation0 + $0x661] ss:$8 sm:$0xf]  }
 0x140   :  { %v2438_v32 = vld [vmem:[#allocation0 + $0x661] ss:$8 sm:$0xf0]   ;;  %2430 = vrot.lane.b32.xlu1 %v2429_v30, %s3261_s14  ;;  %v1879_v55 = vpop.permute.xlu1 %1878  }
 0x141   :  { %v2447_v33 = vld [vmem:[#allocation0 + $0x741] ss:$8 sm:$0xf]   ;;  %v2440_v37 = vsel %vm1263_vm0, %v2438_v32, %v2436_v31  ;;  %3181 = vst.msk [vmem:[%s4858_s1 + $0x98] sm:$0xf] %vm1558_vm2, %v1879_v55  }
 0x142   :  { %v2449_v34 = vld [vmem:[#allocation0 + $0x741] ss:$8 sm:$0xf0]   ;;  %2441 = vrot.lane.b32.xlu0 %v2440_v37, %s3261_s14  ;;  %3182 = vst.msk [vmem:[%s4858_s1 + $0xb4] sm:$0xf0] %vm1558_vm2, %v1879_v55  }
 0x143   :  { %v2451_v38 = vsel %vm1263_vm0, %v2449_v34, %v2447_v33  ;;  %v2458_v39 = vld [vmem:[#allocation0 + $0x81] ss:$8 sm:$0xf]  }
 0x144   :  { %v2460_v36 = vld [vmem:[#allocation0 + $0x81] ss:$8 sm:$0xf0]   ;;  %2452 = vrot.lane.b32.xlu1 %v2451_v38, %s3261_s14  ;;  %v1866_v62 = vpop.permute.xlu0 %1865  }
 0x145   :  { %v2469_v40 = vld [vmem:[#allocation0 + $0x161] ss:$8 sm:$0xf]   ;;  %v2462_v43 = vsel %vm1263_vm0, %v2460_v36, %v2458_v39  ;;  %3179 = vst.msk [vmem:[%s4858_s1 + $0x58] sm:$0xf] %vm1558_vm2, %v1866_v62  }
 0x146   :  { %v2471_v41 = vld [vmem:[#allocation0 + $0x161] ss:$8 sm:$0xf0]   ;;  %2463 = vrot.lane.b32.xlu0 %v2462_v43, %s3261_s14  ;;  %3180 = vst.msk [vmem:[%s4858_s1 + $0x74] sm:$0xf0] %vm1558_vm2, %v1866_v62  }
 0x147   :  { %v2473_v44 = vsel %vm1263_vm0, %v2471_v41, %v2469_v40  ;;  %v2480_v46 = vld [vmem:[#allocation0 + $0x241] ss:$8 sm:$0xf]  }
 0x148   :  { %v2482_v47 = vld [vmem:[#allocation0 + $0x241] ss:$8 sm:$0xf0]   ;;  %2474 = vrot.lane.b32.xlu1 %v2473_v44, %s3261_s14  ;;  %v1892_v5 = vpop.permute.xlu0 %1891  }
 0x149   :  { %v2491_v48 = vld [vmem:[#allocation0 + $0x321] ss:$8 sm:$0xf]   ;;  %v2484_v50 = vsel %vm1263_vm0, %v2482_v47, %v2480_v46  ;;  %3183 = vst.msk [vmem:[%s4858_s1 + $0xd8] sm:$0xf] %vm1558_vm2, %v1892_v5  }
 0x14a   :  { %v2493_v49 = vld [vmem:[#allocation0 + $0x321] ss:$8 sm:$0xf0]   ;;  %2485 = vrot.lane.b32.xlu0 %v2484_v50, %s3261_s14  ;;  %v1901_v6 = vpop.permute.xlu1 %1900   ;;  %3184 = vst.msk [vmem:[%s4858_s1 + $0xf4] sm:$0xf0] %vm1558_vm2, %v1892_v5  }
 0x14b   :  { %v2495_v51 = vsel %vm1263_vm0, %v2493_v49, %v2491_v48  ;;  %v2502_v53 = vld [vmem:[#allocation0 + $0x401] ss:$8 sm:$0xf]   ;;  %3185 = vst.msk [vmem:[%s4858_s1 + $0x118] sm:$0xf] %vm1558_vm2, %v1901_v6  }
 0x14c   :  { %v2504_v54 = vld [vmem:[#allocation0 + $0x401] ss:$8 sm:$0xf0]   ;;  %2496 = vrot.lane.b32.xlu1 %v2495_v51, %s3261_s14  ;;  %v1912_v11 = vpop.permute.xlu0 %1911  }
 0x14d   :  { %v2513_v56 = vld [vmem:[#allocation0 + $0x4e1] ss:$8 sm:$0xf]   ;;  %v2506_v52 = vsel %vm1263_vm0, %v2504_v54, %v2502_v53  ;;  %1914 = vst.msk [vmem:[%s4858_s1] sm:$0xff] %vm1913_vm3, %v1912_v11  }
 0x14e   :  { %v2515_v57 = vld [vmem:[#allocation0 + $0x4e1] ss:$8 sm:$0xf0]   ;;  %2507 = vrot.lane.b32.xlu0 %v2506_v52, %s3261_s14  ;;  %v1922_v13 = vpop.permute.xlu1 %1921  }
 0x14f   :  { %v2517_v58 = vsel %vm1263_vm0, %v2515_v57, %v2513_v56  ;;  %v2524_v60 = vld [vmem:[#allocation0 + $0x5c1] ss:$8 sm:$0xf]   ;;  %3186 = vst.msk [vmem:[%s4858_s1 + $0x20] sm:$0xff] %vm1913_vm3, %v1922_v13  }
 0x150   :  { %v2526_v61 = vld [vmem:[#allocation0 + $0x5c1] ss:$8 sm:$0xf0]   ;;  %2518 = vrot.lane.b32.xlu1 %v2517_v58, %s3261_s14  ;;  %v1933_v18 = vpop.permute.xlu0 %1932  }
 0x151   :  { %v2535_v59 = vld [vmem:[#allocation0 + $0x6a1] ss:$8 sm:$0xf]   ;;  %v2528_v1 = vsel %vm1263_vm0, %v2526_v61, %v2524_v60  ;;  %3187 = vst.msk [vmem:[%s4858_s1 + $0x40] sm:$0xff] %vm1913_vm3, %v1933_v18  }
 0x152   :  { %v2537_v63 = vld [vmem:[#allocation0 + $0x6a1] ss:$8 sm:$0xf0]   ;;  %2529 = vrot.lane.b32.xlu0 %v2528_v1, %s3261_s14  ;;  %v1944_v19 = vpop.permute.xlu1 %1943  }
 0x153   :  { %v2539_v2 = vsel %vm1263_vm0, %v2537_v63, %v2535_v59  ;;  %v2546_v3 = vld [vmem:[#allocation0 + $0x781] ss:$8 sm:$0xf]   ;;  %3188 = vst.msk [vmem:[%s4858_s1 + $0x60] sm:$0xff] %vm1913_vm3, %v1944_v19  }
 0x154   :  { %v2548_v4 = vld [vmem:[#allocation0 + $0x781] ss:$8 sm:$0xf0]   ;;  %2540 = vrot.lane.b32.xlu1 %v2539_v2, %s3261_s14  ;;  %v1955_v24 = vpop.permute.xlu0 %1954  }
 0x155   :  { %v2557_v7 = vld [vmem:[#allocation0 + $0xc1] ss:$8 sm:$0xf]   ;;  %v2550_v9 = vsel %vm1263_vm0, %v2548_v4, %v2546_v3  ;;  %3189 = vst.msk [vmem:[%s4858_s1 + $0x80] sm:$0xff] %vm1913_vm3, %v1955_v24  }
 0x156   :  { %v2559_v8 = vld [vmem:[#allocation0 + $0x181] ss:$8 sm:$0xf0]   ;;  %2551 = vrot.lane.b32.xlu0 %v2550_v9, %s3261_s14  ;;  %v1966_v25 = vpop.permute.xlu1 %1965  }
 0x157   :  { %v2561_v0 = vsel %vm1263_vm0, %v2559_v8, %v2557_v7  ;;  %v2570_v10 = vld [vmem:[#allocation0 + $0x281] ss:$8 sm:$0xf]   ;;  %3190 = vst.msk [vmem:[%s4858_s1 + $0xa0] sm:$0xff] %vm1913_vm3, %v1966_v25  }
 0x158   :  { %v2572_v12 = vld [vmem:[#allocation0 + $0x341] ss:$8 sm:$0xf0]   ;;  %2562 = vrot.lane.b32.xlu1 %v2561_v0, %s3261_s14  ;;  %v1977_v26 = vpop.permute.xlu0 %1976  }
 0x159   :  { %v2583_v14 = vld [vmem:[#allocation0 + $0x441] ss:$8 sm:$0xf]   ;;  %v2574_v16 = vsel %vm1263_vm0, %v2572_v12, %v2570_v10  ;;  %3191 = vst.msk [vmem:[%s4858_s1 + $0xc0] sm:$0xff] %vm1913_vm3, %v1977_v26  }
 0x15a   :  { %v2585_v15 = vld [vmem:[#allocation0 + $0x501] ss:$8 sm:$0xf0]   ;;  %2575 = vrot.lane.b32.xlu0 %v2574_v16, %s3261_s14  ;;  %v1988_v27 = vpop.permute.xlu1 %1987  }
 0x15b   :  { %v2587_v17 = vsel %vm1263_vm0, %v2585_v15, %v2583_v14  ;;  %v2596_v20 = vld [vmem:[#allocation0 + $0x601] ss:$8 sm:$0xf]   ;;  %3192 = vst.msk [vmem:[%s4858_s1 + $0xe0] sm:$0xff] %vm1913_vm3, %v1988_v27  }
 0x15c   :  { %v2598_v21 = vld [vmem:[#allocation0 + $0x6c1] ss:$8 sm:$0xf0]   ;;  %2588 = vrot.lane.b32.xlu1 %v2587_v17, %s3261_s14  ;;  %v1999_v28 = vpop.permute.xlu0 %1998  }
 0x15d   :  { %v2600_v22 = vsel %vm1263_vm0, %v2598_v21, %v2596_v20  ;;  %v2609_v23 = vld [vmem:[#allocation0 + $0x7c1] ss:$8 sm:$0xf]   ;;  %3193 = vst.msk [vmem:[%s4858_s1 + $0x100] sm:$0xff] %vm1913_vm3, %v1999_v28  }
 0x15e   :  { %2601 = vrot.lane.b32.xlu0 %v2600_v22, %s3261_s14  ;;  %v2010_v29 = vpop.permute.xlu1 %2009  }
 0x15f   :  { %3194 = vst.msk [vmem:[%s4858_s1 + $0x8] sm:$0xff] %vm1913_vm3, %v2010_v29  }
 0x160   :  { %2610 = vrot.lane.b32.xlu1 %v2609_v23, %s3261_s14  ;;  %v2021_v30 = vpop.permute.xlu0 %2020  }
 0x161   :  { %3195 = vst.msk [vmem:[%s4858_s1 + $0x28] sm:$0xff] %vm1913_vm3, %v2021_v30  }
 0x162   :  { %v2032_v31 = vpop.permute.xlu1 %2031  }
 0x163   :  { %3196 = vst.msk [vmem:[%s4858_s1 + $0x48] sm:$0xff] %vm1913_vm3, %v2032_v31  }
 0x164   :  { %v2043_v32 = vpop.permute.xlu0 %2042  }
 0x165   :  { %3197 = vst.msk [vmem:[%s4858_s1 + $0x68] sm:$0xff] %vm1913_vm3, %v2043_v32  }
 0x166   :  { %v2054_v33 = vpop.permute.xlu1 %2053  }
 0x167   :  { %3198 = vst.msk [vmem:[%s4858_s1 + $0x88] sm:$0xff] %vm1913_vm3, %v2054_v33  }
 0x168   :  { %v2065_v34 = vpop.permute.xlu0 %2064  }
 0x169   :  { %3199 = vst.msk [vmem:[%s4858_s1 + $0xa8] sm:$0xff] %vm1913_vm3, %v2065_v34  }
 0x16a   :  { %v2076_v35 = vpop.permute.xlu1 %2075  }
 0x16b   :  { %3200 = vst.msk [vmem:[%s4858_s1 + $0xc8] sm:$0xff] %vm1913_vm3, %v2076_v35  }
 0x16c   :  { %v2087_v37 = vpop.permute.xlu0 %2086  }
 0x16d   :  { %3201 = vst.msk [vmem:[%s4858_s1 + $0xe8] sm:$0xff] %vm1913_vm3, %v2087_v37  }
 0x16e   :  { %v2098_v38 = vpop.permute.xlu1 %2097  }
 0x16f   :  { %3202 = vst.msk [vmem:[%s4858_s1 + $0x108] sm:$0xff] %vm1913_vm3, %v2098_v38  }
 0x170   :  { %v2109_v39 = vpop.permute.xlu0 %2108  }
 0x171   :  { %3203 = vst.msk [vmem:[%s4858_s1 + $0x10] sm:$0xff] %vm1913_vm3, %v2109_v39  }
 0x172   :  { %v2120_v36 = vpop.permute.xlu1 %2119  }
 0x173   :  { %3204 = vst.msk [vmem:[%s4858_s1 + $0x30] sm:$0xff] %vm1913_vm3, %v2120_v36  }
 0x174   :  { %v2131_v40 = vpop.permute.xlu0 %2130  }
 0x175   :  { %3205 = vst.msk [vmem:[%s4858_s1 + $0x50] sm:$0xff] %vm1913_vm3, %v2131_v40  }
 0x176   :  { %v2142_v41 = vpop.permute.xlu1 %2141  }
 0x177   :  { %3206 = vst.msk [vmem:[%s4858_s1 + $0x70] sm:$0xff] %vm1913_vm3, %v2142_v41  }
 0x178   :  { %v2153_v42 = vpop.permute.xlu0 %2152  }
 0x179   :  { %3207 = vst.msk [vmem:[%s4858_s1 + $0x90] sm:$0xff] %vm1913_vm3, %v2153_v42  }
 0x17a   :  { %v2164_v43 = vpop.permute.xlu1 %2163  }
 0x17b   :  { %3208 = vst.msk [vmem:[%s4858_s1 + $0xb0] sm:$0xff] %vm1913_vm3, %v2164_v43  }
 0x17c   :  { %v2175_v44 = vpop.permute.xlu0 %2174  }
 0x17d   :  { %3209 = vst.msk [vmem:[%s4858_s1 + $0xd0] sm:$0xff] %vm1913_vm3, %v2175_v44  }
 0x17e   :  { %v2186_v45 = vpop.permute.xlu1 %2185  }
 0x17f   :  { %3210 = vst.msk [vmem:[%s4858_s1 + $0xf0] sm:$0xff] %vm1913_vm3, %v2186_v45  }
 0x180   :  { %v2197_v46 = vpop.permute.xlu0 %2196  }
 0x181   :  { %3211 = vst.msk [vmem:[%s4858_s1 + $0x110] sm:$0xff] %vm1913_vm3, %v2197_v46  }
 0x182   :  { %v2208_v47 = vpop.permute.xlu1 %2207  }
 0x183   :  { %3212 = vst.msk [vmem:[%s4858_s1 + $0x18] sm:$0xf] %vm1913_vm3, %v2208_v47   ;;  %3213 = vst.msk [vmem:[%s4858_s1 + $0x34] sm:$0xf0] %vm1913_vm3, %v2208_v47  }
 0x184   :  { %v2221_v48 = vpop.permute.xlu0 %2220  }
 0x185   :  { %3214 = vst.msk [vmem:[%s4858_s1 + $0x58] sm:$0xf] %vm1913_vm3, %v2221_v48   ;;  %3215 = vst.msk [vmem:[%s4858_s1 + $0x74] sm:$0xf0] %vm1913_vm3, %v2221_v48  }
 0x186   :  { %v2234_v49 = vpop.permute.xlu1 %2233  }
 0x187   :  { %3216 = vst.msk [vmem:[%s4858_s1 + $0x98] sm:$0xf] %vm1913_vm3, %v2234_v49   ;;  %3217 = vst.msk [vmem:[%s4858_s1 + $0xb4] sm:$0xf0] %vm1913_vm3, %v2234_v49  }
 0x18c   :  { %v2247_v50 = vpop.permute.xlu0 %2246   ;;  %v2256_v51 = vpop.permute.xlu1 %2255  }
 0x18d   :  { %3218 = vst.msk [vmem:[%s4858_s1 + $0xd8] sm:$0xf] %vm1913_vm3, %v2247_v50   ;;  %3219 = vst.msk [vmem:[%s4858_s1 + $0xf4] sm:$0xf0] %vm1913_vm3, %v2247_v50  }
 0x18e   :  { %3220 = vst.msk [vmem:[%s4858_s1 + $0x118] sm:$0xf] %vm1913_vm3, %v2256_v51  }
 0x190   :  { %v2267_v53 = vpop.permute.xlu0 %2266  }
 0x191   :  { %v2277_v54 = vpop.permute.xlu1 %2276   ;;  %2269 = vst.msk [vmem:[%s4858_s1] sm:$0xff] %vm2268_vm4, %v2267_v53  }
 0x192   :  { %3221 = vst.msk [vmem:[%s4858_s1 + $0x20] sm:$0xff] %vm2268_vm4, %v2277_v54  }
 0x194   :  { %v2288_v55 = vpop.permute.xlu0 %2287  }
 0x195   :  { %3222 = vst.msk [vmem:[%s4858_s1 + $0x40] sm:$0xff] %vm2268_vm4, %v2288_v55  }
 0x196   :  { %v2299_v56 = vpop.permute.xlu1 %2298  }
 0x197   :  { %3223 = vst.msk [vmem:[%s4858_s1 + $0x60] sm:$0xff] %vm2268_vm4, %v2299_v56  }
 0x199   :  { %v2310_v57 = vpop.permute.xlu0 %2309  }
 0x19a   :  { %3224 = vst.msk [vmem:[%s4858_s1 + $0x80] sm:$0xff] %vm2268_vm4, %v2310_v57  }
 0x19b   :  { %v2321_v52 = vpop.permute.xlu1 %2320  }
 0x19c   :  { %3225 = vst.msk [vmem:[%s4858_s1 + $0xa0] sm:$0xff] %vm2268_vm4, %v2321_v52  }
 0x19e   :  { %v2332_v58 = vpop.permute.xlu0 %2331  }
 0x19f   :  { %3226 = vst.msk [vmem:[%s4858_s1 + $0xc0] sm:$0xff] %vm2268_vm4, %v2332_v58  }
 0x1a0   :  { %v2343_v60 = vpop.permute.xlu1 %2342  }
 0x1a1   :  { %3227 = vst.msk [vmem:[%s4858_s1 + $0xe0] sm:$0xff] %vm2268_vm4, %v2343_v60  }
 0x1a3   :  { %v2354_v61 = vpop.permute.xlu0 %2353  }
 0x1a4   :  { %3228 = vst.msk [vmem:[%s4858_s1 + $0x100] sm:$0xff] %vm2268_vm4, %v2354_v61  }
 0x1a6   :  { %v2365_v62 = vpop.permute.xlu1 %2364  }
 0x1a7   :  { %3229 = vst.msk [vmem:[%s4858_s1 + $0x8] sm:$0xff] %vm2268_vm4, %v2365_v62  }
 0x1a8   :  { %v2376_v59 = vpop.permute.xlu0 %2375  }
 0x1a9   :  { %3230 = vst.msk [vmem:[%s4858_s1 + $0x28] sm:$0xff] %vm2268_vm4, %v2376_v59  }
 0x1aa   :  { %v2387_v63 = vpop.permute.xlu1 %2386  }
 0x1ab   :  { %3231 = vst.msk [vmem:[%s4858_s1 + $0x48] sm:$0xff] %vm2268_vm4, %v2387_v63  }
 0x1ac   :  { %v2398_v1 = vpop.permute.xlu0 %2397  }
 0x1ad   :  { %3232 = vst.msk [vmem:[%s4858_s1 + $0x68] sm:$0xff] %vm2268_vm4, %v2398_v1  }
 0x1ae   :  { %v2409_v2 = vpop.permute.xlu1 %2408  }
 0x1af   :  { %3233 = vst.msk [vmem:[%s4858_s1 + $0x88] sm:$0xff] %vm2268_vm4, %v2409_v2  }
 0x1b0   :  { %v2420_v3 = vpop.permute.xlu0 %2419  }
 0x1b1   :  { %3234 = vst.msk [vmem:[%s4858_s1 + $0xa8] sm:$0xff] %vm2268_vm4, %v2420_v3  }
 0x1b2   :  { %v2431_v4 = vpop.permute.xlu1 %2430  }
 0x1b3   :  { %3235 = vst.msk [vmem:[%s4858_s1 + $0xc8] sm:$0xff] %vm2268_vm4, %v2431_v4  }
 0x1b4   :  { %v2442_v5 = vpop.permute.xlu0 %2441  }
 0x1b5   :  { %3236 = vst.msk [vmem:[%s4858_s1 + $0xe8] sm:$0xff] %vm2268_vm4, %v2442_v5  }
 0x1b6   :  { %v2453_v6 = vpop.permute.xlu1 %2452  }
 0x1b7   :  { %3237 = vst.msk [vmem:[%s4858_s1 + $0x108] sm:$0xff] %vm2268_vm4, %v2453_v6  }
 0x1b8   :  { %v2464_v7 = vpop.permute.xlu0 %2463  }
 0x1b9   :  { %3238 = vst.msk [vmem:[%s4858_s1 + $0x10] sm:$0xff] %vm2268_vm4, %v2464_v7  }
 0x1ba   :  { %v2475_v8 = vpop.permute.xlu1 %2474  }
 0x1bb   :  { %3239 = vst.msk [vmem:[%s4858_s1 + $0x30] sm:$0xff] %vm2268_vm4, %v2475_v8  }
 0x1bc   :  { %v2486_v9 = vpop.permute.xlu0 %2485  }
 0x1bd   :  { %3240 = vst.msk [vmem:[%s4858_s1 + $0x50] sm:$0xff] %vm2268_vm4, %v2486_v9  }
 0x1be   :  { %v2497_v0 = vpop.permute.xlu1 %2496  }
 0x1bf   :  { %3241 = vst.msk [vmem:[%s4858_s1 + $0x70] sm:$0xff] %vm2268_vm4, %v2497_v0  }
 0x1c0   :  { %v2508_v10 = vpop.permute.xlu0 %2507  }
 0x1c1   :  { %3242 = vst.msk [vmem:[%s4858_s1 + $0x90] sm:$0xff] %vm2268_vm4, %v2508_v10  }
 0x1c2   :  { %v2519_v12 = vpop.permute.xlu1 %2518  }
 0x1c3   :  { %3243 = vst.msk [vmem:[%s4858_s1 + $0xb0] sm:$0xff] %vm2268_vm4, %v2519_v12  }
 0x1c4   :  { %v2530_v11 = vpop.permute.xlu0 %2529  }
 0x1c5   :  { %3244 = vst.msk [vmem:[%s4858_s1 + $0xd0] sm:$0xff] %vm2268_vm4, %v2530_v11  }
 0x1c6   :  { %v2541_v13 = vpop.permute.xlu1 %2540  }
 0x1c7   :  { %3245 = vst.msk [vmem:[%s4858_s1 + $0xf0] sm:$0xff] %vm2268_vm4, %v2541_v13  }
 0x1c8   :  { %v2552_v14 = vpop.permute.xlu0 %2551  }
 0x1c9   :  { %3246 = vst.msk [vmem:[%s4858_s1 + $0x110] sm:$0xff] %vm2268_vm4, %v2552_v14  }
 0x1ca   :  { %v2563_v15 = vpop.permute.xlu1 %2562  }
 0x1cb   :  { %3247 = vst.msk [vmem:[%s4858_s1 + $0x18] sm:$0xf] %vm2268_vm4, %v2563_v15   ;;  %3248 = vst.msk [vmem:[%s4858_s1 + $0x34] sm:$0xf0] %vm2268_vm4, %v2563_v15  }
 0x1cc   :  { %v2576_v16 = vpop.permute.xlu0 %2575  }
 0x1cd   :  { %3249 = vst.msk [vmem:[%s4858_s1 + $0x58] sm:$0xf] %vm2268_vm4, %v2576_v16   ;;  %3250 = vst.msk [vmem:[%s4858_s1 + $0x74] sm:$0xf0] %vm2268_vm4, %v2576_v16  }
 0x1ce   :  { %v2589_v17 = vpop.permute.xlu1 %2588  }
 0x1cf   :  { %3251 = vst.msk [vmem:[%s4858_s1 + $0x98] sm:$0xf] %vm2268_vm4, %v2589_v17   ;;  %3252 = vst.msk [vmem:[%s4858_s1 + $0xb4] sm:$0xf0] %vm2268_vm4, %v2589_v17  }
 0x1d0   :  { %v2602_v18 = vpop.permute.xlu0 %2601  }
 0x1d1   :  { %3253 = vst.msk [vmem:[%s4858_s1 + $0xd8] sm:$0xf] %vm2268_vm4, %v2602_v18   ;;  %3254 = vst.msk [vmem:[%s4858_s1 + $0xf4] sm:$0xf0] %vm2268_vm4, %v2602_v18  }
 0x1d2   :  { %v2611_v19 = vpop.permute.xlu1 %2610  }
 0x1d3   :  { %3255 = vst.msk [vmem:[%s4858_s1 + $0x118] sm:$0xf] %vm2268_vm4, %v2611_v19  }

// kernel: nn_forward.1
= control target key start
LH: loop header
LB: loop body
LE: loop exit
PB: predicated region body
PF: predicated region fallthrough
CT: control target
= control target key end

     0   :  { %vm242_vm0 = vcmask 1043456   ;;  %vm235_vm1 = vcmask 228352   ;;  %s18430_s0 = inlined_call_operand.vmem [shape: f32[9,28,112], index: 0, kind: input, shape index: {}]   ;;  %s18431_s1 = inlined_call_operand.vmem [shape: f32[9,1,112], index: 1, kind: input, shape index: {}]   ;;  %s18432_s2 = inlined_call_operand.vmem [shape: f32[1,112], index: 2, kind: input, shape index: {}]   ;;  %s18433_s3 = inlined_call_operand.vmem [shape: f32[2,16,28], index: 3, kind: input, shape index: {}]   ;;  %s18434_s4 = inlined_call_operand.vmem [shape: f32[2,112,256], index: 4, kind: input, shape index: {}]   ;;  %s18435_s5 = inlined_call_operand.vmem [shape: f32[36,1,62], index: 5, kind: input, shape index: {}]   ;;  %s18436_s6 = inlined_call_operand.vmem [shape: f32[1,62], index: 6, kind: input, shape index: {}]   ;;  %s18437_s7 = inlined_call_operand.vmem [shape: f32[2,7,14], index: 7, kind: input, shape index: {}]   ;;  %s18438_s8 = inlined_call_operand.vmem [shape: f32[2,62,28], index: 8, kind: input, shape index: {}]   ;;  %s18439_s9 = inlined_call_operand.vmem [shape: f32[7,28,42], index: 9, kind: input, shape index: {}]   ;;  %s18440_s10 = inlined_call_operand.vmem [shape: f32[1,42], index: 10, kind: input, shape index: {}]   ;;  %s18441_s11 = inlined_call_operand.hbm [shape: f32[1,42], index: 11, kind: output, shape index: {}]  }
   0x1   :  { %v42_v0 = vld [vmem:[%s18430_s0 + $0x18] sm:$0xf]  ;;  %v14209_v1 = vld [vmem:[%s18431_s1] ss:$0 sm:$0xff]  ;;  %v14218_v4 = vld [vmem:[%s18431_s1 + $0x1] ss:$0 sm:$0xff] }
   0x2   :  { %v12248_v2 = vld [vmem:[%s18430_s0 + $0x38] sm:$0xf]  ;;  %v53_v3 = vmul.f32 %v14209_v1, %v42_v0  ;;  %v14226_v6 = vld [vmem:[%s18431_s1 + $0x2] ss:$0 sm:$0xff]  ;;  %v14236_v10 = vld [vmem:[%s18431_s1 + $0x3] ss:$0 sm:$0xff] }
   0x3   :  { %v12254_v5 = vld [vmem:[%s18430_s0 + $0x58] sm:$0xf]  ;;  %v70_v7 = vmul.f32 %v14218_v4, %v12248_v2  ;;  %v14245_v13 = vld [vmem:[%s18431_s1 + $0x4] ss:$0 sm:$0xff]  ;;  %v14253_v15 = vld [vmem:[%s18431_s1 + $0x5] ss:$0 sm:$0xff] }
   0x4   :  { %v87_v8 = vmul.f32 %v14226_v6, %v12254_v5  ;;  %v12260_v9 = vld [vmem:[%s18430_s0 + $0x78] sm:$0xf]  ;;  %v14263_v19 = vld [vmem:[%s18431_s1 + $0x6] ss:$0 sm:$0xff]  ;;  %v14272_v23 = vld [vmem:[%s18431_s1 + $0x7] ss:$0 sm:$0xff] }
   0x5   :  { %v12266_v11 = vld [vmem:[%s18430_s0 + $0x98] sm:$0xf]  ;;  %v104_v12 = vmul.f32 %v14236_v10, %v12260_v9  ;;  %v193_v21 = vadd.f32 %v70_v7, %v53_v3  ;;  %v14280_v25 = vld [vmem:[%s18431_s1 + $0x8] ss:$0 sm:$0xff]  ;;  %v41_v30 = vld [vmem:[%s18430_s0 + $0x10] sm:$0xff] }
   0x6   :  { %v12272_v14 = vld [vmem:[%s18430_s0 + $0xb8] sm:$0xf]  ;;  %v121_v16 = vmul.f32 %v14245_v13, %v12266_v11  ;;  %v12247_v31 = vld [vmem:[%s18430_s0 + $0x30] sm:$0xff]  ;;  %v52_v33 = vmul.f32 %v14209_v1, %v41_v30  ;;  %v40_v50 = vld [vmem:[%s18430_s0 + $0x8] sm:$0xff] }
   0x7   :  { %v138_v17 = vmul.f32 %v14253_v15, %v12272_v14  ;;  %v12278_v18 = vld [vmem:[%s18430_s0 + $0xd8] sm:$0xf]  ;;  %v197_v26 = vadd.f32 %v104_v12, %v87_v8  ;;  %v69_v34 = vmul.f32 %v14218_v4, %v12247_v31  ;;  %v12253_v35 = vld [vmem:[%s18430_s0 + $0x50] sm:$0xff]  ;;  %v12246_v51 = vld [vmem:[%s18430_s0 + $0x28] sm:$0xff]  ;;  %v51_v55 = vmul.f32 %v14209_v1, %v40_v50 }
   0x8   :  { %v12284_v20 = vld [vmem:[%s18430_s0 + $0xf8] sm:$0xf]  ;;  %v155_v22 = vmul.f32 %v14263_v19, %v12278_v18  ;;  %v12259_v36 = vld [vmem:[%s18430_s0 + $0x70] sm:$0xff]  ;;  %v86_v39 = vmul.f32 %v14226_v6, %v12253_v35  ;;  %v12252_v56 = vld [vmem:[%s18430_s0 + $0x48] sm:$0xff]  ;;  %v68_v61 = vmul.f32 %v14218_v4, %v12246_v51 }
   0x9   :  { %v12290_v24 = vld [vmem:[%s18430_s0 + $0x118] sm:$0xf]  ;;  %v172_v27 = vmul.f32 %v14272_v23, %v12284_v20  ;;  %v201_v29 = vadd.f32 %v138_v17, %v121_v16  ;;  %v209_v32 = vadd.f32 %v197_v26, %v193_v21  ;;  %v12265_v37 = vld [vmem:[%s18430_s0 + $0x90] sm:$0xff]  ;;  %v103_v40 = vmul.f32 %v14236_v10, %v12259_v36  ;;  %v12258_v57 = vld [vmem:[%s18430_s0 + $0x68] sm:$0xff] }
   0xa   :  { %v189_v28 = vmul.f32 %v14280_v25, %v12290_v24  ;;  %v120_v41 = vmul.f32 %v14245_v13, %v12265_v37  ;;  %v12271_v42 = vld [vmem:[%s18430_s0 + $0xb0] sm:$0xff]  ;;  %v192_v49 = vadd.f32 %v69_v34, %v52_v33  ;;  %v12264_v58 = vld [vmem:[%s18430_s0 + $0x88] sm:$0xff]  ;;  %v85_v62 = vmul.f32 %v14226_v6, %v12252_v56  ;;  %v39_v11 = vld [vmem:[%s18430_s0] sm:$0xff] }
   0xb   :  { %v205_v38 = vadd.f32 %v172_v27, %v155_v22  ;;  %v12277_v43 = vld [vmem:[%s18430_s0 + $0xd0] sm:$0xff]  ;;  %v137_v45 = vmul.f32 %v14253_v15, %v12271_v42  ;;  %v196_v54 = vadd.f32 %v103_v40, %v86_v39  ;;  %v12270_v63 = vld [vmem:[%s18430_s0 + $0xa8] sm:$0xff]  ;;  %v102_v7 = vmul.f32 %v14236_v10, %v12258_v57  ;;  %v14358_v12 = vld [vmem:[%s18432_s2] ss:$0 sm:$0xff] }
   0xc   :  { %v12283_v44 = vld [vmem:[%s18430_s0 + $0xf0] sm:$0xff]  ;;  %v154_v46 = vmul.f32 %v14263_v19, %v12277_v43  ;;  %v12276_v0 = vld [vmem:[%s18430_s0 + $0xc8] sm:$0xff]  ;;  %v119_v8 = vmul.f32 %v14245_v13, %v12264_v58  ;;  %v136_v16 = vmul.f32 %v14253_v15, %v12270_v63  ;;  %v12245_v20 = vld [vmem:[%s18430_s0 + $0x20] sm:$0xff]  ;;  %v191_v26 = vadd.f32 %v68_v61, %v51_v55 }
   0xd   :  { %v171_v47 = vmul.f32 %v14272_v23, %v12283_v44  ;;  %v12289_v48 = vld [vmem:[%s18430_s0 + $0x110] sm:$0xff]  ;;  %v213_v52 = vadd.f32 %v205_v38, %v201_v29  ;;  %v200_v59 = vadd.f32 %v137_v45, %v120_v41  ;;  %v12282_v2 = vld [vmem:[%s18430_s0 + $0xe8] sm:$0xff]  ;;  %v208_v5 = vadd.f32 %v196_v54, %v192_v49  ;;  %v12251_v21 = vld [vmem:[%s18430_s0 + $0x40] sm:$0xff] }
   0xe   :  { %v188_v53 = vmul.f32 %v14280_v25, %v12289_v48  ;;  %v12288_v9 = vld [vmem:[%s18430_s0 + $0x108] sm:$0xff]  ;;  %v153_v17 = vmul.f32 %v14263_v19, %v12276_v0  ;;  %v170_v18 = vmul.f32 %v14272_v23, %v12282_v2  ;;  %v195_v27 = vadd.f32 %v102_v7, %v85_v62  ;;  %v12257_v29 = vld [vmem:[%s18430_s0 + $0x60] sm:$0xff] }
   0xf   :  { %v204_v60 = vadd.f32 %v171_v47, %v154_v46  ;;  %v217_v3 = vadd.f32 %v213_v52, %v209_v32  ;;  %v187_v24 = vmul.f32 %v14280_v25, %v12288_v9  ;;  %v12263_v30 = vld [vmem:[%s18430_s0 + $0x80] sm:$0xff]  ;;  %v199_v32 = vadd.f32 %v136_v16, %v119_v8 }
  0x10   :  { %v203_v33 = vadd.f32 %v170_v18, %v153_v17  ;;  %v50_v34 = vmul.f32 %v14209_v1, %v39_v11  ;;  %v12275_v35 = vld [vmem:[%s18430_s0 + $0xc0] sm:$0xff]  ;;  %v207_v38 = vadd.f32 %v195_v27, %v191_v26  ;;  %v67_v39 = vmul.f32 %v14218_v4, %v12245_v20 }
  0x11   :  { %v212_v14 = vadd.f32 %v204_v60, %v200_v59  ;;  %v221_v22 = vadd.f32 %v217_v3, %v189_v28  ;;  %v12269_v28 = vld [vmem:[%s18430_s0 + $0xa0] sm:$0xff]  ;;  %v84_v40 = vmul.f32 %v14226_v6, %v12251_v21  ;;  %v101_v43 = vmul.f32 %v14236_v10, %v12257_v29 }
  0x12   :  { %v12281_v36 = vld [vmem:[%s18430_s0 + $0xe0] sm:$0xff]  ;;  %v211_v42 = vadd.f32 %v203_v33, %v199_v32  ;;  %v118_v44 = vmul.f32 %v14245_v13, %v12263_v30 }
  0x13   :  { %v216_v31 = vadd.f32 %v212_v14, %v208_v5  ;;  %v232_v37 = vadd.f32 %v14358_v12, %v221_v22  ;;  %v12287_v1 = vld [vmem:[%s18430_s0 + $0x100] sm:$0xff] }
  0x15   :  { %v220_v41 = vadd.f32 %v216_v31, %v188_v53 }
  0x16   :  { %16 = vsyncpa [#allocation3], 0  ;;  %v244_v45 = vsel %vm242_vm0, %v232_v37, 0  ;;  %v135_v46 = vmul.f32 %v14253_v15, %v12269_v28  ;;  %v152_v47 = vmul.f32 %v14263_v19, %v12275_v35  ;;  %v169_v4 = vmul.f32 %v14272_v23, %v12281_v36  ;;  %v233_v6 = vld [vmem:[%s18433_s3] sm:$0xff]  ;;  %v234_v50 = vld [vmem:[%s18433_s3 + $0x8] sm:$0xff]  ;;  %s14133_s2 = smov 2  }
  0x17   :  { %v14401_v48 = vand.u32 4294901760, %v244_v45  ;;  %v231_v49 = vadd.f32 %v14358_v12, %v220_v41  ;;  %v215_v10 = vadd.f32 %v211_v42, %v207_v38  ;;  %v186_v13 = vmul.f32 %v14280_v25, %v12287_v1  ;;  %v12294_v28 = vld [vmem:[%s18433_s3 + $0x10] sm:$0xff]  ;;  %v12295_v35 = vld [vmem:[%s18433_s3 + $0x18] sm:$0xff]  ;;  %s14132_s3 = smov 65   ;;  %s14134_s20 = smov 64  }
  0x18   :  { %v190_v15 = vadd.f32 %v67_v39, %v50_v34  ;;  %v194_v51 = vadd.f32 %v101_v43, %v84_v40  ;;  %v198_v19 = vadd.f32 %v135_v46, %v118_v44  ;;  %v202_v52 = vadd.f32 %v169_v4, %v152_v47  ;;  %v1338_v47 = vld [vmem:[%s18434_s4 + $0xd8] sm:$0xff]  ;;  %v1337_v4 = vld [vmem:[%s18434_s4 + $0xd0] sm:$0xff]  ;;  %s14135_s21 = smov 127   ;;  %s14136_s28 = smov 1  }
  0x19   :  { %12963 = vmatprep.subr.mxu0 %v14401_v48  ;;  %v14409_v23 = vand.u32 4294901760, %v231_v49  ;;  %v219_v53 = vadd.f32 %v215_v10, %v187_v24  ;;  %v14412_v54 = vsub.f32 %v244_v45, %v14401_v48  ;;  %v237_v55 = vsel %vm235_vm1, %v233_v6, 0  ;;  %s14137_s29 = smov 66   ;;  %s14138_s24 = smov 126  }
  0x1a   :  { %12964 = vmatpush3.msra.mxu0 %v14401_v48  ;;  %v206_v25 = vadd.f32 %v194_v51, %v190_v15  ;;  %v210_v56 = vadd.f32 %v202_v52, %v198_v19  ;;  %v14416_v57 = vand.u32 4294901760, %v237_v55  ;;  %v240_v58 = vsel %vm235_vm1, %v234_v50, 0  ;;  %s14139_s30 = smov 63   ;;  %s14142_s17 = smov [#allocation2]  }
  0x1b   :  { %12965 = vmatprep.subr.mxu0 %v14409_v23  ;;  %v230_v59 = vadd.f32 %v14358_v12, %v219_v53  ;;  %v14422_v60 = vand.u32 4294901760, %v14412_v54  ;;  %v14425_v61 = vsub.f32 %v231_v49, %v14409_v23  ;;  %v14427_v62 = vand.u32 4294901760, %v240_v58  ;;  %s12236_s18 = sshll.u32 %s14142_s17, 4  ;;  %s12237_s18 = int_to_ptr.vmem [resolvable:$true] %s12236_s18 }
  0x1c   :  { %12966 = vmatpush3.msra.mxu0 %v14409_v23  ;;  %v214_v63 = vadd.f32 %v210_v56, %v206_v25  ;;  %v14431_v0 = vsub.f32 %v237_v55, %v14416_v57  ;;  %12982 = vmatprep.mubr.f32.mxu1 %v14416_v57  ;;  %v778_v36 = vsel %vm235_vm1, %v12294_v28, 0  ;;  %v781_v37 = vsel %vm235_vm1, %v12295_v35, 0  ;;  %v1334_v25 = vld [vmem:[%s18434_s4 + $0xb8] sm:$0xff]  ;;  %s14109_s1 = scalar_lea.vmem %s12237_s18, 16  ;;  %s14113_s19 = scalar_lea.vmem %s12237_s18, 32 }
  0x1d   :  { %v14434_v2 = vand.u32 4294901760, %v230_v59  ;;  %v363_v3 = vsub.f32 %v14412_v54, %v14422_v60  ;;  %v14439_v5 = vand.u32 4294901760, %v14425_v61  ;;  %v14442_v7 = vsub.f32 %v240_v58, %v14427_v62  ;;  %v1333_v58 = vld [vmem:[%s18434_s4 + $0xb0] sm:$0xff]  ;;  %v1326_v28 = vld [vmem:[%s18434_s4 + $0x78] sm:$0xff]  ;;  %p14110_p0 = scmp.ne.s32.totalorder %s12237_s18, %s14109_s1  ;;  %p14114_p1 = scmp.lt.s32.totalorder %s12237_s18, %s12237_s18 }
  0x1e   :  { %v218_v8 = vadd.f32 %v214_v63, %v186_v13  ;;  %v317_v9 = vand.u32 4294901760, %v14431_v0  ;;  %v14514_v38 = vand.u32 4294901760, %v778_v36  ;;  %v14520_v39 = vand.u32 4294901760, %v781_v37  ;;  %p14115_p2 = scmp.lt.s32.totalorder %s14113_s19, %s14109_s1 }
  0x1f   :  { %12967 = vmatprep.subr.mxu0 %v14434_v2  ;;  %v14446_v11 = vand.u32 4294901760, %v363_v3  ;;  %v370_v14 = vsub.f32 %v14425_v61, %v14439_v5  ;;  %v327_v16 = vand.u32 4294901760, %v14442_v7  ;;  %v14452_v17 = vsub.f32 %v230_v59, %v14434_v2 }
  0x20   :  { %12968 = vmatpush3.msra.mxu0 %v14434_v2  ;;  %v229_v18 = vadd.f32 %v14358_v12, %v218_v8  ;;  %v318_v20 = vsub.f32 %v14431_v0, %v317_v9  ;;  %v14527_v40 = vsub.f32 %v778_v36, %v14514_v38  ;;  %v14534_v1 = vsub.f32 %v781_v37, %v14520_v39  ;;  %v1330_v8 = vld [vmem:[%s18434_s4 + $0x98] sm:$0xff]  ;;  %p14116_p3 = por %p14115_p2, %p14114_p1 }
  0x21   :  { %12974 = vmatprep.subr.mxu1 %v14446_v11  ;;  %v14460_v21 = vand.u32 4294901760, %v370_v14  ;;  %v328_v22 = vsub.f32 %v14442_v7, %v327_v16  ;;  %v14464_v24 = vand.u32 4294901760, %v14452_v17  ;;  %v14582_v6 = vand.u32 4294901760, %v1338_v47 }
  0x22   :  { %v14466_v26 = vand.u32 4294901760, %v229_v18  ;;  %12975 = vmatpush3.msra.mxu1 %v14446_v11  ;;  %v319_v27 = vand.u32 4294901760, %v318_v20  ;;  %v854_v41 = vand.u32 4294901760, %v14527_v40  ;;  %v864_v42 = vand.u32 4294901760, %v14534_v1  ;;  %p14117_p4 = pnand %p14116_p3, %p14110_p0 }
  0x23   :  { %12976 = vmatprep.subr.mxu1 %v14460_v21  ;;  %v329_v12 = vand.u32 4294901760, %v328_v22  ;;  %v377_v29 = vsub.f32 %v14452_v17, %v14464_v24  ;;  %18783 = vst [vmem:[#allocation5_spill] sm:$0xff] %v14582_v6  ;;  %v14586_v49 = vand.u32 4294901760, %v1337_v4  ;;  %v14595_v10 = vsub.f32 %v1338_v47, %v14582_v6 }
  0x24   :  { %12969 = vmatprep.subr.mxu0 %v14466_v26  ;;  %12971 = vmatprep.mubr.f32.mxu0 %v319_v27  ;;  %v14474_v30 = vsub.f32 %v229_v18, %v14466_v26  ;;  %v855_v43 = vsub.f32 %v14527_v40, %v854_v41  ;;  %v865_v44 = vsub.f32 %v14534_v1, %v864_v42  ;;  %v14793_v47 = vand.u32 4294901760, %v1326_v28 }
  0x25   :  { %12970 = vmatpush3.msra.mxu0 %v14466_v26  ;;  %12977 = vmatpush3.msra.mxu1 %v14460_v21  ;;  %v14478_v31 = vand.u32 4294901760, %v377_v29  ;;  %18784 = vst [vmem:[#allocation6_spill] sm:$0xff] %v14586_v49  ;;  %18785 = vst [vmem:[#allocation7_spill] sm:$0xff] %v14595_v10  ;;  %v14600_v13 = vsub.f32 %v1337_v4, %v14586_v49  ;;  %v14609_v50 = vand.u32 4294901760, %v14595_v10  ;;  %v1323_v4 = vld [vmem:[%s18434_s4 + $0x60] sm:$0xff]  ;;  %vm1339_vm2 = vcmask 916480  }
  0x26   :  { %12985 = vmatprep.subr.mxu0 %v14412_v54  ;;  %12972 = vmatmul.mubr.f32.vlgmr.msra.gmra.mxu0 %v329_v12  ;;  %v14482_v32 = vand.u32 4294901760, %v14474_v30  ;;  %v856_v45 = vand.u32 4294901760, %v855_v43  ;;  %v866_v46 = vand.u32 4294901760, %v865_v44  ;;  %v1324_v43 = vld [vmem:[%s18434_s4 + $0x68] sm:$0xff]  ;;  %18823 = vst [vmem:[#allocation45_spill] sm:$0xff] %v14793_v47  ;;  %vm5232_vm3 = vcmask 1046528  }
  0x27   :  { %12986 = vmatpush3.msra.mxu0 %v14412_v54  ;;  %12978 = vmatprep.subr.mxu1 %v14478_v31  ;;  %18786 = vst [vmem:[#allocation8_spill] sm:$0xff] %v14600_v13  ;;  %18787 = vst [vmem:[#allocation9_spill] sm:$0xff] %v14609_v50  ;;  %v14614_v15 = vand.u32 4294901760, %v14600_v13  ;;  %v1468_v51 = vsub.f32 %v14595_v10, %v14609_v50  ;;  %vm5266_vm4 = vcmask 1041408   ;;  %vm5543_vm5 = vcmask 1040384  }
  0x28   :  { %12987 = vmatprep.subr.mxu0 %v14425_v61  ;;  %12979 = vmatpush3.msra.mxu1 %v14478_v31  ;;  %v384_v33 = vsub.f32 %v14474_v30, %v14482_v32  ;;  %vm5583_vm6 = vcmask 1045504   ;;  %vm14140_vm7 = vmmov 0   ;;  %vm5641_vm8 = vcmask 113664  }
  0x29   :  { %12988 = vmatpush3.msra.mxu0 %v14425_v61  ;;  %12993 = vmatprep.mubr.f32.mxu0 %v14431_v0  ;;  %18788 = vst [vmem:[#allocation10_spill] sm:$0xff] %v14614_v15  ;;  %v1474_v19 = vsub.f32 %v14600_v13, %v14614_v15  ;;  %vm6579_vm9 = vcmask 506880   ;;  %vm12228_vm10 = vcmask 335872  }
  0x2a   :  { %v14492_v34 = vand.u32 4294901760, %v384_v33  ;;  %12989 = vmatprep.subr.mxu0 %v14452_v17 }
  0x2b   :  { %12990 = vmatpush3.msra.mxu0 %v14452_v17  ;;  %v14638_v52 = vand.u32 4294901760, %v1474_v19 }
  0x2c   :  { %12980 = vmatprep.subr.mxu1 %v14492_v34  ;;  %12991 = vmatprep.subr.mxu0 %v14474_v30 }
  0x2d   :  { %12981 = vmatpush3.msra.mxu1 %v14492_v34  ;;  %12992 = vmatpush3.msra.mxu0 %v14474_v30  ;;  %18790 = vst [vmem:[#allocation12_spill] sm:$0xff] %v14638_v52 }
  0x2e   :  { %12983 = vmatmul.mubr.f32.vlgmr.msra.gmra.mxu1 %v14427_v62  ;;  %12996 = vmatprep.subr.mxu1 %v14401_v48 }
  0x2f   :  { %12997 = vmatpush3.msra.mxu1 %v14401_v48  ;;  %12994 = vmatmul.mubr.f32.vlgmr.msra.gmra.mxu0 %v14442_v7 }
  0x30   :  { %12998 = vmatprep.subr.mxu1 %v14409_v23  ;;  %13007 = vmatprep.subr.mxu0 %v14422_v60 }
  0x31   :  { %12999 = vmatpush3.msra.mxu1 %v14409_v23  ;;  %13008 = vmatpush3.msra.mxu0 %v14422_v60 }
  0x32   :  { %13000 = vmatprep.subr.mxu1 %v14434_v2  ;;  %13009 = vmatprep.subr.mxu0 %v14439_v5 }
  0x33   :  { %13001 = vmatpush3.msra.mxu1 %v14434_v2  ;;  %13010 = vmatpush3.msra.mxu0 %v14439_v5 }
  0x34   :  { %13002 = vmatprep.subr.mxu1 %v14466_v26  ;;  %13011 = vmatprep.subr.mxu0 %v14464_v24 }
  0x35   :  { %13003 = vmatpush3.msra.mxu1 %v14466_v26  ;;  %13004 = vmatprep.mubr.f32.mxu1 %v317_v9 }
  0x36   :  { %13012 = vmatpush3.msra.mxu0 %v14464_v24  ;;  %13005 = vmatmul.mubr.f32.vlgmr.msra.gmra.mxu1 %v327_v16  ;;  %v14711_v16 = vand.u32 4294901760, %v1330_v8 }
  0x37   :  { %13013 = vmatprep.subr.mxu0 %v14482_v32  ;;  %13018 = vmatprep.subr.mxu1 %v14401_v48 }
  0x38   :  { %13014 = vmatpush3.msra.mxu0 %v14482_v32  ;;  %13015 = vmatprep.mubr.f32.mxu0 %v14416_v57  ;;  %18805 = vst [vmem:[#allocation27_spill] sm:$0xff] %v14711_v16  ;;  %v14739_v29 = vsub.f32 %v1330_v8, %v14711_v16  ;;  %v14822_v8 = vand.u32 4294901760, %v1324_v43 }
  0x39   :  { %13019 = vmatpush3.msra.mxu1 %v14401_v48  ;;  %13016 = vmatmul.mubr.f32.vlgmr.msra.gmra.mxu0 %v14427_v62 }
  0x3a   :  { %13020 = vmatprep.subr.mxu1 %v14409_v23  ;;  %13026 = vmatprep.mubr.f32.mxu1 %v14416_v57  ;;  %v14664_v57 = vand.u32 4294901760, %v1334_v25  ;;  %18811 = vst [vmem:[#allocation33_spill] sm:$0xff] %v14739_v29  ;;  %v14765_v37 = vand.u32 4294901760, %v14739_v29  ;;  %18830 = vst [vmem:[#allocation52_spill] sm:$0xff] %v14822_v8 }
  0x3b   :  { %13021 = vmatpush3.msra.mxu1 %v14409_v23  ;;  %13029 = vmatprep.subr.mxu0 %v14401_v48 }
  0x3c   :  { %13022 = vmatprep.subr.mxu1 %v14434_v2  ;;  %13030 = vmatpush3.msra.mxu0 %v14401_v48  ;;  %18794 = vst [vmem:[#allocation16_spill] sm:$0xff] %v14664_v57  ;;  %v14683_v63 = vsub.f32 %v1334_v25, %v14664_v57  ;;  %18816 = vst [vmem:[#allocation38_spill] sm:$0xff] %v14765_v37  ;;  %v1322_v25 = vld [vmem:[%s18434_s4 + $0x58] sm:$0xff] }
  0x3d   :  { %13023 = vmatpush3.msra.mxu1 %v14434_v2  ;;  %13031 = vmatprep.subr.mxu0 %v14409_v23 }
  0x3e   :  { %13024 = vmatprep.subr.mxu1 %v14466_v26  ;;  %13032 = vmatpush3.msra.mxu0 %v14409_v23  ;;  %18798 = vst [vmem:[#allocation20_spill] sm:$0xff] %v14683_v63 }
  0x3f   :  { %13025 = vmatpush3.msra.mxu1 %v14466_v26  ;;  %13033 = vmatprep.subr.mxu0 %v14434_v2 }
  0x40   :  { %13027 = vmatmul.mubr.f32.vlgmr.msra.gmra.mxu1 %v14427_v62  ;;  %13040 = vmatprep.subr.mxu1 %v14446_v11 }
  0x41   :  { %13041 = vmatpush3.msra.mxu1 %v14446_v11  ;;  %13034 = vmatpush3.msra.mxu0 %v14434_v2  ;;  %v14706_v11 = vand.u32 4294901760, %v14683_v63 }
  0x42   :  { %13042 = vmatprep.subr.mxu1 %v14460_v21  ;;  %13035 = vmatprep.subr.mxu0 %v14466_v26 }
  0x43   :  { %13043 = vmatpush3.msra.mxu1 %v14460_v21  ;;  %13036 = vmatpush3.msra.mxu0 %v14466_v26  ;;  %18803 = vst [vmem:[#allocation25_spill] sm:$0xff] %v14706_v11  ;;  %v1492_v27 = vsub.f32 %v14683_v63, %v14706_v11 }
  0x44   :  { %13044 = vmatprep.subr.mxu1 %v14478_v31  ;;  %13037 = vmatprep.mubr.f32.mxu0 %v856_v45  ;;  %v1516_v45 = vsub.f32 %v14739_v29, %v14765_v37 }
  0x45   :  { %13045 = vmatpush3.msra.mxu1 %v14478_v31  ;;  %13051 = vmatprep.subr.mxu0 %v14412_v54  ;;  %v14760_v35 = vand.u32 4294901760, %v1492_v27  ;;  %v14837_v27 = vand.u32 4294901760, %v1323_v4 }
  0x46   :  { %13046 = vmatprep.subr.mxu1 %v14492_v34  ;;  %13038 = vmatmul.mubr.f32.vlgmr.msra.gmra.mxu0 %v866_v46 }
  0x47   :  { %13047 = vmatpush3.msra.mxu1 %v14492_v34  ;;  %13052 = vmatpush3.msra.mxu0 %v14412_v54  ;;  %v1335_v54 = vld [vmem:[%s18434_s4 + $0xc0] sm:$0xff]  ;;  %18815 = vst [vmem:[#allocation37_spill] sm:$0xff] %v14760_v35  ;;  %18834 = vst [vmem:[#allocation56_spill] sm:$0xff] %v14837_v27 }
  0x48   :  { %13048 = vmatprep.mubr.f32.mxu1 %v14514_v38  ;;  %13053 = vmatprep.subr.mxu0 %v14425_v61  ;;  %v14656_v55 = vand.u32 4294901760, %v1335_v54 }
  0x49   :  { %13062 = vmatprep.subr.mxu1 %v14401_v48  ;;  %13049 = vmatmul.mubr.f32.vlgmr.msra.gmra.mxu1 %v14520_v39 }
  0x4a   :  { %13054 = vmatpush3.msra.mxu0 %v14425_v61  ;;  %13063 = vmatpush3.msra.mxu1 %v14401_v48  ;;  %18792 = vst [vmem:[#allocation14_spill] sm:$0xff] %v14656_v55  ;;  %v14671_v59 = vsub.f32 %v1335_v54, %v14656_v55  ;;  %v1332_v61 = vld [vmem:[%s18434_s4 + $0xa8] sm:$0xff] }
  0x4b   :  { %13055 = vmatprep.subr.mxu0 %v14452_v17  ;;  %13064 = vmatprep.subr.mxu1 %v14409_v23  ;;  %v14685_v0 = vand.u32 4294901760, %v1332_v61 }
  0x4c   :  { %13056 = vmatpush3.msra.mxu0 %v14452_v17  ;;  %13065 = vmatpush3.msra.mxu1 %v14409_v23  ;;  %18795 = vst [vmem:[#allocation17_spill] sm:$0xff] %v14671_v59  ;;  %v14692_v3 = vand.u32 4294901760, %v14671_v59  ;;  %v1329_v17 = vld [vmem:[%s18434_s4 + $0x90] sm:$0xff] }
  0x4d   :  { %13057 = vmatprep.subr.mxu0 %v14474_v30  ;;  %13066 = vmatprep.subr.mxu1 %v14434_v2  ;;  %18799 = vst [vmem:[#allocation21_spill] sm:$0xff] %v14685_v0  ;;  %v14709_v14 = vsub.f32 %v1332_v61, %v14685_v0  ;;  %v14725_v22 = vand.u32 4294901760, %v1329_v17 }
  0x4e   :  { %13058 = vmatpush3.msra.mxu0 %v14474_v30  ;;  %13067 = vmatpush3.msra.mxu1 %v14434_v2  ;;  %18800 = vst [vmem:[#allocation22_spill] sm:$0xff] %v14692_v3  ;;  %v1486_v18 = vsub.f32 %v14671_v59, %v14692_v3  ;;  %v1327_v30 = vld [vmem:[%s18434_s4 + $0x80] sm:$0xff] }
  0x4f   :  { %13059 = vmatprep.mubr.f32.mxu0 %v14527_v40  ;;  %13068 = vmatprep.subr.mxu1 %v14466_v26  ;;  %18804 = vst [vmem:[#allocation26_spill] sm:$0xff] %v14709_v14  ;;  %18808 = vst [vmem:[#allocation30_spill] sm:$0xff] %v14725_v22  ;;  %v14736_v12 = vand.u32 4294901760, %v14709_v14  ;;  %v14753_v34 = vsub.f32 %v1329_v17, %v14725_v22 }
  0x50   :  { %13073 = vmatprep.subr.mxu0 %v14422_v60  ;;  %13060 = vmatmul.mubr.f32.vlgmr.msra.gmra.mxu0 %v14534_v1  ;;  %v14745_v31 = vand.u32 4294901760, %v1486_v18 }
  0x51   :  { %13069 = vmatpush3.msra.mxu1 %v14466_v26  ;;  %13074 = vmatpush3.msra.mxu0 %v14422_v60  ;;  %v14673_v60 = vand.u32 4294901760, %v1333_v58  ;;  %18810 = vst [vmem:[#allocation32_spill] sm:$0xff] %v14736_v12  ;;  %18814 = vst [vmem:[#allocation36_spill] sm:$0xff] %v14753_v34  ;;  %v1504_v36 = vsub.f32 %v14709_v14, %v14736_v12 }
  0x52   :  { %13070 = vmatprep.mubr.f32.mxu1 %v854_v41  ;;  %13075 = vmatprep.subr.mxu0 %v14439_v5  ;;  %18812 = vst [vmem:[#allocation34_spill] sm:$0xff] %v14745_v31  ;;  %v14778_v41 = vand.u32 4294901760, %v14753_v34 }
  0x53   :  { %13084 = vmatprep.subr.mxu1 %v14401_v48  ;;  %13071 = vmatmul.mubr.f32.vlgmr.msra.gmra.mxu1 %v864_v42  ;;  %18796 = vst [vmem:[#allocation18_spill] sm:$0xff] %v14673_v60  ;;  %v14780_v42 = vand.u32 4294901760, %v1327_v30  ;;  %v14786_v44 = vand.u32 4294901760, %v1504_v36  ;;  %v14849_v36 = vand.u32 4294901760, %v1322_v25 }
  0x54   :  { %13076 = vmatpush3.msra.mxu0 %v14439_v5  ;;  %13085 = vmatpush3.msra.mxu1 %v14401_v48  ;;  %v14634_v48 = vand.u32 4294901760, %v1468_v51  ;;  %v14695_v5 = vsub.f32 %v1333_v58, %v14673_v60  ;;  %18819 = vst [vmem:[#allocation41_spill] sm:$0xff] %v14778_v41  ;;  %v1522_v19 = vsub.f32 %v14753_v34, %v14778_v41  ;;  %v14814_v58 = vand.u32 4294901760, %v1516_v45 }
  0x55   :  { %13077 = vmatprep.subr.mxu0 %v14464_v24  ;;  %13086 = vmatprep.subr.mxu1 %v14409_v23  ;;  %18820 = vst [vmem:[#allocation42_spill] sm:$0xff] %v14780_v42  ;;  %18821 = vst [vmem:[#allocation43_spill] sm:$0xff] %v14786_v44  ;;  %v14859_v45 = vsub.f32 %v1323_v4, %v14837_v27  ;;  %v1319_v4 = vld [vmem:[%s18434_s4 + $0x40] sm:$0xff] }
  0x56   :  { %13078 = vmatpush3.msra.mxu0 %v14464_v24  ;;  %13087 = vmatpush3.msra.mxu1 %v14409_v23  ;;  %18789 = vst [vmem:[#allocation11_spill] sm:$0xff] %v14634_v48  ;;  %v1336_v23 = vld [vmem:[%s18434_s4 + $0xc8] sm:$0xff]  ;;  %18801 = vst [vmem:[#allocation23_spill] sm:$0xff] %v14695_v5  ;;  %v14720_v20 = vand.u32 4294901760, %v14695_v5  ;;  %v14829_v17 = vand.u32 4294901760, %v1522_v19 }
  0x57   :  { %13079 = vmatprep.subr.mxu0 %v14482_v32  ;;  %13088 = vmatprep.subr.mxu1 %v14434_v2  ;;  %v14651_v53 = vand.u32 4294901760, %v1336_v23  ;;  %v1328_v24 = vld [vmem:[%s18434_s4 + $0x88] sm:$0xff]  ;;  %18827 = vst [vmem:[#allocation49_spill] sm:$0xff] %v14814_v58  ;;  %18837 = vst [vmem:[#allocation59_spill] sm:$0xff] %v14849_v36 }
  0x58   :  { %13080 = vmatpush3.msra.mxu0 %v14482_v32  ;;  %13081 = vmatprep.mubr.f32.mxu0 %v14514_v38  ;;  %18806 = vst [vmem:[#allocation28_spill] sm:$0xff] %v14720_v20  ;;  %v1498_v32 = vsub.f32 %v14695_v5, %v14720_v20  ;;  %18831 = vst [vmem:[#allocation53_spill] sm:$0xff] %v14829_v17 }
  0x59   :  { %13089 = vmatpush3.msra.mxu1 %v14434_v2  ;;  %13082 = vmatmul.mubr.f32.vlgmr.msra.gmra.mxu0 %v14520_v39  ;;  %18791 = vst [vmem:[#allocation13_spill] sm:$0xff] %v14651_v53  ;;  %v14662_v56 = vsub.f32 %v1336_v23, %v14651_v53  ;;  %v1331_v2 = vld [vmem:[%s18434_s4 + $0xa0] sm:$0xff]  ;;  %v14805_v23 = vsub.f32 %v1327_v30, %v14780_v42  ;;  %18839 = vst [vmem:[#allocation61_spill] sm:$0xff] %v14859_v45 }
  0x5a   :  { %13090 = vmatprep.subr.mxu1 %v14466_v26  ;;  %13092 = vmatprep.mubr.f32.mxu1 %v14514_v38  ;;  %v14697_v7 = vand.u32 4294901760, %v1331_v2  ;;  %v14767_v38 = vand.u32 4294901760, %v1328_v24  ;;  %v14773_v40 = vand.u32 4294901760, %v1498_v32 }
  0x5b   :  { %13091 = vmatpush3.msra.mxu1 %v14466_v26  ;;  %1351 = vmatprep.subr.mxu0 %v14582_v6  ;;  %18793 = vst [vmem:[#allocation15_spill] sm:$0xff] %v14662_v56  ;;  %v14680_v62 = vand.u32 4294901760, %v14662_v56  ;;  %18825 = vst [vmem:[#allocation47_spill] sm:$0xff] %v14805_v23  ;;  %v14832_v18 = vand.u32 4294901760, %v14805_v23 }
  0x5c   :  { %13093 = vmatmul.mubr.f32.vlgmr.msra.gmra.mxu1 %v14520_v39  ;;  %1470 = vmatprep.subr.mxu1 %v14634_v48  ;;  %18802 = vst [vmem:[#allocation24_spill] sm:$0xff] %v14697_v7  ;;  %v14723_v21 = vsub.f32 %v1331_v2, %v14697_v7  ;;  %18817 = vst [vmem:[#allocation39_spill] sm:$0xff] %v14767_v38  ;;  %v1325_v39 = vld [vmem:[%s18434_s4 + $0x70] sm:$0xff]  ;;  %v14791_v46 = vsub.f32 %v1328_v24, %v14767_v38 }
  0x5d   :  { %1476 = vmatpush1.msra.mxu1 %v14638_v52  ;;  %1353 = vmatpush1.msra.mxu0 %v14586_v49  ;;  %18797 = vst [vmem:[#allocation19_spill] sm:$0xff] %v14680_v62  ;;  %v1480_v9 = vsub.f32 %v14662_v56, %v14680_v62  ;;  %18818 = vst [vmem:[#allocation40_spill] sm:$0xff] %v14773_v40  ;;  %v14807_v54 = vand.u32 4294901760, %v1325_v39  ;;  %v14820_v2 = vsub.f32 %v1326_v28, %v14793_v47 }
  0x5e   :  { %1355 = vmatprep.subr.mxu0 %v14651_v53  ;;  %18807 = vst [vmem:[#allocation29_spill] sm:$0xff] %v14723_v21  ;;  %v14750_v33 = vand.u32 4294901760, %v14723_v21  ;;  %18822 = vst [vmem:[#allocation44_spill] sm:$0xff] %v14791_v46  ;;  %v14817_v61 = vand.u32 4294901760, %v14791_v46  ;;  %v14847_v28 = vsub.f32 %v1324_v43, %v14822_v8  ;;  %v1320_v43 = vld [vmem:[%s18434_s4 + $0x48] sm:$0xff] }
  0x5f   :  { %1357 = vmatpush1.msra.mxu0 %v14656_v55  ;;  %v14731_v26 = vand.u32 4294901760, %v1480_v9  ;;  %18826 = vst [vmem:[#allocation48_spill] sm:$0xff] %v14807_v54  ;;  %18829 = vst [vmem:[#allocation51_spill] sm:$0xff] %v14820_v2  ;;  %v1321_v9 = vld [vmem:[%s18434_s4 + $0x50] sm:$0xff]  ;;  %v14835_v24 = vsub.f32 %v1325_v39, %v14807_v54  ;;  %v14844_v32 = vand.u32 4294901760, %v14820_v2  ;;  %v1534_v39 = vsub.f32 %v14805_v23, %v14832_v18 }
  0x60   :  { %1359 = vmatprep.subr.mxu0 %v14664_v57  ;;  %18813 = vst [vmem:[#allocation35_spill] sm:$0xff] %v14750_v33  ;;  %v1510_v1 = vsub.f32 %v14723_v21, %v14750_v33  ;;  %18828 = vst [vmem:[#allocation50_spill] sm:$0xff] %v14817_v61  ;;  %v1528_v30 = vsub.f32 %v14791_v46, %v14817_v61  ;;  %v14861_v19 = vand.u32 4294901760, %v1321_v9  ;;  %v14903_v48 = vand.u32 4294901760, %v1320_v43  ;;  %v1315_v61 = vld [vmem:[%s18434_s4 + $0x20] sm:$0xff] }
  0x61   :  { %1361 = vmatpush1.msra.mxu0 %v14673_v60  ;;  %18809 = vst [vmem:[#allocation31_spill] sm:$0xff] %v14731_v26  ;;  %1482 = vmatprep.subr.mxu1 %v14731_v26  ;;  %18832 = vst [vmem:[#allocation54_spill] sm:$0xff] %v14832_v18 }
  0x62   :  { %1363 = vmatprep.subr.mxu0 %v14685_v0  ;;  %1488 = vmatpush1.msra.mxu1 %v14745_v31  ;;  %v14800_v51 = vand.u32 4294901760, %v1510_v1  ;;  %18833 = vst [vmem:[#allocation55_spill] sm:$0xff] %v14835_v24  ;;  %18835 = vst [vmem:[#allocation57_spill] sm:$0xff] %v14844_v32  ;;  %v14856_v1 = vand.u32 4294901760, %v14835_v24  ;;  %v14889_v31 = vsub.f32 %v1321_v9, %v14861_v19  ;;  %v1317_v9 = vld [vmem:[%s18434_s4 + $0x30] sm:$0xff] }
  0x63   :  { %1365 = vmatpush1.msra.mxu0 %v14697_v7  ;;  %1494 = vmatprep.subr.mxu1 %v14760_v35  ;;  %18836 = vst [vmem:[#allocation58_spill] sm:$0xff] %v14847_v28  ;;  %18840 = vst [vmem:[#allocation62_spill] sm:$0xff] %v14861_v19  ;;  %v14886_v35 = vand.u32 4294901760, %v14859_v45 }
  0x64   :  { %1367 = vmatprep.subr.mxu0 %v14711_v16  ;;  %1500 = vmatpush1.msra.mxu1 %v14773_v40  ;;  %18824 = vst [vmem:[#allocation46_spill] sm:$0xff] %v14800_v51  ;;  %18838 = vst [vmem:[#allocation60_spill] sm:$0xff] %v14856_v1  ;;  %v14881_v40 = vand.u32 4294901760, %v1534_v39 }
  0x65   :  { %1369 = vmatpush1.msra.mxu0 %v14725_v22  ;;  %1506 = vmatprep.subr.mxu1 %v14786_v44  ;;  %v14875_v44 = vsub.f32 %v1322_v25, %v14849_v36  ;;  %18845 = vst [vmem:[#allocation67_spill] sm:$0xff] %v14886_v35  ;;  %18846 = vst [vmem:[#allocation68_spill] sm:$0xff] %v14889_v31  ;;  %v1318_v25 = vld [vmem:[%s18434_s4 + $0x38] sm:$0xff] }
  0x66   :  { %1371 = vmatprep.subr.mxu0 %v14767_v38  ;;  %1512 = vmatpush1.msra.mxu1 %v14800_v51  ;;  %v14872_v51 = vand.u32 4294901760, %v14847_v28  ;;  %18844 = vst [vmem:[#allocation66_spill] sm:$0xff] %v14881_v40  ;;  %18849 = vst [vmem:[#allocation71_spill] sm:$0xff] %v14903_v48 }
  0x67   :  { %1373 = vmatpush1.msra.mxu0 %v14780_v42  ;;  %1518 = vmatprep.subr.mxu1 %v14814_v58  ;;  %v14867_v58 = vand.u32 4294901760, %v1528_v30  ;;  %18843 = vst [vmem:[#allocation65_spill] sm:$0xff] %v14875_v44  ;;  %v1546_v30 = vsub.f32 %v14835_v24, %v14856_v1  ;;  %v14901_v52 = vand.u32 4294901760, %v14875_v44 }
  0x68   :  { %1375 = vmatprep.subr.mxu0 %v14793_v47  ;;  %1524 = vmatpush1.msra.mxu1 %v14829_v17  ;;  %v1540_v17 = vsub.f32 %v14820_v2, %v14844_v32  ;;  %18842 = vst [vmem:[#allocation64_spill] sm:$0xff] %v14872_v51  ;;  %v1552_v39 = vsub.f32 %v14847_v28, %v14872_v51  ;;  %v14916_v51 = vand.u32 4294901760, %v1319_v4  ;;  %v1316_v32 = vld [vmem:[%s18434_s4 + $0x28] sm:$0xff] }
  0x69   :  { %1377 = vmatpush1.msra.mxu0 %v14807_v54  ;;  %18841 = vst [vmem:[#allocation63_spill] sm:$0xff] %v14867_v58  ;;  %1530 = vmatprep.subr.mxu1 %v14867_v58  ;;  %18848 = vst [vmem:[#allocation70_spill] sm:$0xff] %v14901_v52  ;;  %v14909_v1 = vand.u32 4294901760, %v1546_v30  ;;  %v14914_v58 = vand.u32 4294901760, %v14889_v31  ;;  %v1564_v30 = vsub.f32 %v14875_v44, %v14901_v52  ;;  %v1314_v52 = vld [vmem:[%s18434_s4 + $0x18] sm:$0xff] }
  0x6a   :  { %1379 = vmatprep.subr.mxu0 %v14822_v8  ;;  %v14896_v26 = vand.u32 4294901760, %v1540_v17  ;;  %1536 = vmatpush1.msra.mxu1 %v14881_v40  ;;  %v1558_v17 = vsub.f32 %v14859_v45, %v14886_v35  ;;  %18852 = vst [vmem:[#allocation74_spill] sm:$0xff] %v14916_v51  ;;  %v14922_v18 = vand.u32 4294901760, %v1552_v39  ;;  %v14927_v40 = vsub.f32 %v1320_v43, %v14903_v48 }
  0x6b   :  { %1381 = vmatpush1.msra.mxu0 %v14837_v27  ;;  %18850 = vst [vmem:[#allocation72_spill] sm:$0xff] %v14909_v1  ;;  %18851 = vst [vmem:[#allocation73_spill] sm:$0xff] %v14914_v58  ;;  %v14929_v35 = vand.u32 4294901760, %v1318_v25  ;;  %v1570_v39 = vsub.f32 %v14889_v31, %v14914_v58  ;;  %v14943_v43 = vand.u32 4294901760, %v1317_v9  ;;  %v14950_v37 = vand.u32 4294901760, %v1564_v30  ;;  %v1313_v58 = vld [vmem:[%s18434_s4 + $0x10] sm:$0xff] }
  0x6c   :  { %1383 = vmatprep.subr.mxu0 %v14849_v36  ;;  %18847 = vst [vmem:[#allocation69_spill] sm:$0xff] %v14896_v26  ;;  %1542 = vmatprep.subr.mxu1 %v14896_v26  ;;  %18853 = vst [vmem:[#allocation75_spill] sm:$0xff] %v14922_v18  ;;  %v14936_v41 = vand.u32 4294901760, %v1558_v17  ;;  %v14941_v26 = vsub.f32 %v1319_v4, %v14916_v51  ;;  %v14953_v17 = vand.u32 4294901760, %v14927_v40  ;;  %v14958_v4 = vand.u32 4294901760, %v1316_v32 }
  0x6d   :  { %1385 = vmatpush1.msra.mxu0 %v14861_v19  ;;  %18854 = vst [vmem:[#allocation76_spill] sm:$0xff] %v14927_v40  ;;  %18855 = vst [vmem:[#allocation77_spill] sm:$0xff] %v14929_v35  ;;  %1548 = vmatpush1.msra.mxu1 %v14909_v1  ;;  %v14956_v1 = vsub.f32 %v1318_v25, %v14929_v35  ;;  %v14965_v33 = vand.u32 4294901760, %v1570_v39  ;;  %v14973_v25 = vand.u32 4294901760, %v1315_v61  ;;  %v14997_v11 = vand.u32 4294901760, %v1313_v58 }
  0x6e   :  { %1387 = vmatprep.subr.mxu0 %v14903_v48  ;;  %18856 = vst [vmem:[#allocation78_spill] sm:$0xff] %v14936_v41  ;;  %18857 = vst [vmem:[#allocation79_spill] sm:$0xff] %v14941_v26  ;;  %1554 = vmatprep.subr.mxu1 %v14922_v18  ;;  %v14968_v30 = vand.u32 4294901760, %v14941_v26  ;;  %v14971_v18 = vsub.f32 %v1317_v9, %v14943_v43  ;;  %v1576_v12 = vsub.f32 %v14927_v40, %v14953_v17 }
  0x6f   :  { %18858 = vst [vmem:[#allocation80_spill] sm:$0xff] %v14943_v43  ;;  %1389 = vmatpush1.msra.mxu0 %v14916_v51  ;;  %18859 = vst [vmem:[#allocation81_spill] sm:$0xff] %v14950_v37  ;;  %1560 = vmatpush1.msra.mxu1 %v14936_v41  ;;  %v14980_v20 = vand.u32 4294901760, %v14956_v1  ;;  %v14983_v39 = vsub.f32 %v1316_v32, %v14958_v4  ;;  %v14985_v41 = vand.u32 4294901760, %v1314_v52 }
  0x70   :  { %18860 = vst [vmem:[#allocation82_spill] sm:$0xff] %v14953_v17  ;;  %18861 = vst [vmem:[#allocation83_spill] sm:$0xff] %v14956_v1  ;;  %1391 = vmatprep.subr.mxu0 %v14929_v35  ;;  %1566 = vmatprep.subr.mxu1 %v14950_v37  ;;  %v1582_v9 = vsub.f32 %v14941_v26, %v14968_v30  ;;  %v14992_v37 = vand.u32 4294901760, %v14971_v18  ;;  %v14995_v17 = vsub.f32 %v1315_v61, %v14973_v25  ;;  %v1312_v61 = vld [vmem:[%s18434_s4 + $0x8] sm:$0xff] }
  0x71   :  { %18862 = vst [vmem:[#allocation84_spill] sm:$0xff] %v14958_v4  ;;  %18863 = vst [vmem:[#allocation85_spill] sm:$0xff] %v14965_v33  ;;  %1393 = vmatpush1.msra.mxu0 %v14943_v43  ;;  %1572 = vmatpush1.msra.mxu1 %v14965_v33  ;;  %v15000_v32 = vand.u32 4294901760, %v1576_v12  ;;  %v1588_v3 = vsub.f32 %v14956_v1, %v14980_v20  ;;  %v15005_v33 = vand.u32 4294901760, %v14983_v39  ;;  %v15044_v26 = vand.u32 4294901760, %v1312_v61 }
  0x72   :  { %18864 = vst [vmem:[#allocation86_spill] sm:$0xff] %v14968_v30  ;;  %18865 = vst [vmem:[#allocation87_spill] sm:$0xff] %v14971_v18  ;;  %1395 = vmatprep.subr.mxu0 %v14958_v4  ;;  %v15008_v30 = vsub.f32 %v1314_v52, %v14985_v41  ;;  %v15014_v62 = vand.u32 4294901760, %v1582_v9  ;;  %v1594_v12 = vsub.f32 %v14971_v18, %v14992_v37  ;;  %v15019_v15 = vand.u32 4294901760, %v14995_v17  ;;  %v1311_v52 = vld [vmem:[%s18434_s4] sm:$0xff] }
  0x73   :  { %18866 = vst [vmem:[#allocation88_spill] sm:$0xff] %v14973_v25  ;;  %18867 = vst [vmem:[#allocation89_spill] sm:$0xff] %v14980_v20  ;;  %1397 = vmatpush1.msra.mxu0 %v14973_v25  ;;  %v15022_v20 = vsub.f32 %v1313_v58, %v14997_v11  ;;  %1578 = vmatprep.subr.mxu1 %v15000_v32  ;;  %v15029_v50 = vand.u32 4294901760, %v1588_v3  ;;  %v1600_v9 = vsub.f32 %v14983_v39, %v15005_v33 }
  0x74   :  { %18868 = vst [vmem:[#allocation90_spill] sm:$0xff] %v14983_v39  ;;  %18869 = vst [vmem:[#allocation91_spill] sm:$0xff] %v14985_v41  ;;  %1399 = vmatprep.subr.mxu0 %v14985_v41  ;;  %1584 = vmatpush1.msra.mxu1 %v15014_v62  ;;  %v15037_v58 = vand.u32 4294901760, %v1594_v12  ;;  %v1606_v18 = vsub.f32 %v14995_v17, %v15019_v15 }
  0x75   :  { %18870 = vst [vmem:[#allocation92_spill] sm:$0xff] %v14992_v37  ;;  %18871 = vst [vmem:[#allocation93_spill] sm:$0xff] %v14995_v17  ;;  %1401 = vmatpush1.msra.mxu0 %v14997_v11  ;;  %v15034_v37 = vand.u32 4294901760, %v15008_v30  ;;  %v15042_v1 = vand.u32 4294901760, %v15022_v20  ;;  %1590 = vmatprep.subr.mxu1 %v15029_v50  ;;  %v15047_v3 = vand.u32 4294901760, %v1600_v9 }
  0x76   :  { %18872 = vst [vmem:[#allocation94_spill] sm:$0xff] %v14997_v11  ;;  %18873 = vst [vmem:[#allocation95_spill] sm:$0xff] %v15000_v32  ;;  %1596 = vmatpush1.msra.mxu1 %v15037_v58  ;;  %v15054_v12 = vand.u32 4294901760, %v1606_v18  ;;  %1403 = vmatprep.subr.mxu0 %v15044_v26 }
  0x77   :  { %18874 = vst [vmem:[#allocation96_spill] sm:$0xff] %v15005_v33  ;;  %18875 = vst [vmem:[#allocation97_spill] sm:$0xff] %v15008_v30  ;;  %v1612_v32 = vsub.f32 %v15008_v30, %v15034_v37  ;;  %v15051_v33 = vand.u32 4294901760, %v1311_v52  ;;  %1602 = vmatprep.subr.mxu1 %v15047_v3 }
  0x78   :  { %18876 = vst [vmem:[#allocation98_spill] sm:$0xff] %v15014_v62  ;;  %18877 = vst [vmem:[#allocation99_spill] sm:$0xff] %v15019_v15  ;;  %v1618_v62 = vsub.f32 %v15022_v20, %v15042_v1  ;;  %v15059_v15 = vsub.f32 %v1312_v61, %v15044_v26  ;;  %1608 = vmatpush1.msra.mxu1 %v15054_v12 }
  0x79   :  { %18878 = vst [vmem:[#allocation100_spill] sm:$0xff] %v15022_v20  ;;  %18879 = vst [vmem:[#allocation101_spill] sm:$0xff] %v15029_v50  ;;  %v15063_v9 = vand.u32 4294901760, %v1612_v32  ;;  %v15066_v50 = vsub.f32 %v1311_v52, %v15051_v33  ;;  %1405 = vmatpush1.msra.mxu0 %v15051_v33  ;;  %v18529_v32 = vmov 0.0  }
  0x7a   :  { %18880 = vst [vmem:[#allocation102_spill] sm:$0xff] %v15034_v37  ;;  %18881 = vst [vmem:[#allocation103_spill] sm:$0xff] %v15037_v58  ;;  %v15070_v18 = vand.u32 4294901760, %v1618_v62  ;;  %v15073_v58 = vand.u32 4294901760, %v15059_v15  ;;  %1686 = vmatprep.subr.mxu0 %v14595_v10  ;;  %1665 = vmatprep.mubr.f32.mxu1 %v18529_v32 }
  0x7b   :  { %18882 = vst [vmem:[#allocation104_spill] sm:$0xff] %v15042_v1  ;;  %18883 = vst [vmem:[#allocation105_spill] sm:$0xff] %v15044_v26  ;;  %1614 = vmatprep.subr.mxu1 %v15063_v9  ;;  %v15078_v61 = vand.u32 4294901760, %v15066_v50  ;;  %1438 = vmatprep.mubr.f32.mxu0 %v18529_v32 }
  0x7c   :  { %18884 = vst [vmem:[#allocation106_spill] sm:$0xff] %v15047_v3  ;;  %18885 = vst [vmem:[#allocation107_spill] sm:$0xff] %v15051_v33  ;;  %1620 = vmatpush1.msra.mxu1 %v15070_v18  ;;  %v1624_v52 = vsub.f32 %v15059_v15, %v15073_v58 }
  0x7d   :  { %18886 = vst [vmem:[#allocation108_spill] sm:$0xff] %v15054_v12  ;;  %18887 = vst [vmem:[#allocation109_spill] sm:$0xff] %v15059_v15  ;;  %v1630_v62 = vsub.f32 %v15066_v50, %v15078_v61 }
  0x7e   :  { %18888 = vst [vmem:[#allocation110_spill] sm:$0xff] %v15063_v9  ;;  %18889 = vst [vmem:[#allocation111_spill] sm:$0xff] %v15066_v50  ;;  %v15087_v12 = vand.u32 4294901760, %v1624_v52 }
  0x7f   :  { %18890 = vst [vmem:[#allocation112_spill] sm:$0xff] %v15070_v18  ;;  %18891 = vst [vmem:[#allocation113_spill] sm:$0xff] %v15073_v58  ;;  %v15089_v10 = vand.u32 4294901760, %v1630_v62 }
  0x80   :  { %18892 = vst [vmem:[#allocation114_spill] sm:$0xff] %v15078_v61  ;;  %18893 = vst [vmem:[#allocation115_spill] sm:$0xff] %v15087_v12  ;;  %1626 = vmatprep.subr.mxu1 %v15087_v12 }
  0x81   :  { %18894 = vst [vmem:[#allocation116_spill] sm:$0xff] %v15089_v10  ;;  %1632 = vmatpush1.msra.mxu1 %v15089_v10 }
  0x82   :  { %1822 = vmatprep.subr.mxu1 %v14582_v6 }
  0xe6   :  { %v12973_v9 = vpop.f32.mrf.mxu0 }
  0xe8   :  { %v321_v18 = vpop.f32.mrf.mxu0 }
  0xee   :  { %v12984_v3 = vpop.f32.mrf.mxu1 }
  0xef   :  { %v12995_v58 = vpop.f32.mrf.mxu0  ;;  %v429_v37 = vadd.f32 %v12984_v3, %v12973_v9  ;;  %v18906_v9 = vld [vmem:[#allocation83_spill] sm:$0xff] }
  0xf0   :  { %v422_v1 = vpop.f32.mrf.mxu1 }
  0xf1   :  { %v423_v15 = vadd.f32 %v422_v1, %v321_v18  ;;  %v508_v20 = vpop.f32.mrf.mxu0  ;;  %v516_v61 = vadd.f32 %v12995_v58, %v429_v37  ;;  %v18904_v58 = vld [vmem:[#allocation79_spill] sm:$0xff]  ;;  %v18907_v18 = vld [vmem:[#allocation5_spill] sm:$0xff] }
  0xf3   :  { %v509_v62 = vadd.f32 %v508_v20, %v423_v15 }
  0xf6   :  { %v13006_v32 = vpop.f32.mrf.mxu1 }
  0xf7   :  { %v601_v30 = vadd.f32 %v13006_v32, %v516_v61  ;;  %v18908_v61 = vld [vmem:[#allocation87_spill] sm:$0xff]  ;;  %v18909_v32 = vld [vmem:[#allocation90_spill] sm:$0xff] }
  0xf8   :  { %v592_v52 = vpop.f32.mrf.mxu1 }
  0xf9   :  { %v13017_v50 = vpop.f32.mrf.mxu0  ;;  %v593_v17 = vadd.f32 %v592_v52, %v509_v62  ;;  %v18910_v52 = vld [vmem:[#allocation93_spill] sm:$0xff] }
  0xfa   :  { %v690_v39 = vadd.f32 %v13017_v50, %v601_v30  ;;  %v18902_v30 = vld [vmem:[#allocation76_spill] sm:$0xff]  ;;  %v18911_v62 = vld [vmem:[#allocation97_spill] sm:$0xff] }
  0xfb   :  { %v683_v12 = vpop.f32.mrf.mxu0 }
  0xfc   :  { %v684_v6 = vadd.f32 %v683_v12, %v593_v17  ;;  %v18901_v17 = vld [vmem:[#allocation94_spill] sm:$0xff]  ;;  %v18905_v12 = vld [vmem:[#allocation107_spill] sm:$0xff] }
 0x100   :  { %v13028_v10 = vpop.f32.mrf.mxu1 }
 0x101   :  { %v771_v33 = vadd.f32 %v13028_v10, %v690_v39  ;;  %v18897_v10 = vmov 0.0   ;;  %v18903_v39 = vld [vmem:[#allocation105_spill] sm:$0xff] }
 0x102   :  { %v764_v26 = vpop.f32.mrf.mxu1 }
 0x103   :  { %v1344_v40 = vsel %vm1339_vm2, %v771_v33, 0  ;;  %v765_v11 = vadd.f32 %v764_v26, %v684_v6 }
 0x104   :  { %v15095_v3 = vand.u32 4294901760, %v1344_v40 }
 0x105   :  { %v1341_v1 = vsel %vm1339_vm2, %v765_v11, 0 }
 0x106   :  { %v15098_v37 = vand.u32 4294901760, %v1341_v1  ;;  %v15101_v15 = vsub.f32 %v1344_v40, %v15095_v3 }
 0x108   :  { %18895 = vst [vmem:[#allocation117_spill] sm:$0xff] %v15101_v15  ;;  %v15104_v20 = vsub.f32 %v1341_v1, %v15098_v37  ;;  %1667 = vmatmul.mubr.f32.vlgmr.msra.gmra.mxu1 %v15098_v37  ;;  %v15115_v50 = vand.u32 4294901760, %v15101_v15  ;;  %v18912_v1 = vld [vmem:[#allocation100_spill] sm:$0xff] }
 0x109   :  { %1824 = vmatpush1.msra.mxu1 %v14586_v49  ;;  %1672 = vmatprep.mubr.f32.mxu1 %v18897_v10 }
 0x10a   :  { %18896 = vst [vmem:[#allocation118_spill] sm:$0xff] %v15104_v20  ;;  %1826 = vmatprep.subr.mxu1 %v14651_v53  ;;  %v15111_v6 = vand.u32 4294901760, %v15104_v20  ;;  %18899 = vst [vmem:[#allocation120_spill] sm:$0xff] %v15115_v50  ;;  %v1453_v33 = vsub.f32 %v15101_v15, %v15115_v50 }
 0x10b   :  { %1828 = vmatpush1.msra.mxu1 %v14656_v55 }
 0x10c   :  { %18898 = vst [vmem:[#allocation119_spill] sm:$0xff] %v15111_v6  ;;  %1830 = vmatprep.subr.mxu1 %v14664_v57  ;;  %1674 = vmatmul.mubr.f32.gmra.mxu1 %v15095_v3  ;;  %v1442_v11 = vsub.f32 %v15104_v20, %v15111_v6  ;;  %v15137_v40 = vand.u32 4294901760, %v1453_v33  ;;  %v18914_v33 = vld [vmem:[#allocation111_spill] sm:$0xff] }
 0x10d   :  { %1832 = vmatpush1.msra.mxu1 %v14673_v60  ;;  %1909 = vmatprep.mubr.f32.mxu1 %v18897_v10 }
 0x10e   :  { %1834 = vmatprep.subr.mxu1 %v14685_v0  ;;  %v15124_v26 = vand.u32 4294901760, %v1442_v11  ;;  %18900 = vst [vmem:[#allocation121_spill] sm:$0xff] %v15137_v40  ;;  %v18913_v11 = vld [vmem:[#allocation109_spill] sm:$0xff] }
 0x10f   :  { %1836 = vmatpush1.msra.mxu1 %v14697_v7 }
 0x110   :  { %1838 = vmatprep.subr.mxu1 %v14711_v16  ;;  %1444 = vmatmul.mubr.f32.vlgmr.msra.gmra.mxu0 %v15124_v26 }
 0x111   :  { %1689 = vmatpush1.msra.mxu0 %v14600_v13  ;;  %1840 = vmatpush1.msra.mxu1 %v14725_v22 }
 0x112   :  { %1692 = vmatprep.subr.mxu0 %v14662_v56  ;;  %1842 = vmatprep.subr.mxu1 %v14767_v38 }
 0x113   :  { %1695 = vmatpush1.msra.mxu0 %v14671_v59  ;;  %1844 = vmatpush1.msra.mxu1 %v14780_v42 }
 0x114   :  { %1449 = vmatprep.mubr.f32.mxu0 %v18897_v10  ;;  %1698 = vmatprep.subr.mxu0 %v14683_v63 }
 0x115   :  { %1846 = vmatprep.subr.mxu1 %v14793_v47  ;;  %1455 = vmatmul.mubr.f32.gmra.mxu0 %v15137_v40 }
 0x116   :  { %1701 = vmatpush1.msra.mxu0 %v14695_v5  ;;  %1848 = vmatpush1.msra.mxu1 %v14807_v54 }
 0x117   :  { %1704 = vmatprep.subr.mxu0 %v14709_v14  ;;  %1850 = vmatprep.subr.mxu1 %v14822_v8 }
 0x118   :  { %1707 = vmatpush1.msra.mxu0 %v14723_v21  ;;  %1852 = vmatpush1.msra.mxu1 %v14837_v27 }
 0x119   :  { %1710 = vmatprep.subr.mxu0 %v14739_v29  ;;  %1854 = vmatprep.subr.mxu1 %v14849_v36 }
 0x11a   :  { %1713 = vmatpush1.msra.mxu0 %v14753_v34  ;;  %1856 = vmatpush1.msra.mxu1 %v14861_v19 }
 0x11b   :  { %1716 = vmatprep.subr.mxu0 %v14791_v46  ;;  %1858 = vmatprep.subr.mxu1 %v14903_v48 }
 0x11c   :  { %1719 = vmatpush1.msra.mxu0 %v14805_v23  ;;  %1860 = vmatpush1.msra.mxu1 %v14916_v51 }
 0x11d   :  { %1722 = vmatprep.subr.mxu0 %v14820_v2  ;;  %1862 = vmatprep.subr.mxu1 %v14929_v35  ;;  %v12316_v2 = vld [vmem:[%s18434_s4 + $0x180] sm:$0xff] }
 0x11e   :  { %1725 = vmatpush1.msra.mxu0 %v14835_v24  ;;  %1864 = vmatpush1.msra.mxu1 %v14943_v43  ;;  %v15269_v14 = vand.u32 4294901760, %v12316_v2 }
 0x11f   :  { %1728 = vmatprep.subr.mxu0 %v14847_v28  ;;  %1866 = vmatprep.subr.mxu1 %v14958_v4 }
 0x120   :  { %1731 = vmatpush1.msra.mxu0 %v14859_v45  ;;  %1868 = vmatpush1.msra.mxu1 %v14973_v25  ;;  %v12317_v45 = vld [vmem:[%s18434_s4 + $0x188] sm:$0xff] }
 0x121   :  { %1734 = vmatprep.subr.mxu0 %v14875_v44  ;;  %1870 = vmatprep.subr.mxu1 %v14985_v41  ;;  %v15259_v29 = vand.u32 4294901760, %v12317_v45 }
 0x122   :  { %1737 = vmatpush1.msra.mxu0 %v14889_v31  ;;  %1872 = vmatpush1.msra.mxu1 %v18901_v17  ;;  %v18919_v31 = vld [vmem:[#allocation25_spill] sm:$0xff] }
 0x123   :  { %1740 = vmatprep.subr.mxu0 %v18902_v30  ;;  %1874 = vmatprep.subr.mxu1 %v18903_v39  ;;  %v12318_v30 = vld [vmem:[%s18434_s4 + $0x190] sm:$0xff] }
 0x124   :  { %1743 = vmatpush1.msra.mxu0 %v18904_v58  ;;  %1876 = vmatpush1.msra.mxu1 %v18905_v12  ;;  %v18918_v58 = vld [vmem:[#allocation22_spill] sm:$0xff]  ;;  %v15249_v46 = vand.u32 4294901760, %v12318_v30 }
 0x125   :  { %1746 = vmatprep.subr.mxu0 %v18906_v9  ;;  %1913 = vmatmul.mubr.f32.vlgmr.msra.gmra.mxu1 %v15111_v6  ;;  %v18983_v6 = vld [vmem:[#allocation102_spill] sm:$0xff] }
 0x126   :  { %2096 = vmatprep.subr.mxu1 %v18907_v18  ;;  %1749 = vmatpush1.msra.mxu0 %v18908_v61  ;;  %v15290_v56 = vsub.f32 %v12318_v30, %v15249_v46  ;;  %v18937_v30 = vld [vmem:[#allocation57_spill] sm:$0xff]  ;;  %v12306_v18 = vld [vmem:[%s18434_s4 + $0x130] sm:$0xff] }
 0x127   :  { %2098 = vmatpush1.msra.mxu1 %v14586_v49  ;;  %1752 = vmatprep.subr.mxu0 %v18909_v32  ;;  %v18917_v32 = vld [vmem:[#allocation19_spill] sm:$0xff] }
 0x128   :  { %2100 = vmatprep.subr.mxu1 %v14651_v53  ;;  %1755 = vmatpush1.msra.mxu0 %v18910_v52  ;;  %v18915_v52 = vld [vmem:[#allocation9_spill] sm:$0xff]  ;;  %18933 = vst [vmem:[#allocation129_spill] sm:$0xff] %v15290_v56  ;;  %v18958_v53 = vld [vmem:[#allocation86_spill] sm:$0xff] }
 0x129   :  { %1918 = vmatprep.mubr.f32.mxu1 %v18897_v10  ;;  %2102 = vmatpush1.msra.mxu1 %v14656_v55 }
 0x12a   :  { %1758 = vmatprep.subr.mxu0 %v18911_v62  ;;  %1922 = vmatmul.mubr.f32.gmra.mxu1 %v15115_v50  ;;  %v12323_v62 = vld [vmem:[%s18434_s4 + $0x1b8] sm:$0xff]  ;;  %v12300_v50 = vld [vmem:[%s18434_s4 + $0x100] sm:$0xff] }
 0x12b   :  { %2104 = vmatprep.subr.mxu1 %v14664_v57  ;;  %1761 = vmatpush1.msra.mxu0 %v18912_v1  ;;  %v18916_v1 = vld [vmem:[#allocation10_spill] sm:$0xff]  ;;  %v15208_v61 = vand.u32 4294901760, %v12323_v62 }
 0x12c   :  { %2106 = vmatpush1.msra.mxu1 %v14673_v60  ;;  %1764 = vmatprep.subr.mxu0 %v18913_v11  ;;  %v12322_v11 = vld [vmem:[%s18434_s4 + $0x1b0] sm:$0xff]  ;;  %v12308_v60 = vld [vmem:[%s18434_s4 + $0x140] sm:$0xff] }
 0x12d   :  { %2108 = vmatprep.subr.mxu1 %v14685_v0  ;;  %1767 = vmatpush1.msra.mxu0 %v18914_v33  ;;  %v12321_v33 = vld [vmem:[%s18434_s4 + $0x1a8] sm:$0xff]  ;;  %v15215_v9 = vand.u32 4294901760, %v12322_v11  ;;  %v15237_v28 = vsub.f32 %v12323_v62, %v15208_v61  ;;  %v12315_v62 = vld [vmem:[%s18434_s4 + $0x178] sm:$0xff] }
 0x12e   :  { %1800 = vmatprep.mubr.f32.mxu0 %v18897_v10  ;;  %2110 = vmatpush1.msra.mxu1 %v14697_v7 }
 0x12f   :  { %1803 = vmatmul.mubr.f32.vlgmr.msra.gmra.mxu0 %v15104_v20  ;;  %1935 = vmatprep.subr.mxu0 %v18915_v52  ;;  %v12320_v52 = vld [vmem:[%s18434_s4 + $0x1a0] sm:$0xff]  ;;  %18921 = vst [vmem:[#allocation122_spill] sm:$0xff] %v15237_v28  ;;  %v15247_v23 = vsub.f32 %v12322_v11, %v15215_v9  ;;  %v12314_v11 = vld [vmem:[%s18434_s4 + $0x170] sm:$0xff]  ;;  %v15277_v5 = vand.u32 4294901760, %v15237_v28 }
 0x130   :  { %2112 = vmatprep.subr.mxu1 %v14711_v16  ;;  %1939 = vmatpush1.msra.mxu0 %v18916_v1  ;;  %v12319_v1 = vld [vmem:[%s18434_s4 + $0x198] sm:$0xff]  ;;  %v15229_v44 = vand.u32 4294901760, %v12320_v52  ;;  %v15292_v13 = vand.u32 4294901760, %v12314_v11  ;;  %v18951_v16 = vld [vmem:[#allocation73_spill] sm:$0xff] }
 0x131   :  { %2114 = vmatpush1.msra.mxu1 %v14725_v22  ;;  %1943 = vmatprep.subr.mxu0 %v18917_v32  ;;  %v15222_v32 = vand.u32 4294901760, %v12321_v33  ;;  %v15239_v24 = vand.u32 4294901760, %v12319_v1  ;;  %18923 = vst [vmem:[#allocation123_spill] sm:$0xff] %v15247_v23  ;;  %18929 = vst [vmem:[#allocation126_spill] sm:$0xff] %v15277_v5  ;;  %v15287_v59 = vand.u32 4294901760, %v15247_v23  ;;  %v18975_v20 = vld [vmem:[#allocation99_spill] sm:$0xff] }
 0x132   :  { %2116 = vmatprep.subr.mxu1 %v14767_v38  ;;  %1808 = vmatprep.mubr.f32.mxu0 %v18897_v10  ;;  %v15267_v21 = vsub.f32 %v12320_v52, %v15229_v44  ;;  %v18931_v52 = vld [vmem:[#allocation50_spill] sm:$0xff] }
 0x133   :  { %1947 = vmatpush1.msra.mxu0 %v18918_v58  ;;  %2118 = vmatpush1.msra.mxu1 %v14780_v42  ;;  %v18920_v58 = vld [vmem:[#allocation28_spill] sm:$0xff]  ;;  %v15257_v34 = vsub.f32 %v12321_v33, %v15222_v32  ;;  %v12313_v33 = vld [vmem:[%s18434_s4 + $0x168] sm:$0xff]  ;;  %v15280_v63 = vsub.f32 %v12319_v1, %v15239_v24  ;;  %18932 = vst [vmem:[#allocation128_spill] sm:$0xff] %v15287_v59  ;;  %v12310_v38 = vld [vmem:[%s18434_s4 + $0x150] sm:$0xff] }
 0x134   :  { %1811 = vmatmul.mubr.f32.gmra.mxu0 %v15101_v15  ;;  %1951 = vmatprep.subr.mxu0 %v18919_v31  ;;  %v18922_v31 = vld [vmem:[#allocation32_spill] sm:$0xff]  ;;  %18927 = vst [vmem:[#allocation125_spill] sm:$0xff] %v15267_v21  ;;  %v18934_v1 = vld [vmem:[#allocation54_spill] sm:$0xff]  ;;  %v15389_v55 = vand.u32 4294901760, %v12310_v38 }
 0x135   :  { %2120 = vmatprep.subr.mxu1 %v14793_v47  ;;  %1955 = vmatpush1.msra.mxu0 %v18920_v58  ;;  %v18924_v58 = vld [vmem:[#allocation35_spill] sm:$0xff]  ;;  %18925 = vst [vmem:[#allocation124_spill] sm:$0xff] %v15257_v34  ;;  %18930 = vst [vmem:[#allocation127_spill] sm:$0xff] %v15280_v63  ;;  %v15338_v47 = vsub.f32 %v12314_v11, %v15292_v13  ;;  %v18949_v11 = vld [vmem:[#allocation70_spill] sm:$0xff] }
 0x136   :  { %2122 = vmatpush1.msra.mxu1 %v14807_v54  ;;  %1959 = vmatprep.subr.mxu0 %v18922_v31  ;;  %v18926_v31 = vld [vmem:[#allocation38_spill] sm:$0xff]  ;;  %v15335_v54 = vand.u32 4294901760, %v15290_v56  ;;  %v12304_v15 = vld [vmem:[%s18434_s4 + $0x120] sm:$0xff] }
 0x137   :  { %2124 = vmatprep.subr.mxu1 %v14822_v8  ;;  %1963 = vmatpush1.msra.mxu0 %v18924_v58  ;;  %v18928_v58 = vld [vmem:[#allocation41_spill] sm:$0xff]  ;;  %v15313_v8 = vsub.f32 %v12316_v2, %v15269_v14  ;;  %v12311_v2 = vld [vmem:[%s18434_s4 + $0x158] sm:$0xff]  ;;  %18945 = vst [vmem:[#allocation137_spill] sm:$0xff] %v15338_v47  ;;  %v15387_v57 = vand.u32 4294901760, %v15338_v47 }
 0x138   :  { %2126 = vmatpush1.msra.mxu1 %v14837_v27  ;;  %1967 = vmatprep.subr.mxu0 %v18926_v31  ;;  %v15282_v31 = vand.u32 4294901760, %v12315_v62  ;;  %v15310_v27 = vand.u32 4294901760, %v15267_v21  ;;  %18944 = vst [vmem:[#allocation136_spill] sm:$0xff] %v15335_v54  ;;  %v15360_v22 = vand.u32 4294901760, %v12311_v2 }
 0x139   :  { %2128 = vmatprep.subr.mxu1 %v14849_v36  ;;  %1971 = vmatpush1.msra.mxu0 %v18928_v58  ;;  %v12312_v58 = vld [vmem:[%s18434_s4 + $0x160] sm:$0xff]  ;;  %v15305_v36 = vand.u32 4294901760, %v12313_v33  ;;  %18939 = vst [vmem:[#allocation133_spill] sm:$0xff] %v15313_v8  ;;  %18957 = vst [vmem:[#allocation145_spill] sm:$0xff] %v15387_v57 }
 0x13a   :  { %2130 = vmatpush1.msra.mxu1 %v14861_v19  ;;  %1975 = vmatprep.subr.mxu0 %v18931_v52  ;;  %v15300_v19 = vand.u32 4294901760, %v15257_v34  ;;  %v15303_v52 = vsub.f32 %v12317_v45, %v15259_v29  ;;  %18938 = vst [vmem:[#allocation132_spill] sm:$0xff] %v15310_v27  ;;  %v2349_v45 = vsub.f32 %v15237_v28, %v15277_v5  ;;  %v18971_v5 = vld [vmem:[#allocation96_spill] sm:$0xff] }
 0x13b   :  { %2132 = vmatprep.subr.mxu1 %v14903_v48  ;;  %1979 = vmatpush1.msra.mxu0 %v18934_v1  ;;  %v18940_v1 = vld [vmem:[#allocation60_spill] sm:$0xff]  ;;  %v15320_v48 = vand.u32 4294901760, %v15280_v63 }
 0x13c   :  { %18935 = vst [vmem:[#allocation130_spill] sm:$0xff] %v15300_v19  ;;  %18936 = vst [vmem:[#allocation131_spill] sm:$0xff] %v15303_v52  ;;  %2134 = vmatpush1.msra.mxu1 %v14916_v51  ;;  %1983 = vmatprep.subr.mxu0 %v18937_v30  ;;  %v15323_v51 = vsub.f32 %v12315_v62, %v15282_v31  ;;  %v15325_v30 = vand.u32 4294901760, %v12312_v58  ;;  %v18946_v62 = vld [vmem:[#allocation67_spill] sm:$0xff]  ;;  %v2361_v42 = vsub.f32 %v15257_v34, %v15300_v19 }
 0x13d   :  { %2136 = vmatprep.subr.mxu1 %v14929_v35  ;;  %1987 = vmatpush1.msra.mxu0 %v18940_v1  ;;  %18941 = vst [vmem:[#allocation134_spill] sm:$0xff] %v15320_v48  ;;  %v18943_v35 = vld [vmem:[#allocation64_spill] sm:$0xff]  ;;  %v2355_v1 = vsub.f32 %v15247_v23, %v15287_v59  ;;  %v15367_v7 = vand.u32 4294901760, %v2349_v45  ;;  %v2379_v45 = vsub.f32 %v15290_v56, %v15335_v54  ;;  %v12305_v54 = vld [vmem:[%s18434_s4 + $0x128] sm:$0xff]  ;;  %v15445_v19 = vand.u32 4294901760, %v12306_v18 }
 0x13e   :  { %18942 = vst [vmem:[#allocation135_spill] sm:$0xff] %v15323_v51  ;;  %2138 = vmatpush1.msra.mxu1 %v14943_v43  ;;  %1991 = vmatprep.subr.mxu0 %v18943_v35  ;;  %v15345_v43 = vand.u32 4294901760, %v15303_v52  ;;  %v15348_v35 = vsub.f32 %v12313_v33, %v15305_v36  ;;  %v12309_v33 = vld [vmem:[%s18434_s4 + $0x148] sm:$0xff]  ;;  %v15375_v0 = vsub.f32 %v12312_v58, %v15325_v30  ;;  %v12307_v58 = vld [vmem:[%s18434_s4 + $0x138] sm:$0xff]  ;;  %v12296_v56 = vld [vmem:[%s18434_s4 + $0xe0] sm:$0xff] }
 0x13f   :  { %2140 = vmatprep.subr.mxu1 %v14958_v4  ;;  %1995 = vmatpush1.msra.mxu0 %v18946_v62  ;;  %v2367_v62 = vsub.f32 %v15267_v21, %v15310_v27  ;;  %v15358_v4 = vand.u32 4294901760, %v15313_v8  ;;  %18952 = vst [vmem:[#allocation141_spill] sm:$0xff] %v15367_v7  ;;  %v15403_v49 = vand.u32 4294901760, %v12309_v33  ;;  %v18967_v27 = vld [vmem:[#allocation92_spill] sm:$0xff]  ;;  %18970 = vst [vmem:[#allocation155_spill] sm:$0xff] %v15445_v19 }
 0x140   :  { %18947 = vst [vmem:[#allocation138_spill] sm:$0xff] %v15345_v43  ;;  %18948 = vst [vmem:[#allocation139_spill] sm:$0xff] %v15348_v35  ;;  %2142 = vmatpush1.msra.mxu1 %v14973_v25  ;;  %1999 = vmatprep.subr.mxu0 %v18949_v11  ;;  %v2373_v11 = vsub.f32 %v15280_v63, %v15320_v48  ;;  %v15372_v25 = vand.u32 4294901760, %v15323_v51  ;;  %v18963_v48 = vld [vmem:[#allocation89_spill] sm:$0xff]  ;;  %v12303_v59 = vld [vmem:[%s18434_s4 + $0x118] sm:$0xff] }
 0x141   :  { %18950 = vst [vmem:[#allocation140_spill] sm:$0xff] %v15358_v4  ;;  %2144 = vmatprep.subr.mxu1 %v14985_v41  ;;  %2003 = vmatpush1.msra.mxu0 %v18951_v16  ;;  %18954 = vst [vmem:[#allocation143_spill] sm:$0xff] %v15375_v0  ;;  %v18955_v41 = vld [vmem:[#allocation82_spill] sm:$0xff]  ;;  %v15382_v16 = vand.u32 4294901760, %v2355_v1  ;;  %v2385_v1 = vsub.f32 %v15303_v52, %v15345_v43  ;;  %v15417_v43 = vand.u32 4294901760, %v12308_v60 }
 0x142   :  { %18953 = vst [vmem:[#allocation142_spill] sm:$0xff] %v15372_v25  ;;  %2146 = vmatpush1.msra.mxu1 %v18901_v17  ;;  %2007 = vmatprep.subr.mxu0 %v18955_v41  ;;  %v15396_v17 = vand.u32 4294901760, %v2361_v42  ;;  %v15401_v41 = vand.u32 4294901760, %v15348_v35  ;;  %v2391_v42 = vsub.f32 %v15313_v8, %v15358_v4  ;;  %v15429_v4 = vand.u32 4294901760, %v15375_v0  ;;  %v18993_v8 = vld [vmem:[#allocation113_spill] sm:$0xff] }
 0x143   :  { %18956 = vst [vmem:[#allocation144_spill] sm:$0xff] %v15382_v16  ;;  %2148 = vmatprep.subr.mxu1 %v18903_v39  ;;  %2011 = vmatpush1.msra.mxu0 %v18958_v53  ;;  %v15410_v39 = vand.u32 4294901760, %v2367_v62  ;;  %v15415_v53 = vsub.f32 %v12311_v2, %v15360_v22  ;;  %v2397_v62 = vsub.f32 %v15323_v51, %v15372_v25  ;;  %v15431_v2 = vand.u32 4294901760, %v12307_v58  ;;  %v12298_v51 = vld [vmem:[%s18434_s4 + $0xf0] sm:$0xff]  ;;  %v12297_v52 = vld [vmem:[%s18434_s4 + $0xe8] sm:$0xff] }
 0x144   :  { %18959 = vst [vmem:[#allocation146_spill] sm:$0xff] %v15396_v17  ;;  %18960 = vst [vmem:[#allocation147_spill] sm:$0xff] %v15401_v41  ;;  %2150 = vmatpush1.msra.mxu1 %v18905_v12  ;;  %2183 = vmatprep.mubr.f32.mxu1 %v18897_v10  ;;  %v15424_v12 = vand.u32 4294901760, %v2373_v11  ;;  %v2403_v11 = vsub.f32 %v15338_v47, %v15387_v57  ;;  %v15443_v25 = vsub.f32 %v12310_v38, %v15389_v55  ;;  %v12302_v57 = vld [vmem:[%s18434_s4 + $0x110] sm:$0xff] }
 0x145   :  { %18961 = vst [vmem:[#allocation148_spill] sm:$0xff] %v15410_v39  ;;  %18962 = vst [vmem:[#allocation149_spill] sm:$0xff] %v15415_v53  ;;  %2015 = vmatprep.subr.mxu0 %v18963_v48  ;;  %2185 = vmatmul.mubr.f32.vlgmr.msra.gmra.mxu1 %v15098_v37  ;;  %v15438_v48 = vand.u32 4294901760, %v2379_v45  ;;  %v2409_v45 = vsub.f32 %v15348_v35, %v15401_v41  ;;  %v15459_v38 = vand.u32 4294901760, %v12305_v54  ;;  %v12301_v41 = vld [vmem:[%s18434_s4 + $0x108] sm:$0xff] }
 0x146   :  { %18964 = vst [vmem:[#allocation150_spill] sm:$0xff] %v15424_v12  ;;  %18965 = vst [vmem:[#allocation151_spill] sm:$0xff] %v15429_v4  ;;  %2351 = vmatprep.subr.mxu1 %v15367_v7  ;;  %2019 = vmatpush1.msra.mxu0 %v18967_v27  ;;  %v15452_v7 = vand.u32 4294901760, %v2385_v1  ;;  %v15457_v27 = vsub.f32 %v12309_v33, %v15403_v49  ;;  %v15469_v1 = vand.u32 4294901760, %v15415_v53  ;;  %v15474_v33 = vand.u32 4294901760, %v12304_v15 }
 0x147   :  { %18966 = vst [vmem:[#allocation152_spill] sm:$0xff] %v15431_v2  ;;  %18968 = vst [vmem:[#allocation153_spill] sm:$0xff] %v15438_v48  ;;  %2357 = vmatpush1.msra.mxu1 %v15382_v16  ;;  %2023 = vmatprep.subr.mxu0 %v18971_v5  ;;  %v15466_v16 = vand.u32 4294901760, %v2391_v42  ;;  %v15472_v5 = vsub.f32 %v12308_v60, %v15417_v43  ;;  %v2415_v42 = vsub.f32 %v15375_v0, %v15429_v4  ;;  %v12299_v4 = vld [vmem:[%s18434_s4 + $0xf8] sm:$0xff] }
 0x148   :  { %18969 = vst [vmem:[#allocation154_spill] sm:$0xff] %v15443_v25  ;;  %18972 = vst [vmem:[#allocation156_spill] sm:$0xff] %v15452_v7  ;;  %2363 = vmatprep.subr.mxu1 %v15396_v17  ;;  %2027 = vmatpush1.msra.mxu0 %v18975_v20  ;;  %v15481_v17 = vand.u32 4294901760, %v2397_v62  ;;  %v15486_v20 = vsub.f32 %v12307_v58, %v15431_v2  ;;  %v15488_v60 = vand.u32 4294901760, %v12303_v59  ;;  %v15495_v35 = vand.u32 4294901760, %v2403_v11  ;;  %v18988_v0 = vld [vmem:[#allocation104_spill] sm:$0xff] }
 0x149   :  { %18973 = vst [vmem:[#allocation157_spill] sm:$0xff] %v15457_v27  ;;  %18974 = vst [vmem:[#allocation158_spill] sm:$0xff] %v15459_v38  ;;  %2190 = vmatprep.mubr.f32.mxu1 %v18897_v10  ;;  %2369 = vmatpush1.msra.mxu1 %v15410_v39  ;;  %v15498_v62 = vand.u32 4294901760, %v15443_v25  ;;  %v15501_v39 = vsub.f32 %v12306_v18, %v15445_v19  ;;  %v15503_v58 = vand.u32 4294901760, %v12302_v57  ;;  %v15513_v11 = vand.u32 4294901760, %v15457_v27 }
 0x14a   :  { %18976 = vst [vmem:[#allocation159_spill] sm:$0xff] %v15466_v16  ;;  %18977 = vst [vmem:[#allocation160_spill] sm:$0xff] %v15469_v1  ;;  %2031 = vmatprep.subr.mxu0 %v18983_v6  ;;  %2192 = vmatmul.mubr.f32.gmra.mxu1 %v15095_v3  ;;  %v15510_v6 = vand.u32 4294901760, %v2409_v45  ;;  %v15516_v47 = vsub.f32 %v12305_v54, %v15459_v38  ;;  %v15518_v18 = vand.u32 4294901760, %v12301_v41  ;;  %v15533_v54 = vand.u32 4294901760, %v12300_v50 }
 0x14b   :  { %18978 = vst [vmem:[#allocation161_spill] sm:$0xff] %v15472_v5  ;;  %18979 = vst [vmem:[#allocation162_spill] sm:$0xff] %v15474_v33  ;;  %2375 = vmatprep.subr.mxu1 %v15424_v12  ;;  %2035 = vmatpush1.msra.mxu0 %v18988_v0  ;;  %v2421_v45 = vsub.f32 %v15415_v53, %v15469_v1  ;;  %v15528_v0 = vand.u32 4294901760, %v15472_v5  ;;  %v15531_v12 = vsub.f32 %v12304_v15, %v15474_v33 }
 0x14c   :  { %18980 = vst [vmem:[#allocation163_spill] sm:$0xff] %v15481_v17  ;;  %18981 = vst [vmem:[#allocation164_spill] sm:$0xff] %v15486_v20  ;;  %2381 = vmatpush1.msra.mxu1 %v15438_v48  ;;  %2039 = vmatprep.subr.mxu0 %v18993_v8  ;;  %v18997_v48 = vld [vmem:[#allocation114_spill] sm:$0xff]  ;;  %v15540_v8 = vand.u32 4294901760, %v2415_v42  ;;  %v15543_v1 = vand.u32 4294901760, %v15486_v20  ;;  %v15546_v53 = vsub.f32 %v12303_v59, %v15488_v60  ;;  %v15548_v15 = vand.u32 4294901760, %v12299_v4 }
 0x14d   :  { %18982 = vst [vmem:[#allocation165_spill] sm:$0xff] %v15488_v60  ;;  %18984 = vst [vmem:[#allocation166_spill] sm:$0xff] %v15495_v35  ;;  %2387 = vmatprep.subr.mxu1 %v15452_v7  ;;  %2043 = vmatpush1.msra.mxu0 %v18997_v48  ;;  %v2427_v42 = vsub.f32 %v15443_v25, %v15498_v62  ;;  %v15558_v48 = vand.u32 4294901760, %v15501_v39  ;;  %v15561_v7 = vsub.f32 %v12302_v57, %v15503_v58 }
 0x14e   :  { %18985 = vst [vmem:[#allocation167_spill] sm:$0xff] %v15498_v62  ;;  %18986 = vst [vmem:[#allocation168_spill] sm:$0xff] %v15501_v39  ;;  %2076 = vmatprep.mubr.f32.mxu0 %v18897_v10  ;;  %2393 = vmatpush1.msra.mxu1 %v15466_v16  ;;  %v15563_v59 = vand.u32 4294901760, %v12298_v51  ;;  %v2433_v63 = vsub.f32 %v15457_v27, %v15513_v11  ;;  %v15570_v16 = vand.u32 4294901760, %v15516_v47  ;;  %v15575_v25 = vand.u32 4294901760, %v12297_v52 }
 0x14f   :  { %18987 = vst [vmem:[#allocation169_spill] sm:$0xff] %v15503_v58  ;;  %18989 = vst [vmem:[#allocation170_spill] sm:$0xff] %v15510_v6  ;;  %2078 = vmatmul.mubr.f32.vlgmr.msra.gmra.mxu0 %v15098_v37  ;;  %2232 = vmatprep.subr.mxu0 %v15208_v61  ;;  %v15573_v62 = vsub.f32 %v12301_v41, %v15518_v18  ;;  %v2439_v57 = vsub.f32 %v15472_v5, %v15528_v0  ;;  %v15582_v40 = vand.u32 4294901760, %v15531_v12 }
 0x150   :  { %18990 = vst [vmem:[#allocation171_spill] sm:$0xff] %v15513_v11  ;;  %18991 = vst [vmem:[#allocation172_spill] sm:$0xff] %v15516_v47  ;;  %2399 = vmatprep.subr.mxu1 %v15481_v17  ;;  %2234 = vmatpush1.msra.mxu0 %v15215_v9  ;;  %v15585_v11 = vsub.f32 %v12300_v50, %v15533_v54  ;;  %v15587_v27 = vand.u32 4294901760, %v12296_v56  ;;  %v15591_v41 = vand.u32 4294901760, %v2421_v45  ;;  %v15596_v21 = vand.u32 4294901760, %v15546_v53 }
 0x151   :  { %18992 = vst [vmem:[#allocation173_spill] sm:$0xff] %v15518_v18  ;;  %18994 = vst [vmem:[#allocation174_spill] sm:$0xff] %v15528_v0  ;;  %2405 = vmatpush1.msra.mxu1 %v15495_v35  ;;  %2236 = vmatprep.subr.mxu0 %v15222_v32  ;;  %v2445_v17 = vsub.f32 %v15486_v20, %v15543_v1  ;;  %v15599_v0 = vsub.f32 %v12299_v4, %v15548_v15  ;;  %v15603_v50 = vand.u32 4294901760, %v2427_v42 }
 0x152   :  { %18995 = vst [vmem:[#allocation175_spill] sm:$0xff] %v15531_v12  ;;  %18996 = vst [vmem:[#allocation176_spill] sm:$0xff] %v15533_v54  ;;  %2411 = vmatprep.subr.mxu1 %v15510_v6  ;;  %2083 = vmatprep.mubr.f32.mxu0 %v18897_v10  ;;  %v2451_v35 = vsub.f32 %v15501_v39, %v15558_v48  ;;  %v15608_v45 = vand.u32 4294901760, %v15561_v7  ;;  %v15615_v4 = vand.u32 4294901760, %v2433_v63  ;;  %v15620_v42 = vand.u32 4294901760, %v15573_v62 }
 0x153   :  { %18998 = vst [vmem:[#allocation177_spill] sm:$0xff] %v15540_v8  ;;  %18999 = vst [vmem:[#allocation178_spill] sm:$0xff] %v15543_v1  ;;  %v15611_v1 = vsub.f32 %v12298_v51, %v15563_v59  ;;  %2238 = vmatpush1.msra.mxu0 %v15229_v44  ;;  %2417 = vmatpush1.msra.mxu1 %v15540_v8  ;;  %v2457_v6 = vsub.f32 %v15516_v47, %v15570_v16  ;;  %v15627_v51 = vand.u32 4294901760, %v2439_v57 }
 0x154   :  { %19000 = vst [vmem:[#allocation179_spill] sm:$0xff] %v15546_v53  ;;  %19001 = vst [vmem:[#allocation180_spill] sm:$0xff] %v15548_v15  ;;  %2085 = vmatmul.mubr.f32.gmra.mxu0 %v15095_v3  ;;  %2240 = vmatprep.subr.mxu0 %v15239_v24  ;;  %v2463_v8 = vsub.f32 %v15531_v12, %v15582_v40  ;;  %v15632_v63 = vand.u32 4294901760, %v15585_v11  ;;  %v2469_v47 = vsub.f32 %v15546_v53, %v15596_v21 }
 0x155   :  { %19002 = vst [vmem:[#allocation181_spill] sm:$0xff] %v15558_v48  ;;  %19003 = vst [vmem:[#allocation182_spill] sm:$0xff] %v15561_v7  ;;  %v15623_v48 = vsub.f32 %v12297_v52, %v15575_v25  ;;  %2423 = vmatprep.subr.mxu1 %v15591_v41  ;;  %2242 = vmatpush1.msra.mxu0 %v15249_v46  ;;  %v15639_v52 = vand.u32 4294901760, %v2445_v17  ;;  %v15644_v57 = vand.u32 4294901760, %v15599_v0  ;;  %v15657_v17 = vand.u32 4294901760, %v2457_v6 }
 0x156   :  { %19004 = vst [vmem:[#allocation183_spill] sm:$0xff] %v15563_v59  ;;  %19005 = vst [vmem:[#allocation184_spill] sm:$0xff] %v15570_v16  ;;  %v15635_v16 = vsub.f32 %v12296_v56, %v15587_v27  ;;  %2429 = vmatpush1.msra.mxu1 %v15603_v50  ;;  %2244 = vmatprep.subr.mxu0 %v15259_v29  ;;  %v2475_v56 = vsub.f32 %v15561_v7, %v15608_v45  ;;  %v15675_v6 = vand.u32 4294901760, %v2469_v47 }
 0x157   :  { %19006 = vst [vmem:[#allocation185_spill] sm:$0xff] %v15573_v62  ;;  %19007 = vst [vmem:[#allocation186_spill] sm:$0xff] %v15575_v25  ;;  %2435 = vmatprep.subr.mxu1 %v15615_v4  ;;  %2246 = vmatpush1.msra.mxu0 %v15269_v14 }
 0x158   :  { %19008 = vst [vmem:[#allocation187_spill] sm:$0xff] %v15582_v40  ;;  %19009 = vst [vmem:[#allocation188_spill] sm:$0xff] %v15585_v11  ;;  %v15648_v40 = vand.u32 4294901760, %v2451_v35  ;;  %2441 = vmatpush1.msra.mxu1 %v15627_v51  ;;  %2248 = vmatprep.subr.mxu0 %v15282_v31  ;;  %v15666_v35 = vand.u32 4294901760, %v2463_v8  ;;  %v15681_v8 = vand.u32 4294901760, %v2475_v56 }
 0x159   :  { %19010 = vst [vmem:[#allocation189_spill] sm:$0xff] %v15587_v27  ;;  %19011 = vst [vmem:[#allocation190_spill] sm:$0xff] %v15591_v41  ;;  %v15653_v41 = vand.u32 4294901760, %v15611_v1  ;;  %2447 = vmatprep.subr.mxu1 %v15639_v52  ;;  %2250 = vmatpush1.msra.mxu0 %v15292_v13 }
 0x15a   :  { %19012 = vst [vmem:[#allocation191_spill] sm:$0xff] %v15596_v21  ;;  %19013 = vst [vmem:[#allocation192_spill] sm:$0xff] %v15599_v0  ;;  %v2481_v21 = vsub.f32 %v15573_v62, %v15620_v42  ;;  %2453 = vmatpush1.msra.mxu1 %v15648_v40  ;;  %2252 = vmatprep.subr.mxu0 %v15305_v36 }
 0x15b   :  { %19014 = vst [vmem:[#allocation193_spill] sm:$0xff] %v15603_v50  ;;  %19015 = vst [vmem:[#allocation194_spill] sm:$0xff] %v15608_v45  ;;  %v15662_v50 = vand.u32 4294901760, %v15623_v48  ;;  %v2487_v45 = vsub.f32 %v15585_v11, %v15632_v63  ;;  %2459 = vmatprep.subr.mxu1 %v15657_v17  ;;  %2254 = vmatpush1.msra.mxu0 %v15325_v30 }
 0x15c   :  { %19016 = vst [vmem:[#allocation195_spill] sm:$0xff] %v15611_v1  ;;  %19017 = vst [vmem:[#allocation196_spill] sm:$0xff] %v15615_v4  ;;  %v15671_v4 = vand.u32 4294901760, %v15635_v16  ;;  %2465 = vmatpush1.msra.mxu1 %v15666_v35  ;;  %2256 = vmatprep.subr.mxu0 %v15360_v22 }
 0x15d   :  { %19018 = vst [vmem:[#allocation197_spill] sm:$0xff] %v15620_v42  ;;  %19019 = vst [vmem:[#allocation198_spill] sm:$0xff] %v15623_v48  ;;  %v2493_v42 = vsub.f32 %v15599_v0, %v15644_v57  ;;  %v2505_v47 = vsub.f32 %v15623_v48, %v15662_v50  ;;  %2471 = vmatprep.subr.mxu1 %v15675_v6  ;;  %2258 = vmatpush1.msra.mxu0 %v15389_v55 }
 0x15e   :  { %19020 = vst [vmem:[#allocation199_spill] sm:$0xff] %v15627_v51  ;;  %19021 = vst [vmem:[#allocation200_spill] sm:$0xff] %v15632_v63  ;;  %v2499_v51 = vsub.f32 %v15611_v1, %v15653_v41  ;;  %v2511_v56 = vsub.f32 %v15635_v16, %v15671_v4  ;;  %2477 = vmatpush1.msra.mxu1 %v15681_v8  ;;  %2260 = vmatprep.subr.mxu0 %v15403_v49 }
 0x15f   :  { %19022 = vst [vmem:[#allocation201_spill] sm:$0xff] %v15635_v16  ;;  %19023 = vst [vmem:[#allocation202_spill] sm:$0xff] %v15639_v52  ;;  %v15687_v52 = vand.u32 4294901760, %v2481_v21  ;;  %2262 = vmatpush1.msra.mxu0 %v15417_v43  ;;  %2546 = vmatprep.mubr.f32.mxu1 %v18897_v10 }
 0x160   :  { %19024 = vst [vmem:[#allocation203_spill] sm:$0xff] %v15644_v57  ;;  %19025 = vst [vmem:[#allocation204_spill] sm:$0xff] %v15648_v40  ;;  %v15693_v40 = vand.u32 4294901760, %v2487_v45  ;;  %v15703_v21 = vand.u32 4294901760, %v2499_v51  ;;  %v15707_v45 = vand.u32 4294901760, %v2505_v47  ;;  %2264 = vmatprep.subr.mxu0 %v15431_v2  ;;  %2319 = vmatprep.mubr.f32.mxu0 %v18897_v10  ;;  %v19037_v51 = vld [vmem:[#allocation121_spill] sm:$0xff] }
 0x161   :  { %19026 = vst [vmem:[#allocation205_spill] sm:$0xff] %v15653_v41  ;;  %19027 = vst [vmem:[#allocation206_spill] sm:$0xff] %v15657_v17  ;;  %v15699_v17 = vand.u32 4294901760, %v2493_v42  ;;  %2483 = vmatprep.subr.mxu1 %v15687_v52  ;;  %2266 = vmatpush1.msra.mxu0 %v15445_v19  ;;  %v19036_v42 = vld [vmem:[#allocation125_spill] sm:$0xff] }
 0x162   :  { %19028 = vst [vmem:[#allocation207_spill] sm:$0xff] %v15662_v50  ;;  %19029 = vst [vmem:[#allocation208_spill] sm:$0xff] %v15671_v4  ;;  %2489 = vmatpush1.msra.mxu1 %v15693_v40  ;;  %2268 = vmatprep.subr.mxu0 %v15459_v38  ;;  %v19039_v47 = vld [vmem:[#allocation129_spill] sm:$0xff] }
 0x163   :  { %19030 = vst [vmem:[#allocation209_spill] sm:$0xff] %v15675_v6  ;;  %19031 = vst [vmem:[#allocation210_spill] sm:$0xff] %v15693_v40  ;;  %v15711_v6 = vand.u32 4294901760, %v2511_v56  ;;  %2495 = vmatprep.subr.mxu1 %v15699_v17  ;;  %2270 = vmatpush1.msra.mxu0 %v15474_v33  ;;  %v19040_v56 = vld [vmem:[#allocation131_spill] sm:$0xff]  ;;  %v19139_v40 = vld [vmem:[#allocation17_spill] sm:$0xff] }
 0x164   :  { %19032 = vst [vmem:[#allocation211_spill] sm:$0xff] %v15699_v17  ;;  %19033 = vst [vmem:[#allocation212_spill] sm:$0xff] %v15703_v21  ;;  %2501 = vmatpush1.msra.mxu1 %v15703_v21  ;;  %2272 = vmatprep.subr.mxu0 %v15488_v60  ;;  %v19135_v21 = vld [vmem:[#allocation8_spill] sm:$0xff] }
 0x165   :  { %19034 = vst [vmem:[#allocation213_spill] sm:$0xff] %v15707_v45  ;;  %19035 = vst [vmem:[#allocation214_spill] sm:$0xff] %v15711_v6  ;;  %2507 = vmatprep.subr.mxu1 %v15707_v45  ;;  %2274 = vmatpush1.msra.mxu0 %v15503_v58 }
 0x166   :  { %2513 = vmatpush1.msra.mxu1 %v15711_v6  ;;  %2276 = vmatprep.subr.mxu0 %v15518_v18 }
 0x167   :  { %2548 = vmatmul.mubr.f32.vlgmr.msra.gmra.mxu1 %v15098_v37  ;;  %2703 = vmatprep.subr.mxu1 %v15208_v61 }
 0x168   :  { %2705 = vmatpush1.msra.mxu1 %v15215_v9  ;;  %2278 = vmatpush1.msra.mxu0 %v15533_v54 }
 0x169   :  { %2707 = vmatprep.subr.mxu1 %v15222_v32  ;;  %2553 = vmatprep.mubr.f32.mxu1 %v18897_v10 }
 0x16a   :  { %2709 = vmatpush1.msra.mxu1 %v15229_v44  ;;  %2280 = vmatprep.subr.mxu0 %v15548_v15 }
 0x16b   :  { %2555 = vmatmul.mubr.f32.gmra.mxu1 %v15095_v3  ;;  %2711 = vmatprep.subr.mxu1 %v15239_v24 }
 0x16c   :  { %2282 = vmatpush1.msra.mxu0 %v15563_v59  ;;  %2713 = vmatpush1.msra.mxu1 %v15249_v46 }
 0x16d   :  { %2284 = vmatprep.subr.mxu0 %v15575_v25  ;;  %2715 = vmatprep.subr.mxu1 %v15259_v29 }
 0x16e   :  { %2286 = vmatpush1.msra.mxu0 %v15587_v27  ;;  %2717 = vmatpush1.msra.mxu1 %v15269_v14 }
 0x16f   :  { %2325 = vmatmul.mubr.f32.vlgmr.msra.gmra.mxu0 %v15124_v26  ;;  %2567 = vmatprep.subr.mxu0 %v15237_v28  ;;  %v19038_v26 = vld [vmem:[#allocation127_spill] sm:$0xff]  ;;  %v19119_v28 = vld [vmem:[#allocation62_spill] sm:$0xff] }
 0x170   :  { %2719 = vmatprep.subr.mxu1 %v15282_v31  ;;  %2570 = vmatpush1.msra.mxu0 %v15247_v23 }
 0x171   :  { %2721 = vmatpush1.msra.mxu1 %v15292_v13  ;;  %2573 = vmatprep.subr.mxu0 %v15257_v34  ;;  %v19041_v34 = vld [vmem:[#allocation133_spill] sm:$0xff] }
 0x172   :  { %2723 = vmatprep.subr.mxu1 %v15305_v36  ;;  %2330 = vmatprep.mubr.f32.mxu0 %v18897_v10 }
 0x173   :  { %2576 = vmatpush1.msra.mxu0 %v19036_v42  ;;  %2725 = vmatpush1.msra.mxu1 %v15325_v30  ;;  %v19042_v42 = vld [vmem:[#allocation135_spill] sm:$0xff] }
 0x174   :  { %2336 = vmatmul.mubr.f32.gmra.mxu0 %v19037_v51  ;;  %2579 = vmatprep.subr.mxu0 %v19038_v26  ;;  %v19043_v51 = vld [vmem:[#allocation137_spill] sm:$0xff]  ;;  %v19044_v26 = vld [vmem:[#allocation139_spill] sm:$0xff] }
 0x175   :  { %2727 = vmatprep.subr.mxu1 %v15360_v22  ;;  %2582 = vmatpush1.msra.mxu0 %v19039_v47  ;;  %v19045_v47 = vld [vmem:[#allocation143_spill] sm:$0xff] }
 0x176   :  { %2729 = vmatpush1.msra.mxu1 %v15389_v55  ;;  %2585 = vmatprep.subr.mxu0 %v19040_v56  ;;  %v19046_v56 = vld [vmem:[#allocation149_spill] sm:$0xff] }
 0x177   :  { %2731 = vmatprep.subr.mxu1 %v15403_v49  ;;  %2588 = vmatpush1.msra.mxu0 %v19041_v34  ;;  %v19047_v34 = vld [vmem:[#allocation154_spill] sm:$0xff] }
 0x178   :  { %2733 = vmatpush1.msra.mxu1 %v15417_v43  ;;  %2591 = vmatprep.subr.mxu0 %v19042_v42  ;;  %v19048_v42 = vld [vmem:[#allocation157_spill] sm:$0xff] }
 0x179   :  { %2735 = vmatprep.subr.mxu1 %v15431_v2  ;;  %2594 = vmatpush1.msra.mxu0 %v19043_v51  ;;  %v19116_v51 = vld [vmem:[#allocation108_spill] sm:$0xff] }
 0x17a   :  { %2737 = vmatpush1.msra.mxu1 %v15445_v19  ;;  %2597 = vmatprep.subr.mxu0 %v19044_v26  ;;  %v19111_v26 = vld [vmem:[#allocation48_spill] sm:$0xff] }
 0x17b   :  { %2739 = vmatprep.subr.mxu1 %v15459_v38  ;;  %2600 = vmatpush1.msra.mxu0 %v19045_v47 }
 0x17c   :  { %2741 = vmatpush1.msra.mxu1 %v15474_v33  ;;  %2603 = vmatprep.subr.mxu0 %v19046_v56  ;;  %v19049_v56 = vld [vmem:[#allocation172_spill] sm:$0xff] }
 0x17d   :  { %2743 = vmatprep.subr.mxu1 %v15488_v60  ;;  %2606 = vmatpush1.msra.mxu0 %v19047_v34 }
 0x17e   :  { %2745 = vmatpush1.msra.mxu1 %v15503_v58  ;;  %2609 = vmatprep.subr.mxu0 %v19048_v42  ;;  %v19079_v42 = vld [vmem:[#allocation31_spill] sm:$0xff] }
 0x17f   :  { %2747 = vmatprep.subr.mxu1 %v15518_v18  ;;  %2612 = vmatpush1.msra.mxu0 %v15472_v5  ;;  %v19050_v5 = vld [vmem:[#allocation119_spill] sm:$0xff] }
 0x180   :  { %2749 = vmatpush1.msra.mxu1 %v15533_v54  ;;  %2615 = vmatprep.subr.mxu0 %v15486_v20 }
 0x181   :  { %2751 = vmatprep.subr.mxu1 %v15548_v15  ;;  %2618 = vmatpush1.msra.mxu0 %v15501_v39 }
 0x182   :  { %2753 = vmatpush1.msra.mxu1 %v15563_v59  ;;  %2621 = vmatprep.subr.mxu0 %v19049_v56  ;;  %v19076_v56 = vld [vmem:[#allocation194_spill] sm:$0xff] }
 0x183   :  { %2755 = vmatprep.subr.mxu1 %v15575_v25  ;;  %2624 = vmatpush1.msra.mxu0 %v15531_v12  ;;  %v19074_v12 = vld [vmem:[#allocation191_spill] sm:$0xff] }
 0x184   :  { %2757 = vmatpush1.msra.mxu1 %v15587_v27  ;;  %2790 = vmatprep.mubr.f32.mxu1 %v18897_v10 }
 0x185   :  { %2627 = vmatprep.subr.mxu0 %v15546_v53  ;;  %2794 = vmatmul.mubr.f32.vlgmr.msra.gmra.mxu1 %v19050_v5  ;;  %v19051_v53 = vld [vmem:[#allocation120_spill] sm:$0xff]  ;;  %v19052_v5 = vld [vmem:[#allocation118_spill] sm:$0xff] }
 0x186   :  { %2977 = vmatprep.subr.mxu1 %v15208_v61  ;;  %2630 = vmatpush1.msra.mxu0 %v15561_v7 }
 0x187   :  { %2979 = vmatpush1.msra.mxu1 %v15215_v9  ;;  %2633 = vmatprep.subr.mxu0 %v15573_v62  ;;  %v13050_v62 = vpop.f32.mrf.mxu1 }
 0x188   :  { %2981 = vmatprep.subr.mxu1 %v15222_v32  ;;  %2636 = vmatpush1.msra.mxu0 %v15585_v11 }
 0x189   :  { %2799 = vmatprep.mubr.f32.mxu1 %v18897_v10  ;;  %2983 = vmatpush1.msra.mxu1 %v15229_v44  ;;  %v959_v7 = vpop.f32.mrf.mxu1 }
 0x18a   :  { %2639 = vmatprep.subr.mxu0 %v15599_v0  ;;  %2803 = vmatmul.mubr.f32.gmra.mxu1 %v19051_v53  ;;  %v19053_v0 = vld [vmem:[#allocation126_spill] sm:$0xff]  ;;  %v19054_v53 = vld [vmem:[#allocation128_spill] sm:$0xff] }
 0x18b   :  { %2985 = vmatprep.subr.mxu1 %v15239_v24  ;;  %2642 = vmatpush1.msra.mxu0 %v15611_v1  ;;  %v19055_v1 = vld [vmem:[#allocation130_spill] sm:$0xff]  ;;  %v13072_v20 = vpop.f32.mrf.mxu1 }
 0x18c   :  { %2987 = vmatpush1.msra.mxu1 %v15249_v46  ;;  %2645 = vmatprep.subr.mxu0 %v15623_v48  ;;  %v19057_v48 = vld [vmem:[#allocation117_spill] sm:$0xff] }
 0x18d   :  { %2989 = vmatprep.subr.mxu1 %v15259_v29  ;;  %2648 = vmatpush1.msra.mxu0 %v15635_v16  ;;  %v19056_v16 = vld [vmem:[#allocation132_spill] sm:$0xff] }
 0x18e   :  { %2681 = vmatprep.mubr.f32.mxu0 %v18897_v10  ;;  %2991 = vmatpush1.msra.mxu1 %v15269_v14 }
 0x18f   :  { %2684 = vmatmul.mubr.f32.vlgmr.msra.gmra.mxu0 %v19052_v5  ;;  %2816 = vmatprep.subr.mxu0 %v19053_v0  ;;  %v19058_v5 = vld [vmem:[#allocation134_spill] sm:$0xff]  ;;  %v19059_v0 = vld [vmem:[#allocation136_spill] sm:$0xff] }
 0x190   :  { %2993 = vmatprep.subr.mxu1 %v15282_v31  ;;  %2820 = vmatpush1.msra.mxu0 %v19054_v53  ;;  %v19060_v53 = vld [vmem:[#allocation138_spill] sm:$0xff] }
 0x191   :  { %2995 = vmatpush1.msra.mxu1 %v15292_v13  ;;  %2824 = vmatprep.subr.mxu0 %v19055_v1  ;;  %v19061_v1 = vld [vmem:[#allocation140_spill] sm:$0xff] }
 0x192   :  { %2997 = vmatprep.subr.mxu1 %v15305_v36  ;;  %2689 = vmatprep.mubr.f32.mxu0 %v18897_v10 }
 0x193   :  { %2828 = vmatpush1.msra.mxu0 %v19056_v16  ;;  %2999 = vmatpush1.msra.mxu1 %v15325_v30  ;;  %v19062_v16 = vld [vmem:[#allocation142_spill] sm:$0xff] }
 0x194   :  { %2692 = vmatmul.mubr.f32.gmra.mxu0 %v19057_v48  ;;  %2832 = vmatprep.subr.mxu0 %v19058_v5  ;;  %v19063_v48 = vld [vmem:[#allocation145_spill] sm:$0xff]  ;;  %v19064_v5 = vld [vmem:[#allocation147_spill] sm:$0xff] }
 0x195   :  { %3001 = vmatprep.subr.mxu1 %v15360_v22  ;;  %2836 = vmatpush1.msra.mxu0 %v19059_v0  ;;  %v19065_v0 = vld [vmem:[#allocation151_spill] sm:$0xff] }
 0x196   :  { %3003 = vmatpush1.msra.mxu1 %v15389_v55  ;;  %2840 = vmatprep.subr.mxu0 %v19060_v53  ;;  %v13039_v53 = vpop.f32.mrf.mxu0 }
 0x197   :  { %3005 = vmatprep.subr.mxu1 %v15403_v49  ;;  %2844 = vmatpush1.msra.mxu0 %v19061_v1  ;;  %v19066_v1 = vld [vmem:[#allocation160_spill] sm:$0xff] }
 0x198   :  { %3007 = vmatpush1.msra.mxu1 %v15417_v43  ;;  %2848 = vmatprep.subr.mxu0 %v19062_v16  ;;  %v19067_v16 = vld [vmem:[#allocation167_spill] sm:$0xff]  ;;  %v858_v11 = vpop.f32.mrf.mxu0 }
 0x199   :  { %3009 = vmatprep.subr.mxu1 %v15431_v2  ;;  %2852 = vmatpush1.msra.mxu0 %v19063_v48  ;;  %v19068_v48 = vld [vmem:[#allocation171_spill] sm:$0xff] }
 0x19a   :  { %3011 = vmatpush1.msra.mxu1 %v15445_v19  ;;  %2856 = vmatprep.subr.mxu0 %v19064_v5  ;;  %v19069_v5 = vld [vmem:[#allocation174_spill] sm:$0xff] }
 0x19b   :  { %3013 = vmatprep.subr.mxu1 %v15459_v38  ;;  %2860 = vmatpush1.msra.mxu0 %v19065_v0  ;;  %v19070_v0 = vld [vmem:[#allocation178_spill] sm:$0xff]  ;;  %v19134_v38 = vld [vmem:[#allocation7_spill] sm:$0xff] }
 0x19c   :  { %3015 = vmatpush1.msra.mxu1 %v15474_v33  ;;  %2864 = vmatprep.subr.mxu0 %v19066_v1  ;;  %v19071_v1 = vld [vmem:[#allocation181_spill] sm:$0xff] }
 0x19d   :  { %3017 = vmatprep.subr.mxu1 %v15488_v60  ;;  %2868 = vmatpush1.msra.mxu0 %v19067_v16  ;;  %v19072_v16 = vld [vmem:[#allocation184_spill] sm:$0xff]  ;;  %v19132_v60 = vld [vmem:[#allocation107_spill] sm:$0xff] }
 0x19e   :  { %3019 = vmatpush1.msra.mxu1 %v15503_v58  ;;  %2872 = vmatprep.subr.mxu0 %v19068_v48  ;;  %v19073_v48 = vld [vmem:[#allocation187_spill] sm:$0xff]  ;;  %v19131_v58 = vld [vmem:[#allocation105_spill] sm:$0xff] }
 0x19f   :  { %3021 = vmatprep.subr.mxu1 %v15518_v18  ;;  %2876 = vmatpush1.msra.mxu0 %v19069_v5  ;;  %v13061_v5 = vpop.f32.mrf.mxu0  ;;  %v19130_v18 = vld [vmem:[#allocation94_spill] sm:$0xff] }
 0x1a0   :  { %3023 = vmatpush1.msra.mxu1 %v15533_v54  ;;  %2880 = vmatprep.subr.mxu0 %v19070_v0  ;;  %v960_v0 = vadd.f32 %v959_v7, %v858_v11  ;;  %v966_v7 = vadd.f32 %v13050_v62, %v13039_v53  ;;  %v19081_v11 = vld [vmem:[#allocation37_spill] sm:$0xff] }
 0x1a1   :  { %3025 = vmatprep.subr.mxu1 %v15548_v15  ;;  %2884 = vmatpush1.msra.mxu0 %v19071_v1  ;;  %v19075_v1 = vld [vmem:[#allocation11_spill] sm:$0xff]  ;;  %v1045_v39 = vpop.f32.mrf.mxu0 }
 0x1a2   :  { %3027 = vmatpush1.msra.mxu1 %v15563_v59  ;;  %2888 = vmatprep.subr.mxu0 %v19072_v16  ;;  %v19077_v16 = vld [vmem:[#allocation12_spill] sm:$0xff]  ;;  %v1046_v34 = vadd.f32 %v1045_v39, %v960_v0  ;;  %v19084_v39 = vld [vmem:[#allocation46_spill] sm:$0xff]  ;;  %v19129_v15 = vld [vmem:[#allocation91_spill] sm:$0xff] }
 0x1a3   :  { %3029 = vmatprep.subr.mxu1 %v15575_v25  ;;  %2892 = vmatpush1.msra.mxu0 %v19073_v48  ;;  %v19078_v48 = vld [vmem:[#allocation197_spill] sm:$0xff]  ;;  %v19123_v25 = vld [vmem:[#allocation74_spill] sm:$0xff] }
 0x1a4   :  { %3031 = vmatpush1.msra.mxu1 %v15587_v27  ;;  %3064 = vmatprep.mubr.f32.mxu1 %v18897_v10  ;;  %v19120_v27 = vld [vmem:[#allocation112_spill] sm:$0xff] }
 0x1a5   :  { %2896 = vmatprep.subr.mxu0 %v19074_v12  ;;  %3066 = vmatmul.mubr.f32.vlgmr.msra.gmra.mxu1 %v15098_v37  ;;  %v19080_v12 = vld [vmem:[#allocation34_spill] sm:$0xff] }
 0x1a6   :  { %3209 = vmatprep.subr.mxu1 %v19075_v1  ;;  %2900 = vmatpush1.msra.mxu0 %v19076_v56  ;;  %v1129_v1 = vpop.f32.mrf.mxu1  ;;  %v19103_v56 = vld [vmem:[#allocation30_spill] sm:$0xff] }
 0x1a7   :  { %3215 = vmatpush1.msra.mxu1 %v19077_v16  ;;  %2904 = vmatprep.subr.mxu0 %v19078_v48  ;;  %v13083_v16 = vpop.f32.mrf.mxu0  ;;  %v19082_v48 = vld [vmem:[#allocation40_spill] sm:$0xff]  ;;  %v1130_v0 = vadd.f32 %v1129_v1, %v1046_v34  ;;  %v19090_v1 = vld [vmem:[#allocation63_spill] sm:$0xff] }
 0x1a8   :  { %3221 = vmatprep.subr.mxu1 %v19079_v42  ;;  %2908 = vmatpush1.msra.mxu0 %v15632_v63  ;;  %v19083_v42 = vld [vmem:[#allocation43_spill] sm:$0xff]  ;;  %v13094_v53 = vpop.f32.mrf.mxu1  ;;  %v19100_v63 = vld [vmem:[#allocation78_spill] sm:$0xff] }
 0x1a9   :  { %3071 = vmatprep.mubr.f32.mxu1 %v18897_v10  ;;  %3227 = vmatpush1.msra.mxu1 %v19080_v12  ;;  %v1053_v12 = vadd.f32 %v13061_v5, %v966_v7  ;;  %v1220_v62 = vpop.f32.mrf.mxu0 }
 0x1aa   :  { %2912 = vmatprep.subr.mxu0 %v15644_v57  ;;  %3073 = vmatmul.mubr.f32.gmra.mxu1 %v15095_v3  ;;  %v1221_v34 = vadd.f32 %v1220_v62, %v1130_v0  ;;  %v1301_v7 = vpop.f32.mrf.mxu1  ;;  %v19096_v0 = vld [vmem:[#allocation72_spill] sm:$0xff]  ;;  %v19097_v62 = vld [vmem:[#allocation21_spill] sm:$0xff] }
 0x1ab   :  { %3233 = vmatprep.subr.mxu1 %v19081_v11  ;;  %2916 = vmatpush1.msra.mxu0 %v15653_v41  ;;  %v19085_v11 = vld [vmem:[#allocation5_spill] sm:$0xff]  ;;  %v1138_v5 = vadd.f32 %v13072_v20, %v1053_v12  ;;  %v19098_v20 = vld [vmem:[#allocation75_spill] sm:$0xff]  ;;  %v19099_v12 = vld [vmem:[#allocation24_spill] sm:$0xff] }
 0x1ac   :  { %3239 = vmatpush1.msra.mxu1 %v19082_v48  ;;  %2920 = vmatprep.subr.mxu0 %v15662_v50  ;;  %v19086_v41 = vld [vmem:[#allocation49_spill] sm:$0xff]  ;;  %v19087_v48 = vld [vmem:[#allocation6_spill] sm:$0xff]  ;;  %v1302_v57 = vadd.f32 %v1301_v7, %v1221_v34  ;;  %v19105_v7 = vld [vmem:[#allocation39_spill] sm:$0xff] }
 0x1ad   :  { %3245 = vmatprep.subr.mxu1 %v19083_v42  ;;  %2924 = vmatpush1.msra.mxu0 %v15671_v4  ;;  %v19088_v50 = vld [vmem:[#allocation53_spill] sm:$0xff] }
 0x1ae   :  { %2957 = vmatprep.mubr.f32.mxu0 %v18897_v10  ;;  %3251 = vmatpush1.msra.mxu1 %v19084_v39  ;;  %v19089_v42 = vld [vmem:[#allocation13_spill] sm:$0xff]  ;;  %v19091_v39 = vld [vmem:[#allocation14_spill] sm:$0xff] }
 0x1af   :  { %2959 = vmatmul.mubr.f32.vlgmr.msra.gmra.mxu0 %v15098_v37  ;;  %3090 = vmatprep.subr.mxu0 %v19085_v11  ;;  %v19092_v37 = vld [vmem:[#allocation66_spill] sm:$0xff]  ;;  %v19094_v4 = vld [vmem:[#allocation69_spill] sm:$0xff] }
 0x1b0   :  { %3257 = vmatprep.subr.mxu1 %v19086_v41  ;;  %3092 = vmatpush1.msra.mxu0 %v19087_v48  ;;  %v19093_v41 = vld [vmem:[#allocation16_spill] sm:$0xff]  ;;  %v19104_v34 = vld [vmem:[#allocation85_spill] sm:$0xff] }
 0x1b1   :  { %3263 = vmatpush1.msra.mxu1 %v19088_v50  ;;  %3094 = vmatprep.subr.mxu0 %v19089_v42  ;;  %v19095_v50 = vld [vmem:[#allocation18_spill] sm:$0xff] }
 0x1b2   :  { %3269 = vmatprep.subr.mxu1 %v19090_v1  ;;  %2964 = vmatprep.mubr.f32.mxu0 %v18897_v10  ;;  %v1227_v1 = vadd.f32 %v13083_v16, %v1138_v5  ;;  %v19106_v16 = vld [vmem:[#allocation95_spill] sm:$0xff]  ;;  %v19107_v5 = vld [vmem:[#allocation42_spill] sm:$0xff] }
 0x1b3   :  { %3096 = vmatpush1.msra.mxu0 %v19091_v39  ;;  %3275 = vmatpush1.msra.mxu1 %v19092_v37  ;;  %v19101_v37 = vld [vmem:[#allocation27_spill] sm:$0xff] }
 0x1b4   :  { %2966 = vmatmul.mubr.f32.gmra.mxu0 %v15095_v3  ;;  %3098 = vmatprep.subr.mxu0 %v19093_v41  ;;  %v19102_v3 = vld [vmem:[#allocation81_spill] sm:$0xff] }
 0x1b5   :  { %3281 = vmatprep.subr.mxu1 %v19094_v4  ;;  %3100 = vmatpush1.msra.mxu0 %v19095_v50  ;;  %v3080_v4 = vsel %vm1339_vm2, %v1302_v57, 0  ;;  %v19112_v57 = vld [vmem:[#allocation103_spill] sm:$0xff] }
 0x1b6   :  { %3287 = vmatpush1.msra.mxu1 %v19096_v0  ;;  %3102 = vmatprep.subr.mxu0 %v19097_v62  ;;  %v1308_v0 = vadd.f32 %v13094_v53, %v1227_v1  ;;  %v15898_v47 = vand.u32 4294901760, %v3080_v4  ;;  %v19114_v1 = vld [vmem:[#allocation106_spill] sm:$0xff] }
 0x1b7   :  { %3293 = vmatprep.subr.mxu1 %v19098_v20  ;;  %3104 = vmatpush1.msra.mxu0 %v19099_v12  ;;  %v19108_v20 = vld [vmem:[#allocation98_spill] sm:$0xff] }
 0x1b8   :  { %3299 = vmatpush1.msra.mxu1 %v19100_v63  ;;  %3106 = vmatprep.subr.mxu0 %v19101_v37  ;;  %v19109_v63 = vld [vmem:[#allocation45_spill] sm:$0xff]  ;;  %v3083_v53 = vsel %vm1339_vm2, %v1308_v0, 0  ;;  %v15910_v23 = vsub.f32 %v3080_v4, %v15898_v47  ;;  %v19121_v0 = vld [vmem:[#allocation71_spill] sm:$0xff] }
 0x1b9   :  { %3305 = vmatprep.subr.mxu1 %v19102_v3  ;;  %3108 = vmatpush1.msra.mxu0 %v19103_v56  ;;  %v19110_v3 = vld [vmem:[#allocation101_spill] sm:$0xff] }
 0x1ba   :  { %3311 = vmatpush1.msra.mxu1 %v19104_v34  ;;  %3110 = vmatprep.subr.mxu0 %v19105_v7  ;;  %v19113_v34 = vld [vmem:[#allocation52_spill] sm:$0xff]  ;;  %v15923_v4 = vand.u32 4294901760, %v15910_v23 }
 0x1bb   :  { %3317 = vmatprep.subr.mxu1 %v19106_v16  ;;  %3112 = vmatpush1.msra.mxu0 %v19107_v5  ;;  %v19115_v16 = vld [vmem:[#allocation56_spill] sm:$0xff] }
 0x1bc   :  { %3323 = vmatpush1.msra.mxu1 %v19108_v20  ;;  %3114 = vmatprep.subr.mxu0 %v19109_v63  ;;  %v19117_v20 = vld [vmem:[#allocation59_spill] sm:$0xff] }
 0x1bd   :  { %3329 = vmatprep.subr.mxu1 %v19110_v3  ;;  %3116 = vmatpush1.msra.mxu0 %v19111_v26  ;;  %v19118_v3 = vld [vmem:[#allocation110_spill] sm:$0xff] }
 0x1be   :  { %3335 = vmatpush1.msra.mxu1 %v19112_v57  ;;  %3118 = vmatprep.subr.mxu0 %v19113_v34  ;;  %v15914_v57 = vand.u32 4294901760, %v3083_v53 }
 0x1bf   :  { %3341 = vmatprep.subr.mxu1 %v19114_v1  ;;  %3120 = vmatpush1.msra.mxu0 %v19115_v16  ;;  %v19122_v1 = vld [vmem:[#allocation115_spill] sm:$0xff] }
 0x1c0   :  { %3347 = vmatpush1.msra.mxu1 %v19116_v51  ;;  %3122 = vmatprep.subr.mxu0 %v19117_v20  ;;  %v19124_v51 = vld [vmem:[#allocation116_spill] sm:$0xff]  ;;  %v15928_v59 = vsub.f32 %v3083_v53, %v15914_v57  ;;  %v3181_v53 = vsub.f32 %v15910_v23, %v15923_v4 }
 0x1c1   :  { %3353 = vmatprep.subr.mxu1 %v19118_v3  ;;  %3124 = vmatpush1.msra.mxu0 %v19119_v28  ;;  %v19125_v3 = vld [vmem:[#allocation77_spill] sm:$0xff] }
 0x1c2   :  { %3359 = vmatpush1.msra.mxu1 %v19120_v27  ;;  %3126 = vmatprep.subr.mxu0 %v19121_v0  ;;  %v19126_v27 = vld [vmem:[#allocation80_spill] sm:$0xff]  ;;  %v15943_v54 = vand.u32 4294901760, %v15928_v59  ;;  %v15951_v6 = vand.u32 4294901760, %v3181_v53  ;;  %v19136_v53 = vld [vmem:[#allocation15_spill] sm:$0xff] }
 0x1c3   :  { %3365 = vmatprep.subr.mxu1 %v19122_v1  ;;  %3128 = vmatpush1.msra.mxu0 %v19123_v25  ;;  %v19127_v1 = vld [vmem:[#allocation84_spill] sm:$0xff] }
 0x1c4   :  { %3371 = vmatpush1.msra.mxu1 %v19124_v51  ;;  %3404 = vmatprep.mubr.f32.mxu1 %v18897_v10  ;;  %v19128_v51 = vld [vmem:[#allocation88_spill] sm:$0xff]  ;;  %19133 = vst [vmem:[#allocation121_spill] sm:$0xff] %v15951_v6  ;;  %v3192_v45 = vsub.f32 %v15928_v59, %v15943_v54 }
 0x1c5   :  { %3130 = vmatprep.subr.mxu0 %v19125_v3  ;;  %3406 = vmatmul.mubr.f32.vlgmr.msra.gmra.mxu1 %v15898_v47 }
 0x1c6   :  { %3561 = vmatprep.subr.mxu1 %v19085_v11  ;;  %3132 = vmatpush1.msra.mxu0 %v19126_v27 }
 0x1c7   :  { %3563 = vmatpush1.msra.mxu1 %v19087_v48  ;;  %3134 = vmatprep.subr.mxu0 %v19127_v1 }
 0x1c8   :  { %3565 = vmatprep.subr.mxu1 %v19089_v42  ;;  %3136 = vmatpush1.msra.mxu0 %v19128_v51  ;;  %v1668_v33 = vpop.f32.mrf.mxu1 }
 0x1c9   :  { %3411 = vmatprep.mubr.f32.mxu1 %v18897_v10  ;;  %3567 = vmatpush1.msra.mxu1 %v19091_v39 }
 0x1ca   :  { %3138 = vmatprep.subr.mxu0 %v19129_v15  ;;  %3413 = vmatmul.mubr.f32.gmra.mxu1 %v15914_v57  ;;  %v15963_v17 = vpop.f32.mrf.mxu1 }
 0x1cb   :  { %3569 = vmatprep.subr.mxu1 %v19093_v41  ;;  %3140 = vmatpush1.msra.mxu0 %v19130_v18  ;;  %19137 = vst [vmem:[#allocation119_spill] sm:$0xff] %v15963_v17 }
 0x1cc   :  { %3571 = vmatpush1.msra.mxu1 %v19095_v50  ;;  %3142 = vmatprep.subr.mxu0 %v19131_v58 }
 0x1cd   :  { %3573 = vmatprep.subr.mxu1 %v19097_v62  ;;  %3144 = vmatpush1.msra.mxu0 %v19132_v60 }
 0x1ce   :  { %3177 = vmatprep.mubr.f32.mxu0 %v18897_v10  ;;  %3575 = vmatpush1.msra.mxu1 %v19099_v12 }
 0x1cf   :  { %3183 = vmatmul.mubr.f32.vlgmr.msra.gmra.mxu0 %v15951_v6  ;;  %3425 = vmatprep.subr.mxu0 %v19134_v38  ;;  %v15969_v6 = vand.u32 4294901760, %v3192_v45  ;;  %v19142_v45 = vld [vmem:[#allocation26_spill] sm:$0xff] }
 0x1d0   :  { %3577 = vmatprep.subr.mxu1 %v19101_v37  ;;  %3428 = vmatpush1.msra.mxu0 %v19135_v21  ;;  %v1445_v19 = vpop.f32.mrf.mxu0  ;;  %v19140_v21 = vld [vmem:[#allocation20_spill] sm:$0xff] }
 0x1d1   :  { %3579 = vmatpush1.msra.mxu1 %v19103_v56  ;;  %3431 = vmatprep.subr.mxu0 %v19136_v53  ;;  %v15965_v2 = vadd.f32 %v1668_v33, %v1445_v19  ;;  %v19141_v19 = vld [vmem:[#allocation23_spill] sm:$0xff]  ;;  %v1675_v33 = vpop.f32.mrf.mxu1 }
 0x1d2   :  { %3581 = vmatprep.subr.mxu1 %v19105_v7  ;;  %3188 = vmatprep.mubr.f32.mxu0 %v18897_v10  ;;  %v15971_v38 = vpop.f32.mrf.mxu0 }
 0x1d3   :  { %19138 = vst [vmem:[#allocation120_spill] sm:$0xff] %v15971_v38  ;;  %3434 = vmatpush1.msra.mxu0 %v19139_v40  ;;  %3583 = vmatpush1.msra.mxu1 %v19107_v5  ;;  %v19143_v40 = vld [vmem:[#allocation29_spill] sm:$0xff] }
 0x1d4   :  { %3194 = vmatmul.mubr.f32.gmra.mxu0 %v15969_v6  ;;  %3437 = vmatprep.subr.mxu0 %v19140_v21  ;;  %v19144_v38 = vld [vmem:[#allocation33_spill] sm:$0xff]  ;;  %v19145_v21 = vld [vmem:[#allocation36_spill] sm:$0xff] }
 0x1d5   :  { %3585 = vmatprep.subr.mxu1 %v19109_v63  ;;  %3440 = vmatpush1.msra.mxu0 %v19141_v19  ;;  %v1456_v53 = vpop.f32.mrf.mxu0  ;;  %v19146_v19 = vld [vmem:[#allocation44_spill] sm:$0xff] }
 0x1d6   :  { %3587 = vmatpush1.msra.mxu1 %v19111_v26  ;;  %3443 = vmatprep.subr.mxu0 %v19142_v45  ;;  %v15981_v17 = vadd.f32 %v1675_v33, %v1456_v53  ;;  %v19147_v33 = vld [vmem:[#allocation47_spill] sm:$0xff] }
 0x1d7   :  { %3589 = vmatprep.subr.mxu1 %v19113_v34  ;;  %3446 = vmatpush1.msra.mxu0 %v19143_v40  ;;  %v19148_v53 = vld [vmem:[#allocation51_spill] sm:$0xff]  ;;  %v19151_v40 = vld [vmem:[#allocation61_spill] sm:$0xff] }
 0x1d8   :  { %3591 = vmatpush1.msra.mxu1 %v19115_v16  ;;  %3449 = vmatprep.subr.mxu0 %v19144_v38  ;;  %v19149_v45 = vld [vmem:[#allocation55_spill] sm:$0xff]  ;;  %v19150_v38 = vld [vmem:[#allocation58_spill] sm:$0xff] }
 0x1d9   :  { %3593 = vmatprep.subr.mxu1 %v19117_v20  ;;  %3452 = vmatpush1.msra.mxu0 %v19145_v21  ;;  %v19152_v21 = vld [vmem:[#allocation65_spill] sm:$0xff] }
 0x1da   :  { %3595 = vmatpush1.msra.mxu1 %v19119_v28  ;;  %3455 = vmatprep.subr.mxu0 %v19146_v19  ;;  %v19153_v19 = vld [vmem:[#allocation68_spill] sm:$0xff] }
 0x1db   :  { %3597 = vmatprep.subr.mxu1 %v19121_v0  ;;  %3458 = vmatpush1.msra.mxu0 %v19147_v33  ;;  %v19154_v33 = vld [vmem:[#allocation76_spill] sm:$0xff] }
 0x1dc   :  { %3599 = vmatpush1.msra.mxu1 %v19123_v25  ;;  %3461 = vmatprep.subr.mxu0 %v19148_v53  ;;  %v19155_v53 = vld [vmem:[#allocation79_spill] sm:$0xff] }
 0x1dd   :  { %3601 = vmatprep.subr.mxu1 %v19125_v3  ;;  %3464 = vmatpush1.msra.mxu0 %v19149_v45  ;;  %v19156_v45 = vld [vmem:[#allocation83_spill] sm:$0xff] }
 0x1de   :  { %3603 = vmatpush1.msra.mxu1 %v19126_v27  ;;  %3467 = vmatprep.subr.mxu0 %v19150_v38  ;;  %v19157_v38 = vld [vmem:[#allocation87_spill] sm:$0xff] }
 0x1df   :  { %3605 = vmatprep.subr.mxu1 %v19127_v1  ;;  %3470 = vmatpush1.msra.mxu0 %v19151_v40  ;;  %v19158_v40 = vld [vmem:[#allocation90_spill] sm:$0xff] }
 0x1e0   :  { %3607 = vmatpush1.msra.mxu1 %v19128_v51  ;;  %3473 = vmatprep.subr.mxu0 %v19152_v21  ;;  %v19159_v21 = vld [vmem:[#allocation93_spill] sm:$0xff] }
 0x1e1   :  { %3609 = vmatprep.subr.mxu1 %v19129_v15  ;;  %3476 = vmatpush1.msra.mxu0 %v19153_v19  ;;  %v19160_v19 = vld [vmem:[#allocation97_spill] sm:$0xff] }
 0x1e2   :  { %3611 = vmatpush1.msra.mxu1 %v19130_v18  ;;  %3479 = vmatprep.subr.mxu0 %v19154_v33  ;;  %v16025_v33 = vpop.f32.mrf.mxu1 }
 0x1e3   :  { %3613 = vmatprep.subr.mxu1 %v19131_v58  ;;  %3482 = vmatpush1.msra.mxu0 %v19155_v53  ;;  %v16031_v53 = vpop.f32.mrf.mxu0 }
 0x1e4   :  { %3615 = vmatpush1.msra.mxu1 %v19132_v60  ;;  %3648 = vmatprep.mubr.f32.mxu1 %v18897_v10 }
 0x1e5   :  { %3485 = vmatprep.subr.mxu0 %v19156_v45  ;;  %3652 = vmatmul.mubr.f32.vlgmr.msra.gmra.mxu1 %v15923_v4 }
 0x1e6   :  { %3835 = vmatprep.subr.mxu1 %v19085_v11  ;;  %3488 = vmatpush1.msra.mxu0 %v19157_v38  ;;  %v19161_v11 = vld [vmem:[#allocation100_spill] sm:$0xff]  ;;  %v19166_v38 = vld [vmem:[#allocation19_spill] sm:$0xff] }
 0x1e7   :  { %3837 = vmatpush1.msra.mxu1 %v19087_v48  ;;  %3491 = vmatprep.subr.mxu0 %v19158_v40  ;;  %v19162_v48 = vld [vmem:[#allocation109_spill] sm:$0xff] }
 0x1e8   :  { %3839 = vmatprep.subr.mxu1 %v19089_v42  ;;  %3494 = vmatpush1.msra.mxu0 %v19159_v21  ;;  %v19163_v42 = vld [vmem:[#allocation111_spill] sm:$0xff] }
 0x1e9   :  { %3657 = vmatprep.mubr.f32.mxu1 %v18897_v10  ;;  %3841 = vmatpush1.msra.mxu1 %v19091_v39  ;;  %v1914_v39 = vpop.f32.mrf.mxu1 }
 0x1ea   :  { %3497 = vmatprep.subr.mxu0 %v19160_v19  ;;  %3661 = vmatmul.mubr.f32.gmra.mxu1 %v15943_v54  ;;  %v19167_v19 = vld [vmem:[#allocation22_spill] sm:$0xff] }
 0x1eb   :  { %3843 = vmatprep.subr.mxu1 %v19093_v41  ;;  %3500 = vmatpush1.msra.mxu0 %v19161_v11  ;;  %v19164_v41 = vld [vmem:[#allocation9_spill] sm:$0xff]  ;;  %v19170_v11 = vld [vmem:[#allocation32_spill] sm:$0xff] }
 0x1ec   :  { %3845 = vmatpush1.msra.mxu1 %v19095_v50  ;;  %3503 = vmatprep.subr.mxu0 %v19162_v48  ;;  %v19165_v50 = vld [vmem:[#allocation10_spill] sm:$0xff] }
 0x1ed   :  { %3847 = vmatprep.subr.mxu1 %v19097_v62  ;;  %3506 = vmatpush1.msra.mxu0 %v19163_v42  ;;  %v19171_v42 = vld [vmem:[#allocation35_spill] sm:$0xff] }
 0x1ee   :  { %3539 = vmatprep.mubr.f32.mxu0 %v18897_v10  ;;  %3849 = vmatpush1.msra.mxu1 %v19099_v12  ;;  %v16046_v12 = vpop.f32.mrf.mxu1 }
 0x1ef   :  { %3542 = vmatmul.mubr.f32.vlgmr.msra.gmra.mxu0 %v15910_v23  ;;  %3674 = vmatprep.subr.mxu0 %v19164_v41  ;;  %v1804_v45 = vpop.f32.mrf.mxu0  ;;  %v19187_v41 = vld [vmem:[#allocation144_spill] sm:$0xff] }
 0x1f0   :  { %3851 = vmatprep.subr.mxu1 %v19101_v37  ;;  %3678 = vmatpush1.msra.mxu0 %v19165_v50  ;;  %v1805_v62 = vadd.f32 %v1804_v45, %v15965_v2  ;;  %v19168_v2 = vld [vmem:[#allocation25_spill] sm:$0xff]  ;;  %v19169_v37 = vld [vmem:[#allocation28_spill] sm:$0xff]  ;;  %v1923_v48 = vpop.f32.mrf.mxu1  ;;  %v19189_v45 = vld [vmem:[#allocation146_spill] sm:$0xff] }
 0x1f1   :  { %3853 = vmatpush1.msra.mxu1 %v19103_v56  ;;  %3682 = vmatprep.subr.mxu0 %v19166_v38  ;;  %v16042_v40 = vpop.f32.mrf.mxu0  ;;  %v19192_v50 = vld [vmem:[#allocation102_spill] sm:$0xff]  ;;  %v19194_v38 = vld [vmem:[#allocation104_spill] sm:$0xff] }
 0x1f2   :  { %3855 = vmatprep.subr.mxu1 %v19105_v7  ;;  %3547 = vmatprep.mubr.f32.mxu0 %v18897_v10  ;;  %v16048_v21 = vadd.f32 %v1914_v39, %v1805_v62  ;;  %v19172_v39 = vld [vmem:[#allocation38_spill] sm:$0xff] }
 0x1f3   :  { %3686 = vmatpush1.msra.mxu0 %v19167_v19  ;;  %3857 = vmatpush1.msra.mxu1 %v19107_v5  ;;  %v19193_v62 = vld [vmem:[#allocation150_spill] sm:$0xff]  ;;  %v16103_v19 = vpop.f32.mrf.mxu1 }
 0x1f4   :  { %3550 = vmatmul.mubr.f32.gmra.mxu0 %v15928_v59  ;;  %3690 = vmatprep.subr.mxu0 %v19168_v2  ;;  %v1812_v56 = vpop.f32.mrf.mxu0  ;;  %v19195_v2 = vld [vmem:[#allocation153_spill] sm:$0xff] }
 0x1f5   :  { %3859 = vmatprep.subr.mxu1 %v19109_v63  ;;  %3694 = vmatpush1.msra.mxu0 %v19169_v37  ;;  %v1813_v7 = vadd.f32 %v1812_v56, %v15981_v17  ;;  %v19173_v63 = vld [vmem:[#allocation41_spill] sm:$0xff]  ;;  %v19174_v17 = vld [vmem:[#allocation50_spill] sm:$0xff]  ;;  %v19197_v37 = vld [vmem:[#allocation156_spill] sm:$0xff] }
 0x1f6   :  { %3861 = vmatpush1.msra.mxu1 %v19111_v26  ;;  %3698 = vmatprep.subr.mxu0 %v19170_v11  ;;  %v19175_v26 = vld [vmem:[#allocation54_spill] sm:$0xff]  ;;  %v19196_v56 = vld [vmem:[#allocation113_spill] sm:$0xff]  ;;  %v16109_v11 = vpop.f32.mrf.mxu0 }
 0x1f7   :  { %3863 = vmatprep.subr.mxu1 %v19113_v34  ;;  %3702 = vmatpush1.msra.mxu0 %v19171_v42  ;;  %v16061_v5 = vadd.f32 %v1923_v48, %v1813_v7  ;;  %v19176_v34 = vld [vmem:[#allocation57_spill] sm:$0xff]  ;;  %v19198_v7 = vld [vmem:[#allocation114_spill] sm:$0xff]  ;;  %v19199_v48 = vld [vmem:[#allocation159_spill] sm:$0xff] }
 0x1f8   :  { %3865 = vmatpush1.msra.mxu1 %v19115_v16  ;;  %3706 = vmatprep.subr.mxu0 %v19172_v39  ;;  %v19177_v16 = vld [vmem:[#allocation60_spill] sm:$0xff] }
 0x1f9   :  { %3867 = vmatprep.subr.mxu1 %v19117_v20  ;;  %3710 = vmatpush1.msra.mxu0 %v19173_v63  ;;  %v19178_v20 = vld [vmem:[#allocation64_spill] sm:$0xff]  ;;  %v19200_v63 = vld [vmem:[#allocation163_spill] sm:$0xff] }
 0x1fa   :  { %3869 = vmatpush1.msra.mxu1 %v19119_v28  ;;  %3714 = vmatprep.subr.mxu0 %v19174_v17  ;;  %v19179_v28 = vld [vmem:[#allocation67_spill] sm:$0xff] }
 0x1fb   :  { %3871 = vmatprep.subr.mxu1 %v19121_v0  ;;  %3718 = vmatpush1.msra.mxu0 %v19175_v26  ;;  %v19180_v0 = vld [vmem:[#allocation70_spill] sm:$0xff] }
 0x1fc   :  { %3873 = vmatpush1.msra.mxu1 %v19123_v25  ;;  %3722 = vmatprep.subr.mxu0 %v19176_v34  ;;  %v19181_v25 = vld [vmem:[#allocation73_spill] sm:$0xff]  ;;  %v19201_v26 = vld [vmem:[#allocation166_spill] sm:$0xff] }
 0x1fd   :  { %3875 = vmatprep.subr.mxu1 %v19125_v3  ;;  %3726 = vmatpush1.msra.mxu0 %v19177_v16  ;;  %v19182_v3 = vld [vmem:[#allocation82_spill] sm:$0xff] }
 0x1fe   :  { %3877 = vmatpush1.msra.mxu1 %v19126_v27  ;;  %3730 = vmatprep.subr.mxu0 %v19178_v20  ;;  %v19183_v27 = vld [vmem:[#allocation86_spill] sm:$0xff] }
 0x1ff   :  { %3879 = vmatprep.subr.mxu1 %v19127_v1  ;;  %3734 = vmatpush1.msra.mxu0 %v19179_v28  ;;  %v19184_v1 = vld [vmem:[#allocation89_spill] sm:$0xff]  ;;  %v19202_v16 = vld [vmem:[#allocation170_spill] sm:$0xff] }
 0x200   :  { %3881 = vmatpush1.msra.mxu1 %v19128_v51  ;;  %3738 = vmatprep.subr.mxu0 %v19180_v0  ;;  %v19185_v51 = vld [vmem:[#allocation141_spill] sm:$0xff] }
 0x201   :  { %3883 = vmatprep.subr.mxu1 %v19129_v15  ;;  %3742 = vmatpush1.msra.mxu0 %v19181_v25  ;;  %v19186_v15 = vld [vmem:[#allocation92_spill] sm:$0xff]  ;;  %v19203_v0 = vld [vmem:[#allocation177_spill] sm:$0xff]  ;;  %v19204_v25 = vld [vmem:[#allocation190_spill] sm:$0xff] }
 0x202   :  { %3885 = vmatpush1.msra.mxu1 %v19130_v18  ;;  %3746 = vmatprep.subr.mxu0 %v19182_v3  ;;  %v19188_v18 = vld [vmem:[#allocation96_spill] sm:$0xff] }
 0x203   :  { %3887 = vmatprep.subr.mxu1 %v19131_v58  ;;  %3750 = vmatpush1.msra.mxu0 %v19183_v27  ;;  %v19190_v58 = vld [vmem:[#allocation99_spill] sm:$0xff]  ;;  %v19205_v27 = vld [vmem:[#allocation193_spill] sm:$0xff] }
 0x204   :  { %3889 = vmatpush1.msra.mxu1 %v19132_v60  ;;  %3922 = vmatprep.mubr.f32.mxu1 %v18897_v10  ;;  %v19191_v60 = vld [vmem:[#allocation148_spill] sm:$0xff] }
 0x205   :  { %3754 = vmatprep.subr.mxu0 %v19184_v1  ;;  %3924 = vmatmul.mubr.f32.vlgmr.msra.gmra.mxu1 %v15898_v47  ;;  %v2186_v42 = vpop.f32.mrf.mxu1 }
 0x206   :  { %4061 = vmatprep.subr.mxu1 %v19185_v51  ;;  %3758 = vmatpush1.msra.mxu0 %v19186_v15  ;;  %v19206_v51 = vld [vmem:[#allocation196_spill] sm:$0xff] }
 0x207   :  { %4067 = vmatpush1.msra.mxu1 %v19187_v41  ;;  %3762 = vmatprep.subr.mxu0 %v19188_v18  ;;  %v16124_v20 = vpop.f32.mrf.mxu1  ;;  %v19208_v41 = vld [vmem:[#allocation199_spill] sm:$0xff]  ;;  %v19209_v18 = vld [vmem:[#allocation202_spill] sm:$0xff] }
 0x208   :  { %4073 = vmatprep.subr.mxu1 %v19189_v45  ;;  %3766 = vmatpush1.msra.mxu0 %v19190_v58  ;;  %v19211_v45 = vld [vmem:[#allocation206_spill] sm:$0xff]  ;;  %v19212_v58 = vld [vmem:[#allocation209_spill] sm:$0xff] }
 0x209   :  { %3929 = vmatprep.mubr.f32.mxu1 %v18897_v10  ;;  %4079 = vmatpush1.msra.mxu1 %v19191_v60  ;;  %v19213_v60 = vld [vmem:[#allocation210_spill] sm:$0xff] }
 0x20a   :  { %3770 = vmatprep.subr.mxu0 %v19192_v50  ;;  %3931 = vmatmul.mubr.f32.gmra.mxu1 %v15914_v57  ;;  %v2193_v1 = vpop.f32.mrf.mxu1  ;;  %v19214_v50 = vld [vmem:[#allocation152_spill] sm:$0xff] }
 0x20b   :  { %4085 = vmatprep.subr.mxu1 %v19193_v62  ;;  %3774 = vmatpush1.msra.mxu0 %v19194_v38  ;;  %v19215_v62 = vld [vmem:[#allocation211_spill] sm:$0xff]  ;;  %v19217_v38 = vld [vmem:[#allocation212_spill] sm:$0xff] }
 0x20c   :  { %4091 = vmatpush1.msra.mxu1 %v19195_v2  ;;  %3778 = vmatprep.subr.mxu0 %v19196_v56  ;;  %v19218_v2 = vld [vmem:[#allocation158_spill] sm:$0xff]  ;;  %v19219_v56 = vld [vmem:[#allocation213_spill] sm:$0xff] }
 0x20d   :  { %4097 = vmatprep.subr.mxu1 %v19197_v37  ;;  %3782 = vmatpush1.msra.mxu0 %v19198_v7  ;;  %v19221_v37 = vld [vmem:[#allocation214_spill] sm:$0xff]  ;;  %v19223_v7 = vld [vmem:[#allocation169_spill] sm:$0xff] }
 0x20e   :  { %3815 = vmatprep.mubr.f32.mxu0 %v18897_v10  ;;  %4103 = vmatpush1.msra.mxu1 %v19199_v48  ;;  %v19224_v48 = vld [vmem:[#allocation173_spill] sm:$0xff] }
 0x20f   :  { %3817 = vmatmul.mubr.f32.vlgmr.msra.gmra.mxu0 %v15898_v47  ;;  %3942 = vmatprep.subr.mxu0 %v15208_v61  ;;  %v2079_v39 = vpop.f32.mrf.mxu0 }
 0x210   :  { %4109 = vmatprep.subr.mxu1 %v19200_v63  ;;  %3944 = vmatpush1.msra.mxu0 %v15215_v9  ;;  %v2080_v17 = vadd.f32 %v2079_v39, %v16048_v21  ;;  %v16177_v39 = vpop.f32.mrf.mxu1  ;;  %v19226_v63 = vld [vmem:[#allocation180_spill] sm:$0xff] }
 0x211   :  { %4115 = vmatpush1.msra.mxu1 %v19201_v26  ;;  %3946 = vmatprep.subr.mxu0 %v15222_v32  ;;  %v16120_v34 = vpop.f32.mrf.mxu0  ;;  %v19228_v26 = vld [vmem:[#allocation186_spill] sm:$0xff] }
 0x212   :  { %4121 = vmatprep.subr.mxu1 %v19202_v16  ;;  %3822 = vmatprep.mubr.f32.mxu0 %v18897_v10  ;;  %v16126_v28 = vadd.f32 %v2186_v42, %v2080_v17  ;;  %v19225_v42 = vld [vmem:[#allocation176_spill] sm:$0xff]  ;;  %v19227_v17 = vld [vmem:[#allocation183_spill] sm:$0xff] }
 0x213   :  { %3948 = vmatpush1.msra.mxu0 %v15229_v44  ;;  %4127 = vmatpush1.msra.mxu1 %v19203_v0  ;;  %v19229_v0 = vld [vmem:[#allocation189_spill] sm:$0xff] }
 0x214   :  { %3824 = vmatmul.mubr.f32.gmra.mxu0 %v15914_v57  ;;  %3950 = vmatprep.subr.mxu0 %v15239_v24  ;;  %v2086_v21 = vpop.f32.mrf.mxu0 }
 0x215   :  { %4133 = vmatprep.subr.mxu1 %v19204_v25  ;;  %3952 = vmatpush1.msra.mxu0 %v15249_v46  ;;  %v2087_v3 = vadd.f32 %v2086_v21, %v16061_v5  ;;  %v19210_v5 = vld [vmem:[#allocation204_spill] sm:$0xff]  ;;  %v19230_v25 = vld [vmem:[#allocation121_spill] sm:$0xff] }
 0x216   :  { %4139 = vmatpush1.msra.mxu1 %v19205_v27  ;;  %3954 = vmatprep.subr.mxu0 %v15259_v29  ;;  %v16187_v21 = vpop.f32.mrf.mxu0 }
 0x217   :  { %4145 = vmatprep.subr.mxu1 %v19206_v51  ;;  %3956 = vmatpush1.msra.mxu0 %v15269_v14  ;;  %v16139_v15 = vadd.f32 %v2193_v1, %v2087_v3  ;;  %v19231_v3 = vld [vmem:[#allocation122_spill] sm:$0xff]  ;;  %v19232_v1 = vld [vmem:[#allocation123_spill] sm:$0xff] }
 0x218   :  { %4151 = vmatpush1.msra.mxu1 %v19208_v41  ;;  %3958 = vmatprep.subr.mxu0 %v15282_v31 }
 0x219   :  { %19207 = vst [vmem:[#allocation118_spill] sm:$0xff] %v16139_v15  ;;  %4157 = vmatprep.subr.mxu1 %v19209_v18  ;;  %3960 = vmatpush1.msra.mxu0 %v15292_v13  ;;  %v19233_v18 = vld [vmem:[#allocation124_spill] sm:$0xff] }
 0x21a   :  { %4163 = vmatpush1.msra.mxu1 %v19210_v5  ;;  %3962 = vmatprep.subr.mxu0 %v15305_v36 }
 0x21b   :  { %4169 = vmatprep.subr.mxu1 %v19211_v45  ;;  %3964 = vmatpush1.msra.mxu0 %v15325_v30  ;;  %v19234_v45 = vld [vmem:[#allocation125_spill] sm:$0xff] }
 0x21c   :  { %4175 = vmatpush1.msra.mxu1 %v15666_v35  ;;  %3966 = vmatprep.subr.mxu0 %v15360_v22  ;;  %v19216_v35 = vld [vmem:[#allocation155_spill] sm:$0xff] }
 0x21d   :  { %4181 = vmatprep.subr.mxu1 %v19212_v58  ;;  %3968 = vmatpush1.msra.mxu0 %v15389_v55  ;;  %v19235_v58 = vld [vmem:[#allocation127_spill] sm:$0xff] }
 0x21e   :  { %4187 = vmatpush1.msra.mxu1 %v15681_v8  ;;  %3970 = vmatprep.subr.mxu0 %v15403_v49  ;;  %v19220_v8 = vld [vmem:[#allocation162_spill] sm:$0xff] }
 0x21f   :  { %4193 = vmatprep.subr.mxu1 %v15687_v52  ;;  %3972 = vmatpush1.msra.mxu0 %v15417_v43  ;;  %v19222_v52 = vld [vmem:[#allocation165_spill] sm:$0xff] }
 0x220   :  { %4199 = vmatpush1.msra.mxu1 %v19213_v60  ;;  %3974 = vmatprep.subr.mxu0 %v19214_v50 }
 0x221   :  { %4205 = vmatprep.subr.mxu1 %v19215_v62  ;;  %3976 = vmatpush1.msra.mxu0 %v19216_v35 }
 0x222   :  { %4211 = vmatpush1.msra.mxu1 %v19217_v38  ;;  %3978 = vmatprep.subr.mxu0 %v19218_v2  ;;  %v19236_v38 = vld [vmem:[#allocation129_spill] sm:$0xff] }
 0x223   :  { %4217 = vmatprep.subr.mxu1 %v19219_v56  ;;  %3980 = vmatpush1.msra.mxu0 %v19220_v8 }
 0x224   :  { %4223 = vmatpush1.msra.mxu1 %v19221_v37  ;;  %4256 = vmatprep.mubr.f32.mxu1 %v18897_v10  ;;  %v19237_v37 = vld [vmem:[#allocation131_spill] sm:$0xff] }
 0x225   :  { %3982 = vmatprep.subr.mxu0 %v19222_v52  ;;  %4258 = vmatmul.mubr.f32.vlgmr.msra.gmra.mxu1 %v15898_v47 }
 0x226   :  { %4413 = vmatprep.subr.mxu1 %v15208_v61  ;;  %3984 = vmatpush1.msra.mxu0 %v19223_v7 }
 0x227   :  { %4415 = vmatpush1.msra.mxu1 %v15215_v9  ;;  %3986 = vmatprep.subr.mxu0 %v19224_v48  ;;  %v2549_v16 = vpop.f32.mrf.mxu1 }
 0x228   :  { %4417 = vmatprep.subr.mxu1 %v15222_v32  ;;  %3988 = vmatpush1.msra.mxu0 %v19225_v42 }
 0x229   :  { %4263 = vmatprep.mubr.f32.mxu1 %v18897_v10  ;;  %4419 = vmatpush1.msra.mxu1 %v15229_v44  ;;  %v16195_v51 = vpop.f32.mrf.mxu1 }
 0x22a   :  { %3990 = vmatprep.subr.mxu0 %v19226_v63  ;;  %4265 = vmatmul.mubr.f32.gmra.mxu1 %v15914_v57 }
 0x22b   :  { %4421 = vmatprep.subr.mxu1 %v15239_v24  ;;  %3992 = vmatpush1.msra.mxu0 %v19227_v17  ;;  %v2556_v60 = vpop.f32.mrf.mxu1 }
 0x22c   :  { %4423 = vmatpush1.msra.mxu1 %v15249_v46  ;;  %3994 = vmatprep.subr.mxu0 %v19228_v26 }
 0x22d   :  { %4425 = vmatprep.subr.mxu1 %v15259_v29  ;;  %3996 = vmatpush1.msra.mxu0 %v19229_v0 }
 0x22e   :  { %4029 = vmatprep.mubr.f32.mxu0 %v18897_v10  ;;  %4427 = vmatpush1.msra.mxu1 %v15269_v14 }
 0x22f   :  { %4035 = vmatmul.mubr.f32.vlgmr.msra.gmra.mxu0 %v19230_v25  ;;  %4277 = vmatprep.subr.mxu0 %v19231_v3  ;;  %v2326_v27 = vpop.f32.mrf.mxu0  ;;  %v19240_v25 = vld [vmem:[#allocation137_spill] sm:$0xff]  ;;  %v19241_v3 = vld [vmem:[#allocation139_spill] sm:$0xff] }
 0x230   :  { %4429 = vmatprep.subr.mxu1 %v15282_v31  ;;  %4280 = vmatpush1.msra.mxu0 %v19232_v1  ;;  %v16197_v41 = vadd.f32 %v2549_v16, %v2326_v27  ;;  %v19238_v16 = vld [vmem:[#allocation133_spill] sm:$0xff]  ;;  %v19242_v27 = vld [vmem:[#allocation143_spill] sm:$0xff] }
 0x231   :  { %4431 = vmatpush1.msra.mxu1 %v15292_v13  ;;  %4283 = vmatprep.subr.mxu0 %v19233_v18  ;;  %v16201_v5 = vpop.f32.mrf.mxu0  ;;  %v19243_v1 = vld [vmem:[#allocation149_spill] sm:$0xff]  ;;  %v19244_v18 = vld [vmem:[#allocation154_spill] sm:$0xff] }
 0x232   :  { %4433 = vmatprep.subr.mxu1 %v15305_v36  ;;  %4040 = vmatprep.mubr.f32.mxu0 %v18897_v10 }
 0x233   :  { %4286 = vmatpush1.msra.mxu0 %v19234_v45  ;;  %4435 = vmatpush1.msra.mxu1 %v15325_v30  ;;  %v19245_v45 = vld [vmem:[#allocation157_spill] sm:$0xff] }
 0x234   :  { %4046 = vmatmul.mubr.f32.gmra.mxu0 %v15969_v6  ;;  %4289 = vmatprep.subr.mxu0 %v19235_v58  ;;  %v2337_v62 = vpop.f32.mrf.mxu0  ;;  %v19239_v6 = vld [vmem:[#allocation135_spill] sm:$0xff]  ;;  %v19246_v58 = vld [vmem:[#allocation161_spill] sm:$0xff] }
 0x235   :  { %4437 = vmatprep.subr.mxu1 %v15360_v22  ;;  %4292 = vmatpush1.msra.mxu0 %v19236_v38  ;;  %v16211_v56 = vadd.f32 %v2556_v60, %v2337_v62  ;;  %v19247_v60 = vld [vmem:[#allocation164_spill] sm:$0xff] }
 0x236   :  { %4439 = vmatpush1.msra.mxu1 %v15389_v55  ;;  %4295 = vmatprep.subr.mxu0 %v19237_v37  ;;  %v19248_v62 = vld [vmem:[#allocation168_spill] sm:$0xff]  ;;  %v19250_v37 = vld [vmem:[#allocation175_spill] sm:$0xff] }
 0x237   :  { %4441 = vmatprep.subr.mxu1 %v15403_v49  ;;  %4298 = vmatpush1.msra.mxu0 %v19238_v16  ;;  %v19249_v38 = vld [vmem:[#allocation172_spill] sm:$0xff]  ;;  %v19251_v16 = vld [vmem:[#allocation179_spill] sm:$0xff] }
 0x238   :  { %4443 = vmatpush1.msra.mxu1 %v15417_v43  ;;  %4301 = vmatprep.subr.mxu0 %v19239_v6  ;;  %v19252_v6 = vld [vmem:[#allocation182_spill] sm:$0xff] }
 0x239   :  { %4445 = vmatprep.subr.mxu1 %v19214_v50  ;;  %4304 = vmatpush1.msra.mxu0 %v19240_v25  ;;  %v19253_v25 = vld [vmem:[#allocation185_spill] sm:$0xff] }
 0x23a   :  { %4447 = vmatpush1.msra.mxu1 %v19216_v35  ;;  %4307 = vmatprep.subr.mxu0 %v19241_v3  ;;  %v19254_v3 = vld [vmem:[#allocation188_spill] sm:$0xff] }
 0x23b   :  { %4449 = vmatprep.subr.mxu1 %v19218_v2  ;;  %4310 = vmatpush1.msra.mxu0 %v19242_v27  ;;  %v19255_v27 = vld [vmem:[#allocation192_spill] sm:$0xff] }
 0x23c   :  { %4451 = vmatpush1.msra.mxu1 %v19220_v8  ;;  %4313 = vmatprep.subr.mxu0 %v19243_v1  ;;  %v16263_v1 = vpop.f32.mrf.mxu0 }
 0x23d   :  { %4453 = vmatprep.subr.mxu1 %v19222_v52  ;;  %4316 = vmatpush1.msra.mxu0 %v19244_v18  ;;  %v19261_v18 = vld [vmem:[#allocation130_spill] sm:$0xff] }
 0x23e   :  { %4455 = vmatpush1.msra.mxu1 %v19223_v7  ;;  %4319 = vmatprep.subr.mxu0 %v19245_v45 }
 0x23f   :  { %4457 = vmatprep.subr.mxu1 %v19224_v48  ;;  %4322 = vmatpush1.msra.mxu0 %v19246_v58  ;;  %v19262_v58 = vld [vmem:[#allocation132_spill] sm:$0xff] }
 0x240   :  { %4459 = vmatpush1.msra.mxu1 %v19225_v42  ;;  %4325 = vmatprep.subr.mxu0 %v19247_v60  ;;  %v19265_v60 = vld [vmem:[#allocation138_spill] sm:$0xff] }
 0x241   :  { %4461 = vmatprep.subr.mxu1 %v19226_v63  ;;  %4328 = vmatpush1.msra.mxu0 %v19248_v62 }
 0x242   :  { %4463 = vmatpush1.msra.mxu1 %v19227_v17  ;;  %4331 = vmatprep.subr.mxu0 %v19249_v38  ;;  %v19266_v38 = vld [vmem:[#allocation140_spill] sm:$0xff] }
 0x243   :  { %4465 = vmatprep.subr.mxu1 %v19228_v26  ;;  %4334 = vmatpush1.msra.mxu0 %v19250_v37  ;;  %v19283_v37 = vld [vmem:[#allocation203_spill] sm:$0xff] }
 0x244   :  { %4467 = vmatpush1.msra.mxu1 %v19229_v0  ;;  %4500 = vmatprep.mubr.f32.mxu1 %v18897_v10 }
 0x245   :  { %4337 = vmatprep.subr.mxu0 %v19251_v16  ;;  %4504 = vmatmul.mubr.f32.vlgmr.msra.gmra.mxu1 %v15923_v4  ;;  %v16257_v4 = vpop.f32.mrf.mxu1  ;;  %v12354_v16 = vld [vmem:[%s18435_s5 + $0xf] ss:$0 sm:$0xff] }
 0x246   :  { %4687 = vmatprep.subr.mxu1 %v15208_v61  ;;  %4340 = vmatpush1.msra.mxu0 %v19252_v6  ;;  %v19256_v61 = vld [vmem:[#allocation195_spill] sm:$0xff]  ;;  %v19284_v6 = vld [vmem:[#allocation205_spill] sm:$0xff] }
 0x247   :  { %4689 = vmatpush1.msra.mxu1 %v15215_v9  ;;  %4343 = vmatprep.subr.mxu0 %v19253_v25  ;;  %v19257_v9 = vld [vmem:[#allocation198_spill] sm:$0xff]  ;;  %v19285_v25 = vld [vmem:[#allocation207_spill] sm:$0xff] }
 0x248   :  { %4691 = vmatprep.subr.mxu1 %v15222_v32  ;;  %4346 = vmatpush1.msra.mxu0 %v19254_v3  ;;  %v19258_v32 = vld [vmem:[#allocation201_spill] sm:$0xff]  ;;  %v12384_v3 = vld [vmem:[%s18435_s5 + $0x1e] ss:$0 sm:$0xff] }
 0x249   :  { %4509 = vmatprep.mubr.f32.mxu1 %v18897_v10  ;;  %4693 = vmatpush1.msra.mxu1 %v15229_v44  ;;  %v2795_v44 = vpop.f32.mrf.mxu1 }
 0x24a   :  { %4349 = vmatprep.subr.mxu0 %v19255_v27  ;;  %4513 = vmatmul.mubr.f32.gmra.mxu1 %v15943_v54 }
 0x24b   :  { %4695 = vmatprep.subr.mxu1 %v15239_v24  ;;  %4352 = vmatpush1.msra.mxu0 %v19256_v61  ;;  %v19259_v24 = vld [vmem:[#allocation126_spill] sm:$0xff]  ;;  %v19286_v61 = vld [vmem:[#allocation208_spill] sm:$0xff] }
 0x24c   :  { %4697 = vmatpush1.msra.mxu1 %v15249_v46  ;;  %4355 = vmatprep.subr.mxu0 %v19257_v9  ;;  %v19260_v46 = vld [vmem:[#allocation128_spill] sm:$0xff] }
 0x24d   :  { %4699 = vmatprep.subr.mxu1 %v15259_v29  ;;  %4358 = vmatpush1.msra.mxu0 %v19258_v32 }
 0x24e   :  { %4391 = vmatprep.mubr.f32.mxu0 %v18897_v10  ;;  %4701 = vmatpush1.msra.mxu1 %v15269_v14  ;;  %v16278_v14 = vpop.f32.mrf.mxu1 }
 0x24f   :  { %4394 = vmatmul.mubr.f32.vlgmr.msra.gmra.mxu0 %v15910_v23  ;;  %4526 = vmatprep.subr.mxu0 %v19259_v24  ;;  %v2685_v54 = vpop.f32.mrf.mxu0 }
 0x250   :  { %4703 = vmatprep.subr.mxu1 %v15282_v31  ;;  %4530 = vmatpush1.msra.mxu0 %v19260_v46  ;;  %v2686_v29 = vadd.f32 %v2685_v54, %v16197_v41  ;;  %v19263_v31 = vld [vmem:[#allocation134_spill] sm:$0xff]  ;;  %v19264_v41 = vld [vmem:[#allocation136_spill] sm:$0xff]  ;;  %v2804_v62 = vpop.f32.mrf.mxu1 }
 0x251   :  { %4705 = vmatpush1.msra.mxu1 %v15292_v13  ;;  %4534 = vmatprep.subr.mxu0 %v19261_v18  ;;  %v16274_v45 = vpop.f32.mrf.mxu0 }
 0x252   :  { %4707 = vmatprep.subr.mxu1 %v15305_v36  ;;  %4399 = vmatprep.mubr.f32.mxu0 %v18897_v10  ;;  %v16280_v23 = vadd.f32 %v2795_v44, %v2686_v29  ;;  %v16347_v27 = vpop.f32.mrf.mxu1 }
 0x253   :  { %4538 = vmatpush1.msra.mxu0 %v19262_v58  ;;  %4709 = vmatpush1.msra.mxu1 %v15325_v30 }
 0x254   :  { %4402 = vmatmul.mubr.f32.gmra.mxu0 %v15928_v59  ;;  %4542 = vmatprep.subr.mxu0 %v19263_v31  ;;  %v2693_v13 = vpop.f32.mrf.mxu0  ;;  %v19267_v59 = vld [vmem:[#allocation142_spill] sm:$0xff] }
 0x255   :  { %4711 = vmatprep.subr.mxu1 %v15360_v22  ;;  %4546 = vmatpush1.msra.mxu0 %v19264_v41  ;;  %v2694_v36 = vadd.f32 %v2693_v13, %v16211_v56  ;;  %v19268_v22 = vld [vmem:[#allocation145_spill] sm:$0xff]  ;;  %v19270_v56 = vld [vmem:[#allocation151_spill] sm:$0xff] }
 0x256   :  { %4713 = vmatpush1.msra.mxu1 %v15389_v55  ;;  %4550 = vmatprep.subr.mxu0 %v19265_v60  ;;  %v19269_v55 = vld [vmem:[#allocation147_spill] sm:$0xff]  ;;  %v16352_v9 = vpop.f32.mrf.mxu0 }
 0x257   :  { %4715 = vmatprep.subr.mxu1 %v15403_v49  ;;  %4554 = vmatpush1.msra.mxu0 %v19266_v38  ;;  %v16293_v30 = vadd.f32 %v2804_v62, %v2694_v36  ;;  %v19271_v49 = vld [vmem:[#allocation160_spill] sm:$0xff] }
 0x258   :  { %4717 = vmatpush1.msra.mxu1 %v15417_v43  ;;  %4558 = vmatprep.subr.mxu0 %v19267_v59  ;;  %v19272_v43 = vld [vmem:[#allocation167_spill] sm:$0xff] }
 0x259   :  { %4719 = vmatprep.subr.mxu1 %v19214_v50  ;;  %4562 = vmatpush1.msra.mxu0 %v19268_v22  ;;  %v19273_v50 = vld [vmem:[#allocation171_spill] sm:$0xff] }
 0x25a   :  { %4721 = vmatpush1.msra.mxu1 %v19216_v35  ;;  %4566 = vmatprep.subr.mxu0 %v19269_v55  ;;  %v19274_v35 = vld [vmem:[#allocation174_spill] sm:$0xff] }
 0x25b   :  { %4723 = vmatprep.subr.mxu1 %v19218_v2  ;;  %4570 = vmatpush1.msra.mxu0 %v19270_v56  ;;  %v19275_v2 = vld [vmem:[#allocation178_spill] sm:$0xff] }
 0x25c   :  { %4725 = vmatpush1.msra.mxu1 %v19220_v8  ;;  %4574 = vmatprep.subr.mxu0 %v19271_v49  ;;  %v19276_v8 = vld [vmem:[#allocation181_spill] sm:$0xff] }
 0x25d   :  { %4727 = vmatprep.subr.mxu1 %v19222_v52  ;;  %4578 = vmatpush1.msra.mxu0 %v19272_v43  ;;  %v19277_v52 = vld [vmem:[#allocation184_spill] sm:$0xff] }
 0x25e   :  { %4729 = vmatpush1.msra.mxu1 %v19223_v7  ;;  %4582 = vmatprep.subr.mxu0 %v19273_v50  ;;  %v19278_v7 = vld [vmem:[#allocation187_spill] sm:$0xff] }
 0x25f   :  { %4731 = vmatprep.subr.mxu1 %v19224_v48  ;;  %4586 = vmatpush1.msra.mxu0 %v19274_v35  ;;  %v19279_v48 = vld [vmem:[#allocation191_spill] sm:$0xff] }
 0x260   :  { %4733 = vmatpush1.msra.mxu1 %v19225_v42  ;;  %4590 = vmatprep.subr.mxu0 %v19275_v2  ;;  %v12386_v42 = vld [vmem:[%s18435_s5 + $0x1f] ss:$0 sm:$0xff] }
 0x261   :  { %4735 = vmatprep.subr.mxu1 %v19226_v63  ;;  %4594 = vmatpush1.msra.mxu0 %v19276_v8  ;;  %v19280_v63 = vld [vmem:[#allocation194_spill] sm:$0xff] }
 0x262   :  { %4737 = vmatpush1.msra.mxu1 %v19227_v17  ;;  %4598 = vmatprep.subr.mxu0 %v19277_v52  ;;  %v19281_v17 = vld [vmem:[#allocation197_spill] sm:$0xff] }
 0x263   :  { %4739 = vmatprep.subr.mxu1 %v19228_v26  ;;  %4602 = vmatpush1.msra.mxu0 %v19278_v7  ;;  %v12370_v26 = vld [vmem:[%s18435_s5 + $0x17] ss:$0 sm:$0xff] }
 0x264   :  { %4741 = vmatpush1.msra.mxu1 %v19229_v0  ;;  %4774 = vmatprep.mubr.f32.mxu1 %v18897_v10  ;;  %v19282_v0 = vld [vmem:[#allocation200_spill] sm:$0xff] }
 0x265   :  { %4606 = vmatprep.subr.mxu0 %v19279_v48  ;;  %4776 = vmatmul.mubr.f32.vlgmr.msra.gmra.mxu1 %v15898_v47  ;;  %v3067_v32 = vpop.f32.mrf.mxu1 }
 0x266   :  { %4610 = vmatpush1.msra.mxu0 %v19280_v63  ;;  %4781 = vmatprep.mubr.f32.mxu1 %v18897_v10 }
 0x267   :  { %4614 = vmatprep.subr.mxu0 %v19281_v17  ;;  %4667 = vmatprep.mubr.f32.mxu0 %v18897_v10  ;;  %v16361_v46 = vpop.f32.mrf.mxu1 }
 0x268   :  { %4618 = vmatpush1.msra.mxu0 %v19282_v0  ;;  %5167 = vrot.lane.b32.xlu0 %v12386_v42, %s14132_s3 }
 0x269   :  { %4622 = vmatprep.subr.mxu0 %v19283_v37  ;;  %4783 = vmatmul.mubr.f32.gmra.mxu1 %v15914_v57 }
 0x26a   :  { %4626 = vmatpush1.msra.mxu0 %v19284_v6  ;;  %5073 = vrot.lane.b32.xlu1 %v12370_v26, %s14133_s2  ;;  %v3074_v31 = vpop.f32.mrf.mxu1 }
 0x26b   :  { %4630 = vmatprep.subr.mxu0 %v19285_v25  ;;  %13102 = vmatprep.subr.mxu1 %v18897_v10 }
 0x26c   :  { %4634 = vmatpush1.msra.mxu0 %v19286_v61  ;;  %4981 = vrot.lane.b32.xlu0 %v12354_v16, %s14134_s20  ;;  %v16372_v41 = vpop.f32.mrf.mxu1 }
 0x26d   :  { %4669 = vmatmul.mubr.f32.vlgmr.msra.gmra.mxu0 %v15898_v47  ;;  %13095 = vmatprep.subr.mxu0 %v18897_v10 }
 0x26e   :  { %4674 = vmatprep.mubr.f32.mxu0 %v18897_v10  ;;  %5155 = vrot.lane.b32.xlu1 %v12384_v3, %s14134_s20 }
 0x26f   :  { %v2960_v44 = vpop.f32.mrf.mxu0 }
 0x270   :  { %v2961_v24 = vadd.f32 %v2960_v44, %v16280_v23 }
 0x271   :  { %4676 = vmatmul.mubr.f32.gmra.mxu0 %v15914_v57  ;;  %v16359_v54 = vpop.f32.mrf.mxu0 }
 0x272   :  { %v16363_v29 = vadd.f32 %v3067_v32, %v2961_v24 }
 0x274   :  { %v2967_v18 = vpop.f32.mrf.mxu0 }
 0x275   :  { %v2968_v58 = vadd.f32 %v2967_v18, %v16293_v30 }
 0x276   :  { %v16374_v57 = vpop.f32.mrf.mxu0 }
 0x277   :  { %v16368_v13 = vadd.f32 %v3074_v31, %v2968_v58 }
 0x279   :  { %19287 = vst [vmem:[#allocation117_spill] sm:$0xff] %v16368_v13 }
 0x285   :  { %v3407_v36 = vpop.f32.mrf.mxu1 }
 0x287   :  { %v3409_v59 = vpop.f32.mrf.mxu1 }
 0x28a   :  { %v16378_v55 = vpop.f32.mrf.mxu1 }
 0x28c   :  { %v3416_v56 = vpop.f32.mrf.mxu1 }
 0x28f   :  { %v3184_v60 = vpop.f32.mrf.mxu0 }
 0x290   :  { %v3408_v62 = vadd.f32 %v3407_v36, %v3184_v60 }
 0x291   :  { %v3186_v38 = vpop.f32.mrf.mxu0 }
 0x292   :  { %v3410_v13 = vadd.f32 %v3409_v59, %v3186_v38 }
 0x294   :  { %v16376_v22 = vpop.f32.mrf.mxu0 }
 0x296   :  { %v3197_v30 = vpop.f32.mrf.mxu0 }
 0x2a5   :  { %v3653_v50 = vpop.f32.mrf.mxu1 }
 0x2a7   :  { %v3655_v8 = vpop.f32.mrf.mxu1 }
 0x2aa   :  { %v16382_v7 = vpop.f32.mrf.mxu1 }
 0x2ac   :  { %v3664_v42 = vpop.f32.mrf.mxu1 }
 0x2af   :  { %v3543_v49 = vpop.f32.mrf.mxu0 }
 0x2b0   :  { %v3544_v43 = vadd.f32 %v3543_v49, %v3408_v62 }
 0x2b1   :  { %v3545_v2 = vpop.f32.mrf.mxu0 }
 0x2b2   :  { %v3654_v35 = vadd.f32 %v3653_v50, %v3544_v43 }
 0x2b4   :  { %v16380_v52 = vpop.f32.mrf.mxu0 }
 0x2b6   :  { %v3553_v48 = vpop.f32.mrf.mxu0 }
 0x2c5   :  { %v3925_v26 = vpop.f32.mrf.mxu1 }
 0x2c7   :  { %v3927_v37 = vpop.f32.mrf.mxu1 }
 0x2ca   :  { %v16386_v6 = vpop.f32.mrf.mxu1 }
 0x2cb   :  { %19288 = vst [vmem:[#allocation11_spill] sm:$0xff] %v16386_v6  ;;  %v3546_v6 = vadd.f32 %v3545_v2, %v3410_v13 }
 0x2cc   :  { %v16390_v3 = vpop.f32.mrf.mxu1 }
 0x2cd   :  { %v3656_v13 = vadd.f32 %v3655_v8, %v3546_v6 }
 0x2cf   :  { %v3818_v63 = vpop.f32.mrf.mxu0 }
 0x2d0   :  { %v3819_v17 = vadd.f32 %v3818_v63, %v3654_v35 }
 0x2d1   :  { %v3820_v16 = vpop.f32.mrf.mxu0 }
 0x2d2   :  { %v16384_v0 = vadd.f32 %v3925_v26, %v3819_v17  ;;  %v2552_v17 = vadd.f32 %v16195_v51, %v16201_v5  ;;  %v1678_v51 = vadd.f32 %v16025_v33, %v16031_v53  ;;  %v3821_v33 = vadd.f32 %v3820_v16, %v3656_v13 }
 0x2d4   :  { %v16388_v25 = vpop.f32.mrf.mxu0  ;;  %v2688_v10 = vadd.f32 %v16274_v45, %v2552_v17  ;;  %v1815_v38 = vadd.f32 %v16109_v11, %v1678_v51  ;;  %v3928_v6 = vadd.f32 %v3927_v37, %v3821_v33  ;;  %v12376_v33 = vld [vmem:[%s18435_s5 + $0x1a] ss:$0 sm:$0xff] }
 0x2d5   :  { %19289 = vst [vmem:[#allocation12_spill] sm:$0xff] %v16388_v25 }
 0x2d6   :  { %v3827_v61 = vpop.f32.mrf.mxu0  ;;  %v2798_v5 = vadd.f32 %v16278_v14, %v2688_v10  ;;  %v1926_v11 = vadd.f32 %v16103_v19, %v1815_v38 }
 0x2d8   :  { %v2089_v16 = vadd.f32 %v16187_v21, %v1926_v11 }
 0x2da   :  { %v2196_v37 = vadd.f32 %v16177_v39, %v2089_v16 }
 0x2e5   :  { %v4259_v32 = vpop.f32.mrf.mxu1 }
 0x2e7   :  { %v4261_v58 = vpop.f32.mrf.mxu1 }
 0x2ea   :  { %v16394_v36 = vpop.f32.mrf.mxu1 }
 0x2ec   :  { %v4268_v62 = vpop.f32.mrf.mxu1 }
 0x2ef   :  { %v4036_v44 = vpop.f32.mrf.mxu0 }
 0x2f0   :  { %v4260_v24 = vadd.f32 %v4259_v32, %v4036_v44  ;;  %v19290_v32 = vld [vmem:[#allocation120_spill] sm:$0xff]  ;;  %v19291_v44 = vld [vmem:[#allocation119_spill] sm:$0xff] }
 0x2f1   :  { %v4038_v18 = vpop.f32.mrf.mxu0  ;;  %v1671_v47 = vadd.f32 %v19291_v44, %v19290_v32  ;;  %v3417_v44 = vadd.f32 %v3416_v56, %v3197_v30 }
 0x2f3   :  { %v1807_v15 = vadd.f32 %v16042_v40, %v1671_v47  ;;  %v2963_v47 = vadd.f32 %v16359_v54, %v2798_v5 }
 0x2f4   :  { %v16392_v31 = vpop.f32.mrf.mxu0 }
 0x2f5   :  { %v1917_v40 = vadd.f32 %v16046_v12, %v1807_v15  ;;  %v3070_v12 = vadd.f32 %v16361_v46, %v2963_v47  ;;  %v4267_v39 = vadd.f32 %v16394_v36, %v16392_v31  ;;  %v12346_v47 = vld [vmem:[%s18435_s5 + $0xb] ss:$0 sm:$0xff] }
 0x2f6   :  { %v4049_v60 = vpop.f32.mrf.mxu0 }
 0x2f7   :  { %v2082_v2 = vadd.f32 %v16120_v34, %v1917_v40  ;;  %v19293_v40 = vld [vmem:[#allocation12_spill] sm:$0xff] }
 0x2f9   :  { %v2189_v34 = vadd.f32 %v16124_v20, %v2082_v2 }
 0x305   :  { %v4505_v50 = vpop.f32.mrf.mxu1 }
 0x307   :  { %v4507_v63 = vpop.f32.mrf.mxu1 }
 0x30a   :  { %v16398_v26 = vpop.f32.mrf.mxu1 }
 0x30c   :  { %v4516_v25 = vpop.f32.mrf.mxu1 }
 0x30f   :  { %v4395_v49 = vpop.f32.mrf.mxu0 }
 0x310   :  { %v4396_v43 = vadd.f32 %v4395_v49, %v4260_v24  ;;  %v2559_v49 = vadd.f32 %v16257_v4, %v16263_v1  ;;  %v3554_v4 = vadd.f32 %v3553_v48, %v3417_v44  ;;  %v4269_v1 = vadd.f32 %v4268_v62, %v4049_v60  ;;  %v12382_v44 = vld [vmem:[%s18435_s5 + $0x1d] ss:$0 sm:$0xff] }
 0x311   :  { %v4397_v23 = vpop.f32.mrf.mxu0 }
 0x312   :  { %v4506_v35 = vadd.f32 %v4505_v50, %v4396_v43  ;;  %v4262_v43 = vadd.f32 %v4261_v58, %v4038_v18  ;;  %v2696_v32 = vadd.f32 %v16352_v9, %v2559_v49  ;;  %v3665_v56 = vadd.f32 %v3664_v42, %v3554_v4  ;;  %v12338_v4 = vld [vmem:[%s18435_s5 + $0x7] ss:$0 sm:$0xff] }
 0x314   :  { %v4403_v24 = vpop.f32.mrf.mxu0  ;;  %v4398_v45 = vadd.f32 %v4397_v23, %v4262_v43  ;;  %v2807_v14 = vadd.f32 %v16347_v27, %v2696_v32  ;;  %v3828_v58 = vadd.f32 %v3827_v61, %v3665_v56  ;;  %v12368_v32 = vld [vmem:[%s18435_s5 + $0x16] ss:$0 sm:$0xff] }
 0x316   :  { %v4405_v59 = vpop.f32.mrf.mxu0  ;;  %v4508_v23 = vadd.f32 %v4507_v63, %v4398_v45  ;;  %v2970_v54 = vadd.f32 %v16374_v57, %v2807_v14  ;;  %v19292_v57 = vmax.f32 %v16126_v28, %v16363_v29  ;;  %v3935_v61 = vadd.f32 %v16390_v3, %v3828_v58  ;;  %v12378_v28 = vld [vmem:[%s18435_s5 + $0x1b] ss:$0 sm:$0xff]  ;;  %v19296_v14 = vld [vmem:[#allocation117_spill] sm:$0xff] }
 0x317   :  { %v4406_v9 = vadd.f32 %v4405_v59, %v4269_v1  ;;  %v3415_v3 = vadd.f32 %v16378_v55, %v16376_v22  ;;  %v5074_v22 = vpop.permute.xlu1 %5073  ;;  %v12350_v55 = vld [vmem:[%s18435_s5 + $0xd] ss:$0 sm:$0xff]  ;;  %v19294_v59 = vld [vmem:[#allocation11_spill] sm:$0xff]  ;;  %v12352_v1 = vld [vmem:[%s18435_s5 + $0xe] ss:$0 sm:$0xff] }
 0x318   :  { %v3077_v63 = vadd.f32 %v16372_v41, %v2970_v54 }
 0x319   :  { %v4517_v19 = vadd.f32 %v4516_v25, %v4406_v9  ;;  %v5168_v25 = vpop.permute.xlu0 %5167  ;;  %v3552_v31 = vadd.f32 %v16380_v52, %v3415_v3 }
 0x31a   :  { %v4792_v43 = vmax.f32 %v2196_v37, %v3077_v63 }
 0x31b   :  { %v5156_v54 = vpop.permute.xlu1 %5155 }
 0x325   :  { %v4777_v50 = vpop.f32.mrf.mxu1 }
 0x327   :  { %v4779_v53 = vpop.f32.mrf.mxu1 }
 0x329   :  { %v4784_v18 = vpop.f32.mrf.mxu1 }
 0x32b   :  { %v4786_v21 = vpop.f32.mrf.mxu1 }
 0x32d   :  { %v4670_v10 = vpop.f32.mrf.mxu0 }
 0x32e   :  { %v4671_v30 = vadd.f32 %v4670_v10, %v4506_v35  ;;  %v4790_v35 = vmax.f32 %v2189_v34, %v3070_v12  ;;  %v19295_v10 = vld [vmem:[#allocation118_spill] sm:$0xff] }
 0x32f   :  { %v4672_v15 = vpop.f32.mrf.mxu0  ;;  %v19297_v9 = vmax.f32 %v19295_v10, %v19296_v14  ;;  %v12334_v10 = vld [vmem:[%s18435_s5 + $0x5] ss:$0 sm:$0xff] }
 0x330   :  { %v4778_v8 = vadd.f32 %v4777_v50, %v4671_v30  ;;  %v4673_v48 = vadd.f32 %v4672_v15, %v4508_v23  ;;  %v4404_v50 = vadd.f32 %v4403_v24, %v4267_v39  ;;  %v3663_v24 = vadd.f32 %v16382_v7, %v3552_v31  ;;  %v4982_v23 = vpop.permute.xlu0 %4981  ;;  %v12342_v39 = vld [vmem:[%s18435_s5 + $0x9] ss:$0 sm:$0xff] }
 0x331   :  { %v4677_v27 = vpop.f32.mrf.mxu0 }
 0x332   :  { %v4793_v60 = vmax.f32 %v16384_v0, %v4778_v8  ;;  %v4780_v62 = vadd.f32 %v4779_v53, %v4673_v48  ;;  %v4515_v36 = vadd.f32 %v16398_v26, %v4404_v50  ;;  %v3826_v52 = vadd.f32 %v19293_v40, %v3663_v24  ;;  %v12362_v26 = vld [vmem:[%s18435_s5 + $0x13] ss:$0 sm:$0xff]  ;;  %v12380_v53 = vld [vmem:[%s18435_s5 + $0x1c] ss:$0 sm:$0xff]  ;;  %v12344_v40 = vld [vmem:[%s18435_s5 + $0xa] ss:$0 sm:$0xff] }
 0x333   :  { %v4679_v46 = vpop.f32.mrf.mxu0 }
 0x334   :  { %v16425_v42 = vmax.f32 %v19292_v57, %v4793_v60  ;;  %v4794_v20 = vmax.f32 %v3928_v6, %v4780_v62  ;;  %v4680_v17 = vadd.f32 %v4679_v46, %v4517_v19  ;;  %v4678_v45 = vadd.f32 %v4677_v27, %v4515_v36  ;;  %v12374_v46 = vld [vmem:[%s18435_s5 + $0x19] ss:$0 sm:$0xff] }
 0x335   :  { %v3933_v7 = vadd.f32 %v19294_v59, %v3826_v52  ;;  %v12364_v59 = vld [vmem:[%s18435_s5 + $0x14] ss:$0 sm:$0xff] }
 0x336   :  { %v16429_v49 = vmax.f32 %v4790_v35, %v4794_v20  ;;  %v4787_v0 = vadd.f32 %v4786_v21, %v4680_v17  ;;  %v4785_v13 = vadd.f32 %v4784_v18, %v4678_v45  ;;  %v4984_v62 = vmul.f32 %v4982_v23, %v16425_v42 }
 0x338   :  { %v5170_v51 = vmul.f32 %v5168_v25, %v16429_v49  ;;  %v4796_v41 = vmax.f32 %v3935_v61, %v4787_v0  ;;  %v5076_v38 = vmul.f32 %v5074_v22, %v16429_v49  ;;  %v4795_v2 = vmax.f32 %v3933_v7, %v4785_v13  ;;  %v12394_v61 = vld [vmem:[%s18435_s5 + $0x23] ss:$0 sm:$0xff] }
 0x339   :  { %v5300_v21 = vrot.slane %v4984_v62, 1  ;;  %v5158_v0 = vmul.f32 %v5156_v54, %v16429_v49 }
 0x33a   :  { %v16432_v5 = vmax.f32 %v4792_v43, %v4796_v41  ;;  %5389 = vrot.lane.b32.xlu0 %v5170_v51, %s14135_s21  ;;  %v16489_v30 = vmax.f32 %v19297_v9, %v4795_v2 }
 0x33c   :  { %v5171_v29 = vmul.f32 %v5168_v25, %v16432_v5  ;;  %v4985_v11 = vmul.f32 %v4982_v23, %v16489_v30  ;;  %v5077_v12 = vmul.f32 %v5074_v22, %v16432_v5  ;;  %v5159_v34 = vmul.f32 %v5156_v54, %v16432_v5 }
 0x33e   :  { %5119 = vrot.lane.b32.xlu0 %v12378_v28, %s14134_s20  ;;  %5391 = vrot.lane.b32.xlu1 %v5171_v29, %s14135_s21  ;;  %v5301_v15 = vrot.slane %v4985_v11, 1  ;;  %v12358_v11 = vld [vmem:[%s18435_s5 + $0x11] ss:$0 sm:$0xff] }
 0x340   :  { %v5302_v51 = vsel %vm5232_vm3, %v5300_v21, %v5301_v15 }
 0x342   :  { %5061 = vrot.lane.b32.xlu0 %v12368_v32, %s14136_s28  ;;  %5143 = vrot.lane.b32.xlu1 %v12382_v44, %s14137_s29  ;;  %v12348_v32 = vld [vmem:[%s18435_s5 + $0xc] ss:$0 sm:$0xff] }
 0x346   :  { %4957 = vrot.lane.b32.xlu0 %v12350_v55, %s14132_s3  ;;  %5346 = vrot.lane.b32.xlu1 %v5076_v38, %s14135_s21 }
 0x34a   :  { %5027 = vrot.lane.b32.xlu0 %v12362_v26, %s14136_s28  ;;  %4933 = vrot.lane.b32.xlu1 %v12346_v47, %s14137_s29  ;;  %v12366_v26 = vld [vmem:[%s18435_s5 + $0x15] ss:$0 sm:$0xff] }
 0x34b   :  { %v5053_v13 = vmul.f32 %v12366_v26, %v16432_v5  ;;  %v5052_v7 = vmul.f32 %v12366_v26, %v16429_v49 }
 0x34d   :  { %v5333_v2 = vrot.slane %v5052_v7, 1 }
 0x34e   :  { %4885 = vrot.lane.b32.xlu0 %v12338_v4, %s14136_s28  ;;  %4969 = vrot.lane.b32.xlu1 %v12352_v1, %s14137_s29  ;;  %v5334_v1 = vrot.slane %v5053_v13, 1 }
 0x352   :  { %5107 = vrot.lane.b32.xlu0 %v12376_v33, %s14133_s2  ;;  %5131 = vrot.lane.b32.xlu1 %v12380_v53, %s14132_s3  ;;  %v5335_v53 = vsel %vm5232_vm3, %v5333_v2, %v5334_v1 }
 0x356   :  { %5348 = vrot.lane.b32.xlu0 %v5077_v12, %s14135_s21 }
 0x35a   :  { %5305 = vrot.lane.b32.xlu0 %v5301_v15, %s14133_s2 }
 0x3ac   :  { %v5390_v56 = vpop.permute.xlu0 %5389 }
 0x3ad   :  { %v5395_v41 = vadd.f32 %v5390_v56, %v5158_v0 }
 0x3af   :  { %v5504_v3 = vrot.slane %v5395_v41, 1 }
 0x3b0   :  { %v5120_v8 = vpop.permute.xlu0 %5119  ;;  %v5392_v48 = vpop.permute.xlu1 %5391 }
 0x3b1   :  { %v5396_v18 = vadd.f32 %v5392_v48, %v5159_v34  ;;  %v5122_v20 = vmul.f32 %v5120_v8, %v16429_v49  ;;  %v5123_v17 = vmul.f32 %v5120_v8, %v16432_v5  ;;  %v12390_v48 = vld [vmem:[%s18435_s5 + $0x21] ss:$0 sm:$0xff] }
 0x3b3   :  { %v5505_v63 = vrot.slane %v5396_v18, 1  ;;  %v5366_v25 = vrot.slane %v5122_v20, 6  ;;  %v5367_v43 = vrot.slane %v5123_v17, 6 }
 0x3b4   :  { %v5062_v16 = vpop.permute.xlu0 %5061  ;;  %v5144_v6 = vpop.permute.xlu1 %5143 }
 0x3b5   :  { %v5146_v27 = vmul.f32 %v5144_v6, %v16429_v49  ;;  %v5147_v58 = vmul.f32 %v5144_v6, %v16432_v5  ;;  %v5064_v60 = vmul.f32 %v5062_v16, %v16429_v49  ;;  %v5368_v29 = vsel %vm5266_vm4, %v5366_v25, %v5367_v43 }
 0x3b6   :  { %v5506_v31 = vsel %vm5232_vm3, %v5504_v3, %v5505_v63  ;;  %v5065_v36 = vmul.f32 %v5062_v16, %v16432_v5 }
 0x3b7   :  { %5379 = vrot.lane.b32.xlu1 %v5146_v27, %s14135_s21  ;;  %5381 = vrot.lane.b32.xlu0 %v5147_v58, %s14135_s21 }
 0x3b8   :  { %v4958_v19 = vpop.permute.xlu0 %4957  ;;  %v5347_v35 = vpop.permute.xlu1 %5346 }
 0x3b9   :  { %v5352_v57 = vadd.f32 %v5347_v35, %v5064_v60  ;;  %v4960_v52 = vmul.f32 %v4958_v19, %v16425_v42  ;;  %v4961_v14 = vmul.f32 %v4958_v19, %v16489_v30 }
 0x3bb   :  { %5095 = vrot.lane.b32.xlu1 %v12374_v46, %s14136_s28  ;;  %5509 = vrot.lane.b32.xlu0 %v5505_v63, %s14136_s28  ;;  %v5481_v45 = vrot.slane %v5352_v57, 1 }
 0x3bc   :  { %v5028_v37 = vpop.permute.xlu0 %5027  ;;  %v4934_v44 = vpop.permute.xlu1 %4933 }
 0x3bd   :  { %v4936_v55 = vmul.f32 %v4934_v44, %v16425_v42  ;;  %v5030_v4 = vmul.f32 %v5028_v37, %v16429_v49  ;;  %v4937_v33 = vmul.f32 %v4934_v44, %v16489_v30  ;;  %v5031_v9 = vmul.f32 %v5028_v37, %v16432_v5 }
 0x3bf   :  { %5303 = vrot.lane.b32.xlu1 %v5302_v51, %s14133_s2  ;;  %5215 = vrot.lane.b32.xlu0 %v12394_v61, %s14137_s29  ;;  %v12392_v51 = vld [vmem:[%s18435_s5 + $0x22] ss:$0 sm:$0xff] }
 0x3c0   :  { %v4886_v28 = vpop.permute.xlu0 %4885  ;;  %v4970_v12 = vpop.permute.xlu1 %4969 }
 0x3c1   :  { %v4889_v23 = vmul.f32 %v4886_v28, %v16489_v30  ;;  %v4888_v15 = vmul.f32 %v4886_v28, %v16425_v42  ;;  %v4973_v56 = vmul.f32 %v4970_v12, %v16489_v30  ;;  %v4972_v60 = vmul.f32 %v4970_v12, %v16425_v42 }
 0x3c3   :  { %5371 = vrot.lane.b32.xlu1 %v5368_v29, %s14137_s29  ;;  %4909 = vrot.lane.b32.xlu0 %v12342_v39, %s14134_s20 }
 0x3c4   :  { %v16524_v50 = vpop.permute.xlu0 %5107  ;;  %v5132_v34 = vpop.permute.xlu1 %5131 }
 0x3c5   :  { %v5135_v63 = vmul.f32 %v5132_v34, %v16432_v5  ;;  %v5134_v17 = vmul.f32 %v5132_v34, %v16429_v49  ;;  %v5110_v28 = vmul.f32 %v16524_v50, %v16429_v49 }
 0x3c7   :  { %5507 = vrot.lane.b32.xlu1 %v5506_v31, %s14136_s28  ;;  %4945 = vrot.lane.b32.xlu0 %v12348_v32, %s14134_s20 }
 0x3c8   :  { %v5349_v22 = vpop.permute.xlu0 %5348 }
 0x3c9   :  { %v5353_v24 = vadd.f32 %v5349_v22, %v5065_v36 }
 0x3cb   :  { %v5482_v38 = vrot.slane %v5353_v24, 1  ;;  %5369 = vrot.lane.b32.xlu1 %v5366_v25, %s14137_s29  ;;  %5280 = vrot.lane.b32.xlu0 %v4936_v55, %s14135_s21 }
 0x3cc   :  { %v5306_v54 = vpop.permute.xlu0 %5305 }
 0x3cd   :  { %v16544_v47 = vsel %vm5232_vm3, %v5481_v45, %v5482_v38  ;;  %v5310_v8 = vadd.f32 %v5306_v54, %v4973_v56  ;;  %v5111_v45 = vmul.f32 %v16524_v50, %v16432_v5  ;;  %v12326_v50 = vld [vmem:[%s18435_s5 + $0x1] ss:$0 sm:$0xff]  ;;  %v12328_v56 = vld [vmem:[%s18435_s5 + $0x2] ss:$0 sm:$0xff] }
 0x3cf   :  { %4921 = vrot.lane.b32.xlu1 %v12344_v40, %s14132_s3  ;;  %5290 = vrot.lane.b32.xlu0 %v4960_v52, %s14135_s21 }
 0x3d3   :  { %5039 = vrot.lane.b32.xlu1 %v12364_v59, %s14133_s2  ;;  %5323 = vrot.lane.b32.xlu0 %v5030_v4, %s14135_s21 }
 0x3d7   :  { %5282 = vrot.lane.b32.xlu1 %v4937_v33, %s14135_s21  ;;  %5336 = vrot.lane.b32.xlu0 %v5335_v53, %s14133_s2  ;;  %v12332_v53 = vld [vmem:[%s18435_s5 + $0x4] ss:$0 sm:$0xff] }
 0x3db   :  { %5292 = vrot.lane.b32.xlu1 %v4961_v14, %s14135_s21  ;;  %4863 = vrot.lane.b32.xlu0 %v12334_v10, %s14133_s2 }
 0x3df   :  { %5258 = vrot.lane.b32.xlu0 %v4889_v23, %s14135_s21  ;;  %5325 = vrot.lane.b32.xlu1 %v5031_v9, %s14135_s21  ;;  %v12356_v23 = vld [vmem:[%s18435_s5 + $0x10] ss:$0 sm:$0xff] }
 0x3e3   :  { %5338 = vrot.lane.b32.xlu1 %v5334_v1, %s14133_s2 }
 0x3e7   :  { %5005 = vrot.lane.b32.xlu1 %v12358_v11, %s14137_s29 }
 0x3eb   :  { %5256 = vrot.lane.b32.xlu1 %v4888_v15, %s14135_s21 }
 0x3ef   :  { %5460 = vrot.lane.b32.xlu1 %v5310_v8, %s14138_s24 }
 0x3f3   :  { %5486 = vrot.lane.b32.xlu1 %v5482_v38, %s14136_s28  ;;  %v12340_v38 = vld [vmem:[%s18435_s5 + $0x8] ss:$0 sm:$0xff] }
 0x3f7   :  { %5191 = vrot.lane.b32.xlu1 %v12390_v48, %s14134_s20 }
 0x429   :  { %v5380_v16 = vpop.permute.xlu1 %5379  ;;  %v5382_v6 = vpop.permute.xlu0 %5381 }
 0x42a   :  { %v5386_v21 = vadd.f32 %v5382_v6, %v5135_v63  ;;  %v5385_v61 = vadd.f32 %v5380_v16, %v5134_v17  ;;  %v12330_v6 = vld [vmem:[%s18435_s5 + $0x3] ss:$0 sm:$0xff]  ;;  %v12360_v17 = vld [vmem:[%s18435_s5 + $0x12] ss:$0 sm:$0xff] }
 0x42d   :  { %v5096_v18 = vpop.permute.xlu1 %5095  ;;  %v5510_v27 = vpop.permute.xlu0 %5509 }
 0x42e   :  { %v5098_v58 = vmul.f32 %v5096_v18, %v16429_v49  ;;  %v5099_v37 = vmul.f32 %v5096_v18, %v16432_v5  ;;  %v5514_v0 = vadd.f32 %v5510_v27, %v5386_v21  ;;  %v16652_v27 = vmul.f32 %v12330_v6, %v16489_v30 }
 0x430   :  { %5356 = vrot.lane.b32.xlu1 %v5098_v58, %s14135_s21  ;;  %v5571_v39 = vrot.slane %v5514_v0, 6 }
 0x431   :  { %v5304_v62 = vpop.permute.xlu1 %5303  ;;  %v5216_v19 = vpop.permute.xlu0 %5215 }
 0x432   :  { %v5309_v35 = vadd.f32 %v5304_v62, %v4972_v60  ;;  %v5219_v46 = vmul.f32 %v5216_v19, %v16432_v5 }
 0x434   :  { %5458 = vrot.lane.b32.xlu0 %v5309_v35, %s14138_s24  ;;  %5414 = vrot.lane.b32.xlu1 %v5219_v46, %s14135_s21  ;;  %v5234_v46 = vrot.slane %v16652_v27, 1 }
 0x435   :  { %v5372_v57 = vpop.permute.xlu1 %5371  ;;  %v4910_v20 = vpop.permute.xlu0 %4909 }
 0x436   :  { %v5376_v26 = vadd.f32 %v5372_v57, %v5111_v45  ;;  %v4912_v11 = vmul.f32 %v4910_v20, %v16425_v42  ;;  %v4913_v12 = vmul.f32 %v4910_v20, %v16489_v30  ;;  %v12336_v57 = vld [vmem:[%s18435_s5 + $0x6] ss:$0 sm:$0xff] }
 0x437   :  { %v4877_v21 = vmul.f32 %v12336_v57, %v16489_v30 }
 0x438   :  { %5358 = vrot.lane.b32.xlu0 %v5099_v37, %s14135_s21  ;;  %v5267_v48 = vrot.slane %v4912_v11, 6  ;;  %v5268_v34 = vrot.slane %v4913_v12, 6 }
 0x439   :  { %v5508_v25 = vpop.permute.xlu1 %5507  ;;  %v4946_v43 = vpop.permute.xlu0 %4945 }
 0x43a   :  { %v5513_v41 = vadd.f32 %v5508_v25, %v5385_v61  ;;  %v4948_v36 = vmul.f32 %v4946_v43, %v16425_v42  ;;  %v4949_v1 = vmul.f32 %v4946_v43, %v16489_v30  ;;  %v5269_v58 = vsel %vm5266_vm4, %v5267_v48, %v5268_v34 }
 0x43b   :  { %v5019_v61 = vmul.f32 %v12360_v17, %v16432_v5 }
 0x43c   :  { %v5570_v29 = vrot.slane %v5513_v41, 6  ;;  %5203 = vrot.lane.b32.xlu0 %v12392_v51, %s14132_s3  ;;  %v5018_v51 = vmul.f32 %v12360_v17, %v16429_v49 }
 0x43d   :  { %v5370_v3 = vpop.permute.xlu1 %5369  ;;  %v16600_v32 = vpop.permute.xlu0 %5280 }
 0x43e   :  { %v5375_v44 = vadd.f32 %v5370_v3, %v5110_v28  ;;  %v5572_v31 = vsel %vm5266_vm4, %v5570_v29, %v5571_v39  ;;  %v4876_v3 = vmul.f32 %v12336_v57, %v16425_v42 }
 0x43f   :  { %5575 = vrot.lane.b32.xlu1 %v5572_v31, %s14139_s30 }
 0x440   :  { %5494 = vrot.lane.b32.xlu0 %v5375_v44, %s14138_s24 }
 0x441   :  { %v4922_v22 = vpop.permute.xlu1 %4921  ;;  %v5291_v55 = vpop.permute.xlu0 %5290 }
 0x442   :  { %v16606_v24 = vadd.f32 %v5291_v55, %v4948_v36  ;;  %v4924_v60 = vmul.f32 %v4922_v22, %v16425_v42  ;;  %v4925_v62 = vmul.f32 %v4922_v22, %v16489_v30 }
 0x443   :  { %5573 = vrot.lane.b32.xlu1 %v5570_v29, %s14139_s30 }
 0x444   :  { %5484 = vrot.lane.b32.xlu0 %v16544_v47, %s14136_s28  ;;  %v5218_v47 = vmul.f32 %v5216_v19, %v16429_v49  ;;  %v5286_v37 = vadd.f32 %v16600_v32, %v4924_v60 }
 0x445   :  { %v5040_v40 = vpop.permute.xlu1 %5039  ;;  %v5324_v52 = vpop.permute.xlu0 %5323 }
 0x446   :  { %v5042_v13 = vmul.f32 %v5040_v40, %v16429_v49  ;;  %v5043_v15 = vmul.f32 %v5040_v40, %v16432_v5  ;;  %v5445_v39 = vrot.slane %v5286_v37, 6  ;;  %v5329_v29 = vadd.f32 %v5324_v52, %v5018_v51  ;;  %v12388_v40 = vld [vmem:[%s18435_s5 + $0x20] ss:$0 sm:$0xff] }
 0x447   :  { %4897 = vrot.lane.b32.xlu1 %v12340_v38, %s14133_s2 }
 0x448   :  { %5496 = vrot.lane.b32.xlu0 %v5376_v26, %s14138_s24  ;;  %v5468_v45 = vrot.slane %v5329_v29, 6 }
 0x449   :  { %v5283_v59 = vpop.permute.xlu1 %5282  ;;  %v5337_v7 = vpop.permute.xlu0 %5336 }
 0x44a   :  { %v16623_v4 = vadd.f32 %v5337_v7, %v5042_v13  ;;  %v5287_v63 = vadd.f32 %v5283_v59, %v4925_v62 }
 0x44b   :  { %4817 = vrot.lane.b32.xlu1 %v12326_v50, %s14136_s28 }
 0x44c   :  { %5412 = vrot.lane.b32.xlu0 %v5218_v47, %s14135_s21  ;;  %v5446_v41 = vrot.slane %v5287_v63, 6 }
 0x44d   :  { %v5293_v2 = vpop.permute.xlu1 %5292  ;;  %v4864_v33 = vpop.permute.xlu0 %4863 }
 0x44e   :  { %v16631_v10 = vadd.f32 %v5293_v2, %v4949_v1  ;;  %v4867_v14 = vmul.f32 %v4864_v33, %v16489_v30  ;;  %v4866_v35 = vmul.f32 %v4864_v33, %v16425_v42  ;;  %v5447_v55 = vsel %vm5266_vm4, %v5445_v39, %v5446_v41 }
 0x450   :  { %4851 = vrot.lane.b32.xlu0 %v12332_v53, %s14136_s28  ;;  %5248 = vrot.lane.b32.xlu1 %v4867_v14, %s14135_s21  ;;  %v4842_v14 = vmul.f32 %v12330_v6, %v16425_v42  ;;  %v12372_v6 = vld [vmem:[%s18435_s5 + $0x18] ss:$0 sm:$0xff] }
 0x451   :  { %v5326_v9 = vpop.permute.xlu1 %5325  ;;  %v5259_v20 = vpop.permute.xlu0 %5258  ;;  %v5086_v17 = vmul.f32 %v12372_v6, %v16429_v49 }
 0x452   :  { %v5263_v25 = vadd.f32 %v5259_v20, %v4877_v21  ;;  %v5330_v28 = vadd.f32 %v5326_v9, %v5019_v61 }
 0x454   :  { %4993 = vrot.lane.b32.xlu0 %v12356_v23, %s14132_s3  ;;  %v5433_v32 = vrot.slane %v5263_v25, 1  ;;  %v5469_v36 = vrot.slane %v5330_v28, 6 }
 0x455   :  { %v5339_v54 = vpop.permute.xlu1 %5338 }
 0x456   :  { %v5343_v8 = vadd.f32 %v5339_v54, %v5043_v15  ;;  %v5470_v50 = vsel %vm5266_vm4, %v5468_v45, %v5469_v36  ;;  %v5233_v54 = vrot.slane %v4842_v14, 1 }
 0x458   :  { %4829 = vrot.lane.b32.xlu0 %v12328_v56, %s14133_s2 }
 0x459   :  { %v5006_v16 = vpop.permute.xlu1 %5005 }
 0x45a   :  { %v5009_v18 = vmul.f32 %v5006_v16, %v16489_v30  ;;  %v5008_v43 = vmul.f32 %v5006_v16, %v16425_v42 }
 0x45c   :  { %5272 = vrot.lane.b32.xlu0 %v5269_v58, %s14137_s29  ;;  %5315 = vrot.lane.b32.xlu1 %v5009_v18, %s14135_s21  ;;  %v5087_v58 = vmul.f32 %v12372_v6, %v16432_v5 }
 0x45d   :  { %v5257_v19 = vpop.permute.xlu1 %5256 }
 0x45e   :  { %v5262_v22 = vadd.f32 %v5257_v19, %v4876_v3 }
 0x460   :  { %5238 = vrot.lane.b32.xlu0 %v5234_v46, %s14133_s2  ;;  %5246 = vrot.lane.b32.xlu1 %v4866_v35, %s14135_s21  ;;  %v5432_v13 = vrot.slane %v5262_v22, 1 }
 0x461   :  { %v5461_v0 = vpop.permute.xlu1 %5460 }
 0x462   :  { %v5434_v1 = vsel %vm5232_vm3, %v5432_v13, %v5433_v32  ;;  %v5465_v2 = vadd.f32 %v5461_v0, %v16631_v10 }
 0x464   :  { %5270 = vrot.lane.b32.xlu0 %v5267_v48, %s14137_s29  ;;  %5313 = vrot.lane.b32.xlu1 %v5008_v43, %s14135_s21  ;;  %v5545_v9 = vrot.slane %v5465_v2, 7  ;;  %v5235_v48 = vsel %vm5232_vm3, %v5233_v54, %v5234_v46 }
 0x465   :  { %v5487_v44 = vpop.permute.xlu1 %5486 }
 0x466   :  { %v5491_v31 = vadd.f32 %v5487_v44, %v5343_v8 }
 0x468   :  { %5437 = vrot.lane.b32.xlu0 %v5433_v32, %s14136_s28  ;;  %5450 = vrot.lane.b32.xlu1 %v5447_v55, %s14132_s3  ;;  %v5558_v62 = vrot.slane %v5491_v31, 6 }
 0x469   :  { %v5192_v38 = vpop.permute.xlu1 %5191 }
 0x46a   :  { %v5194_v52 = vmul.f32 %v5192_v38, %v16429_v49  ;;  %v5195_v26 = vmul.f32 %v5192_v38, %v16432_v5 }
 0x46c   :  { %v5399_v59 = vrot.slane %v5194_v52, 1  ;;  %v5400_v7 = vrot.slane %v5195_v26, 1  ;;  %5179 = vrot.lane.b32.xlu1 %v12388_v40, %s14137_s29  ;;  %5473 = vrot.lane.b32.xlu0 %v5470_v50, %s14132_s3 }
 0x46e   :  { %v5401_v47 = vsel %vm5232_vm3, %v5399_v59, %v5400_v7 }
 0x470   :  { %5448 = vrot.lane.b32.xlu1 %v5445_v39, %s14132_s3  ;;  %5435 = vrot.lane.b32.xlu0 %v5434_v1, %s14136_s28 }
 0x474   :  { %5471 = vrot.lane.b32.xlu0 %v5468_v45, %s14132_s3 }
 0x478   :  { %5404 = vrot.lane.b32.xlu0 %v5400_v7, %s14133_s2 }
 0x4a2   :  { %v5357_v11 = vpop.permute.xlu1 %5356 }
 0x4a3   :  { %v5362_v0 = vadd.f32 %v5357_v11, %v5086_v17 }
 0x4a6   :  { %v5459_v33 = vpop.permute.xlu0 %5458  ;;  %v5415_v10 = vpop.permute.xlu1 %5414 }
 0x4a7   :  { %v5464_v53 = vadd.f32 %v5459_v33, %v16606_v24 }
 0x4a9   :  { %v5544_v23 = vrot.slane %v5464_v53, 7 }
 0x4aa   :  { %v5359_v12 = vpop.permute.xlu0 %5358 }
 0x4ab   :  { %v5546_v15 = vsel %vm5543_vm5, %v5544_v23, %v5545_v9  ;;  %v5363_v19 = vadd.f32 %v5359_v12, %v5087_v58 }
 0x4ac   :  { %5549 = vrot.lane.b32.xlu1 %v5546_v15, %s14137_s29 }
 0x4ae   :  { %v5204_v56 = vpop.permute.xlu0 %5203 }
 0x4af   :  { %v5207_v8 = vmul.f32 %v5204_v56, %v16432_v5  ;;  %v5206_v21 = vmul.f32 %v5204_v56, %v16429_v49 }
 0x4b0   :  { %5236 = vrot.lane.b32.xlu1 %v5235_v48, %s14133_s2 }
 0x4b1   :  { %v5419_v24 = vadd.f32 %v5415_v10, %v5207_v8  ;;  %v5576_v16 = vpop.permute.xlu1 %5575 }
 0x4b2   :  { %v5495_v34 = vpop.permute.xlu0 %5494 }
 0x4b3   :  { %v5518_v27 = vrot.slane %v5419_v24, 1  ;;  %v5500_v43 = vadd.f32 %v5495_v34, %v5362_v0 }
 0x4b4   :  { %5547 = vrot.lane.b32.xlu1 %v5544_v23, %s14137_s29 }
 0x4b5   :  { %v5574_v46 = vpop.permute.xlu1 %5573 }
 0x4b6   :  { %v5485_v18 = vpop.permute.xlu0 %5484  ;;  %v5579_v39 = vadd.f32 %v5574_v46, %v5500_v43 }
 0x4b7   :  { %v5490_v60 = vadd.f32 %v5485_v18, %v16623_v4 }
 0x4b8   :  { %5522 = vrot.lane.b32.xlu1 %v5518_v27, %s14136_s28 }
 0x4b9   :  { %v5557_v35 = vrot.slane %v5490_v60, 6  ;;  %v4898_v25 = vpop.permute.xlu1 %4897 }
 0x4ba   :  { %v5497_v63 = vpop.permute.xlu0 %5496  ;;  %v4901_v31 = vmul.f32 %v4898_v25, %v16489_v30  ;;  %v4900_v26 = vmul.f32 %v4898_v25, %v16425_v42 }
 0x4bb   :  { %v5501_v57 = vadd.f32 %v5497_v63, %v5363_v19  ;;  %5560 = vrot.lane.b32.xlu0 %v5557_v35, %s14139_s30  ;;  %v5559_v20 = vsel %vm5266_vm4, %v5557_v35, %v5558_v62 }
 0x4bd   :  { %v5580_v37 = vadd.f32 %v5576_v16, %v5501_v57  ;;  %v4818_v29 = vpop.permute.xlu1 %4817 }
 0x4be   :  { %v5413_v61 = vpop.permute.xlu0 %5412  ;;  %v4821_v44 = vmul.f32 %v4818_v29, %v16489_v30  ;;  %v4820_v36 = vmul.f32 %v4818_v29, %v16425_v42 }
 0x4bf   :  { %v5418_v4 = vadd.f32 %v5413_v61, %v5206_v21  ;;  %5599 = vrot.lane.b32.xlu1 %v5580_v37, %s14132_s3  ;;  %5402 = vrot.lane.b32.xlu0 %v5401_v47, %s14133_s2 }
 0x4c1   :  { %v5517_v51 = vrot.slane %v5418_v4, 1 }
 0x4c2   :  { %v4852_v41 = vpop.permute.xlu0 %4851  ;;  %v5249_v52 = vpop.permute.xlu1 %5248 }
 0x4c3   :  { %5562 = vrot.lane.b32.xlu0 %v5559_v20, %s14139_s30  ;;  %v5519_v28 = vsel %vm5232_vm3, %v5517_v51, %v5518_v27  ;;  %v4855_v13 = vmul.f32 %v4852_v41, %v16489_v30  ;;  %v4854_v9 = vmul.f32 %v4852_v41, %v16425_v42 }
 0x4c4   :  { %5520 = vrot.lane.b32.xlu1 %v5519_v28, %s14136_s28 }
 0x4c5   :  { %v5253_v47 = vadd.f32 %v5249_v52, %v4855_v13  ;;  %v19298_v13 = vmov 0.0  }
 0x4c6   :  { %v4994_v3 = vpop.permute.xlu0 %4993  ;;  %13099 = vmatprep.mubr.msk.f32.mxu0 %vm14140_vm7, %v19298_v13  ;;  %13106 = vmatprep.mubr.msk.f32.mxu1 %vm14140_vm7, %v19298_v13 }
 0x4c7   :  { %5597 = vrot.lane.b32.xlu0 %v5579_v39, %s14132_s3  ;;  %v4997_v21 = vmul.f32 %v4994_v3, %v16489_v30  ;;  %v4996_v61 = vmul.f32 %v4994_v3, %v16425_v42  ;;  %s14141_s3 = smov 62  }
 0x4ca   :  { %v4830_v32 = vpop.permute.xlu0 %4829 }
 0x4cb   :  { %5224 = vrot.lane.b32.xlu0 %v4821_v44, %s14135_s21  ;;  %v4833_v45 = vmul.f32 %v4830_v32, %v16489_v30  ;;  %v4832_v6 = vmul.f32 %v4830_v32, %v16425_v42 }
 0x4ce   :  { %v5273_v22 = vpop.permute.xlu0 %5272  ;;  %v5316_v7 = vpop.permute.xlu1 %5315 }
 0x4cf   :  { %v5277_v55 = vadd.f32 %v5273_v22, %v4901_v31  ;;  %5222 = vrot.lane.b32.xlu0 %v4820_v36, %s14135_s21  ;;  %v5320_v0 = vadd.f32 %v5316_v7, %v4997_v21 }
 0x4d2   :  { %v5239_v38 = vpop.permute.xlu0 %5238  ;;  %v5247_v53 = vpop.permute.xlu1 %5246 }
 0x4d3   :  { %v5243_v40 = vadd.f32 %v5239_v38, %v4833_v45  ;;  %v5252_v23 = vadd.f32 %v5247_v53, %v4854_v9 }
 0x4d5   :  { %5424 = vrot.lane.b32.xlu1 %v5243_v40, %s14138_s24 }
 0x4d6   :  { %v5271_v50 = vpop.permute.xlu0 %5270  ;;  %v5314_v56 = vpop.permute.xlu1 %5313 }
 0x4d7   :  { %v5276_v59 = vadd.f32 %v5271_v50, %v4900_v26  ;;  %v5319_v25 = vadd.f32 %v5314_v56, %v4996_v61 }
 0x4da   :  { %v5438_v1 = vpop.permute.xlu0 %5437  ;;  %v5451_v8 = vpop.permute.xlu1 %5450 }
 0x4db   :  { %v5442_v2 = vadd.f32 %v5438_v1, %v5253_v47  ;;  %v5455_v24 = vadd.f32 %v5451_v8, %v5277_v55 }
 0x4dd   :  { %v5531_v33 = vrot.slane %v5442_v2, 1  ;;  %v5640_v2 = vld [vmem:[%s18437_s7] sm:$0x7f] }
 0x4de   :  { %v5474_v14 = vpop.permute.xlu0 %5473  ;;  %v5180_v48 = vpop.permute.xlu1 %5179  ;;  %v5643_v9 = vsel %vm5641_vm8, %v5640_v2, 0  ;;  %v6575_v2 = vld [vmem:[%s18438_s8 + $0x20] sm:$0xff] }
 0x4df   :  { %5535 = vrot.lane.b32.xlu1 %v5531_v33, %s14135_s21  ;;  %v5478_v43 = vadd.f32 %v5474_v14, %v5320_v0  ;;  %v5183_v41 = vmul.f32 %v5180_v48, %v16432_v5  ;;  %v5182_v29 = vmul.f32 %v5180_v48, %v16429_v49 }
 0x4e2   :  { %v5436_v11 = vpop.permute.xlu0 %5435  ;;  %v5449_v10 = vpop.permute.xlu1 %5448 }
 0x4e3   :  { %v5441_v12 = vadd.f32 %v5436_v11, %v5252_v23  ;;  %v5454_v62 = vadd.f32 %v5449_v10, %v5276_v59 }
 0x4e5   :  { %v5530_v15 = vrot.slane %v5441_v12, 1 }
 0x4e6   :  { %v5472_v58 = vpop.permute.xlu0 %5471 }
 0x4e7   :  { %v5532_v54 = vsel %vm5232_vm3, %v5530_v15, %v5531_v33  ;;  %v5477_v28 = vadd.f32 %v5472_v58, %v5319_v25  ;;  %v12324_v33 = vld [vmem:[%s18435_s5] ss:$0 sm:$0xff]  ;;  %v16756_v15 = vand.u32 4294901760, %v5643_v9 }
 0x4e8   :  { %v4809_v14 = vmul.f32 %v12324_v33, %v16489_v30  ;;  %v12395_v58 = vld [vmem:[%s18436_s6] ss:$0 sm:$0xff] }
 0x4ea   :  { %v5405_v46 = vpop.permute.xlu0 %5404 }
 0x4eb   :  { %v5409_v44 = vadd.f32 %v5405_v46, %v5183_v41 }
 0x51e   :  { %v5550_v34 = vpop.permute.xlu1 %5549 }
 0x51f   :  { %v5554_v16 = vadd.f32 %v5550_v34, %v5455_v24  ;;  %v16760_v34 = vsub.f32 %v5643_v9, %v16756_v15  ;;  %v6574_v9 = vld [vmem:[%s18438_s8 + $0x18] sm:$0xff] }
 0x521   :  { %v5585_v18 = vrot.slane %v5554_v16, 2 }
 0x522   :  { %v5237_v27 = vpop.permute.xlu1 %5236 }
 0x523   :  { %v5242_v60 = vadd.f32 %v5237_v27, %v4832_v6  ;;  %5589 = vrot.lane.b32.xlu1 %v5585_v18, %s14138_s24 }
 0x525   :  { %5422 = vrot.lane.b32.xlu0 %v5242_v60, %s14138_s24 }
 0x526   :  { %v5548_v19 = vpop.permute.xlu1 %5547 }
 0x527   :  { %v5553_v35 = vadd.f32 %v5548_v19, %v5454_v62 }
 0x529   :  { %v5584_v63 = vrot.slane %v5553_v35, 2  ;;  %5533 = vrot.lane.b32.xlu0 %v5532_v54, %s14135_s21  ;;  %v4808_v54 = vmul.f32 %v12324_v33, %v16425_v42  ;;  %v5717_v42 = vand.u32 4294901760, %v16760_v34  ;;  %v12396_v35 = vld [vmem:[%s18437_s7 + $0x8] sm:$0x7f] }
 0x52a   :  { %v5523_v17 = vpop.permute.xlu1 %5522 }
 0x52b   :  { %v5586_v57 = vsel %vm5583_vm6, %v5584_v63, %v5585_v18  ;;  %v5527_v45 = vadd.f32 %v5523_v17, %v5409_v44 }
 0x52d   :  { %5587 = vrot.lane.b32.xlu0 %v5586_v57, %s14138_s24  ;;  %v5561_v20 = vpop.permute.xlu0 %5560  ;;  %v5621_v26 = vrot.slane %v5527_v45, 1 }
 0x52e   :  { %v5566_v32 = vadd.f32 %v5561_v20, %v5477_v28  ;;  %v5718_v20 = vsub.f32 %v16760_v34, %v5717_v42 }
 0x530   :  { %v5719_v25 = vand.u32 4294901760, %v5718_v20 }
 0x531   :  { %v5403_v37 = vpop.permute.xlu0 %5402  ;;  %v5600_v4 = vpop.permute.xlu1 %5599 }
 0x532   :  { %v5408_v22 = vadd.f32 %v5403_v37, %v5182_v29  ;;  %v6110_v37 = vsel %vm5641_vm8, %v12396_v35, 0 }
 0x535   :  { %v5563_v51 = vpop.permute.xlu0 %5562 }
 0x536   :  { %v5567_v39 = vadd.f32 %v5563_v51, %v5478_v43  ;;  %v5521_v36 = vpop.permute.xlu1 %5520  ;;  %v16776_v43 = vand.u32 4294901760, %v6110_v37 }
 0x537   :  { %v5526_v40 = vadd.f32 %v5521_v36, %v5408_v22 }
 0x538   :  { %v5604_v31 = vadd.f32 %v5600_v4, %v5567_v39  ;;  %v16785_v29 = vsub.f32 %v6110_v37, %v16776_v43 }
 0x539   :  { %v5598_v55 = vpop.permute.xlu0 %5597  ;;  %v5620_v49 = vrot.slane %v5526_v40, 1 }
 0x53a   :  { %v5608_v38 = vrot.slane %v5604_v31, 2  ;;  %v5603_v3 = vadd.f32 %v5598_v55, %v5566_v32  ;;  %v6181_v36 = vand.u32 4294901760, %v16785_v29 }
 0x53b   :  { %v5622_v50 = vsel %vm5232_vm3, %v5620_v49, %v5621_v26  ;;  %v6577_v49 = vld [vmem:[%s18438_s8 + $0x30] sm:$0xff] }
 0x53c   :  { %v5607_v52 = vrot.slane %v5603_v3, 2  ;;  %5612 = vrot.lane.b32.xlu1 %v5608_v38, %s14139_s30  ;;  %v6182_v55 = vsub.f32 %v16785_v29, %v6181_v36 }
 0x53d   :  { %v5225_v59 = vpop.permute.xlu0 %5224 }
 0x53e   :  { %v5609_v5 = vsel %vm5583_vm6, %v5607_v52, %v5608_v38  ;;  %v5229_v11 = vadd.f32 %v5225_v59, %v4809_v14  ;;  %v6183_v45 = vand.u32 4294901760, %v6182_v55  ;;  %v6578_v38 = vld [vmem:[%s18438_s8 + $0x38] sm:$0x3f]  ;;  %v16874_v59 = vand.u32 4294901760, %v6577_v49 }
 0x53f   :  { %5610 = vrot.lane.b32.xlu0 %v5609_v5, %s14139_s30  ;;  %v6584_v3 = vsel %vm5583_vm6, %v6578_v38, 0  ;;  %v16897_v14 = vand.u32 4294901760, %v6575_v2 }
 0x540   :  { %5625 = vrot.lane.b32.xlu1 %v5621_v26, %s14141_s3  ;;  %v16845_v40 = vand.u32 4294901760, %v6584_v3 }
 0x541   :  { %v5223_v7 = vpop.permute.xlu0 %5222 }
 0x542   :  { %v5228_v8 = vadd.f32 %v5223_v7, %v4808_v54  ;;  %v16862_v52 = vsub.f32 %v6584_v3, %v16845_v40  ;;  %v6576_v7 = vld [vmem:[%s18438_s8 + $0x28] sm:$0xff]  ;;  %v6573_v54 = vld [vmem:[%s18438_s8 + $0x10] sm:$0xff] }
 0x544   :  { %5623 = vrot.lane.b32.xlu1 %v5622_v50, %s14141_s3  ;;  %v16865_v26 = vand.u32 4294901760, %v16862_v52 }
 0x546   :  { %v6689_v5 = vsub.f32 %v16862_v52, %v16865_v26 }
 0x547   :  { %v5425_v47 = vpop.permute.xlu1 %5424 }
 0x548   :  { %v5429_v56 = vadd.f32 %v5425_v47, %v5229_v11  ;;  %v16872_v50 = vand.u32 4294901760, %v6689_v5  ;;  %v16881_v47 = vsub.f32 %v6577_v49, %v16874_v59 }
 0x54a   :  { %v16892_v33 = vand.u32 4294901760, %v16881_v47 }
 0x54c   :  { %19299 = vst [vmem:[#allocation31_spill] sm:$0xff] %v16892_v33 }
 0x551   :  { %v5536_v53 = vpop.permute.xlu1 %5535 }
 0x552   :  { %v5540_v48 = vadd.f32 %v5536_v53, %v5429_v56 }
 0x595   :  { %v5590_v12 = vpop.permute.xlu1 %5589 }
 0x596   :  { %v5594_v16 = vadd.f32 %v5590_v12, %v5540_v48  ;;  %v16910_v12 = vsub.f32 %v6575_v2, %v16897_v14 }
 0x597   :  { %v5423_v1 = vpop.permute.xlu0 %5422 }
 0x598   :  { %v5428_v6 = vadd.f32 %v5423_v1, %v5228_v8  ;;  %v16883_v1 = vand.u32 4294901760, %v6576_v7  ;;  %v16924_v48 = vand.u32 4294901760, %v16910_v12 }
 0x59a   :  { %v16895_v53 = vsub.f32 %v6576_v7, %v16883_v1  ;;  %19301 = vst [vmem:[#allocation37_spill] sm:$0xff] %v16924_v48 }
 0x59b   :  { %v5534_v23 = vpop.permute.xlu0 %5533 }
 0x59c   :  { %v5539_v30 = vadd.f32 %v5534_v23, %v5428_v6  ;;  %v6696_v23 = vsub.f32 %v16881_v47, %v16892_v33  ;;  %v16907_v11 = vand.u32 4294901760, %v16895_v53  ;;  %v6710_v6 = vsub.f32 %v16910_v12, %v16924_v48 }
 0x59e   :  { %19300 = vst [vmem:[#allocation34_spill] sm:$0xff] %v16907_v11  ;;  %v16919_v56 = vand.u32 4294901760, %v6696_v23  ;;  %v6703_v8 = vsub.f32 %v16895_v53, %v16907_v11 }
 0x59f   :  { %v5588_v10 = vpop.permute.xlu0 %5587 }
 0x5a0   :  { %v5593_v62 = vadd.f32 %v5588_v10, %v5539_v30 }
 0x5ae   :  { %v5613_v24 = vpop.permute.xlu1 %5612 }
 0x5af   :  { %v5617_v18 = vadd.f32 %v5613_v24, %v5594_v16  ;;  %v16930_v24 = vand.u32 4294901760, %v6573_v54  ;;  %v16937_v16 = vand.u32 4294901760, %v6703_v8 }
 0x5b1   :  { %v5611_v27 = vpop.permute.xlu0 %5610 }
 0x5b2   :  { %v5626_v60 = vpop.permute.xlu1 %5625  ;;  %v5616_v46 = vadd.f32 %v5611_v27, %v5593_v62  ;;  %v16948_v27 = vsub.f32 %v6573_v54, %v16930_v24 }
 0x5b3   :  { %v5630_v19 = vadd.f32 %v5626_v60, %v5617_v18  ;;  %v16955_v60 = vand.u32 4294901760, %v6710_v6 }
 0x5b4   :  { %v16967_v35 = vand.u32 4294901760, %v16948_v27 }
 0x5b5   :  { %v5639_v63 = vadd.f32 %v12395_v58, %v5630_v19 }
 0x5b6   :  { %v5624_v57 = vpop.permute.xlu1 %5623  ;;  %19303 = vst [vmem:[#allocation43_spill] sm:$0xff] %v16967_v35  ;;  %v6724_v20 = vsub.f32 %v16948_v27, %v16967_v35 }
 0x5b7   :  { %v5646_v17 = vsel %vm5583_vm6, %v5639_v63, 0  ;;  %v5629_v21 = vadd.f32 %v5624_v57, %v5616_v46 }
 0x5b8   :  { %v16772_v61 = vand.u32 4294901760, %v5646_v17  ;;  %v16992_v37 = vand.u32 4294901760, %v6724_v20 }
 0x5b9   :  { %v5638_v0 = vadd.f32 %v12395_v58, %v5629_v21  ;;  %v6571_v58 = vld [vmem:[%s18438_s8] sm:$0xff] }
 0x5ba   :  { %v5755_v4 = vsub.f32 %v5646_v17, %v16772_v61  ;;  %13096 = vmatpush3.msra.mxu0 %v16772_v61  ;;  %v16962_v19 = vand.u32 4294901760, %v6571_v58 }
 0x5bb   :  { %v16778_v51 = vand.u32 4294901760, %v5638_v0  ;;  %13097 = vmatprep.subr.mxu0 %v19298_v13 }
 0x5bc   :  { %v5756_v41 = vand.u32 4294901760, %v5755_v4  ;;  %v16977_v57 = vsub.f32 %v6571_v58, %v16962_v19 }
 0x5bd   :  { %v5762_v28 = vsub.f32 %v5638_v0, %v16778_v51  ;;  %13098 = vmatpush3.msra.mxu0 %v16778_v51 }
 0x5be   :  { %13109 = vmatprep.subr.mxu0 %v19298_v13  ;;  %13100 = vmatmul.mubr.f32.vlgmr.msra.gmra.mxu0 %v5719_v25  ;;  %v5757_v39 = vsub.f32 %v5755_v4, %v5756_v41  ;;  %v16988_v21 = vand.u32 4294901760, %v16977_v57 }
 0x5bf   :  { %13110 = vmatpush3.msra.mxu0 %v5755_v4  ;;  %13113 = vmatprep.mubr.msk.f32.mxu0 %vm14140_vm7, %v19298_v13  ;;  %v5763_v44 = vand.u32 4294901760, %v5762_v28 }
 0x5c0   :  { %13111 = vmatprep.subr.mxu0 %v19298_v13  ;;  %v5758_v32 = vand.u32 4294901760, %v5757_v39  ;;  %v6738_v0 = vsub.f32 %v16977_v57, %v16988_v21 }
 0x5c1   :  { %13112 = vmatpush3.msra.mxu0 %v5762_v28  ;;  %v5764_v31 = vsub.f32 %v5762_v28, %v5763_v44 }
 0x5c2   :  { %13103 = vmatpush3.msra.mxu1 %v5758_v32  ;;  %13123 = vmatprep.subr.mxu0 %v19298_v13 }
 0x5c3   :  { %13114 = vmatmul.mubr.f32.vlgmr.msra.gmra.mxu0 %v16760_v34  ;;  %13104 = vmatprep.subr.mxu1 %v19298_v13  ;;  %v5765_v22 = vand.u32 4294901760, %v5764_v31  ;;  %v6572_v34 = vld [vmem:[%s18438_s8 + $0x8] sm:$0xff] }
 0x5c4   :  { %13124 = vmatpush3.msra.mxu0 %v5756_v41  ;;  %13127 = vmatprep.mubr.msk.f32.mxu0 %vm14140_vm7, %v19298_v13  ;;  %v16944_v18 = vand.u32 4294901760, %v6572_v34 }
 0x5c5   :  { %13125 = vmatprep.subr.mxu0 %v19298_v13  ;;  %13105 = vmatpush3.msra.mxu1 %v5765_v22 }
 0x5c6   :  { %13126 = vmatpush3.msra.mxu0 %v5763_v44  ;;  %13107 = vmatmul.mubr.f32.vlgmr.msra.gmra.mxu1 %v16756_v15  ;;  %v16960_v62 = vsub.f32 %v6572_v34, %v16944_v18 }
 0x5c7   :  { %13116 = vmatprep.subr.mxu1 %v19298_v13  ;;  %13137 = vmatprep.subr.mxu0 %v19298_v13 }
 0x5c8   :  { %13117 = vmatpush3.msra.mxu1 %v16772_v61  ;;  %13128 = vmatmul.mubr.f32.vlgmr.msra.gmra.mxu0 %v16756_v15  ;;  %v16974_v63 = vand.u32 4294901760, %v16960_v62 }
 0x5c9   :  { %13138 = vmatpush3.msra.mxu0 %v16772_v61  ;;  %13118 = vmatprep.subr.mxu1 %v19298_v13 }
 0x5ca   :  { %13139 = vmatprep.subr.mxu0 %v19298_v13  ;;  %13119 = vmatpush3.msra.mxu1 %v16778_v51  ;;  %19304 = vst [vmem:[#allocation46_spill] sm:$0xff] %v16974_v63  ;;  %v6731_v17 = vsub.f32 %v16960_v62, %v16974_v63 }
 0x5cb   :  { %13120 = vmatprep.mubr.msk.f32.mxu1 %vm14140_vm7, %v19298_v13  ;;  %13140 = vmatpush3.msra.mxu0 %v16778_v51 }
 0x5cc   :  { %13121 = vmatmul.mubr.f32.vlgmr.msra.gmra.mxu1 %v5717_v42  ;;  %13130 = vmatprep.subr.mxu1 %v19298_v13 }
 0x5cd   :  { %13141 = vmatprep.mubr.msk.f32.mxu0 %vm14140_vm7, %v19298_v13  ;;  %13151 = vmatprep.subr.mxu0 %v19298_v13 }
 0x5ce   :  { %13131 = vmatpush3.msra.mxu1 %v16772_v61  ;;  %13142 = vmatmul.mubr.f32.vlgmr.msra.gmra.mxu0 %v6183_v45 }
 0x5cf   :  { %13152 = vmatpush3.msra.mxu0 %v5755_v4  ;;  %13132 = vmatprep.subr.mxu1 %v19298_v13  ;;  %v17000_v4 = vand.u32 4294901760, %v6738_v0 }
 0x5d0   :  { %13153 = vmatprep.subr.mxu0 %v19298_v13  ;;  %13133 = vmatpush3.msra.mxu1 %v16778_v51 }
 0x5d1   :  { %13134 = vmatprep.mubr.msk.f32.mxu1 %vm14140_vm7, %v19298_v13  ;;  %13154 = vmatpush3.msra.mxu0 %v5762_v28 }
 0x5d2   :  { %13135 = vmatmul.mubr.f32.vlgmr.msra.gmra.mxu1 %v16756_v15  ;;  %13144 = vmatprep.subr.mxu1 %v19298_v13  ;;  %v16912_v15 = vand.u32 4294901760, %v6574_v9 }
 0x5d3   :  { %13155 = vmatprep.mubr.msk.f32.mxu0 %vm14140_vm7, %v19298_v13  ;;  %13165 = vmatprep.subr.mxu0 %v19298_v13 }
 0x5d4   :  { %13145 = vmatpush3.msra.mxu1 %v5758_v32  ;;  %13156 = vmatmul.mubr.f32.vlgmr.msra.gmra.mxu0 %v16785_v29  ;;  %v16927_v10 = vsub.f32 %v6574_v9, %v16912_v15 }
 0x5d5   :  { %13166 = vmatpush3.msra.mxu0 %v5756_v41  ;;  %13146 = vmatprep.subr.mxu1 %v19298_v13 }
 0x5d6   :  { %13167 = vmatprep.subr.mxu0 %v19298_v13  ;;  %13147 = vmatpush3.msra.mxu1 %v5765_v22  ;;  %v16942_v30 = vand.u32 4294901760, %v16927_v10 }
 0x5d7   :  { %13168 = vmatpush3.msra.mxu0 %v5763_v44  ;;  %13148 = vmatprep.mubr.msk.f32.mxu1 %vm14140_vm7, %v19298_v13 }
 0x5d8   :  { %13158 = vmatprep.subr.mxu1 %v19298_v13  ;;  %13149 = vmatmul.mubr.f32.vlgmr.msra.gmra.mxu1 %v16776_v43  ;;  %19302 = vst [vmem:[#allocation40_spill] sm:$0xff] %v16942_v30  ;;  %v6717_v42 = vsub.f32 %v16927_v10, %v16942_v30 }
 0x5d9   :  { %13159 = vmatpush3.msra.mxu1 %v16772_v61  ;;  %13162 = vmatprep.mubr.msk.f32.mxu1 %vm14140_vm7, %v19298_v13 }
 0x5da   :  { %13160 = vmatprep.subr.mxu1 %v19298_v13  ;;  %13169 = vmatprep.mubr.msk.f32.mxu0 %vm14140_vm7, %v19298_v13  ;;  %v16971_v46 = vand.u32 4294901760, %v6717_v42 }
 0x5db   :  { %13161 = vmatpush3.msra.mxu1 %v16778_v51  ;;  %13170 = vmatmul.mubr.f32.vlgmr.msra.gmra.mxu0 %v16776_v43 }
 0x5dc   :  { %13172 = vmatprep.subr.mxu1 %v19298_v13  ;;  %13163 = vmatmul.mubr.f32.vlgmr.msra.gmra.mxu1 %v6181_v36 }
 0x5dd   :  { %13173 = vmatpush3.msra.mxu1 %v16772_v61  ;;  %13176 = vmatprep.mubr.msk.f32.mxu1 %vm14140_vm7, %v19298_v13  ;;  %v16994_v61 = vand.u32 4294901760, %v6731_v17 }
 0x5de   :  { %13174 = vmatprep.subr.mxu1 %v19298_v13  ;;  %13179 = vmatprep.subr.mxu0 %v19298_v13 }
 0x5df   :  { %13175 = vmatpush3.msra.mxu1 %v16778_v51  ;;  %13180 = vmatpush3.msra.mxu0 %v16845_v40 }
 0x5e0   :  { %13177 = vmatmul.mubr.f32.vlgmr.msra.gmra.mxu1 %v16776_v43  ;;  %13198 = vmatprep.subr.mxu1 %v19298_v13 }
 0x5e1   :  { %13181 = vmatprep.subr.mxu0 %v19298_v13  ;;  %13214 = vmatprep.mubr.msk.f32.mxu1 %vm14140_vm7, %v19298_v13 }
 0x5e2   :  { %13195 = vmatprep.mubr.msk.f32.mxu0 %vm14140_vm7, %v19298_v13  ;;  %13199 = vmatpush3.msra.mxu1 %v16872_v50 }
 0x5e3   :  { %13182 = vmatpush3.msra.mxu0 %v16874_v59  ;;  %13200 = vmatprep.subr.mxu1 %v19298_v13 }
 0x5e4   :  { %13183 = vmatprep.subr.mxu0 %v19298_v13  ;;  %13201 = vmatpush3.msra.mxu1 %v16919_v56 }
 0x5e5   :  { %13184 = vmatpush3.msra.mxu0 %v16883_v1  ;;  %13202 = vmatprep.subr.mxu1 %v19298_v13 }
 0x5e6   :  { %13185 = vmatprep.subr.mxu0 %v19298_v13  ;;  %13203 = vmatpush3.msra.mxu1 %v16937_v16 }
 0x5e7   :  { %13186 = vmatpush3.msra.mxu0 %v16897_v14  ;;  %13204 = vmatprep.subr.mxu1 %v19298_v13 }
 0x5e8   :  { %13187 = vmatprep.subr.mxu0 %v19298_v13  ;;  %13205 = vmatpush3.msra.mxu1 %v16955_v60 }
 0x5e9   :  { %13188 = vmatpush3.msra.mxu0 %v16912_v15  ;;  %13206 = vmatprep.subr.mxu1 %v19298_v13 }
 0x5ea   :  { %13189 = vmatprep.subr.mxu0 %v19298_v13  ;;  %13207 = vmatpush3.msra.mxu1 %v16971_v46 }
 0x5eb   :  { %13190 = vmatpush3.msra.mxu0 %v16930_v24  ;;  %13208 = vmatprep.subr.mxu1 %v19298_v13 }
 0x5ec   :  { %13191 = vmatprep.subr.mxu0 %v19298_v13  ;;  %13209 = vmatpush3.msra.mxu1 %v16992_v37 }
 0x5ed   :  { %13192 = vmatpush3.msra.mxu0 %v16944_v18  ;;  %13210 = vmatprep.subr.mxu1 %v19298_v13 }
 0x5ee   :  { %13193 = vmatprep.subr.mxu0 %v19298_v13  ;;  %13211 = vmatpush3.msra.mxu1 %v16994_v61 }
 0x5ef   :  { %13194 = vmatpush3.msra.mxu0 %v16962_v19  ;;  %13212 = vmatprep.subr.mxu1 %v19298_v13 }
 0x5f0   :  { %13217 = vmatprep.subr.mxu0 %v19298_v13  ;;  %13213 = vmatpush3.msra.mxu1 %v17000_v4 }
 0x5f1   :  { %13236 = vmatprep.subr.mxu1 %v19298_v13 }
 0x67e   :  { %v5721_v25 = vpop.f32.mrf.mxu0 }
 0x680   :  { %v13101_v43 = vpop.f32.mrf.mxu0 }
 0x683   :  { %v5878_v51 = vpop.f32.mrf.mxu0 }
 0x685   :  { %v13115_v41 = vpop.f32.mrf.mxu0 }
 0x686   :  { %v5802_v28 = vpop.f32.mrf.mxu1 }
 0x687   :  { %v5803_v39 = vadd.f32 %v5802_v28, %v5721_v25 }
 0x688   :  { %v13108_v29 = vpop.f32.mrf.mxu1  ;;  %v6030_v44 = vpop.f32.mrf.mxu0 }
 0x689   :  { %v5879_v32 = vadd.f32 %v5878_v51, %v5803_v39 }
 0x68a   :  { %v13129_v31 = vpop.f32.mrf.mxu0 }
 0x68c   :  { %v5953_v36 = vpop.f32.mrf.mxu1 }
 0x68d   :  { %v5954_v22 = vadd.f32 %v5953_v36, %v5879_v32  ;;  %v12404_v32 = vld [vmem:[%s18438_s8 + $0x78] sm:$0x3f] }
 0x68e   :  { %v13122_v55 = vpop.f32.mrf.mxu1  ;;  %v6185_v45 = vpop.f32.mrf.mxu0 }
 0x68f   :  { %v6031_v38 = vadd.f32 %v6030_v44, %v5954_v22  ;;  %v7133_v22 = vsel %vm5583_vm6, %v12404_v32, 0  ;;  %v12403_v55 = vld [vmem:[%s18438_s8 + $0x70] sm:$0xff] }
 0x690   :  { %v13143_v3 = vpop.f32.mrf.mxu0 }
 0x691   :  { %v17066_v3 = vand.u32 4294901760, %v12403_v55 }
 0x692   :  { %v6103_v5 = vpop.f32.mrf.mxu1 }
 0x693   :  { %v6104_v49 = vadd.f32 %v6103_v5, %v6031_v38  ;;  %v12402_v38 = vld [vmem:[%s18438_s8 + $0x68] sm:$0xff]  ;;  %v12401_v5 = vld [vmem:[%s18438_s8 + $0x60] sm:$0xff] }
 0x694   :  { %v13136_v7 = vpop.f32.mrf.mxu1  ;;  %v6342_v2 = vpop.f32.mrf.mxu0 }
 0x695   :  { %v6581_v9 = vsel %vm6579_vm9, %v6104_v49, 0  ;;  %v17078_v7 = vand.u32 4294901760, %v12402_v38 }
 0x696   :  { %v17007_v23 = vand.u32 4294901760, %v6581_v9  ;;  %v13157_v54 = vpop.f32.mrf.mxu0 }
 0x697   :  { %v12400_v54 = vld [vmem:[%s18438_s8 + $0x58] sm:$0xff] }
 0x698   :  { %v17010_v8 = vsub.f32 %v6581_v9, %v17007_v23  ;;  %13215 = vmatmul.mubr.f32.vlgmr.msra.gmra.mxu1 %v17007_v23  ;;  %v6266_v34 = vpop.f32.mrf.mxu1  ;;  %v17087_v9 = vand.u32 4294901760, %v12401_v5 }
 0x699   :  { %13237 = vmatpush3.msra.mxu1 %v16845_v40  ;;  %13252 = vmatprep.mubr.msk.f32.mxu1 %vm14140_vm7, %v19298_v13  ;;  %v6267_v6 = vadd.f32 %v6266_v34, %v6185_v45  ;;  %v17055_v45 = vand.u32 4294901760, %v7133_v22 }
 0x69a   :  { %v17017_v58 = vand.u32 4294901760, %v17010_v8  ;;  %13238 = vmatprep.subr.mxu1 %v19298_v13  ;;  %v13150_v42 = vpop.f32.mrf.mxu1 }
 0x69b   :  { %13239 = vmatpush3.msra.mxu1 %v16874_v59  ;;  %v6343_v20 = vadd.f32 %v6342_v2, %v6267_v6  ;;  %v6494_v17 = vpop.f32.mrf.mxu0  ;;  %v17074_v49 = vsub.f32 %v7133_v22, %v17055_v45  ;;  %v17085_v2 = vsub.f32 %v12403_v55, %v17066_v3  ;;  %v17101_v6 = vsub.f32 %v12402_v38, %v17078_v7  ;;  %v12399_v42 = vld [vmem:[%s18438_s8 + $0x50] sm:$0xff] }
 0x69c   :  { %13240 = vmatprep.subr.mxu1 %v19298_v13  ;;  %v6662_v0 = vsub.f32 %v17010_v8, %v17017_v58  ;;  %v6417_v25 = vpop.f32.mrf.mxu1 }
 0x69d   :  { %13241 = vmatpush3.msra.mxu1 %v16883_v1  ;;  %v6418_v43 = vadd.f32 %v6417_v25, %v6343_v20  ;;  %v13171_v51 = vpop.f32.mrf.mxu0  ;;  %v17098_v34 = vand.u32 4294901760, %v17074_v49  ;;  %v17108_v20 = vand.u32 4294901760, %v12400_v54  ;;  %v12398_v25 = vld [vmem:[%s18438_s8 + $0x48] sm:$0xff] }
 0x69e   :  { %13242 = vmatprep.subr.mxu1 %v19298_v13  ;;  %v17026_v41 = vand.u32 4294901760, %v6662_v0  ;;  %v13164_v28 = vpop.f32.mrf.mxu1  ;;  %v17116_v0 = vsub.f32 %v12401_v5, %v17087_v9 }
 0x69f   :  { %13243 = vmatpush3.msra.mxu1 %v16897_v14  ;;  %v6495_v39 = vadd.f32 %v6494_v17, %v6418_v43  ;;  %v17113_v17 = vand.u32 4294901760, %v17085_v2  ;;  %v17123_v43 = vand.u32 4294901760, %v12399_v42  ;;  %v7238_v51 = vsub.f32 %v17074_v49, %v17098_v34 }
 0x6a0   :  { %13244 = vmatprep.subr.mxu1 %v19298_v13  ;;  %13196 = vmatmul.mubr.f32.vlgmr.msra.gmra.mxu0 %v17026_v41  ;;  %v6567_v29 = vpop.f32.mrf.mxu1  ;;  %v17130_v28 = vand.u32 4294901760, %v17101_v6 }
 0x6a1   :  { %13218 = vmatpush3.msra.mxu0 %v16862_v52  ;;  %13245 = vmatpush3.msra.mxu1 %v16912_v15  ;;  %v6568_v44 = vadd.f32 %v6567_v29, %v6495_v39  ;;  %v12397_v39 = vld [vmem:[%s18438_s8 + $0x40] sm:$0xff]  ;;  %v17138_v29 = vsub.f32 %v12400_v54, %v17108_v20  ;;  %v7245_v32 = vsub.f32 %v17085_v2, %v17113_v17  ;;  %v17158_v38 = vand.u32 4294901760, %v7238_v51 }
 0x6a2   :  { %13219 = vmatprep.subr.mxu0 %v19298_v13  ;;  %13246 = vmatprep.subr.mxu1 %v19298_v13  ;;  %v13178_v31 = vpop.f32.mrf.mxu1  ;;  %v17152_v22 = vsub.f32 %v12399_v42, %v17123_v43  ;;  %v17154_v55 = vand.u32 4294901760, %v12397_v39  ;;  %v7252_v5 = vsub.f32 %v17101_v6, %v17130_v28 }
 0x6a3   :  { %13220 = vmatpush3.msra.mxu0 %v16881_v47  ;;  %13247 = vmatpush3.msra.mxu1 %v16930_v24  ;;  %v17041_v36 = vsel %vm6579_vm9, %v6568_v44, 0  ;;  %v17140_v44 = vand.u32 4294901760, %v12398_v25  ;;  %v17147_v31 = vand.u32 4294901760, %v17116_v0  ;;  %v17166_v54 = vand.u32 4294901760, %v17138_v29 }
 0x6a4   :  { %13221 = vmatprep.subr.mxu0 %v19298_v13  ;;  %13248 = vmatprep.subr.mxu1 %v19298_v13  ;;  %v17173_v51 = vand.u32 4294901760, %v7245_v32 }
 0x6a5   :  { %13222 = vmatpush3.msra.mxu0 %v16895_v53  ;;  %13249 = vmatpush3.msra.mxu1 %v16944_v18  ;;  %v17169_v42 = vsub.f32 %v12398_v25, %v17140_v44  ;;  %v17187_v25 = vand.u32 4294901760, %v7252_v5  ;;  %v7266_v32 = vsub.f32 %v17138_v29, %v17166_v54 }
 0x6a6   :  { %13223 = vmatprep.subr.mxu0 %v19298_v13  ;;  %13250 = vmatprep.subr.mxu1 %v19298_v13  ;;  %19305 = vst [vmem:[#allocation5_spill] sm:$0xff] %v17173_v51 }
 0x6a7   :  { %13224 = vmatpush3.msra.mxu0 %v16910_v12  ;;  %13251 = vmatpush3.msra.mxu1 %v16962_v19  ;;  %19306 = vst [vmem:[#allocation49_spill] sm:$0xff] %v17187_v25 }
 0x6a8   :  { %13225 = vmatprep.subr.mxu0 %v19298_v13  ;;  %13253 = vmatmul.mubr.f32.vlgmr.msra.gmra.mxu1 %v17017_v58 }
 0x6a9   :  { %13274 = vmatprep.subr.mxu1 %v19298_v13  ;;  %13226 = vmatpush3.msra.mxu0 %v16927_v10 }
 0x6aa   :  { %13275 = vmatpush3.msra.mxu1 %v16845_v40  ;;  %13227 = vmatprep.subr.mxu0 %v19298_v13 }
 0x6ab   :  { %13276 = vmatprep.subr.mxu1 %v19298_v13  ;;  %13228 = vmatpush3.msra.mxu0 %v16948_v27 }
 0x6ac   :  { %13277 = vmatpush3.msra.mxu1 %v16874_v59  ;;  %13229 = vmatprep.subr.mxu0 %v19298_v13 }
 0x6ad   :  { %13278 = vmatprep.subr.mxu1 %v19298_v13  ;;  %13230 = vmatpush3.msra.mxu0 %v16960_v62 }
 0x6ae   :  { %13279 = vmatpush3.msra.mxu1 %v16883_v1  ;;  %13231 = vmatprep.subr.mxu0 %v19298_v13 }
 0x6af   :  { %13280 = vmatprep.subr.mxu1 %v19298_v13  ;;  %13232 = vmatpush3.msra.mxu0 %v16977_v57 }
 0x6b0   :  { %13233 = vmatprep.mubr.msk.f32.mxu0 %vm14140_vm7, %v19298_v13  ;;  %13281 = vmatpush3.msra.mxu1 %v16897_v14 }
 0x6b1   :  { %13234 = vmatmul.mubr.f32.vlgmr.msra.gmra.mxu0 %v17010_v8  ;;  %13255 = vmatprep.subr.mxu0 %v19298_v13 }
 0x6b2   :  { %13282 = vmatprep.subr.mxu1 %v19298_v13  ;;  %13256 = vmatpush3.msra.mxu0 %v16865_v26 }
 0x6b3   :  { %13283 = vmatpush3.msra.mxu1 %v16912_v15  ;;  %13257 = vmatprep.subr.mxu0 %v19298_v13 }
 0x6b4   :  { %13284 = vmatprep.subr.mxu1 %v19298_v13  ;;  %13258 = vmatpush3.msra.mxu0 %v16892_v33  ;;  %v17183_v33 = vsub.f32 %v12397_v39, %v17154_v55 }
 0x6b5   :  { %13285 = vmatpush3.msra.mxu1 %v16930_v24  ;;  %13259 = vmatprep.subr.mxu0 %v19298_v13 }
 0x6b6   :  { %13286 = vmatprep.subr.mxu1 %v19298_v13  ;;  %13260 = vmatpush3.msra.mxu0 %v16907_v11  ;;  %v17180_v11 = vand.u32 4294901760, %v17152_v22 }
 0x6b7   :  { %13287 = vmatpush3.msra.mxu1 %v16944_v18  ;;  %13261 = vmatprep.subr.mxu0 %v19298_v13 }
 0x6b8   :  { %13288 = vmatprep.subr.mxu1 %v19298_v13  ;;  %13262 = vmatpush3.msra.mxu0 %v16924_v48  ;;  %v7259_v48 = vsub.f32 %v17116_v0, %v17147_v31  ;;  %v7273_v5 = vsub.f32 %v17152_v22, %v17180_v11 }
 0x6b9   :  { %13289 = vmatpush3.msra.mxu1 %v16962_v19  ;;  %13290 = vmatprep.mubr.msk.f32.mxu1 %vm14140_vm7, %v19298_v13 }
 0x6ba   :  { %13263 = vmatprep.subr.mxu0 %v19298_v13  ;;  %13291 = vmatmul.mubr.f32.vlgmr.msra.gmra.mxu1 %v17007_v23  ;;  %v17198_v39 = vand.u32 4294901760, %v7259_v48  ;;  %v17211_v48 = vand.u32 4294901760, %v7266_v32 }
 0x6bb   :  { %13312 = vmatprep.subr.mxu1 %v19298_v13  ;;  %13264 = vmatpush3.msra.mxu0 %v16942_v30  ;;  %v17194_v30 = vand.u32 4294901760, %v17169_v42 }
 0x6bc   :  { %13313 = vmatpush3.msra.mxu1 %v17158_v38  ;;  %13265 = vmatprep.subr.mxu0 %v19298_v13 }
 0x6bd   :  { %13314 = vmatprep.subr.mxu1 %v19298_v13  ;;  %13266 = vmatpush3.msra.mxu0 %v16967_v35  ;;  %v17205_v35 = vand.u32 4294901760, %v17183_v33 }
 0x6be   :  { %13315 = vmatpush3.msra.mxu1 %v17173_v51  ;;  %13267 = vmatprep.subr.mxu0 %v19298_v13  ;;  %v7280_v51 = vsub.f32 %v17169_v42, %v17194_v30 }
 0x6bf   :  { %13316 = vmatprep.subr.mxu1 %v19298_v13  ;;  %13268 = vmatpush3.msra.mxu0 %v16974_v63  ;;  %v7287_v63 = vsub.f32 %v17183_v33, %v17205_v35 }
 0x6c0   :  { %13317 = vmatpush3.msra.mxu1 %v17187_v25  ;;  %13269 = vmatprep.subr.mxu0 %v19298_v13  ;;  %v17220_v25 = vand.u32 4294901760, %v7273_v5  ;;  %v17228_v32 = vand.u32 4294901760, %v7280_v51 }
 0x6c1   :  { %13318 = vmatprep.subr.mxu1 %v19298_v13  ;;  %13270 = vmatpush3.msra.mxu0 %v16988_v21  ;;  %v17234_v5 = vand.u32 4294901760, %v7287_v63 }
 0x6c2   :  { %13271 = vmatprep.mubr.msk.f32.mxu0 %vm14140_vm7, %v19298_v13  ;;  %13319 = vmatpush3.msra.mxu1 %v17198_v39 }
 0x6c3   :  { %13272 = vmatmul.mubr.f32.vlgmr.msra.gmra.mxu0 %v17007_v23  ;;  %13293 = vmatprep.subr.mxu0 %v19298_v13 }
 0x6c4   :  { %13320 = vmatprep.subr.mxu1 %v19298_v13  ;;  %13294 = vmatpush3.msra.mxu0 %v17055_v45 }
 0x6c5   :  { %13321 = vmatpush3.msra.mxu1 %v17211_v48  ;;  %13295 = vmatprep.subr.mxu0 %v19298_v13 }
 0x6c6   :  { %13322 = vmatprep.subr.mxu1 %v19298_v13  ;;  %13296 = vmatpush3.msra.mxu0 %v17066_v3 }
 0x6c7   :  { %13323 = vmatpush3.msra.mxu1 %v17220_v25  ;;  %13297 = vmatprep.subr.mxu0 %v19298_v13 }
 0x6c8   :  { %13324 = vmatprep.subr.mxu1 %v19298_v13  ;;  %13298 = vmatpush3.msra.mxu0 %v17078_v7 }
 0x6c9   :  { %13325 = vmatpush3.msra.mxu1 %v17228_v32  ;;  %13299 = vmatprep.subr.mxu0 %v19298_v13 }
 0x6ca   :  { %13326 = vmatprep.subr.mxu1 %v19298_v13  ;;  %13300 = vmatpush3.msra.mxu0 %v17087_v9 }
 0x6cb   :  { %13327 = vmatpush3.msra.mxu1 %v17234_v5  ;;  %13328 = vmatprep.mubr.msk.f32.mxu1 %vm14140_vm7, %v19298_v13 }
 0x6cc   :  { %13301 = vmatprep.subr.mxu0 %v19298_v13  ;;  %13329 = vmatmul.mubr.f32.vlgmr.msra.gmra.mxu1 %v17007_v23 }
 0x6cd   :  { %13350 = vmatprep.subr.mxu1 %v19298_v13  ;;  %13302 = vmatpush3.msra.mxu0 %v17108_v20 }
 0x6ce   :  { %13351 = vmatpush3.msra.mxu1 %v17055_v45  ;;  %13303 = vmatprep.subr.mxu0 %v19298_v13 }
 0x6cf   :  { %13352 = vmatprep.subr.mxu1 %v19298_v13  ;;  %13304 = vmatpush3.msra.mxu0 %v17123_v43 }
 0x6d0   :  { %13353 = vmatpush3.msra.mxu1 %v17066_v3  ;;  %13305 = vmatprep.subr.mxu0 %v19298_v13 }
 0x6d1   :  { %13354 = vmatprep.subr.mxu1 %v19298_v13  ;;  %13306 = vmatpush3.msra.mxu0 %v17140_v44 }
 0x6d2   :  { %13355 = vmatpush3.msra.mxu1 %v17078_v7  ;;  %13307 = vmatprep.subr.mxu0 %v19298_v13 }
 0x6d3   :  { %13356 = vmatprep.subr.mxu1 %v19298_v13  ;;  %13308 = vmatpush3.msra.mxu0 %v17154_v55 }
 0x6d4   :  { %13309 = vmatprep.mubr.msk.f32.mxu0 %vm14140_vm7, %v19298_v13  ;;  %13357 = vmatpush3.msra.mxu1 %v17087_v9 }
 0x6d5   :  { %13310 = vmatmul.mubr.f32.vlgmr.msra.gmra.mxu0 %v17026_v41  ;;  %13331 = vmatprep.subr.mxu0 %v19298_v13 }
 0x6d6   :  { %13358 = vmatprep.subr.mxu1 %v19298_v13  ;;  %13332 = vmatpush3.msra.mxu0 %v17074_v49 }
 0x6d7   :  { %13359 = vmatpush3.msra.mxu1 %v17108_v20  ;;  %13333 = vmatprep.subr.mxu0 %v19298_v13 }
 0x6d8   :  { %13360 = vmatprep.subr.mxu1 %v19298_v13  ;;  %13334 = vmatpush3.msra.mxu0 %v17085_v2 }
 0x6d9   :  { %13361 = vmatpush3.msra.mxu1 %v17123_v43  ;;  %13335 = vmatprep.subr.mxu0 %v19298_v13 }
 0x6da   :  { %13362 = vmatprep.subr.mxu1 %v19298_v13  ;;  %13336 = vmatpush3.msra.mxu0 %v17101_v6 }
 0x6db   :  { %13363 = vmatpush3.msra.mxu1 %v17140_v44  ;;  %13337 = vmatprep.subr.mxu0 %v19298_v13 }
 0x6dc   :  { %13364 = vmatprep.subr.mxu1 %v19298_v13  ;;  %13338 = vmatpush3.msra.mxu0 %v17116_v0 }
 0x6dd   :  { %13365 = vmatpush3.msra.mxu1 %v17154_v55  ;;  %13366 = vmatprep.mubr.msk.f32.mxu1 %vm14140_vm7, %v19298_v13 }
 0x6de   :  { %13339 = vmatprep.subr.mxu0 %v19298_v13  ;;  %13367 = vmatmul.mubr.f32.vlgmr.msra.gmra.mxu1 %v17017_v58 }
 0x6df   :  { %13388 = vmatprep.subr.mxu1 %v19298_v13  ;;  %13340 = vmatpush3.msra.mxu0 %v17138_v29 }
 0x6e0   :  { %13389 = vmatpush3.msra.mxu1 %v17055_v45  ;;  %13341 = vmatprep.subr.mxu0 %v19298_v13 }
 0x6e1   :  { %13390 = vmatprep.subr.mxu1 %v19298_v13  ;;  %13342 = vmatpush3.msra.mxu0 %v17152_v22 }
 0x6e2   :  { %13391 = vmatpush3.msra.mxu1 %v17066_v3  ;;  %13343 = vmatprep.subr.mxu0 %v19298_v13 }
 0x6e3   :  { %13392 = vmatprep.subr.mxu1 %v19298_v13  ;;  %13344 = vmatpush3.msra.mxu0 %v17169_v42 }
 0x6e4   :  { %13393 = vmatpush3.msra.mxu1 %v17078_v7  ;;  %13345 = vmatprep.subr.mxu0 %v19298_v13 }
 0x6e5   :  { %13394 = vmatprep.subr.mxu1 %v19298_v13  ;;  %13346 = vmatpush3.msra.mxu0 %v17183_v33 }
 0x6e6   :  { %13347 = vmatprep.mubr.msk.f32.mxu0 %vm14140_vm7, %v19298_v13  ;;  %13395 = vmatpush3.msra.mxu1 %v17087_v9 }
 0x6e7   :  { %13348 = vmatmul.mubr.f32.vlgmr.msra.gmra.mxu0 %v17010_v8  ;;  %13369 = vmatprep.subr.mxu0 %v19298_v13 }
 0x6e8   :  { %13396 = vmatprep.subr.mxu1 %v19298_v13  ;;  %13370 = vmatpush3.msra.mxu0 %v17098_v34 }
 0x6e9   :  { %13397 = vmatpush3.msra.mxu1 %v17108_v20  ;;  %13371 = vmatprep.subr.mxu0 %v19298_v13 }
 0x6ea   :  { %13398 = vmatprep.subr.mxu1 %v19298_v13  ;;  %13372 = vmatpush3.msra.mxu0 %v17113_v17 }
 0x6eb   :  { %13399 = vmatpush3.msra.mxu1 %v17123_v43  ;;  %13373 = vmatprep.subr.mxu0 %v19298_v13 }
 0x6ec   :  { %13400 = vmatprep.subr.mxu1 %v19298_v13  ;;  %13374 = vmatpush3.msra.mxu0 %v17130_v28 }
 0x6ed   :  { %13401 = vmatpush3.msra.mxu1 %v17140_v44  ;;  %13375 = vmatprep.subr.mxu0 %v19298_v13 }
 0x6ee   :  { %13402 = vmatprep.subr.mxu1 %v19298_v13  ;;  %13376 = vmatpush3.msra.mxu0 %v17147_v31 }
 0x6ef   :  { %13403 = vmatpush3.msra.mxu1 %v17154_v55  ;;  %13404 = vmatprep.mubr.msk.f32.mxu1 %vm14140_vm7, %v19298_v13 }
 0x6f0   :  { %13377 = vmatprep.subr.mxu0 %v19298_v13  ;;  %13405 = vmatmul.mubr.f32.vlgmr.msra.gmra.mxu1 %v17007_v23 }
 0x6f1   :  { %13426 = vmatprep.subr.mxu1 %v19298_v13  ;;  %13378 = vmatpush3.msra.mxu0 %v17166_v54 }
 0x6f2   :  { %13427 = vmatpush3.msra.mxu1 %v16872_v50  ;;  %13379 = vmatprep.subr.mxu0 %v19298_v13  ;;  %v17343_v50 = vand.u32 4294901760, %v17041_v36 }
 0x6f3   :  { %13428 = vmatprep.subr.mxu1 %v19298_v13  ;;  %13380 = vmatpush3.msra.mxu0 %v17180_v11 }
 0x6f4   :  { %13429 = vmatpush3.msra.mxu1 %v16919_v56  ;;  %13381 = vmatprep.subr.mxu0 %v19298_v13  ;;  %v17353_v56 = vsub.f32 %v17041_v36, %v17343_v50 }
 0x6f5   :  { %13430 = vmatprep.subr.mxu1 %v19298_v13  ;;  %13382 = vmatpush3.msra.mxu0 %v17194_v30 }
 0x6f6   :  { %13431 = vmatpush3.msra.mxu1 %v16937_v16  ;;  %13383 = vmatprep.subr.mxu0 %v19298_v13  ;;  %v17364_v16 = vand.u32 4294901760, %v17353_v56 }
 0x6f7   :  { %13432 = vmatprep.subr.mxu1 %v19298_v13  ;;  %13384 = vmatpush3.msra.mxu0 %v17205_v35 }
 0x6f8   :  { %13385 = vmatprep.mubr.msk.f32.mxu0 %vm14140_vm7, %v19298_v13  ;;  %13433 = vmatpush3.msra.mxu1 %v16955_v60  ;;  %v7751_v60 = vsub.f32 %v17353_v56, %v17364_v16 }
 0x6f9   :  { %13386 = vmatmul.mubr.f32.vlgmr.msra.gmra.mxu0 %v17007_v23  ;;  %13407 = vmatprep.subr.mxu0 %v19298_v13 }
 0x6fa   :  { %13434 = vmatprep.subr.mxu1 %v19298_v13  ;;  %13408 = vmatpush3.msra.mxu0 %v16845_v40 }
 0x6fb   :  { %13435 = vmatpush3.msra.mxu1 %v16971_v46  ;;  %13409 = vmatprep.subr.mxu0 %v19298_v13  ;;  %v17387_v46 = vand.u32 4294901760, %v7751_v60 }
 0x6fc   :  { %13436 = vmatprep.subr.mxu1 %v19298_v13  ;;  %13410 = vmatpush3.msra.mxu0 %v16874_v59 }
 0x6fd   :  { %13437 = vmatpush3.msra.mxu1 %v16992_v37  ;;  %13411 = vmatprep.subr.mxu0 %v19298_v13 }
 0x6fe   :  { %13438 = vmatprep.subr.mxu1 %v19298_v13  ;;  %13412 = vmatpush3.msra.mxu0 %v16883_v1 }
 0x6ff   :  { %13439 = vmatpush3.msra.mxu1 %v16994_v61  ;;  %13413 = vmatprep.subr.mxu0 %v19298_v13 }
 0x700   :  { %13440 = vmatprep.subr.mxu1 %v19298_v13  ;;  %13414 = vmatpush3.msra.mxu0 %v16897_v14 }
 0x701   :  { %13441 = vmatpush3.msra.mxu1 %v17000_v4  ;;  %13415 = vmatprep.subr.mxu0 %v19298_v13 }
 0x702   :  { %13442 = vmatprep.mubr.msk.f32.mxu1 %vm14140_vm7, %v19298_v13  ;;  %13464 = vmatprep.subr.mxu1 %v19298_v13 }
 0x703   :  { %13416 = vmatpush3.msra.mxu0 %v16912_v15  ;;  %13443 = vmatmul.mubr.f32.vlgmr.msra.gmra.mxu1 %v17343_v50 }
 0x704   :  { %13465 = vmatpush3.msra.mxu1 %v16845_v40  ;;  %13417 = vmatprep.subr.mxu0 %v19298_v13 }
 0x705   :  { %13466 = vmatprep.subr.mxu1 %v19298_v13  ;;  %13418 = vmatpush3.msra.mxu0 %v16930_v24 }
 0x706   :  { %13467 = vmatpush3.msra.mxu1 %v16874_v59  ;;  %13419 = vmatprep.subr.mxu0 %v19298_v13 }
 0x707   :  { %13468 = vmatprep.subr.mxu1 %v19298_v13  ;;  %13420 = vmatpush3.msra.mxu0 %v16944_v18 }
 0x708   :  { %13469 = vmatpush3.msra.mxu1 %v16883_v1  ;;  %13421 = vmatprep.subr.mxu0 %v19298_v13 }
 0x709   :  { %13470 = vmatprep.subr.mxu1 %v19298_v13  ;;  %13422 = vmatpush3.msra.mxu0 %v16962_v19 }
 0x70a   :  { %13423 = vmatprep.mubr.msk.f32.mxu0 %vm14140_vm7, %v19298_v13  ;;  %13471 = vmatpush3.msra.mxu1 %v16897_v14 }
 0x70b   :  { %13424 = vmatmul.mubr.f32.vlgmr.msra.gmra.mxu0 %v17387_v46  ;;  %13445 = vmatprep.subr.mxu0 %v19298_v13 }
 0x70c   :  { %13472 = vmatprep.subr.mxu1 %v19298_v13  ;;  %13446 = vmatpush3.msra.mxu0 %v16862_v52  ;;  %v19308_v52 = vld [vmem:[#allocation34_spill] sm:$0xff] }
 0x70d   :  { %13473 = vmatpush3.msra.mxu1 %v16912_v15  ;;  %13447 = vmatprep.subr.mxu0 %v19298_v13 }
 0x70e   :  { %13474 = vmatprep.subr.mxu1 %v19298_v13  ;;  %13448 = vmatpush3.msra.mxu0 %v16881_v47  ;;  %v19311_v47 = vld [vmem:[#allocation43_spill] sm:$0xff] }
 0x70f   :  { %13475 = vmatpush3.msra.mxu1 %v16930_v24  ;;  %13449 = vmatprep.subr.mxu0 %v19298_v13 }
 0x710   :  { %13476 = vmatprep.subr.mxu1 %v19298_v13  ;;  %13450 = vmatpush3.msra.mxu0 %v16895_v53  ;;  %v19313_v53 = vld [vmem:[#allocation46_spill] sm:$0xff] }
 0x711   :  { %13477 = vmatpush3.msra.mxu1 %v16944_v18  ;;  %13451 = vmatprep.subr.mxu0 %v19298_v13 }
 0x712   :  { %13478 = vmatprep.subr.mxu1 %v19298_v13  ;;  %13452 = vmatpush3.msra.mxu0 %v16910_v12 }
 0x713   :  { %13479 = vmatpush3.msra.mxu1 %v16962_v19  ;;  %13480 = vmatprep.mubr.msk.f32.mxu1 %vm14140_vm7, %v19298_v13 }
 0x714   :  { %13453 = vmatprep.subr.mxu0 %v19298_v13  ;;  %13481 = vmatmul.mubr.f32.vlgmr.msra.gmra.mxu1 %v17364_v16 }
 0x715   :  { %13502 = vmatprep.subr.mxu1 %v19298_v13  ;;  %13454 = vmatpush3.msra.mxu0 %v16927_v10 }
 0x716   :  { %13503 = vmatpush3.msra.mxu1 %v16845_v40  ;;  %13455 = vmatprep.subr.mxu0 %v19298_v13  ;;  %v19307_v40 = vld [vmem:[#allocation31_spill] sm:$0xff] }
 0x717   :  { %13504 = vmatprep.subr.mxu1 %v19298_v13  ;;  %13456 = vmatpush3.msra.mxu0 %v16948_v27 }
 0x718   :  { %13505 = vmatpush3.msra.mxu1 %v16874_v59  ;;  %13457 = vmatprep.subr.mxu0 %v19298_v13  ;;  %v19310_v59 = vld [vmem:[#allocation40_spill] sm:$0xff] }
 0x719   :  { %13506 = vmatprep.subr.mxu1 %v19298_v13  ;;  %13458 = vmatpush3.msra.mxu0 %v16960_v62 }
 0x71a   :  { %13507 = vmatpush3.msra.mxu1 %v16883_v1  ;;  %13459 = vmatprep.subr.mxu0 %v19298_v13  ;;  %v19312_v1 = vld [vmem:[#allocation5_spill] sm:$0xff] }
 0x71b   :  { %13508 = vmatprep.subr.mxu1 %v19298_v13  ;;  %13460 = vmatpush3.msra.mxu0 %v16977_v57 }
 0x71c   :  { %13461 = vmatprep.mubr.msk.f32.mxu0 %vm14140_vm7, %v19298_v13  ;;  %13509 = vmatpush3.msra.mxu1 %v16897_v14  ;;  %v19314_v14 = vld [vmem:[#allocation49_spill] sm:$0xff] }
 0x71d   :  { %13462 = vmatmul.mubr.f32.vlgmr.msra.gmra.mxu0 %v17353_v56  ;;  %13483 = vmatprep.subr.mxu0 %v19298_v13 }
 0x71e   :  { %13510 = vmatprep.subr.mxu1 %v19298_v13  ;;  %13484 = vmatpush3.msra.mxu0 %v16865_v26  ;;  %v19309_v26 = vld [vmem:[#allocation37_spill] sm:$0xff] }
 0x71f   :  { %13511 = vmatpush3.msra.mxu1 %v16912_v15  ;;  %13485 = vmatprep.subr.mxu0 %v19298_v13 }
 0x720   :  { %13512 = vmatprep.subr.mxu1 %v19298_v13  ;;  %13486 = vmatpush3.msra.mxu0 %v19307_v40 }
 0x721   :  { %13513 = vmatpush3.msra.mxu1 %v16930_v24  ;;  %13487 = vmatprep.subr.mxu0 %v19298_v13 }
 0x722   :  { %13514 = vmatprep.subr.mxu1 %v19298_v13  ;;  %13488 = vmatpush3.msra.mxu0 %v19308_v52 }
 0x723   :  { %13515 = vmatpush3.msra.mxu1 %v16944_v18  ;;  %13489 = vmatprep.subr.mxu0 %v19298_v13 }
 0x724   :  { %13516 = vmatprep.subr.mxu1 %v19298_v13  ;;  %13490 = vmatpush3.msra.mxu0 %v19309_v26 }
 0x725   :  { %13517 = vmatpush3.msra.mxu1 %v16962_v19  ;;  %13518 = vmatprep.mubr.msk.f32.mxu1 %vm14140_vm7, %v19298_v13 }
 0x726   :  { %13491 = vmatprep.subr.mxu0 %v19298_v13  ;;  %13519 = vmatmul.mubr.f32.vlgmr.msra.gmra.mxu1 %v17343_v50 }
 0x727   :  { %13540 = vmatprep.subr.mxu1 %v19298_v13  ;;  %13492 = vmatpush3.msra.mxu0 %v19310_v59 }
 0x728   :  { %13541 = vmatpush3.msra.mxu1 %v17158_v38  ;;  %13493 = vmatprep.subr.mxu0 %v19298_v13 }
 0x729   :  { %13542 = vmatprep.subr.mxu1 %v19298_v13  ;;  %13494 = vmatpush3.msra.mxu0 %v19311_v47 }
 0x72a   :  { %13543 = vmatpush3.msra.mxu1 %v19312_v1  ;;  %13495 = vmatprep.subr.mxu0 %v19298_v13 }
 0x72b   :  { %13544 = vmatprep.subr.mxu1 %v19298_v13  ;;  %13496 = vmatpush3.msra.mxu0 %v19313_v53 }
 0x72c   :  { %13545 = vmatpush3.msra.mxu1 %v19314_v14  ;;  %13497 = vmatprep.subr.mxu0 %v19298_v13 }
 0x72d   :  { %13546 = vmatprep.subr.mxu1 %v19298_v13  ;;  %13498 = vmatpush3.msra.mxu0 %v16988_v21 }
 0x72e   :  { %13499 = vmatprep.mubr.msk.f32.mxu0 %vm14140_vm7, %v19298_v13  ;;  %13547 = vmatpush3.msra.mxu1 %v17198_v39 }
 0x72f   :  { %13500 = vmatmul.mubr.f32.vlgmr.msra.gmra.mxu0 %v17343_v50  ;;  %13521 = vmatprep.subr.mxu0 %v19298_v13 }
 0x730   :  { %13548 = vmatprep.subr.mxu1 %v19298_v13  ;;  %13522 = vmatpush3.msra.mxu0 %v17055_v45 }
 0x731   :  { %13549 = vmatpush3.msra.mxu1 %v17211_v48  ;;  %13523 = vmatprep.subr.mxu0 %v19298_v13 }
 0x732   :  { %13550 = vmatprep.subr.mxu1 %v19298_v13  ;;  %13524 = vmatpush3.msra.mxu0 %v17066_v3 }
 0x733   :  { %13551 = vmatpush3.msra.mxu1 %v17220_v25  ;;  %13525 = vmatprep.subr.mxu0 %v19298_v13 }
 0x734   :  { %13552 = vmatprep.subr.mxu1 %v19298_v13  ;;  %13526 = vmatpush3.msra.mxu0 %v17078_v7 }
 0x735   :  { %13553 = vmatpush3.msra.mxu1 %v17228_v32  ;;  %13527 = vmatprep.subr.mxu0 %v19298_v13 }
 0x736   :  { %13554 = vmatprep.subr.mxu1 %v19298_v13  ;;  %13528 = vmatpush3.msra.mxu0 %v17087_v9 }
 0x737   :  { %13555 = vmatpush3.msra.mxu1 %v17234_v5  ;;  %13556 = vmatprep.mubr.msk.f32.mxu1 %vm14140_vm7, %v19298_v13 }
 0x738   :  { %13529 = vmatprep.subr.mxu0 %v19298_v13  ;;  %13557 = vmatmul.mubr.f32.vlgmr.msra.gmra.mxu1 %v17343_v50 }
 0x739   :  { %13578 = vmatprep.subr.mxu1 %v19298_v13  ;;  %13530 = vmatpush3.msra.mxu0 %v17108_v20 }
 0x73a   :  { %13579 = vmatpush3.msra.mxu1 %v17055_v45  ;;  %13531 = vmatprep.subr.mxu0 %v19298_v13 }
 0x73b   :  { %13580 = vmatprep.subr.mxu1 %v19298_v13  ;;  %13532 = vmatpush3.msra.mxu0 %v17123_v43 }
 0x73c   :  { %13581 = vmatpush3.msra.mxu1 %v17066_v3  ;;  %13533 = vmatprep.subr.mxu0 %v19298_v13 }
 0x73d   :  { %13582 = vmatprep.subr.mxu1 %v19298_v13  ;;  %13534 = vmatpush3.msra.mxu0 %v17140_v44 }
 0x73e   :  { %13583 = vmatpush3.msra.mxu1 %v17078_v7  ;;  %13535 = vmatprep.subr.mxu0 %v19298_v13 }
 0x73f   :  { %13584 = vmatprep.subr.mxu1 %v19298_v13  ;;  %13536 = vmatpush3.msra.mxu0 %v17154_v55 }
 0x740   :  { %13537 = vmatprep.mubr.msk.f32.mxu0 %vm14140_vm7, %v19298_v13  ;;  %13585 = vmatpush3.msra.mxu1 %v17087_v9 }
 0x741   :  { %13538 = vmatmul.mubr.f32.vlgmr.msra.gmra.mxu0 %v17387_v46  ;;  %13559 = vmatprep.subr.mxu0 %v19298_v13 }
 0x742   :  { %13586 = vmatprep.subr.mxu1 %v19298_v13  ;;  %13560 = vmatpush3.msra.mxu0 %v17074_v49 }
 0x743   :  { %13587 = vmatpush3.msra.mxu1 %v17108_v20  ;;  %13561 = vmatprep.subr.mxu0 %v19298_v13 }
 0x744   :  { %13588 = vmatprep.subr.mxu1 %v19298_v13  ;;  %13562 = vmatpush3.msra.mxu0 %v17085_v2  ;;  %v12407_v2 = vld [vmem:[%s18439_s9 + $0x30] sm:$0xff] }
 0x745   :  { %13589 = vmatpush3.msra.mxu1 %v17123_v43  ;;  %13563 = vmatprep.subr.mxu0 %v19298_v13 }
 0x746   :  { %13590 = vmatprep.subr.mxu1 %v19298_v13  ;;  %13564 = vmatpush3.msra.mxu0 %v17101_v6  ;;  %v12406_v6 = vld [vmem:[%s18439_s9 + $0x28] sm:$0xff] }
 0x747   :  { %13591 = vmatpush3.msra.mxu1 %v17140_v44  ;;  %13565 = vmatprep.subr.mxu0 %v19298_v13 }
 0x748   :  { %13592 = vmatprep.subr.mxu1 %v19298_v13  ;;  %13566 = vmatpush3.msra.mxu0 %v17116_v0  ;;  %v17606_v0 = vand.u32 4294901760, %v12406_v6 }
 0x749   :  { %13593 = vmatpush3.msra.mxu1 %v17154_v55  ;;  %13594 = vmatprep.mubr.msk.f32.mxu1 %vm14140_vm7, %v19298_v13 }
 0x74a   :  { %13567 = vmatprep.subr.mxu0 %v19298_v13  ;;  %13595 = vmatmul.mubr.f32.vlgmr.msra.gmra.mxu1 %v17364_v16 }
 0x74b   :  { %13616 = vmatprep.subr.mxu1 %v19298_v13  ;;  %13568 = vmatpush3.msra.mxu0 %v17138_v29 }
 0x74c   :  { %13617 = vmatpush3.msra.mxu1 %v17055_v45  ;;  %13569 = vmatprep.subr.mxu0 %v19298_v13  ;;  %v12408_v45 = vld [vmem:[%s18439_s9 + $0x38] sm:$0xf] }
 0x74d   :  { %13618 = vmatprep.subr.mxu1 %v19298_v13  ;;  %13570 = vmatpush3.msra.mxu0 %v17152_v22 }
 0x74e   :  { %13619 = vmatpush3.msra.mxu1 %v17066_v3  ;;  %13571 = vmatprep.subr.mxu0 %v19298_v13  ;;  %v8766_v3 = vsel %vm242_vm0, %v12408_v45, 0 }
 0x74f   :  { %13620 = vmatprep.subr.mxu1 %v19298_v13  ;;  %13572 = vmatpush3.msra.mxu0 %v17169_v42 }
 0x750   :  { %13621 = vmatpush3.msra.mxu1 %v17078_v7  ;;  %13573 = vmatprep.subr.mxu0 %v19298_v13  ;;  %v17587_v7 = vand.u32 4294901760, %v8766_v3 }
 0x751   :  { %13622 = vmatprep.subr.mxu1 %v19298_v13  ;;  %13574 = vmatpush3.msra.mxu0 %v17183_v33 }
 0x752   :  { %13575 = vmatprep.mubr.msk.f32.mxu0 %vm14140_vm7, %v19298_v13  ;;  %13623 = vmatpush3.msra.mxu1 %v17087_v9  ;;  %v17593_v9 = vsub.f32 %v8766_v3, %v17587_v7 }
 0x753   :  { %13576 = vmatmul.mubr.f32.vlgmr.msra.gmra.mxu0 %v17353_v56  ;;  %13597 = vmatprep.subr.mxu0 %v19298_v13 }
 0x754   :  { %13624 = vmatprep.subr.mxu1 %v19298_v13  ;;  %13598 = vmatpush3.msra.mxu0 %v17098_v34  ;;  %v17595_v34 = vand.u32 4294901760, %v12407_v2 }
 0x755   :  { %13625 = vmatpush3.msra.mxu1 %v17108_v20  ;;  %13599 = vmatprep.subr.mxu0 %v19298_v13  ;;  %v8874_v20 = vand.u32 4294901760, %v17593_v9 }
 0x756   :  { %13626 = vmatprep.subr.mxu1 %v19298_v13  ;;  %13600 = vmatpush3.msra.mxu0 %v17113_v17  ;;  %v17604_v17 = vsub.f32 %v12407_v2, %v17595_v34 }
 0x757   :  { %13627 = vmatpush3.msra.mxu1 %v17123_v43  ;;  %13601 = vmatprep.subr.mxu0 %v19298_v13  ;;  %v12405_v43 = vld [vmem:[%s18439_s9 + $0x20] sm:$0xff] }
 0x758   :  { %13628 = vmatprep.subr.mxu1 %v19298_v13  ;;  %13602 = vmatpush3.msra.mxu0 %v17130_v28  ;;  %v6776_v33 = vpop.f32.mrf.mxu1  ;;  %v8875_v28 = vsub.f32 %v17593_v9, %v8874_v20  ;;  %v8881_v29 = vand.u32 4294901760, %v17604_v17 }
 0x759   :  { %13629 = vmatpush3.msra.mxu1 %v17140_v44  ;;  %13603 = vmatprep.subr.mxu0 %v19298_v13  ;;  %v17618_v44 = vsub.f32 %v12406_v6, %v17606_v0 }
 0x75a   :  { %13630 = vmatprep.subr.mxu1 %v19298_v13  ;;  %13604 = vmatpush3.msra.mxu0 %v17147_v31  ;;  %v13216_v12 = vpop.f32.mrf.mxu1  ;;  %v17620_v31 = vand.u32 4294901760, %v12405_v43  ;;  %v8876_v38 = vand.u32 4294901760, %v8875_v28 }
 0x75b   :  { %13631 = vmatpush3.msra.mxu1 %v17154_v55  ;;  %13632 = vmatprep.mubr.msk.f32.mxu1 %vm14140_vm7, %v19298_v13  ;;  %v8888_v42 = vand.u32 4294901760, %v17618_v44 }
 0x75c   :  { %13605 = vmatprep.subr.mxu0 %v19298_v13  ;;  %13633 = vmatmul.mubr.f32.vlgmr.msra.gmra.mxu1 %v17343_v50  ;;  %v17630_v25 = vsub.f32 %v12405_v43, %v17620_v31 }
 0x75d   :  { %13606 = vmatpush3.msra.mxu0 %v17166_v54  ;;  %13613 = vmatprep.mubr.msk.f32.mxu0 %vm14140_vm7, %v19298_v13  ;;  %v8882_v54 = vsub.f32 %v17604_v17, %v8881_v29  ;;  %v8889_v32 = vsub.f32 %v17618_v44, %v8888_v42 }
 0x75e   :  { %13607 = vmatprep.subr.mxu0 %v19298_v13  ;;  %13646 = vmatprep.subr.mxu1 %v19298_v13  ;;  %v8895_v5 = vand.u32 4294901760, %v17630_v25 }
 0x75f   :  { %13608 = vmatpush3.msra.mxu0 %v17180_v11  ;;  %13654 = vmatprep.mubr.msk.f32.mxu1 %vm14140_vm7, %v19298_v13  ;;  %v8883_v48 = vand.u32 4294901760, %v8882_v54  ;;  %v12416_v54 = vld [vmem:[%s18439_s9 + $0x78] sm:$0xf] }
 0x760   :  { %13609 = vmatprep.subr.mxu0 %v19298_v13  ;;  %v6665_v15 = vpop.f32.mrf.mxu0  ;;  %13647 = vmatpush3.msra.mxu1 %v8876_v38  ;;  %v8896_v56 = vsub.f32 %v17630_v25, %v8895_v5 }
 0x761   :  { %13610 = vmatpush3.msra.mxu0 %v17194_v30  ;;  %v6777_v10 = vadd.f32 %v6776_v33, %v6665_v15  ;;  %13648 = vmatprep.subr.mxu1 %v19298_v13 }
 0x762   :  { %13611 = vmatprep.subr.mxu0 %v19298_v13  ;;  %v13197_v24 = vpop.f32.mrf.mxu0  ;;  %13649 = vmatpush3.msra.mxu1 %v8883_v48  ;;  %v8897_v16 = vand.u32 4294901760, %v8896_v56  ;;  %v9267_v48 = vsel %vm242_vm0, %v12416_v54, 0 }
 0x763   :  { %13612 = vmatpush3.msra.mxu0 %v17205_v35  ;;  %13650 = vmatprep.subr.mxu1 %v19298_v13 }
 0x764   :  { %13614 = vmatmul.mubr.f32.vlgmr.msra.gmra.mxu0 %v17343_v50  ;;  %13635 = vmatprep.subr.mxu0 %v19298_v13  ;;  %v8890_v50 = vand.u32 4294901760, %v8889_v32 }
 0x765   :  { %13643 = vmatprep.mubr.msk.f32.mxu0 %vm14140_vm7, %v19298_v13  ;;  %13636 = vmatpush3.msra.mxu0 %v17587_v7 }
 0x766   :  { %13637 = vmatprep.subr.mxu0 %v19298_v13  ;;  %13651 = vmatpush3.msra.mxu1 %v8890_v50  ;;  %v12415_v50 = vld [vmem:[%s18439_s9 + $0x70] sm:$0xff] }
 0x767   :  { %13638 = vmatpush3.msra.mxu0 %v17595_v34  ;;  %13652 = vmatprep.subr.mxu1 %v19298_v13 }
 0x768   :  { %v6945_v11 = vpop.f32.mrf.mxu1  ;;  %13639 = vmatprep.subr.mxu0 %v19298_v13  ;;  %13653 = vmatpush3.msra.mxu1 %v8897_v16  ;;  %v17660_v16 = vand.u32 4294901760, %v9267_v48 }
 0x769   :  { %13640 = vmatpush3.msra.mxu0 %v17606_v0  ;;  %13668 = vmatprep.subr.mxu1 %v19298_v13 }
 0x76a   :  { %v13254_v18 = vpop.f32.mrf.mxu1  ;;  %13641 = vmatprep.subr.mxu0 %v19298_v13 }
 0x76b   :  { %13642 = vmatpush3.msra.mxu0 %v17620_v31 }
 0x76c   :  { %13657 = vmatprep.subr.mxu0 %v19298_v13 }
 0x771   :  { %v6864_v27 = vpop.f32.mrf.mxu0 }
 0x772   :  { %v6865_v62 = vadd.f32 %v6864_v27, %v6777_v10 }
 0x773   :  { %v13235_v19 = vpop.f32.mrf.mxu0 }
 0x774   :  { %v6946_v63 = vadd.f32 %v6945_v11, %v6865_v62 }
 0x77a   :  { %v7119_v30 = vpop.f32.mrf.mxu1 }
 0x77c   :  { %v13292_v57 = vpop.f32.mrf.mxu1 }
 0x783   :  { %v7040_v21 = vpop.f32.mrf.mxu0 }
 0x784   :  { %v7041_v37 = vadd.f32 %v7040_v21, %v6946_v63 }
 0x785   :  { %v13273_v61 = vpop.f32.mrf.mxu0 }
 0x786   :  { %v17581_v4 = vadd.f32 %v7119_v30, %v7041_v37 }
 0x78c   :  { %v7325_v35 = vpop.f32.mrf.mxu1 }
 0x78e   :  { %v13330_v23 = vpop.f32.mrf.mxu1 }
 0x795   :  { %v7214_v8 = vpop.f32.mrf.mxu0 }
 0x796   :  { %v7326_v58 = vadd.f32 %v7325_v35, %v7214_v8 }
 0x797   :  { %v13311_v41 = vpop.f32.mrf.mxu0 }
 0x79e   :  { %v7494_v36 = vpop.f32.mrf.mxu1 }
 0x7a0   :  { %v13368_v49 = vpop.f32.mrf.mxu1 }
 0x7a7   :  { %v7413_v22 = vpop.f32.mrf.mxu0 }
 0x7a8   :  { %v7414_v55 = vadd.f32 %v7413_v22, %v7326_v58 }
 0x7a9   :  { %v13349_v51 = vpop.f32.mrf.mxu0 }
 0x7aa   :  { %v7495_v39 = vadd.f32 %v7494_v36, %v7414_v55 }
 0x7b0   :  { %v7668_v60 = vpop.f32.mrf.mxu1 }
 0x7b2   :  { %v13406_v46 = vpop.f32.mrf.mxu1 }
 0x7b9   :  { %v7589_v40 = vpop.f32.mrf.mxu0 }
 0x7ba   :  { %v7590_v52 = vadd.f32 %v7589_v40, %v7495_v39  ;;  %v17669_v40 = vand.u32 4294901760, %v12415_v50 }
 0x7bb   :  { %v13387_v26 = vpop.f32.mrf.mxu0 }
 0x7bc   :  { %v7669_v59 = vadd.f32 %v7668_v60, %v7590_v52  ;;  %v12414_v60 = vld [vmem:[%s18439_s9 + $0x68] sm:$0xff]  ;;  %v12413_v52 = vld [vmem:[%s18439_s9 + $0x60] sm:$0xff] }
 0x7be   :  { %v8749_v47 = vmax.f32 %v17581_v4, %v7669_v59  ;;  %v17677_v59 = vsub.f32 %v9267_v48, %v17660_v16 }
 0x7c3   :  { %v7865_v1 = vpop.f32.mrf.mxu1 }
 0x7c5   :  { %v13444_v53 = vpop.f32.mrf.mxu1 }
 0x7c6   :  { %v17684_v53 = vsub.f32 %v12415_v50, %v17669_v40 }
 0x7cb   :  { %v7754_v14 = vpop.f32.mrf.mxu0 }
 0x7cc   :  { %v7866_v33 = vadd.f32 %v7865_v1, %v7754_v14  ;;  %v17686_v14 = vand.u32 4294901760, %v12413_v52 }
 0x7cd   :  { %v13425_v12 = vpop.f32.mrf.mxu0 }
 0x7d4   :  { %v8034_v15 = vpop.f32.mrf.mxu1 }
 0x7d6   :  { %v13482_v10 = vpop.f32.mrf.mxu1 }
 0x7d7   :  { %v17699_v10 = vsub.f32 %v12413_v52, %v17686_v14 }
 0x7dd   :  { %v7953_v24 = vpop.f32.mrf.mxu0 }
 0x7de   :  { %v7954_v11 = vadd.f32 %v7953_v24, %v7866_v33  ;;  %v9375_v33 = vand.u32 4294901760, %v17677_v59 }
 0x7df   :  { %v13463_v18 = vpop.f32.mrf.mxu0 }
 0x7e0   :  { %v8035_v27 = vadd.f32 %v8034_v15, %v7954_v11  ;;  %v9382_v15 = vand.u32 4294901760, %v17684_v53  ;;  %v9396_v18 = vand.u32 4294901760, %v17699_v10 }
 0x7e6   :  { %v8208_v62 = vpop.f32.mrf.mxu1 }
 0x7e8   :  { %v13520_v19 = vpop.f32.mrf.mxu1 }
 0x7ef   :  { %v8129_v63 = vpop.f32.mrf.mxu0 }
 0x7f0   :  { %v8130_v30 = vadd.f32 %v8129_v63, %v8035_v27 }
 0x7f1   :  { %v13501_v57 = vpop.f32.mrf.mxu0 }
 0x7f2   :  { %v8209_v21 = vadd.f32 %v8208_v62, %v8130_v30 }
 0x7f8   :  { %v8402_v37 = vpop.f32.mrf.mxu1 }
 0x7fa   :  { %v13558_v61 = vpop.f32.mrf.mxu1 }
 0x801   :  { %v8291_v4 = vpop.f32.mrf.mxu0 }
 0x802   :  { %v8403_v45 = vadd.f32 %v8402_v37, %v8291_v4  ;;  %v12421_v37 = vld [vmem:[%s18439_s9 + $0xa0] sm:$0xff] }
 0x803   :  { %v13539_v35 = vpop.f32.mrf.mxu0 }
 0x80a   :  { %v8571_v23 = vpop.f32.mrf.mxu1 }
 0x80c   :  { %v13596_v8 = vpop.f32.mrf.mxu1 }
 0x80d   :  { %v17805_v8 = vand.u32 4294901760, %v12421_v37 }
 0x813   :  { %v8490_v58 = vpop.f32.mrf.mxu0 }
 0x814   :  { %v8491_v49 = vadd.f32 %v8490_v58, %v8403_v45  ;;  %v17820_v45 = vsub.f32 %v12421_v37, %v17805_v8  ;;  %v8753_v37 = vld [vmem:[%s18439_s9 + $0x8] sm:$0xff] }
 0x815   :  { %v13577_v41 = vpop.f32.mrf.mxu0 }
 0x816   :  { %v8572_v2 = vadd.f32 %v8571_v23, %v8491_v49 }
 0x81c   :  { %v8745_v36 = vpop.f32.mrf.mxu1 }
 0x81e   :  { %v13634_v3 = vpop.f32.mrf.mxu1 }
 0x824   :  { %v8666_v6 = vpop.f32.mrf.mxu0 }
 0x825   :  { %v8667_v43 = vadd.f32 %v8666_v6, %v8572_v2 }
 0x826   :  { %v13615_v28 = vpop.f32.mrf.mxu0 }
 0x827   :  { %v8746_v22 = vadd.f32 %v8745_v36, %v8667_v43  ;;  %v9897_v43 = vand.u32 4294901760, %v17820_v45 }
 0x829   :  { %v8750_v55 = vmax.f32 %v8209_v21, %v8746_v22 }
 0x82b   :  { %v17645_v38 = vmax.f32 %v8749_v47, %v8750_v55  ;;  %v17679_v47 = vand.u32 4294901760, %v12414_v60 }
 0x82d   :  { %v8762_v51 = vrot.slane %v17645_v38, 1  ;;  %v17692_v12 = vsub.f32 %v12414_v60, %v17679_v47  ;;  %v9263_v11 = vrot.slane %v17645_v38, 3  ;;  %v9764_v2 = vrot.slane %v17645_v38, 5 }
 0x82f   :  { %v8763_v39 = vsel %vm235_vm1, %v8762_v51, 0  ;;  %v9389_v24 = vand.u32 4294901760, %v17692_v12  ;;  %v9264_v62 = vsel %vm235_vm1, %v9263_v11, 0  ;;  %v9765_v55 = vsel %vm235_vm1, %v9764_v2, 0 }
 0x830   :  { %v17653_v32 = vand.u32 4294901760, %v8763_v39  ;;  %v17737_v63 = vand.u32 4294901760, %v9264_v62  ;;  %v9898_v51 = vsub.f32 %v17820_v45, %v9897_v43 }
 0x831   :  { %v9390_v27 = vsub.f32 %v17692_v12, %v9389_v24 }
 0x832   :  { %v8838_v56 = vsub.f32 %v8763_v39, %v17653_v32  ;;  %13655 = vmatmul.mubr.f32.vlgmr.msra.gmra.mxu1 %v17653_v32  ;;  %v17859_v39 = vand.u32 4294901760, %v9765_v55 }
 0x833   :  { %13669 = vmatpush3.msra.mxu1 %v17587_v7  ;;  %13676 = vmatprep.mubr.msk.f32.mxu1 %vm14140_vm7, %v19298_v13  ;;  %v9391_v30 = vand.u32 4294901760, %v9390_v27 }
 0x834   :  { %13670 = vmatprep.subr.mxu1 %v19298_v13  ;;  %v8839_v46 = vand.u32 4294901760, %v8838_v56  ;;  %v17870_v50 = vsub.f32 %v9765_v55, %v17859_v39 }
 0x835   :  { %13671 = vmatpush3.msra.mxu1 %v17595_v34 }
 0x836   :  { %13672 = vmatprep.subr.mxu1 %v19298_v13  ;;  %v8840_v26 = vsub.f32 %v8838_v56, %v8839_v46 }
 0x837   :  { %13673 = vmatpush3.msra.mxu1 %v17606_v0 }
 0x838   :  { %13674 = vmatprep.subr.mxu1 %v19298_v13  ;;  %v8841_v1 = vand.u32 4294901760, %v8840_v26  ;;  %v12426_v26 = vld [vmem:[%s18439_s9 + $0xc8] sm:$0xff] }
 0x839   :  { %13675 = vmatpush3.msra.mxu1 %v17620_v31 }
 0x83a   :  { %13677 = vmatmul.mubr.f32.vlgmr.msra.gmra.mxu1 %v8839_v46  ;;  %13690 = vmatprep.subr.mxu1 %v19298_v13  ;;  %v12427_v46 = vld [vmem:[%s18439_s9 + $0xd0] sm:$0xff] }
 0x83b   :  { %13644 = vmatmul.mubr.f32.vlgmr.msra.gmra.mxu0 %v8841_v1  ;;  %13691 = vmatpush3.msra.mxu1 %v17587_v7  ;;  %v9376_v7 = vsub.f32 %v17677_v59, %v9375_v33 }
 0x83c   :  { %13658 = vmatpush3.msra.mxu0 %v17593_v9  ;;  %13692 = vmatprep.subr.mxu1 %v19298_v13  ;;  %v17748_v9 = vsub.f32 %v9264_v62, %v17737_v63 }
 0x83d   :  { %13659 = vmatprep.subr.mxu0 %v19298_v13  ;;  %13693 = vmatpush3.msra.mxu1 %v17595_v34  ;;  %v9383_v34 = vsub.f32 %v17684_v53, %v9382_v15 }
 0x83e   :  { %13660 = vmatpush3.msra.mxu0 %v17604_v17  ;;  %13694 = vmatprep.subr.mxu1 %v19298_v13  ;;  %v9340_v17 = vand.u32 4294901760, %v17748_v9 }
 0x83f   :  { %13661 = vmatprep.subr.mxu0 %v19298_v13  ;;  %13695 = vmatpush3.msra.mxu1 %v17606_v0  ;;  %v9377_v0 = vand.u32 4294901760, %v9376_v7  ;;  %v9384_v19 = vand.u32 4294901760, %v9383_v34 }
 0x840   :  { %13662 = vmatpush3.msra.mxu0 %v17618_v44  ;;  %13696 = vmatprep.subr.mxu1 %v19298_v13  ;;  %v12423_v44 = vld [vmem:[%s18439_s9 + $0xb0] sm:$0xff] }
 0x841   :  { %13663 = vmatprep.subr.mxu0 %v19298_v13  ;;  %13665 = vmatprep.mubr.msk.f32.mxu0 %vm14140_vm7, %v19298_v13  ;;  %v17783_v21 = vand.u32 4294901760, %v12423_v44 }
 0x842   :  { %13664 = vmatpush3.msra.mxu0 %v17630_v25  ;;  %13697 = vmatpush3.msra.mxu1 %v17620_v31  ;;  %v9397_v31 = vsub.f32 %v17699_v10, %v9396_v18  ;;  %v9341_v25 = vsub.f32 %v17748_v9, %v9340_v17 }
 0x843   :  { %13698 = vmatprep.mubr.msk.f32.mxu1 %vm14140_vm7, %v19298_v13  ;;  %13666 = vmatmul.mubr.f32.vlgmr.msra.gmra.mxu0 %v8838_v56  ;;  %v17803_v23 = vsub.f32 %v12423_v44, %v17783_v21  ;;  %v12428_v56 = vld [vmem:[%s18439_s9 + $0xd8] sm:$0xf] }
 0x844   :  { %13679 = vmatprep.subr.mxu0 %v19298_v13  ;;  %13699 = vmatmul.mubr.f32.vlgmr.msra.gmra.mxu1 %v17653_v32  ;;  %v9398_v57 = vand.u32 4294901760, %v9397_v31  ;;  %v9342_v35 = vand.u32 4294901760, %v9341_v25  ;;  %v10264_v60 = vsel %vm242_vm0, %v12428_v56, 0  ;;  %v8754_v25 = vld [vmem:[%s18439_s9 + $0x10] sm:$0xff] }
 0x845   :  { %13712 = vmatprep.subr.mxu1 %v19298_v13  ;;  %13680 = vmatpush3.msra.mxu0 %v8874_v20  ;;  %v12424_v20 = vld [vmem:[%s18439_s9 + $0xb8] sm:$0xf]  ;;  %v9883_v36 = vand.u32 4294901760, %v17803_v23 }
 0x846   :  { %13713 = vmatpush3.msra.mxu1 %v9377_v0  ;;  %13681 = vmatprep.subr.mxu0 %v19298_v13 }
 0x847   :  { %13714 = vmatprep.subr.mxu1 %v19298_v13  ;;  %13682 = vmatpush3.msra.mxu0 %v8881_v29  ;;  %v9768_v29 = vsel %vm242_vm0, %v12424_v20, 0  ;;  %v9884_v6 = vsub.f32 %v17803_v23, %v9883_v36 }
 0x848   :  { %13715 = vmatpush3.msra.mxu1 %v9384_v19  ;;  %13683 = vmatprep.subr.mxu0 %v19298_v13 }
 0x849   :  { %13716 = vmatprep.subr.mxu1 %v19298_v13  ;;  %13684 = vmatpush3.msra.mxu0 %v8888_v42  ;;  %v17773_v42 = vand.u32 4294901760, %v9768_v29  ;;  %v9885_v54 = vand.u32 4294901760, %v9884_v6 }
 0x84a   :  { %13717 = vmatpush3.msra.mxu1 %v9391_v30  ;;  %13685 = vmatprep.subr.mxu0 %v19298_v13 }
 0x84b   :  { %13718 = vmatprep.subr.mxu1 %v19298_v13  ;;  %13686 = vmatpush3.msra.mxu0 %v8895_v5  ;;  %v12422_v5 = vld [vmem:[%s18439_s9 + $0xa8] sm:$0xff]  ;;  %v17793_v61 = vsub.f32 %v9768_v29, %v17773_v42  ;;  %v8755_v29 = vld [vmem:[%s18439_s9 + $0x18] sm:$0xf] }
 0x84c   :  { %13687 = vmatprep.mubr.msk.f32.mxu0 %vm14140_vm7, %v19298_v13  ;;  %13719 = vmatpush3.msra.mxu1 %v9398_v57  ;;  %v17795_v4 = vand.u32 4294901760, %v12422_v5 }
 0x84d   :  { %13720 = vmatprep.mubr.msk.f32.mxu1 %vm14140_vm7, %v19298_v13  ;;  %13688 = vmatmul.mubr.f32.vlgmr.msra.gmra.mxu0 %v17653_v32  ;;  %v9876_v58 = vand.u32 4294901760, %v17793_v61  ;;  %v9899_v32 = vand.u32 4294901760, %v9898_v51 }
 0x84e   :  { %13701 = vmatprep.subr.mxu0 %v19298_v13  ;;  %13721 = vmatmul.mubr.f32.vlgmr.msra.gmra.mxu1 %v17737_v63  ;;  %v17812_v41 = vsub.f32 %v12422_v5, %v17795_v4 }
 0x84f   :  { %13734 = vmatprep.subr.mxu1 %v19298_v13  ;;  %13702 = vmatpush3.msra.mxu0 %v17660_v16  ;;  %v9877_v3 = vsub.f32 %v17793_v61, %v9876_v58 }
 0x850   :  { %13735 = vmatpush3.msra.mxu1 %v17660_v16  ;;  %13703 = vmatprep.subr.mxu0 %v19298_v13  ;;  %v9890_v49 = vand.u32 4294901760, %v17812_v41 }
 0x851   :  { %13736 = vmatprep.subr.mxu1 %v19298_v13  ;;  %13704 = vmatpush3.msra.mxu0 %v17669_v40  ;;  %v9878_v28 = vand.u32 4294901760, %v9877_v3 }
 0x852   :  { %13737 = vmatpush3.msra.mxu1 %v17669_v40  ;;  %13705 = vmatprep.subr.mxu0 %v19298_v13  ;;  %v9891_v22 = vsub.f32 %v17812_v41, %v9890_v49 }
 0x853   :  { %13738 = vmatprep.subr.mxu1 %v19298_v13  ;;  %13706 = vmatpush3.msra.mxu0 %v17679_v47 }
 0x854   :  { %13739 = vmatpush3.msra.mxu1 %v17679_v47  ;;  %13707 = vmatprep.subr.mxu0 %v19298_v13  ;;  %v9892_v48 = vand.u32 4294901760, %v9891_v22 }
 0x855   :  { %13740 = vmatprep.subr.mxu1 %v19298_v13  ;;  %13708 = vmatpush3.msra.mxu0 %v17686_v14 }
 0x856   :  { %13709 = vmatprep.mubr.msk.f32.mxu0 %vm14140_vm7, %v19298_v13  ;;  %13741 = vmatpush3.msra.mxu1 %v17686_v14 }
 0x857   :  { %13742 = vmatprep.mubr.msk.f32.mxu1 %vm14140_vm7, %v19298_v13  ;;  %13710 = vmatmul.mubr.f32.vlgmr.msra.gmra.mxu0 %v9342_v35 }
 0x858   :  { %13723 = vmatprep.subr.mxu0 %v19298_v13  ;;  %13743 = vmatmul.mubr.f32.vlgmr.msra.gmra.mxu1 %v9340_v17 }
 0x859   :  { %13756 = vmatprep.subr.mxu1 %v19298_v13  ;;  %13724 = vmatpush3.msra.mxu0 %v17677_v59  ;;  %v17905_v59 = vand.u32 4294901760, %v12427_v46 }
 0x85a   :  { %13757 = vmatpush3.msra.mxu1 %v17660_v16  ;;  %13725 = vmatprep.subr.mxu0 %v19298_v13  ;;  %v9841_v16 = vand.u32 4294901760, %v17870_v50 }
 0x85b   :  { %13758 = vmatprep.subr.mxu1 %v19298_v13  ;;  %13726 = vmatpush3.msra.mxu0 %v17684_v53  ;;  %v17917_v53 = vand.u32 4294901760, %v12426_v26 }
 0x85c   :  { %13759 = vmatpush3.msra.mxu1 %v17669_v40  ;;  %13727 = vmatprep.subr.mxu0 %v19298_v13  ;;  %v17895_v40 = vand.u32 4294901760, %v10264_v60  ;;  %v9842_v52 = vsub.f32 %v17870_v50, %v9841_v16 }
 0x85d   :  { %13760 = vmatprep.subr.mxu1 %v19298_v13  ;;  %13728 = vmatpush3.msra.mxu0 %v17692_v12 }
 0x85e   :  { %13761 = vmatpush3.msra.mxu1 %v17679_v47  ;;  %13729 = vmatprep.subr.mxu0 %v19298_v13  ;;  %v12425_v47 = vld [vmem:[%s18439_s9 + $0xc0] sm:$0xff]  ;;  %v17915_v1 = vsub.f32 %v10264_v60, %v17895_v40 }
 0x85f   :  { %13762 = vmatprep.subr.mxu1 %v19298_v13  ;;  %13730 = vmatpush3.msra.mxu0 %v17699_v10  ;;  %v17927_v12 = vand.u32 4294901760, %v12425_v47  ;;  %v17934_v10 = vsub.f32 %v12426_v26, %v17917_v53 }
 0x860   :  { %13731 = vmatprep.mubr.msk.f32.mxu0 %vm14140_vm7, %v19298_v13  ;;  %13763 = vmatpush3.msra.mxu1 %v17686_v14  ;;  %v9843_v14 = vand.u32 4294901760, %v9842_v52 }
 0x861   :  { %13764 = vmatprep.mubr.msk.f32.mxu1 %vm14140_vm7, %v19298_v13  ;;  %13732 = vmatmul.mubr.f32.vlgmr.msra.gmra.mxu0 %v17748_v9  ;;  %v10386_v34 = vand.u32 4294901760, %v17934_v10 }
 0x862   :  { %13745 = vmatprep.subr.mxu0 %v19298_v13  ;;  %13765 = vmatmul.mubr.f32.vlgmr.msra.gmra.mxu1 %v17737_v63 }
 0x863   :  { %13778 = vmatprep.subr.mxu1 %v19298_v13  ;;  %13746 = vmatpush3.msra.mxu0 %v9375_v33  ;;  %v17925_v33 = vsub.f32 %v12427_v46, %v17905_v59  ;;  %v10387_v19 = vsub.f32 %v17934_v10, %v10386_v34 }
 0x864   :  { %13779 = vmatpush3.msra.mxu1 %v9878_v28  ;;  %13747 = vmatprep.subr.mxu0 %v19298_v13 }
 0x865   :  { %13780 = vmatprep.subr.mxu1 %v19298_v13  ;;  %13748 = vmatpush3.msra.mxu0 %v9382_v15  ;;  %v10372_v15 = vand.u32 4294901760, %v17915_v1  ;;  %v10379_v7 = vand.u32 4294901760, %v17925_v33  ;;  %v10388_v9 = vand.u32 4294901760, %v10387_v19 }
 0x866   :  { %13781 = vmatpush3.msra.mxu1 %v9885_v54  ;;  %13749 = vmatprep.subr.mxu0 %v19298_v13  ;;  %v10751_v54 = vsel %vm235_vm1, %v17645_v38, 0 }
 0x867   :  { %13782 = vmatprep.subr.mxu1 %v19298_v13  ;;  %13750 = vmatpush3.msra.mxu0 %v9389_v24  ;;  %v17942_v24 = vsub.f32 %v12425_v47, %v17927_v12  ;;  %v10373_v11 = vsub.f32 %v17915_v1, %v10372_v15  ;;  %v10380_v0 = vsub.f32 %v17925_v33, %v10379_v7 }
 0x868   :  { %13783 = vmatpush3.msra.mxu1 %v9892_v48  ;;  %13751 = vmatprep.subr.mxu0 %v19298_v13  ;;  %v18103_v48 = vand.u32 4294901760, %v10751_v54 }
 0x869   :  { %13784 = vmatprep.subr.mxu1 %v19298_v13  ;;  %13752 = vmatpush3.msra.mxu0 %v9396_v18  ;;  %v10260_v18 = vrot.slane %v17645_v38, 6  ;;  %v10393_v27 = vand.u32 4294901760, %v17942_v24  ;;  %v10374_v62 = vand.u32 4294901760, %v10373_v11 }
 0x86a   :  { %13753 = vmatprep.mubr.msk.f32.mxu0 %vm14140_vm7, %v19298_v13  ;;  %13785 = vmatpush3.msra.mxu1 %v9899_v32  ;;  %v18114_v56 = vsub.f32 %v10751_v54, %v18103_v48 }
 0x86b   :  { %13786 = vmatprep.mubr.msk.f32.mxu1 %vm14140_vm7, %v19298_v13  ;;  %13754 = vmatmul.mubr.f32.vlgmr.msra.gmra.mxu0 %v17737_v63  ;;  %v10261_v31 = vsel %vm235_vm1, %v10260_v18, 0  ;;  %v10381_v63 = vand.u32 4294901760, %v10380_v0  ;;  %v10394_v30 = vsub.f32 %v17942_v24, %v10393_v27  ;;  %v11241_v0 = vrot.slane %v17645_v38, 2 }
 0x86c   :  { %13767 = vmatprep.subr.mxu0 %v19298_v13  ;;  %13787 = vmatmul.mubr.f32.vlgmr.msra.gmra.mxu1 %v17859_v39  ;;  %v17981_v57 = vand.u32 4294901760, %v10261_v31  ;;  %v10827_v60 = vand.u32 4294901760, %v18114_v56 }
 0x86d   :  { %13800 = vmatprep.subr.mxu1 %v19298_v13  ;;  %13768 = vmatpush3.msra.mxu0 %v17773_v42  ;;  %v10395_v20 = vand.u32 4294901760, %v10394_v30 }
 0x86e   :  { %13801 = vmatpush3.msra.mxu1 %v17773_v42  ;;  %13769 = vmatprep.subr.mxu0 %v19298_v13  ;;  %v17992_v17 = vsub.f32 %v10261_v31, %v17981_v57  ;;  %v10828_v26 = vsub.f32 %v18114_v56, %v10827_v60 }
 0x86f   :  { %13802 = vmatprep.subr.mxu1 %v19298_v13  ;;  %13770 = vmatpush3.msra.mxu0 %v17783_v21 }
 0x870   :  { %13803 = vmatpush3.msra.mxu1 %v17783_v21  ;;  %13771 = vmatprep.subr.mxu0 %v19298_v13  ;;  %v10337_v44 = vand.u32 4294901760, %v17992_v17 }
 0x871   :  { %13804 = vmatprep.subr.mxu1 %v19298_v13  ;;  %13772 = vmatpush3.msra.mxu0 %v17795_v4 }
 0x872   :  { %13805 = vmatpush3.msra.mxu1 %v17795_v4  ;;  %13773 = vmatprep.subr.mxu0 %v19298_v13 }
 0x873   :  { %13806 = vmatprep.subr.mxu1 %v19298_v13  ;;  %13774 = vmatpush3.msra.mxu0 %v17805_v8 }
 0x874   :  { %13775 = vmatprep.mubr.msk.f32.mxu0 %vm14140_vm7, %v19298_v13  ;;  %13807 = vmatpush3.msra.mxu1 %v17805_v8 }
 0x875   :  { %13808 = vmatprep.mubr.msk.f32.mxu1 %vm14140_vm7, %v19298_v13  ;;  %13776 = vmatmul.mubr.f32.vlgmr.msra.gmra.mxu0 %v9843_v14 }
 0x876   :  { %13789 = vmatprep.subr.mxu0 %v19298_v13  ;;  %13809 = vmatmul.mubr.f32.vlgmr.msra.gmra.mxu1 %v9841_v16  ;;  %v12412_v16 = vld [vmem:[%s18439_s9 + $0x58] sm:$0xf] }
 0x877   :  { %13822 = vmatprep.subr.mxu1 %v19298_v13  ;;  %13790 = vmatpush3.msra.mxu0 %v17793_v61  ;;  %v18027_v61 = vand.u32 4294901760, %v8754_v25  ;;  %v11245_v46 = vsel %vm242_vm0, %v12412_v16, 0 }
 0x878   :  { %13823 = vmatpush3.msra.mxu1 %v17773_v42  ;;  %13791 = vmatprep.subr.mxu0 %v19298_v13  ;;  %v10754_v42 = vsel %vm242_vm0, %v8755_v29, 0  ;;  %v18139_v52 = vand.u32 4294901760, %v11245_v46 }
 0x879   :  { %13824 = vmatprep.subr.mxu1 %v19298_v13  ;;  %13792 = vmatpush3.msra.mxu0 %v17803_v23  ;;  %v18017_v5 = vand.u32 4294901760, %v10754_v42  ;;  %v18039_v23 = vand.u32 4294901760, %v8753_v37 }
 0x87a   :  { %13825 = vmatpush3.msra.mxu1 %v17783_v21  ;;  %13793 = vmatprep.subr.mxu0 %v19298_v13  ;;  %v10338_v21 = vsub.f32 %v17992_v17, %v10337_v44 }
 0x87b   :  { %13826 = vmatprep.subr.mxu1 %v19298_v13  ;;  %13794 = vmatpush3.msra.mxu0 %v17812_v41  ;;  %v18037_v35 = vsub.f32 %v10754_v42, %v18017_v5 }
 0x87c   :  { %13827 = vmatpush3.msra.mxu1 %v17795_v4  ;;  %13795 = vmatprep.subr.mxu0 %v19298_v13  ;;  %v8752_v4 = vld [vmem:[%s18439_s9] sm:$0xff] }
 0x87d   :  { %13828 = vmatprep.subr.mxu1 %v19298_v13  ;;  %13796 = vmatpush3.msra.mxu0 %v17820_v45  ;;  %v18049_v41 = vand.u32 4294901760, %v8752_v4  ;;  %v18056_v45 = vsub.f32 %v8753_v37, %v18039_v23 }
 0x87e   :  { %13797 = vmatprep.mubr.msk.f32.mxu0 %vm14140_vm7, %v19298_v13  ;;  %13829 = vmatpush3.msra.mxu1 %v17805_v8  ;;  %v10339_v8 = vand.u32 4294901760, %v10338_v21 }
 0x87f   :  { %13830 = vmatprep.mubr.msk.f32.mxu1 %vm14140_vm7, %v19298_v13  ;;  %13798 = vmatmul.mubr.f32.vlgmr.msra.gmra.mxu0 %v17870_v50  ;;  %v10876_v6 = vand.u32 4294901760, %v18056_v45 }
 0x880   :  { %13811 = vmatprep.subr.mxu0 %v19298_v13  ;;  %13831 = vmatmul.mubr.f32.vlgmr.msra.gmra.mxu1 %v17859_v39 }
 0x881   :  { %13844 = vmatprep.subr.mxu1 %v19298_v13  ;;  %13812 = vmatpush3.msra.mxu0 %v9876_v58  ;;  %v18047_v58 = vsub.f32 %v8754_v25, %v18027_v61  ;;  %v10877_v55 = vsub.f32 %v18056_v45, %v10876_v6 }
 0x882   :  { %13845 = vmatpush3.msra.mxu1 %v10374_v62  ;;  %13813 = vmatprep.subr.mxu0 %v19298_v13 }
 0x883   :  { %13846 = vmatprep.subr.mxu1 %v19298_v13  ;;  %13814 = vmatpush3.msra.mxu0 %v9883_v36  ;;  %v10862_v36 = vand.u32 4294901760, %v18037_v35  ;;  %v10869_v3 = vand.u32 4294901760, %v18047_v58  ;;  %v10878_v32 = vand.u32 4294901760, %v10877_v55 }
 0x884   :  { %13847 = vmatpush3.msra.mxu1 %v10381_v63  ;;  %13815 = vmatprep.subr.mxu0 %v19298_v13  ;;  %v11242_v63 = vsel %vm235_vm1, %v11241_v0, 0 }
 0x885   :  { %13848 = vmatprep.subr.mxu1 %v19298_v13  ;;  %13816 = vmatpush3.msra.mxu0 %v9890_v49  ;;  %v18064_v49 = vsub.f32 %v8752_v4, %v18049_v41  ;;  %v10863_v2 = vsub.f32 %v18037_v35, %v10862_v36 }
 0x886   :  { %13849 = vmatpush3.msra.mxu1 %v10388_v9  ;;  %13817 = vmatprep.subr.mxu0 %v19298_v13  ;;  %v18225_v9 = vand.u32 4294901760, %v11242_v63 }
 0x887   :  { %13850 = vmatprep.subr.mxu1 %v19298_v13  ;;  %13818 = vmatpush3.msra.mxu0 %v9897_v43  ;;  %v10870_v43 = vsub.f32 %v18047_v58, %v10869_v3  ;;  %v10883_v28 = vand.u32 4294901760, %v18064_v49  ;;  %v10864_v22 = vand.u32 4294901760, %v10863_v2 }
 0x888   :  { %13819 = vmatprep.mubr.msk.f32.mxu0 %vm14140_vm7, %v19298_v13  ;;  %13851 = vmatpush3.msra.mxu1 %v10395_v20  ;;  %v18236_v29 = vsub.f32 %v11242_v63, %v18225_v9 }
 0x889   :  { %13852 = vmatprep.mubr.msk.f32.mxu1 %vm14140_vm7, %v19298_v13  ;;  %13820 = vmatmul.mubr.f32.vlgmr.msra.gmra.mxu0 %v17859_v39  ;;  %v10871_v51 = vand.u32 4294901760, %v10870_v43  ;;  %v10884_v39 = vsub.f32 %v18064_v49, %v10883_v28 }
 0x88a   :  { %13833 = vmatprep.subr.mxu0 %v19298_v13  ;;  %13853 = vmatmul.mubr.f32.vlgmr.msra.gmra.mxu1 %v17981_v57  ;;  %v11318_v42 = vand.u32 4294901760, %v18236_v29 }
 0x88b   :  { %13866 = vmatprep.subr.mxu1 %v19298_v13  ;;  %13834 = vmatpush3.msra.mxu0 %v17895_v40  ;;  %v10885_v50 = vand.u32 4294901760, %v10884_v39 }
 0x88c   :  { %13867 = vmatpush3.msra.mxu1 %v17895_v40  ;;  %13835 = vmatprep.subr.mxu0 %v19298_v13  ;;  %v11319_v37 = vsub.f32 %v18236_v29, %v11318_v42 }
 0x88d   :  { %13868 = vmatprep.subr.mxu1 %v19298_v13  ;;  %13836 = vmatpush3.msra.mxu0 %v17905_v59 }
 0x88e   :  { %13869 = vmatpush3.msra.mxu1 %v17905_v59  ;;  %13837 = vmatprep.subr.mxu0 %v19298_v13 }
 0x88f   :  { %13870 = vmatprep.subr.mxu1 %v19298_v13  ;;  %13838 = vmatpush3.msra.mxu0 %v17917_v53 }
 0x890   :  { %13871 = vmatpush3.msra.mxu1 %v17917_v53  ;;  %13839 = vmatprep.subr.mxu0 %v19298_v13 }
 0x891   :  { %13872 = vmatprep.subr.mxu1 %v19298_v13  ;;  %13840 = vmatpush3.msra.mxu0 %v17927_v12 }
 0x892   :  { %13841 = vmatprep.mubr.msk.f32.mxu0 %vm14140_vm7, %v19298_v13  ;;  %13873 = vmatpush3.msra.mxu1 %v17927_v12 }
 0x893   :  { %13874 = vmatprep.mubr.msk.f32.mxu1 %vm14140_vm7, %v19298_v13  ;;  %13842 = vmatmul.mubr.f32.vlgmr.msra.gmra.mxu0 %v10339_v8 }
 0x894   :  { %13855 = vmatprep.subr.mxu0 %v19298_v13  ;;  %13875 = vmatmul.mubr.f32.vlgmr.msra.gmra.mxu1 %v10337_v44  ;;  %v12420_v44 = vld [vmem:[%s18439_s9 + $0x98] sm:$0xf] }
 0x895   :  { %13888 = vmatprep.subr.mxu1 %v19298_v13  ;;  %13856 = vmatpush3.msra.mxu0 %v17915_v1  ;;  %v12409_v1 = vld [vmem:[%s18439_s9 + $0x40] sm:$0xff]  ;;  %v11736_v25 = vsel %vm242_vm0, %v12420_v44, 0 }
 0x896   :  { %13889 = vmatpush3.msra.mxu1 %v17895_v40  ;;  %13857 = vmatprep.subr.mxu0 %v19298_v13  ;;  %v12411_v40 = vld [vmem:[%s18439_s9 + $0x50] sm:$0xff]  ;;  %v18261_v21 = vand.u32 4294901760, %v11736_v25 }
 0x897   :  { %13890 = vmatprep.subr.mxu1 %v19298_v13  ;;  %13858 = vmatpush3.msra.mxu0 %v17925_v33  ;;  %v18149_v47 = vand.u32 4294901760, %v12411_v40  ;;  %v10829_v33 = vand.u32 4294901760, %v10828_v26 }
 0x898   :  { %13891 = vmatpush3.msra.mxu1 %v17905_v59  ;;  %13859 = vmatprep.subr.mxu0 %v19298_v13  ;;  %v12410_v59 = vld [vmem:[%s18439_s9 + $0x48] sm:$0xff] }
 0x899   :  { %13892 = vmatprep.subr.mxu1 %v19298_v13  ;;  %13860 = vmatpush3.msra.mxu0 %v17934_v10  ;;  %v18161_v14 = vand.u32 4294901760, %v12410_v59 }
 0x89a   :  { %13893 = vmatpush3.msra.mxu1 %v17917_v53  ;;  %13861 = vmatprep.subr.mxu0 %v19298_v13  ;;  %v18159_v53 = vsub.f32 %v11245_v46, %v18139_v52 }
 0x89b   :  { %13894 = vmatprep.subr.mxu1 %v19298_v13  ;;  %13862 = vmatpush3.msra.mxu0 %v17942_v24 }
 0x89c   :  { %13863 = vmatprep.mubr.msk.f32.mxu0 %vm14140_vm7, %v19298_v13  ;;  %13895 = vmatpush3.msra.mxu1 %v17927_v12  ;;  %v18169_v12 = vsub.f32 %v12411_v40, %v18149_v47  ;;  %v11353_v10 = vand.u32 4294901760, %v18159_v53 }
 0x89d   :  { %13896 = vmatprep.mubr.msk.f32.mxu1 %vm14140_vm7, %v19298_v13  ;;  %13864 = vmatmul.mubr.f32.vlgmr.msra.gmra.mxu0 %v17992_v17 }
 0x89e   :  { %13877 = vmatprep.subr.mxu0 %v19298_v13  ;;  %13897 = vmatmul.mubr.f32.vlgmr.msra.gmra.mxu1 %v17981_v57  ;;  %v11360_v24 = vand.u32 4294901760, %v18169_v12 }
 0x89f   :  { %13910 = vmatprep.subr.mxu1 %v19298_v13  ;;  %13878 = vmatpush3.msra.mxu0 %v10372_v15  ;;  %v18171_v15 = vand.u32 4294901760, %v12409_v1 }
 0x8a0   :  { %13911 = vmatpush3.msra.mxu1 %v10864_v22  ;;  %13879 = vmatprep.subr.mxu0 %v19298_v13 }
 0x8a1   :  { %13912 = vmatprep.subr.mxu1 %v19298_v13  ;;  %13880 = vmatpush3.msra.mxu0 %v10379_v7  ;;  %v18178_v7 = vsub.f32 %v12410_v59, %v18161_v14  ;;  %v18186_v11 = vsub.f32 %v12409_v1, %v18171_v15 }
 0x8a2   :  { %13913 = vmatpush3.msra.mxu1 %v10871_v51  ;;  %13881 = vmatprep.subr.mxu0 %v19298_v13 }
 0x8a3   :  { %13914 = vmatprep.subr.mxu1 %v19298_v13  ;;  %13882 = vmatpush3.msra.mxu0 %v10386_v34  ;;  %v11354_v34 = vsub.f32 %v18159_v53, %v11353_v10  ;;  %v11367_v18 = vand.u32 4294901760, %v18178_v7  ;;  %v11374_v62 = vand.u32 4294901760, %v18186_v11 }
 0x8a4   :  { %13915 = vmatpush3.msra.mxu1 %v10878_v32  ;;  %13883 = vmatprep.subr.mxu0 %v19298_v13 }
 0x8a5   :  { %13916 = vmatprep.subr.mxu1 %v19298_v13  ;;  %13884 = vmatpush3.msra.mxu0 %v10393_v27  ;;  %v11361_v27 = vsub.f32 %v18169_v12, %v11360_v24  ;;  %v11355_v19 = vand.u32 4294901760, %v11354_v34  ;;  %v11368_v31 = vsub.f32 %v18178_v7, %v11367_v18 }
 0x8a6   :  { %13885 = vmatprep.mubr.msk.f32.mxu0 %vm14140_vm7, %v19298_v13  ;;  %13917 = vmatpush3.msra.mxu1 %v10885_v50 }
 0x8a7   :  { %13918 = vmatprep.mubr.msk.f32.mxu1 %vm14140_vm7, %v19298_v13  ;;  %13886 = vmatmul.mubr.f32.vlgmr.msra.gmra.mxu0 %v17981_v57  ;;  %v11362_v30 = vand.u32 4294901760, %v11361_v27  ;;  %v11375_v57 = vsub.f32 %v18186_v11, %v11374_v62  ;;  %v11369_v20 = vand.u32 4294901760, %v11368_v31 }
 0x8a8   :  { %13899 = vmatprep.subr.mxu0 %v19298_v13  ;;  %13919 = vmatmul.mubr.f32.vlgmr.msra.gmra.mxu1 %v18103_v48 }
 0x8a9   :  { %13932 = vmatprep.subr.mxu1 %v19298_v13  ;;  %13900 = vmatpush3.msra.mxu0 %v18017_v5  ;;  %v11376_v17 = vand.u32 4294901760, %v11375_v57 }
 0x8aa   :  { %13933 = vmatpush3.msra.mxu1 %v18017_v5  ;;  %13901 = vmatprep.subr.mxu0 %v19298_v13 }
 0x8ab   :  { %13934 = vmatprep.subr.mxu1 %v19298_v13  ;;  %13902 = vmatpush3.msra.mxu0 %v18027_v61 }
 0x8ac   :  { %13935 = vmatpush3.msra.mxu1 %v18027_v61  ;;  %13903 = vmatprep.subr.mxu0 %v19298_v13 }
 0x8ad   :  { %13936 = vmatprep.subr.mxu1 %v19298_v13  ;;  %13904 = vmatpush3.msra.mxu0 %v18039_v23 }
 0x8ae   :  { %13937 = vmatpush3.msra.mxu1 %v18039_v23  ;;  %13905 = vmatprep.subr.mxu0 %v19298_v13 }
 0x8af   :  { %13938 = vmatprep.subr.mxu1 %v19298_v13  ;;  %13906 = vmatpush3.msra.mxu0 %v18049_v41 }
 0x8b0   :  { %13907 = vmatprep.mubr.msk.f32.mxu0 %vm14140_vm7, %v19298_v13  ;;  %13939 = vmatpush3.msra.mxu1 %v18049_v41 }
 0x8b1   :  { %13940 = vmatprep.mubr.msk.f32.mxu1 %vm14140_vm7, %v19298_v13  ;;  %13908 = vmatmul.mubr.f32.vlgmr.msra.gmra.mxu0 %v10829_v33 }
 0x8b2   :  { %13921 = vmatprep.subr.mxu0 %v19298_v13  ;;  %13941 = vmatmul.mubr.f32.vlgmr.msra.gmra.mxu1 %v10827_v60 }
 0x8b3   :  { %13954 = vmatprep.subr.mxu1 %v19298_v13  ;;  %13922 = vmatpush3.msra.mxu0 %v18037_v35  ;;  %v12417_v35 = vld [vmem:[%s18439_s9 + $0x80] sm:$0xff] }
 0x8b4   :  { %13955 = vmatpush3.msra.mxu1 %v18017_v5  ;;  %13923 = vmatprep.subr.mxu0 %v19298_v13  ;;  %v12419_v5 = vld [vmem:[%s18439_s9 + $0x90] sm:$0xff] }
 0x8b5   :  { %13956 = vmatprep.subr.mxu1 %v19298_v13  ;;  %13924 = vmatpush3.msra.mxu0 %v18047_v58  ;;  %v18271_v4 = vand.u32 4294901760, %v12419_v5  ;;  %v11320_v58 = vand.u32 4294901760, %v11319_v37 }
 0x8b6   :  { %13957 = vmatpush3.msra.mxu1 %v18027_v61  ;;  %13925 = vmatprep.subr.mxu0 %v19298_v13  ;;  %v12418_v61 = vld [vmem:[%s18439_s9 + $0x88] sm:$0xff] }
 0x8b7   :  { %13958 = vmatprep.subr.mxu1 %v19298_v13  ;;  %13926 = vmatpush3.msra.mxu0 %v18056_v45  ;;  %v18283_v8 = vand.u32 4294901760, %v12418_v61 }
 0x8b8   :  { %13959 = vmatpush3.msra.mxu1 %v18039_v23  ;;  %13927 = vmatprep.subr.mxu0 %v19298_v13  ;;  %v18281_v23 = vsub.f32 %v11736_v25, %v18261_v21 }
 0x8b9   :  { %13960 = vmatprep.subr.mxu1 %v19298_v13  ;;  %13928 = vmatpush3.msra.mxu0 %v18064_v49 }
 0x8ba   :  { %13929 = vmatprep.mubr.msk.f32.mxu0 %vm14140_vm7, %v19298_v13  ;;  %13961 = vmatpush3.msra.mxu1 %v18049_v41  ;;  %v18291_v41 = vsub.f32 %v12419_v5, %v18271_v4  ;;  %v11844_v45 = vand.u32 4294901760, %v18281_v23 }
 0x8bb   :  { %13962 = vmatprep.mubr.msk.f32.mxu1 %vm14140_vm7, %v19298_v13  ;;  %13930 = vmatmul.mubr.f32.vlgmr.msra.gmra.mxu0 %v18114_v56 }
 0x8bc   :  { %13943 = vmatprep.subr.mxu0 %v19298_v13  ;;  %13963 = vmatmul.mubr.f32.vlgmr.msra.gmra.mxu1 %v18103_v48  ;;  %v11851_v49 = vand.u32 4294901760, %v18291_v41 }
 0x8bd   :  { %13976 = vmatprep.subr.mxu1 %v19298_v13  ;;  %13944 = vmatpush3.msra.mxu0 %v10862_v36  ;;  %v18293_v36 = vand.u32 4294901760, %v12417_v35 }
 0x8be   :  { %13977 = vmatpush3.msra.mxu1 %v11355_v19  ;;  %13945 = vmatprep.subr.mxu0 %v19298_v13  ;;  %v11852_v22 = vsub.f32 %v18291_v41, %v11851_v49 }
 0x8bf   :  { %13978 = vmatprep.subr.mxu1 %v19298_v13  ;;  %13946 = vmatpush3.msra.mxu0 %v10869_v3  ;;  %v18300_v3 = vsub.f32 %v12418_v61, %v18283_v8  ;;  %v18308_v2 = vsub.f32 %v12417_v35, %v18293_v36 }
 0x8c0   :  { %13979 = vmatpush3.msra.mxu1 %v11362_v30  ;;  %13947 = vmatprep.subr.mxu0 %v19298_v13  ;;  %v11853_v39 = vand.u32 4294901760, %v11852_v22 }
 0x8c1   :  { %13980 = vmatprep.subr.mxu1 %v19298_v13  ;;  %13948 = vmatpush3.msra.mxu0 %v10876_v6  ;;  %v11845_v6 = vsub.f32 %v18281_v23, %v11844_v45  ;;  %v11858_v43 = vand.u32 4294901760, %v18300_v3  ;;  %v11865_v55 = vand.u32 4294901760, %v18308_v2 }
 0x8c2   :  { %13981 = vmatpush3.msra.mxu1 %v11369_v20  ;;  %13949 = vmatprep.subr.mxu0 %v19298_v13 }
 0x8c3   :  { %13982 = vmatprep.subr.mxu1 %v19298_v13  ;;  %13950 = vmatpush3.msra.mxu0 %v10883_v28  ;;  %v11732_v28 = vrot.slane %v17645_v38, 4  ;;  %v11846_v38 = vand.u32 4294901760, %v11845_v6  ;;  %v11859_v54 = vsub.f32 %v18300_v3, %v11858_v43 }
 0x8c4   :  { %13951 = vmatprep.mubr.msk.f32.mxu0 %vm14140_vm7, %v19298_v13  ;;  %13983 = vmatpush3.msra.mxu1 %v11376_v17 }
 0x8c5   :  { %13984 = vmatprep.mubr.msk.f32.mxu1 %vm14140_vm7, %v19298_v13  ;;  %13952 = vmatmul.mubr.f32.vlgmr.msra.gmra.mxu0 %v18103_v48  ;;  %v11733_v51 = vsel %vm235_vm1, %v11732_v28, 0  ;;  %v11866_v48 = vsub.f32 %v18308_v2, %v11865_v55  ;;  %v11860_v50 = vand.u32 4294901760, %v11859_v54 }
 0x8c6   :  { %13965 = vmatprep.subr.mxu0 %v19298_v13  ;;  %13985 = vmatmul.mubr.f32.vlgmr.msra.gmra.mxu1 %v18225_v9  ;;  %v18347_v32 = vand.u32 4294901760, %v11733_v51 }
 0x8c7   :  { %13998 = vmatprep.subr.mxu1 %v19298_v13  ;;  %13966 = vmatpush3.msra.mxu0 %v18139_v52  ;;  %v11867_v56 = vand.u32 4294901760, %v11866_v48 }
 0x8c8   :  { %13999 = vmatpush3.msra.mxu1 %v18139_v52  ;;  %13967 = vmatprep.subr.mxu0 %v19298_v13  ;;  %v11808_v16 = vsub.f32 %v11733_v51, %v18347_v32 }
 0x8c9   :  { %14000 = vmatprep.subr.mxu1 %v19298_v13  ;;  %13968 = vmatpush3.msra.mxu0 %v18149_v47 }
 0x8ca   :  { %14001 = vmatpush3.msra.mxu1 %v18149_v47  ;;  %13969 = vmatprep.subr.mxu0 %v19298_v13  ;;  %v11809_v60 = vand.u32 4294901760, %v11808_v16 }
 0x8cb   :  { %14002 = vmatprep.subr.mxu1 %v19298_v13  ;;  %13970 = vmatpush3.msra.mxu0 %v18161_v14 }
 0x8cc   :  { %14003 = vmatpush3.msra.mxu1 %v18161_v14  ;;  %13971 = vmatprep.subr.mxu0 %v19298_v13  ;;  %v11810_v46 = vsub.f32 %v11808_v16, %v11809_v60 }
 0x8cd   :  { %14004 = vmatprep.subr.mxu1 %v19298_v13  ;;  %13972 = vmatpush3.msra.mxu0 %v18171_v15 }
 0x8ce   :  { %13973 = vmatprep.mubr.msk.f32.mxu0 %vm14140_vm7, %v19298_v13  ;;  %14005 = vmatpush3.msra.mxu1 %v18171_v15  ;;  %v11811_v40 = vand.u32 4294901760, %v11810_v46 }
 0x8cf   :  { %14006 = vmatprep.mubr.msk.f32.mxu1 %vm14140_vm7, %v19298_v13  ;;  %13974 = vmatmul.mubr.f32.vlgmr.msra.gmra.mxu0 %v11320_v58 }
 0x8d0   :  { %13987 = vmatprep.subr.mxu0 %v19298_v13  ;;  %14007 = vmatmul.mubr.f32.vlgmr.msra.gmra.mxu1 %v11318_v42 }
 0x8d1   :  { %14020 = vmatprep.subr.mxu1 %v19298_v13  ;;  %13988 = vmatpush3.msra.mxu0 %v18159_v53 }
 0x8d2   :  { %14021 = vmatpush3.msra.mxu1 %v18139_v52  ;;  %13989 = vmatprep.subr.mxu0 %v19298_v13 }
 0x8d3   :  { %14022 = vmatprep.subr.mxu1 %v19298_v13  ;;  %13990 = vmatpush3.msra.mxu0 %v18169_v12 }
 0x8d4   :  { %14023 = vmatpush3.msra.mxu1 %v18149_v47  ;;  %13991 = vmatprep.subr.mxu0 %v19298_v13 }
 0x8d5   :  { %14024 = vmatprep.subr.mxu1 %v19298_v13  ;;  %13992 = vmatpush3.msra.mxu0 %v18178_v7 }
 0x8d6   :  { %14025 = vmatpush3.msra.mxu1 %v18161_v14  ;;  %13993 = vmatprep.subr.mxu0 %v19298_v13 }
 0x8d7   :  { %14026 = vmatprep.subr.mxu1 %v19298_v13  ;;  %13994 = vmatpush3.msra.mxu0 %v18186_v11 }
 0x8d8   :  { %13995 = vmatprep.mubr.msk.f32.mxu0 %vm14140_vm7, %v19298_v13  ;;  %14027 = vmatpush3.msra.mxu1 %v18171_v15 }
 0x8d9   :  { %14028 = vmatprep.mubr.msk.f32.mxu1 %vm14140_vm7, %v19298_v13  ;;  %13996 = vmatmul.mubr.f32.vlgmr.msra.gmra.mxu0 %v18236_v29 }
 0x8da   :  { %14009 = vmatprep.subr.mxu0 %v19298_v13  ;;  %14029 = vmatmul.mubr.f32.vlgmr.msra.gmra.mxu1 %v18225_v9 }
 0x8db   :  { %14042 = vmatprep.subr.mxu1 %v19298_v13  ;;  %14010 = vmatpush3.msra.mxu0 %v11353_v10 }
 0x8dc   :  { %14043 = vmatpush3.msra.mxu1 %v11846_v38  ;;  %14011 = vmatprep.subr.mxu0 %v19298_v13 }
 0x8dd   :  { %14044 = vmatprep.subr.mxu1 %v19298_v13  ;;  %14012 = vmatpush3.msra.mxu0 %v11360_v24 }
 0x8de   :  { %14045 = vmatpush3.msra.mxu1 %v11853_v39  ;;  %14013 = vmatprep.subr.mxu0 %v19298_v13 }
 0x8df   :  { %14046 = vmatprep.subr.mxu1 %v19298_v13  ;;  %14014 = vmatpush3.msra.mxu0 %v11367_v18 }
 0x8e0   :  { %14047 = vmatpush3.msra.mxu1 %v11860_v50  ;;  %14015 = vmatprep.subr.mxu0 %v19298_v13 }
 0x8e1   :  { %14048 = vmatprep.subr.mxu1 %v19298_v13  ;;  %14016 = vmatpush3.msra.mxu0 %v11374_v62 }
 0x8e2   :  { %14017 = vmatprep.mubr.msk.f32.mxu0 %vm14140_vm7, %v19298_v13  ;;  %14049 = vmatpush3.msra.mxu1 %v11867_v56 }
 0x8e3   :  { %14050 = vmatprep.mubr.msk.f32.mxu1 %vm14140_vm7, %v19298_v13  ;;  %14018 = vmatmul.mubr.f32.vlgmr.msra.gmra.mxu0 %v18225_v9 }
 0x8e4   :  { %14031 = vmatprep.subr.mxu0 %v19298_v13  ;;  %14051 = vmatmul.mubr.f32.vlgmr.msra.gmra.mxu1 %v18347_v32 }
 0x8e5   :  { %14064 = vmatprep.subr.mxu1 %v19298_v13  ;;  %14032 = vmatpush3.msra.mxu0 %v18261_v21 }
 0x8e6   :  { %14065 = vmatpush3.msra.mxu1 %v18261_v21  ;;  %14033 = vmatprep.subr.mxu0 %v19298_v13 }
 0x8e7   :  { %14066 = vmatprep.subr.mxu1 %v19298_v13  ;;  %14034 = vmatpush3.msra.mxu0 %v18271_v4 }
 0x8e8   :  { %14067 = vmatpush3.msra.mxu1 %v18271_v4  ;;  %14035 = vmatprep.subr.mxu0 %v19298_v13 }
 0x8e9   :  { %14068 = vmatprep.subr.mxu1 %v19298_v13  ;;  %14036 = vmatpush3.msra.mxu0 %v18283_v8 }
 0x8ea   :  { %14069 = vmatpush3.msra.mxu1 %v18283_v8  ;;  %14037 = vmatprep.subr.mxu0 %v19298_v13 }
 0x8eb   :  { %14070 = vmatprep.subr.mxu1 %v19298_v13  ;;  %14038 = vmatpush3.msra.mxu0 %v18293_v36 }
 0x8ec   :  { %14039 = vmatprep.mubr.msk.f32.mxu0 %vm14140_vm7, %v19298_v13  ;;  %14071 = vmatpush3.msra.mxu1 %v18293_v36 }
 0x8ed   :  { %14072 = vmatprep.mubr.msk.f32.mxu1 %vm14140_vm7, %v19298_v13  ;;  %14040 = vmatmul.mubr.f32.vlgmr.msra.gmra.mxu0 %v11811_v40 }
 0x8ee   :  { %14053 = vmatprep.subr.mxu0 %v19298_v13  ;;  %14073 = vmatmul.mubr.f32.vlgmr.msra.gmra.mxu1 %v11809_v60 }
 0x8ef   :  { %14086 = vmatprep.subr.mxu1 %v19298_v13  ;;  %14054 = vmatpush3.msra.mxu0 %v18281_v23 }
 0x8f0   :  { %14087 = vmatpush3.msra.mxu1 %v18261_v21  ;;  %14055 = vmatprep.subr.mxu0 %v19298_v13 }
 0x8f1   :  { %14088 = vmatprep.subr.mxu1 %v19298_v13  ;;  %14056 = vmatpush3.msra.mxu0 %v18291_v41 }
 0x8f2   :  { %14089 = vmatpush3.msra.mxu1 %v18271_v4  ;;  %14057 = vmatprep.subr.mxu0 %v19298_v13  ;;  %v8934_v52 = vpop.f32.mrf.mxu1 }
 0x8f3   :  { %14090 = vmatprep.subr.mxu1 %v19298_v13  ;;  %14058 = vmatpush3.msra.mxu0 %v18300_v3 }
 0x8f4   :  { %14091 = vmatpush3.msra.mxu1 %v18283_v8  ;;  %14059 = vmatprep.subr.mxu0 %v19298_v13  ;;  %v13656_v26 = vpop.f32.mrf.mxu1 }
 0x8f5   :  { %14092 = vmatprep.subr.mxu1 %v19298_v13  ;;  %14060 = vmatpush3.msra.mxu0 %v18308_v2 }
 0x8f6   :  { %14061 = vmatprep.mubr.msk.f32.mxu0 %vm14140_vm7, %v19298_v13  ;;  %14093 = vmatpush3.msra.mxu1 %v18293_v36 }
 0x8f7   :  { %14094 = vmatprep.mubr.msk.f32.mxu1 %vm14140_vm7, %v19298_v13  ;;  %14062 = vmatmul.mubr.f32.vlgmr.msra.gmra.mxu0 %v11808_v16 }
 0x8f8   :  { %14075 = vmatprep.subr.mxu0 %v19298_v13  ;;  %14095 = vmatmul.mubr.f32.vlgmr.msra.gmra.mxu1 %v18347_v32 }
 0x8f9   :  { %14076 = vmatpush3.msra.mxu0 %v11844_v45  ;;  %14083 = vmatprep.mubr.msk.f32.mxu0 %vm14140_vm7, %v19298_v13 }
 0x8fa   :  { %14077 = vmatprep.subr.mxu0 %v19298_v13  ;;  %v9091_v59 = vpop.f32.mrf.mxu1 }
 0x8fb   :  { %14078 = vmatpush3.msra.mxu0 %v11851_v49  ;;  %v8843_v47 = vpop.f32.mrf.mxu0 }
 0x8fc   :  { %14079 = vmatprep.subr.mxu0 %v19298_v13  ;;  %v8935_v1 = vadd.f32 %v8934_v52, %v8843_v47  ;;  %v13678_v53 = vpop.f32.mrf.mxu1 }
 0x8fd   :  { %14080 = vmatpush3.msra.mxu0 %v11858_v43  ;;  %v13645_v14 = vpop.f32.mrf.mxu0 }
 0x8fe   :  { %14081 = vmatprep.subr.mxu0 %v19298_v13 }
 0x8ff   :  { %14082 = vmatpush3.msra.mxu0 %v11865_v55 }
 0x900   :  { %14084 = vmatmul.mubr.f32.vlgmr.msra.gmra.mxu0 %v18347_v32 }
 0x903   :  { %v9014_v33 = vpop.f32.mrf.mxu0 }
 0x904   :  { %v9015_v12 = vadd.f32 %v9014_v33, %v8935_v1  ;;  %v9249_v15 = vpop.f32.mrf.mxu1 }
 0x905   :  { %v13667_v10 = vpop.f32.mrf.mxu0 }
 0x906   :  { %v13700_v7 = vpop.f32.mrf.mxu1  ;;  %v9092_v24 = vadd.f32 %v9091_v59, %v9015_v12 }
 0x90d   :  { %v9174_v11 = vpop.f32.mrf.mxu0 }
 0x90e   :  { %v9175_v34 = vadd.f32 %v9174_v11, %v9092_v24  ;;  %v9435_v18 = vpop.f32.mrf.mxu1 }
 0x90f   :  { %v13689_v0 = vpop.f32.mrf.mxu0 }
 0x910   :  { %v13722_v27 = vpop.f32.mrf.mxu1  ;;  %v9250_v62 = vadd.f32 %v9249_v15, %v9175_v34 }
 0x917   :  { %v9344_v19 = vpop.f32.mrf.mxu0 }
 0x918   :  { %v9436_v31 = vadd.f32 %v9435_v18, %v9344_v19  ;;  %v9592_v13 = vpop.f32.mrf.mxu1 }
 0x919   :  { %v13711_v63 = vpop.f32.mrf.mxu0 }
 0x91a   :  { %v13744_v30 = vpop.f32.mrf.mxu1 }
 0x921   :  { %v9515_v57 = vpop.f32.mrf.mxu0 }
 0x922   :  { %v9516_v9 = vadd.f32 %v9515_v57, %v9436_v31  ;;  %v9750_v20 = vpop.f32.mrf.mxu1 }
 0x923   :  { %v13733_v17 = vpop.f32.mrf.mxu0 }
 0x924   :  { %v13766_v29 = vpop.f32.mrf.mxu1  ;;  %v9593_v44 = vadd.f32 %v9592_v13, %v9516_v9 }
 0x92b   :  { %v9675_v42 = vpop.f32.mrf.mxu0 }
 0x92c   :  { %v9676_v25 = vadd.f32 %v9675_v42, %v9593_v44  ;;  %v9936_v5 = vpop.f32.mrf.mxu1 }
 0x92d   :  { %v13755_v21 = vpop.f32.mrf.mxu0 }
 0x92e   :  { %v13788_v37 = vpop.f32.mrf.mxu1  ;;  %v9751_v61 = vadd.f32 %v9750_v20, %v9676_v25 }
 0x935   :  { %v9845_v4 = vpop.f32.mrf.mxu0 }
 0x936   :  { %v9937_v35 = vadd.f32 %v9936_v5, %v9845_v4  ;;  %v10093_v23 = vpop.f32.mrf.mxu1 }
 0x937   :  { %v13777_v8 = vpop.f32.mrf.mxu0 }
 0x938   :  { %v13810_v58 = vpop.f32.mrf.mxu1 }
 0x93f   :  { %v10016_v41 = vpop.f32.mrf.mxu0 }
 0x940   :  { %v10017_v36 = vadd.f32 %v10016_v41, %v9937_v35  ;;  %v10251_v45 = vpop.f32.mrf.mxu1 }
 0x941   :  { %v13799_v3 = vpop.f32.mrf.mxu0 }
 0x942   :  { %v13832_v49 = vpop.f32.mrf.mxu1  ;;  %v10094_v2 = vadd.f32 %v10093_v23, %v10017_v36 }
 0x949   :  { %v10176_v6 = vpop.f32.mrf.mxu0 }
 0x94a   :  { %v10177_v43 = vadd.f32 %v10176_v6, %v10094_v2  ;;  %v10432_v28 = vpop.f32.mrf.mxu1 }
 0x94b   :  { %v13821_v22 = vpop.f32.mrf.mxu0 }
 0x94c   :  { %v13854_v55 = vpop.f32.mrf.mxu1  ;;  %v10252_v38 = vadd.f32 %v10251_v45, %v10177_v43 }
 0x953   :  { %v10341_v54 = vpop.f32.mrf.mxu0 }
 0x954   :  { %v10433_v51 = vadd.f32 %v10432_v28, %v10341_v54  ;;  %v10589_v39 = vpop.f32.mrf.mxu1 }
 0x955   :  { %v13843_v48 = vpop.f32.mrf.mxu0 }
 0x956   :  { %v13876_v32 = vpop.f32.mrf.mxu1 }
 0x95d   :  { %v10512_v50 = vpop.f32.mrf.mxu0 }
 0x95e   :  { %v10513_v56 = vadd.f32 %v10512_v50, %v10433_v51  ;;  %v10747_v16 = vpop.f32.mrf.mxu1 }
 0x95f   :  { %v13865_v60 = vpop.f32.mrf.mxu0 }
 0x960   :  { %v13898_v46 = vpop.f32.mrf.mxu1  ;;  %v10590_v40 = vadd.f32 %v10589_v39, %v10513_v56  ;;  %v12226_v60 = vld [vmem:[%s18440_s10] sm:$0x1] }
 0x967   :  { %v10672_v52 = vpop.f32.mrf.mxu0 }
 0x968   :  { %v10673_v26 = vadd.f32 %v10672_v52, %v10590_v40  ;;  %v10922_v59 = vpop.f32.mrf.mxu1 }
 0x969   :  { %v13887_v47 = vpop.f32.mrf.mxu0 }
 0x96a   :  { %v10748_v1 = vadd.f32 %v10747_v16, %v10673_v26  ;;  %v13920_v53 = vpop.f32.mrf.mxu1 }
 0x971   :  { %v10831_v14 = vpop.f32.mrf.mxu0 }
 0x972   :  { %v10832_v33 = vadd.f32 %v10831_v14, %v9250_v62  ;;  %v11079_v12 = vpop.f32.mrf.mxu1 }
 0x973   :  { %v13909_v15 = vpop.f32.mrf.mxu0 }
 0x974   :  { %v13942_v10 = vpop.f32.mrf.mxu1  ;;  %v10923_v7 = vadd.f32 %v10922_v59, %v10832_v33 }
 0x97b   :  { %v11002_v24 = vpop.f32.mrf.mxu0 }
 0x97c   :  { %v11003_v11 = vadd.f32 %v11002_v24, %v10923_v7  ;;  %v11237_v34 = vpop.f32.mrf.mxu1 }
 0x97d   :  { %v13931_v18 = vpop.f32.mrf.mxu0 }
 0x97e   :  { %v13964_v0 = vpop.f32.mrf.mxu1  ;;  %v11080_v27 = vadd.f32 %v11079_v12, %v11003_v11 }
 0x985   :  { %v11162_v19 = vpop.f32.mrf.mxu0 }
 0x986   :  { %v11163_v31 = vadd.f32 %v11162_v19, %v11080_v27  ;;  %v11413_v13 = vpop.f32.mrf.mxu1 }
 0x987   :  { %v13953_v63 = vpop.f32.mrf.mxu0 }
 0x988   :  { %v11238_v30 = vadd.f32 %v11237_v34, %v11163_v31  ;;  %v13986_v57 = vpop.f32.mrf.mxu1 }
 0x98f   :  { %v11322_v9 = vpop.f32.mrf.mxu0 }
 0x990   :  { %v11570_v20 = vpop.f32.mrf.mxu1  ;;  %v11323_v29 = vadd.f32 %v11322_v9, %v9751_v61 }
 0x991   :  { %v13975_v17 = vpop.f32.mrf.mxu0 }
 0x992   :  { %v14008_v62 = vpop.f32.mrf.mxu1  ;;  %v11414_v5 = vadd.f32 %v11413_v13, %v11323_v29 }
 0x999   :  { %v11493_v44 = vpop.f32.mrf.mxu0 }
 0x99a   :  { %v11728_v42 = vpop.f32.mrf.mxu1  ;;  %v11494_v37 = vadd.f32 %v11493_v44, %v11414_v5 }
 0x99b   :  { %v13997_v25 = vpop.f32.mrf.mxu0 }
 0x99c   :  { %v14030_v21 = vpop.f32.mrf.mxu1  ;;  %v11571_v4 = vadd.f32 %v11570_v20, %v11494_v37 }
 0x9a3   :  { %v11653_v35 = vpop.f32.mrf.mxu0 }
 0x9a4   :  { %v11654_v23 = vadd.f32 %v11653_v35, %v11571_v4  ;;  %v11904_v8 = vpop.f32.mrf.mxu1 }
 0x9a5   :  { %v14019_v58 = vpop.f32.mrf.mxu0 }
 0x9a6   :  { %v11729_v41 = vadd.f32 %v11728_v42, %v11654_v23  ;;  %v14052_v36 = vpop.f32.mrf.mxu1 }
 0x9a8   :  { %v12223_v45 = vadd.f32 %v11729_v41, %v11238_v30 }
 0x9ad   :  { %v11813_v3 = vpop.f32.mrf.mxu0 }
 0x9ae   :  { %v12061_v49 = vpop.f32.mrf.mxu1  ;;  %v11814_v43 = vadd.f32 %v11813_v3, %v10252_v38 }
 0x9af   :  { %v14041_v2 = vpop.f32.mrf.mxu0 }
 0x9b0   :  { %v14074_v6 = vpop.f32.mrf.mxu1  ;;  %v11905_v22 = vadd.f32 %v11904_v8, %v11814_v43 }
 0x9b7   :  { %v11984_v61 = vpop.f32.mrf.mxu0 }
 0x9b8   :  { %v12219_v28 = vpop.f32.mrf.mxu1  ;;  %v11985_v51 = vadd.f32 %v11984_v61, %v11905_v22 }
 0x9b9   :  { %v14063_v55 = vpop.f32.mrf.mxu0 }
 0x9ba   :  { %v14096_v54 = vpop.f32.mrf.mxu1  ;;  %v12062_v39 = vadd.f32 %v12061_v49, %v11985_v51 }
 0x9c0   :  { %v12144_v48 = vpop.f32.mrf.mxu0 }
 0x9c1   :  { %v12145_v32 = vadd.f32 %v12144_v48, %v12062_v39 }
 0x9c2   :  { %v14085_v50 = vpop.f32.mrf.mxu0 }
 0x9c3   :  { %v12220_v56 = vadd.f32 %v12219_v28, %v12145_v32 }
 0x9c5   :  { %v12224_v16 = vadd.f32 %v12220_v56, %v10748_v1 }
 0x9c7   :  { %v12225_v46 = vadd.f32 %v12224_v16, %v12223_v45 }
 0x9c9   :  { %v12227_v38 = vadd.f32 %v12226_v60, %v12225_v46 }
 0x9cb   :  { %12229 = vst.msk [vmem:[#allocation2] sm:$0x1] %vm12228_vm10, %v12227_v38 }
 0x9cc   :  { %14120 = shalt.err (!%p14117_p4)
}
 0x9cd   :  { %12239 = dma.vmem_to_hbm [thread:$0]  %s12237_s18, 16, %s18441_s11, [#allocation3]  }
 0x9ce   :  { %14129 = dma.done.wait [#allocation3], 16  }
 0x9cf   :  { %14130 = vsyncadd [#allocation3], 4294967280 }
 0x9d0   :  { %12243 = vsyncpa [#allocation3], 1 }

</bundles_post_ra>
